<compile_context>
chip_gen: v7x
topology: tpu7x:2x2x1
jax: 0.10.0
libtpu: 0.0.40
codegen_flags: <defaults>
</compile_context>

<pallas_src>
import functools

import jax
import jax.numpy as jnp
from jax.experimental import pallas as pl
from jax.experimental.pallas import tpu as pltpu

NUM_CLASSES = 10
EMBED_DIM = 16
C_IN = 1 + EMBED_DIM          # 17 channels into conv1
C1_OUT = 64
C2_OUT = 128
H_IN = W_IN = 28
FC_H = FC_W = 7               # spatial size after the two stride-2 convs
K1_RAW = 25 * C_IN            # 425 = 5x5 union patch x 17 channels
K1 = 512                      # zero-padded to a lane-aligned contraction dim
N1 = 4 * C1_OUT               # 256 = 4 stride-2 parity blocks x 64 channels


# ------------------------------ Pallas kernel -------------------------------

def _fused_disc_kernel(patch_ref, w1_ref, b1_ref, mask_ref, w2_ref, b2_ref,
                       fcw_ref, fcb_ref, o_ref, h1_ref, acc_ref):
    """Full forward for one block of BB images (grid axis = batch blocks).

    patch_ref: (BB*64, 512) bf16  conv1 "union" patches, one row per sd cell
                                  (b, i, j) of the padded conv1 output grid.
    w1_ref   : (512, 256)   bf16  conv1 weight, 4 parity column blocks.
    b1_ref   : (1, 256)     f32   conv1 bias tiled over the 4 parity blocks.
    mask_ref : (BB*64, 256) bf16  1 where the sd cell/parity is a real h1 pixel,
                                  0 on the zero border (= conv2's padding).
    w2_ref   : (576, 128)   bf16  conv2 weight, 9 row blocks of (cin=64, cout).
    b2_ref   : (1, 128)     f32
    fcw_ref  : (64, 128)    f32   fc weight in (oh*8+ow, cout) order, 0 on the
                                  garbage rows (ow==7 or oh==7).
    fcb_ref  : (1, 1)       f32
    o_ref    : (1, 1, BB)   f32   sigmoid(logit) for the BB images of the block.
    h1_ref   : (BB*64+16, 256) bf16 VMEM  conv1 output, space-to-depth by 2,
                                  flattened (b*64 + i*8 + j) rows + zero tail.
    acc_ref  : (BB*64, 128) f32 VMEM  conv2 accumulator.
    """
    BB = o_ref.shape[-1]
    M = BB * 64                       # rows of the conv2 matmul
    tail = h1_ref.shape[0] - M

    # ---- conv1: a single (M, 512) @ (512, 256) MXU matmul for the block ------
    raw = jnp.dot(patch_ref[...], w1_ref[...],
                  preferred_element_type=jnp.float32)          # (M, 256) f32
    h1 = raw + b1_ref[...]
    h1 = jnp.where(h1 >= 0.0, h1, 0.2 * h1)                    # LeakyReLU(0.2)
    h1 = h1 * mask_ref[...]                                    # zero h1_pad border
    h1_ref[pl.ds(0, M), :] = h1.astype(jnp.bfloat16)
    h1_ref[pl.ds(M, tail), :] = jnp.zeros((tail, h1_ref.shape[1]), jnp.bfloat16)

    # ---- conv2: 9 K-accumulating dots on the flattened sd scratch ------------
    # Output row m = b*64 + oh*8 + ow; tap (kh,kw) reads row m + (kh//2)*8+(kw//2)
    # and lane block ((kh%2)*2 + kw%2)*64.  Rows with ow==7 / oh==7 are garbage
    # and are zero-weighted in fcw.
    for kh in range(3):
        for kw in range(3):
            off = (kh // 2) * 8 + (kw // 2)          # 0, 1, 8, 9
            blk = (kh % 2) * 2 + (kw % 2)            # parity lane block
            slab = h1_ref[pl.ds(off, M), pl.ds(blk * C1_OUT, C1_OUT)]   # (M, 64)
            wblk = w2_ref[pl.ds((kh * 3 + kw) * C1_OUT, C1_OUT), :]     # (64, 128)
            part = jnp.dot(slab, wblk, preferred_element_type=jnp.float32)
            if kh == 0 and kw == 0:
                acc_ref[...] = part
            else:
                acc_ref[...] += part

    # ---- bias + LeakyReLU + N=1 fc (VPU multiply-reduce) + sigmoid ----------
    b2 = b2_ref[...]
    fcw = fcw_ref[...]
    parts = []
    for b in range(BB):
        hb = acc_ref[pl.ds(b * 64, 64), :] + b2                # (64, 128)
        hb = jnp.where(hb >= 0.0, hb, 0.2 * hb)
        s = jnp.sum(jnp.sum(hb * fcw, axis=1, keepdims=True),
                    axis=0, keepdims=True)                      # (1, 1)
        parts.append(s)
    logit = jnp.concatenate(parts, axis=1) + fcb_ref[...]       # (1, BB)
    o_ref[...] = (1.0 / (1.0 + jnp.exp(-logit))).reshape(1, 1, BB)


# ------------------------------- wrappers ------------------------------------

def init_params(key):
    """Deterministic synthetic parameters with the module's (PyTorch) shapes."""
    ks = jax.random.split(key, 7)
    return {
        "embed":   jax.random.normal(ks[0], (NUM_CLASSES, EMBED_DIM), jnp.float32),
        "conv1_w": jax.random.normal(ks[1], (C1_OUT, C_IN, 3, 3), jnp.float32) * 0.05,
        "conv1_b": jax.random.normal(ks[2], (C1_OUT,), jnp.float32) * 0.05,
        "conv2_w": jax.random.normal(ks[3], (C2_OUT, C1_OUT, 3, 3), jnp.float32) * 0.05,
        "conv2_b": jax.random.normal(ks[4], (C2_OUT,), jnp.float32) * 0.05,
        "fc_w":    jax.random.normal(ks[5], (1, C2_OUT * FC_H * FC_W), jnp.float32) * 0.01,
        "fc_b":    jax.random.normal(ks[6], (1,), jnp.float32) * 0.01,
    }


def prepare_params(params):
    """One-time re-layout of the PyTorch-style parameters for the fused kernel."""
    # conv1 block weight: W1[(dh*5+dw)*17 + c, (p*2+q)*64 + o] = w1[o, c, dh-2p, dw-2q]
    w1 = params["conv1_w"]                                     # (64, 17, 3, 3)
    w1_big = jnp.zeros((K1, N1), jnp.float32)
    for p in range(2):
        for q in range(2):
            for kh in range(3):
                for kw in range(3):
                    dh, dw = kh + 2 * p, kw + 2 * q
                    r0 = (dh * 5 + dw) * C_IN
                    c0 = (p * 2 + q) * C1_OUT
                    w1_big = w1_big.at[r0:r0 + C_IN, c0:c0 + C1_OUT].set(
                        jnp.transpose(w1[:, :, kh, kw]))       # (17, 64)
    w1_big = w1_big.astype(jnp.bfloat16)
    b1 = jnp.tile(params["conv1_b"], 4).reshape(1, N1)

    # validity mask of the zero-padded 16x16 h1 grid, in sd layout (64 cells x 256)
    cell = jnp.arange(64)
    ci, cj = cell // 8, cell % 8
    lane = jnp.arange(N1)
    lp, lq = (lane // C1_OUT) // 2, (lane // C1_OUT) % 2
    r = 2 * ci[:, None] + lp[None, :]
    c = 2 * cj[:, None] + lq[None, :]
    mask64 = ((r >= 1) & (r <= 14) & (c >= 1) & (c <= 14)).astype(jnp.bfloat16)

    w2 = jnp.transpose(params["conv2_w"], (2, 3, 1, 0))        # (3,3,64,128)
    w2 = w2.reshape(9 * C1_OUT, C2_OUT).astype(jnp.bfloat16)
    b2 = params["conv2_b"].reshape(1, C2_OUT)

    # fc weight in (oh*8+ow, cout) order (torch flatten order baked in); the
    # ow==7 / oh==7 rows correspond to garbage conv2 output rows -> zero.
    fc = params["fc_w"].reshape(C2_OUT, FC_H, FC_W)            # (128, 7, 7)
    fcw = jnp.zeros((8, 8, C2_OUT), jnp.float32)
    fcw = fcw.at[:FC_H, :FC_W, :].set(jnp.transpose(fc, (1, 2, 0)))
    fcw = fcw.reshape(64, C2_OUT)
    fcb = params["fc_b"].reshape(1, 1)

    return {"embed": params["embed"], "w1": w1_big, "b1": b1, "mask64": mask64,
            "w2": w2, "b2": b2, "fcw": fcw, "fcb": fcb}


@functools.partial(jax.jit, static_argnames=("block_batch",))
def conditional_discriminator(prep, x_nchw, labels, block_batch=8):
    assert x_nchw.shape[1:] == (1, H_IN, W_IN)
    B = x_nchw.shape[0]
    BB = block_batch
    Bpad = ((B + BB - 1) // BB) * BB
    G = Bpad // BB

    # Embedding lookup + broadcast + channel concat (tiny XLA glue, jit-fused),
    # cast to bf16 immediately so all downstream HBM traffic is halved.
    lbl = prep["embed"][labels]                                      # (B, 16)
    x = jnp.transpose(x_nchw, (0, 2, 3, 1))                          # (B, 28, 28, 1)
    lbl_map = jnp.broadcast_to(lbl[:, None, None, :], (B, H_IN, W_IN, EMBED_DIM))
    xc = jnp.concatenate([x, lbl_map], axis=-1).astype(jnp.bfloat16) # (B, 28, 28, 17)
    if Bpad != B:
        xc = jnp.pad(xc, ((0, Bpad - B), (0, 0), (0, 0), (0, 0)))

    # 5x5 / stride-4 "union" patches: one row per space-to-depth cell (i, j) of
    # the padded conv1 output grid; last dim ordered (dh, dw, cin), zero-padded
    # to the lane-aligned contraction dim K1.
    xp = jnp.pad(xc, ((0, 0), (3, 2), (3, 2), (0, 0)))               # (Bpad, 33, 33, 17)
    taps = [xp[:, dh:dh + 29:4, dw:dw + 29:4, :]
            for dh in range(5) for dw in range(5)]
    patch = jnp.concatenate(taps, axis=-1)                           # (Bpad, 8, 8, 425)
    patch = jnp.pad(patch, ((0, 0), (0, 0), (0, 0), (0, K1 - K1_RAW)))
    patch = patch.reshape(Bpad * 64, K1)                             # bf16

    mask = jnp.tile(prep["mask64"], (BB, 1))                         # (BB*64, 256)

    out = pl.pallas_call(
        _fused_disc_kernel,
        out_shape=jax.ShapeDtypeStruct((G, 1, BB), jnp.float32),
        grid=(G,),
        in_specs=[
            pl.BlockSpec((BB * 64, K1), lambda g: (g, 0)),           # patches
            pl.BlockSpec((K1, N1), lambda g: (0, 0)),                # W1 block mat
            pl.BlockSpec((1, N1), lambda g: (0, 0)),                 # b1
            pl.BlockSpec((BB * 64, N1), lambda g: (0, 0)),           # border mask
            pl.BlockSpec((9 * C1_OUT, C2_OUT), lambda g: (0, 0)),    # W2
            pl.BlockSpec((1, C2_OUT), lambda g: (0, 0)),             # b2
            pl.BlockSpec((64, C2_OUT), lambda g: (0, 0)),            # fc weight
            pl.BlockSpec((1, 1), lambda g: (0, 0)),                  # fc bias
        ],
        out_specs=pl.BlockSpec((1, 1, BB), lambda g: (g, 0, 0)),
        scratch_shapes=[
            pltpu.VMEM((BB * 64 + 16, N1), jnp.bfloat16),            # h1 (sd layout)
            pltpu.VMEM((BB * 64, C2_OUT), jnp.float32),              # conv2 acc
        ],
        compiler_params=pltpu.CompilerParams(
            dimension_semantics=("parallel",)),                      # v7x megacore
    )(patch, prep["w1"], prep["b1"], mask, prep["w2"], prep["b2"],
      prep["fcw"], prep["fcb"])

    return out.reshape(Bpad, 1)[:B]


def reference_forward(params, x_nchw, labels):
    """Pure-JAX (XLA, f32) reference replicating the PyTorch forward."""
    B, _, H, W = x_nchw.shape
    lbl = params["embed"][labels][:, :, None, None]
    lbl = jnp.broadcast_to(lbl, (B, EMBED_DIM, H, W))
    x = jnp.concatenate([x_nchw, lbl], axis=1)

    def conv(v, w, b):
        y = jax.lax.conv_general_dilated(
            v, w, window_strides=(2, 2), padding=((1, 1), (1, 1)),
            dimension_numbers=("NCHW", "OIHW", "NCHW"))
        return y + b[None, :, None, None]

    lrelu = lambda v: jnp.where(v >= 0, v, 0.2 * v)
    h1 = lrelu(conv(x, params["conv1_w"], params["conv1_b"]))
    h2 = lrelu(conv(h1, params["conv2_w"], params["conv2_b"]))
    flat = h2.reshape(B, -1)
    return jax.nn.sigmoid(flat @ params["fc_w"].T + params["fc_b"])


if __name__ == "__main__":
    key = jax.random.PRNGKey(0)
    kp, kx, kl = jax.random.split(key, 3)

    params = init_params(kp)
    prep = prepare_params(params)

    # 28x28 spatial is required by the module (fc expects 128*7*7).  B=12 pads
    # to 16 -> two grid blocks of 8 images (exercises padding and grid > 1).
    B = 12
    x = jax.random.normal(kx, (B, 1, H_IN, W_IN), jnp.float32)
    labels = jax.random.randint(kl, (B,), 0, NUM_CLASSES)

    out = conditional_discriminator(prep, x, labels)
    out = jax.block_until_ready(out)

    ref = reference_forward(params, x, labels)
    assert out.shape == (B, 1)
    assert jnp.allclose(out, ref, atol=3e-3, rtol=3e-3), (out, ref)

    print("KERNEL_OK")
</pallas_src>

<mosaic_0001>
module attributes {stable_mosaic.version = 11 : i64} {
  func.func @_fused_disc_kernel(%arg0: i32, %arg1: memref<512x512xbf16, #tpu.memory_space<vmem>>, %arg2: memref<512x256xbf16, #tpu.memory_space<vmem>>, %arg3: memref<1x256xf32, #tpu.memory_space<vmem>>, %arg4: memref<512x256xbf16, #tpu.memory_space<vmem>>, %arg5: memref<576x128xbf16, #tpu.memory_space<vmem>>, %arg6: memref<1x128xf32, #tpu.memory_space<vmem>>, %arg7: memref<64x128xf32, #tpu.memory_space<vmem>>, %arg8: memref<1x1xf32, #tpu.memory_space<vmem>>, %arg9: memref<1x1x8xf32, #tpu.memory_space<vmem>>, %arg10: memref<528x256xbf16, #tpu.memory_space<vmem>>, %arg11: memref<512x128xf32, #tpu.memory_space<vmem>>) attributes {dimension_semantics = [#tpu.dimension_semantics<parallel>], iteration_bounds = array<i64: 2>, scalar_prefetch = 0 : i64, scratch_operands = 2 : i64, tpu.core_type = #tpu.core_type<tc>, window_params = [{transform_indices = @transform_0, window_bounds = array<i64: 512, 512>}, {pipeline_mode = #tpu.pipeline_mode<synchronous>, transform_indices = @transform_1, window_bounds = array<i64: 512, 256>}, {pipeline_mode = #tpu.pipeline_mode<synchronous>, transform_indices = @transform_2, window_bounds = array<i64: 1, 256>}, {pipeline_mode = #tpu.pipeline_mode<synchronous>, transform_indices = @transform_3, window_bounds = array<i64: 512, 256>}, {pipeline_mode = #tpu.pipeline_mode<synchronous>, transform_indices = @transform_4, window_bounds = array<i64: 576, 128>}, {pipeline_mode = #tpu.pipeline_mode<synchronous>, transform_indices = @transform_5, window_bounds = array<i64: 1, 128>}, {pipeline_mode = #tpu.pipeline_mode<synchronous>, transform_indices = @transform_6, window_bounds = array<i64: 64, 128>}, {pipeline_mode = #tpu.pipeline_mode<synchronous>, transform_indices = @transform_7, window_bounds = array<i64: 1, 1>}, {transform_indices = @transform_8, window_bounds = array<i64: 1, 1, 8>}]} {
    %c0 = arith.constant 0 : index
    %c0_0 = arith.constant 0 : index
    %0 = vector.load %arg1[%c0, %c0_0] : memref<512x512xbf16, #tpu.memory_space<vmem>>, vector<512x512xbf16>
    %c0_1 = arith.constant 0 : index
    %c0_2 = arith.constant 0 : index
    %1 = vector.load %arg2[%c0_1, %c0_2] : memref<512x256xbf16, #tpu.memory_space<vmem>>, vector<512x256xbf16>
    %cst = arith.constant dense<0.000000e+00> : vector<512x256xf32>
    %2 = tpu.matmul %0, %1, %cst {dimension_numbers = #tpu.dot_dimension_numbers<[1], [0], [0], [1], [0, 0, 1, 1], [], []>} : vector<512x512xbf16>, vector<512x256xbf16>, vector<512x256xf32> -> vector<512x256xf32>
    %c0_3 = arith.constant 0 : index
    %c0_4 = arith.constant 0 : index
    %3 = vector.load %arg3[%c0_3, %c0_4] : memref<1x256xf32, #tpu.memory_space<vmem>>, vector<1x256xf32>
    %4 = vector.broadcast %3 : vector<1x256xf32> to vector<512x256xf32>
    %5 = arith.addf %2, %4 : vector<512x256xf32>
    %cst_5 = arith.constant 0.000000e+00 : f32
    %6 = vector.broadcast %cst_5 : f32 to vector<512x256xf32>
    %7 = arith.cmpf oge, %5, %6 : vector<512x256xf32>
    %cst_6 = arith.constant 2.000000e-01 : f32
    %8 = vector.broadcast %cst_6 : f32 to vector<512x256xf32>
    %9 = arith.mulf %8, %5 : vector<512x256xf32>
    %10 = arith.select %7, %5, %9 : vector<512x256xi1>, vector<512x256xf32>
    %c0_7 = arith.constant 0 : index
    %c0_8 = arith.constant 0 : index
    %11 = vector.load %arg4[%c0_7, %c0_8] : memref<512x256xbf16, #tpu.memory_space<vmem>>, vector<512x256xbf16>
    %12 = arith.extf %11 : vector<512x256xbf16> to vector<512x256xf32>
    %13 = arith.mulf %10, %12 : vector<512x256xf32>
    %14 = arith.truncf %13 : vector<512x256xf32> to vector<512x256xbf16>
    %c0_9 = arith.constant 0 : index
    %c0_10 = arith.constant 0 : index
    %15 = vector.load %arg10[%c0_9, %c0_10] : memref<528x256xbf16, #tpu.memory_space<vmem>>, vector<512x256xbf16>
    tpu.vector_store %arg10[%c0_9, %c0_10], %14 {strides = array<i32>} : memref<528x256xbf16, #tpu.memory_space<vmem>>, vector<512x256xbf16>,
    %cst_11 = arith.constant 0.000000e+00 : bf16
    %16 = vector.broadcast %cst_11 : bf16 to vector<16x256xbf16>
    %c512 = arith.constant 512 : index
    %c0_12 = arith.constant 0 : index
    %17 = vector.load %arg10[%c512, %c0_12] : memref<528x256xbf16, #tpu.memory_space<vmem>>, vector<16x256xbf16>
    tpu.vector_store %arg10[%c512, %c0_12], %16 {strides = array<i32>} : memref<528x256xbf16, #tpu.memory_space<vmem>>, vector<16x256xbf16>,
    %c0_13 = arith.constant 0 : index
    %c0_14 = arith.constant 0 : index
    %18 = vector.load %arg10[%c0_13, %c0_14] : memref<528x256xbf16, #tpu.memory_space<vmem>>, vector<512x64xbf16>
    %c0_15 = arith.constant 0 : index
    %c0_16 = arith.constant 0 : index
    %19 = vector.load %arg5[%c0_15, %c0_16] : memref<576x128xbf16, #tpu.memory_space<vmem>>, vector<64x128xbf16>
    %cst_17 = arith.constant dense<0.000000e+00> : vector<512x128xf32>
    %20 = tpu.matmul %18, %19, %cst_17 {dimension_numbers = #tpu.dot_dimension_numbers<[1], [0], [0], [1], [0, 0, 1, 1], [], []>} : vector<512x64xbf16>, vector<64x128xbf16>, vector<512x128xf32> -> vector<512x128xf32>
    %c0_18 = arith.constant 0 : index
    %c0_19 = arith.constant 0 : index
    %21 = vector.load %arg11[%c0_18, %c0_19] : memref<512x128xf32, #tpu.memory_space<vmem>>, vector<512x128xf32>
    tpu.vector_store %arg11[%c0_18, %c0_19], %20 {strides = array<i32>} : memref<512x128xf32, #tpu.memory_space<vmem>>, vector<512x128xf32>,
    %c0_20 = arith.constant 0 : index
    %c64 = arith.constant 64 : index
    %22 = vector.load %arg10[%c0_20, %c64] : memref<528x256xbf16, #tpu.memory_space<vmem>>, vector<512x64xbf16>
    %c64_21 = arith.constant 64 : index
    %c0_22 = arith.constant 0 : index
    %23 = vector.load %arg5[%c64_21, %c0_22] : memref<576x128xbf16, #tpu.memory_space<vmem>>, vector<64x128xbf16>
    %cst_23 = arith.constant dense<0.000000e+00> : vector<512x128xf32>
    %24 = tpu.matmul %22, %23, %cst_23 {dimension_numbers = #tpu.dot_dimension_numbers<[1], [0], [0], [1], [0, 0, 1, 1], [], []>} : vector<512x64xbf16>, vector<64x128xbf16>, vector<512x128xf32> -> vector<512x128xf32>
    %c0_24 = arith.constant 0 : index
    %c0_25 = arith.constant 0 : index
    %25 = vector.load %arg11[%c0_24, %c0_25] : memref<512x128xf32, #tpu.memory_space<vmem>>, vector<512x128xf32>
    %26 = arith.addf %25, %24 : vector<512x128xf32>
    %c0_26 = arith.constant 0 : index
    %c0_27 = arith.constant 0 : index
    %27 = vector.load %arg11[%c0_26, %c0_27] : memref<512x128xf32, #tpu.memory_space<vmem>>, vector<512x128xf32>
    tpu.vector_store %arg11[%c0_26, %c0_27], %26 {strides = array<i32>} : memref<512x128xf32, #tpu.memory_space<vmem>>, vector<512x128xf32>,
    %c1 = arith.constant 1 : index
    %c0_28 = arith.constant 0 : index
    %28 = vector.load %arg10[%c1, %c0_28] : memref<528x256xbf16, #tpu.memory_space<vmem>>, vector<512x64xbf16>
    %c128 = arith.constant 128 : index
    %c0_29 = arith.constant 0 : index
    %29 = vector.load %arg5[%c128, %c0_29] : memref<576x128xbf16, #tpu.memory_space<vmem>>, vector<64x128xbf16>
    %cst_30 = arith.constant dense<0.000000e+00> : vector<512x128xf32>
    %30 = tpu.matmul %28, %29, %cst_30 {dimension_numbers = #tpu.dot_dimension_numbers<[1], [0], [0], [1], [0, 0, 1, 1], [], []>} : vector<512x64xbf16>, vector<64x128xbf16>, vector<512x128xf32> -> vector<512x128xf32>
    %c0_31 = arith.constant 0 : index
    %c0_32 = arith.constant 0 : index
    %31 = vector.load %arg11[%c0_31, %c0_32] : memref<512x128xf32, #tpu.memory_space<vmem>>, vector<512x128xf32>
    %32 = arith.addf %31, %30 : vector<512x128xf32>
    %c0_33 = arith.constant 0 : index
    %c0_34 = arith.constant 0 : index
    %33 = vector.load %arg11[%c0_33, %c0_34] : memref<512x128xf32, #tpu.memory_space<vmem>>, vector<512x128xf32>
    tpu.vector_store %arg11[%c0_33, %c0_34], %32 {strides = array<i32>} : memref<512x128xf32, #tpu.memory_space<vmem>>, vector<512x128xf32>,
    %c0_35 = arith.constant 0 : index
    %c128_36 = arith.constant 128 : index
    %34 = vector.load %arg10[%c0_35, %c128_36] : memref<528x256xbf16, #tpu.memory_space<vmem>>, vector<512x64xbf16>
    %c192 = arith.constant 192 : index
    %c0_37 = arith.constant 0 : index
    %35 = vector.load %arg5[%c192, %c0_37] : memref<576x128xbf16, #tpu.memory_space<vmem>>, vector<64x128xbf16>
    %cst_38 = arith.constant dense<0.000000e+00> : vector<512x128xf32>
    %36 = tpu.matmul %34, %35, %cst_38 {dimension_numbers = #tpu.dot_dimension_numbers<[1], [0], [0], [1], [0, 0, 1, 1], [], []>} : vector<512x64xbf16>, vector<64x128xbf16>, vector<512x128xf32> -> vector<512x128xf32>
    %c0_39 = arith.constant 0 : index
    %c0_40 = arith.constant 0 : index
    %37 = vector.load %arg11[%c0_39, %c0_40] : memref<512x128xf32, #tpu.memory_space<vmem>>, vector<512x128xf32>
    %38 = arith.addf %37, %36 : vector<512x128xf32>
    %c0_41 = arith.constant 0 : index
    %c0_42 = arith.constant 0 : index
    %39 = vector.load %arg11[%c0_41, %c0_42] : memref<512x128xf32, #tpu.memory_space<vmem>>, vector<512x128xf32>
    tpu.vector_store %arg11[%c0_41, %c0_42], %38 {strides = array<i32>} : memref<512x128xf32, #tpu.memory_space<vmem>>, vector<512x128xf32>,
    %c0_43 = arith.constant 0 : index
    %c192_44 = arith.constant 192 : index
    %40 = vector.load %arg10[%c0_43, %c192_44] : memref<528x256xbf16, #tpu.memory_space<vmem>>, vector<512x64xbf16>
    %c256 = arith.constant 256 : index
    %c0_45 = arith.constant 0 : index
    %41 = vector.load %arg5[%c256, %c0_45] : memref<576x128xbf16, #tpu.memory_space<vmem>>, vector<64x128xbf16>
    %cst_46 = arith.constant dense<0.000000e+00> : vector<512x128xf32>
    %42 = tpu.matmul %40, %41, %cst_46 {dimension_numbers = #tpu.dot_dimension_numbers<[1], [0], [0], [1], [0, 0, 1, 1], [], []>} : vector<512x64xbf16>, vector<64x128xbf16>, vector<512x128xf32> -> vector<512x128xf32>
    %c0_47 = arith.constant 0 : index
    %c0_48 = arith.constant 0 : index
    %43 = vector.load %arg11[%c0_47, %c0_48] : memref<512x128xf32, #tpu.memory_space<vmem>>, vector<512x128xf32>
    %44 = arith.addf %43, %42 : vector<512x128xf32>
    %c0_49 = arith.constant 0 : index
    %c0_50 = arith.constant 0 : index
    %45 = vector.load %arg11[%c0_49, %c0_50] : memref<512x128xf32, #tpu.memory_space<vmem>>, vector<512x128xf32>
    tpu.vector_store %arg11[%c0_49, %c0_50], %44 {strides = array<i32>} : memref<512x128xf32, #tpu.memory_space<vmem>>, vector<512x128xf32>,
    %c1_51 = arith.constant 1 : index
    %c128_52 = arith.constant 128 : index
    %46 = vector.load %arg10[%c1_51, %c128_52] : memref<528x256xbf16, #tpu.memory_space<vmem>>, vector<512x64xbf16>
    %c320 = arith.constant 320 : index
    %c0_53 = arith.constant 0 : index
    %47 = vector.load %arg5[%c320, %c0_53] : memref<576x128xbf16, #tpu.memory_space<vmem>>, vector<64x128xbf16>
    %cst_54 = arith.constant dense<0.000000e+00> : vector<512x128xf32>
    %48 = tpu.matmul %46, %47, %cst_54 {dimension_numbers = #tpu.dot_dimension_numbers<[1], [0], [0], [1], [0, 0, 1, 1], [], []>} : vector<512x64xbf16>, vector<64x128xbf16>, vector<512x128xf32> -> vector<512x128xf32>
    %c0_55 = arith.constant 0 : index
    %c0_56 = arith.constant 0 : index
    %49 = vector.load %arg11[%c0_55, %c0_56] : memref<512x128xf32, #tpu.memory_space<vmem>>, vector<512x128xf32>
    %50 = arith.addf %49, %48 : vector<512x128xf32>
    %c0_57 = arith.constant 0 : index
    %c0_58 = arith.constant 0 : index
    %51 = vector.load %arg11[%c0_57, %c0_58] : memref<512x128xf32, #tpu.memory_space<vmem>>, vector<512x128xf32>
    tpu.vector_store %arg11[%c0_57, %c0_58], %50 {strides = array<i32>} : memref<512x128xf32, #tpu.memory_space<vmem>>, vector<512x128xf32>,
    %c8 = arith.constant 8 : index
    %c0_59 = arith.constant 0 : index
    %52 = vector.load %arg10[%c8, %c0_59] : memref<528x256xbf16, #tpu.memory_space<vmem>>, vector<512x64xbf16>
    %c384 = arith.constant 384 : index
    %c0_60 = arith.constant 0 : index
    %53 = vector.load %arg5[%c384, %c0_60] : memref<576x128xbf16, #tpu.memory_space<vmem>>, vector<64x128xbf16>
    %cst_61 = arith.constant dense<0.000000e+00> : vector<512x128xf32>
    %54 = tpu.matmul %52, %53, %cst_61 {dimension_numbers = #tpu.dot_dimension_numbers<[1], [0], [0], [1], [0, 0, 1, 1], [], []>} : vector<512x64xbf16>, vector<64x128xbf16>, vector<512x128xf32> -> vector<512x128xf32>
    %c0_62 = arith.constant 0 : index
    %c0_63 = arith.constant 0 : index
    %55 = vector.load %arg11[%c0_62, %c0_63] : memref<512x128xf32, #tpu.memory_space<vmem>>, vector<512x128xf32>
    %56 = arith.addf %55, %54 : vector<512x128xf32>
    %c0_64 = arith.constant 0 : index
    %c0_65 = arith.constant 0 : index
    %57 = vector.load %arg11[%c0_64, %c0_65] : memref<512x128xf32, #tpu.memory_space<vmem>>, vector<512x128xf32>
    tpu.vector_store %arg11[%c0_64, %c0_65], %56 {strides = array<i32>} : memref<512x128xf32, #tpu.memory_space<vmem>>, vector<512x128xf32>,
    %c8_66 = arith.constant 8 : index
    %c64_67 = arith.constant 64 : index
    %58 = vector.load %arg10[%c8_66, %c64_67] : memref<528x256xbf16, #tpu.memory_space<vmem>>, vector<512x64xbf16>
    %c448 = arith.constant 448 : index
    %c0_68 = arith.constant 0 : index
    %59 = vector.load %arg5[%c448, %c0_68] : memref<576x128xbf16, #tpu.memory_space<vmem>>, vector<64x128xbf16>
    %cst_69 = arith.constant dense<0.000000e+00> : vector<512x128xf32>
    %60 = tpu.matmul %58, %59, %cst_69 {dimension_numbers = #tpu.dot_dimension_numbers<[1], [0], [0], [1], [0, 0, 1, 1], [], []>} : vector<512x64xbf16>, vector<64x128xbf16>, vector<512x128xf32> -> vector<512x128xf32>
    %c0_70 = arith.constant 0 : index
    %c0_71 = arith.constant 0 : index
    %61 = vector.load %arg11[%c0_70, %c0_71] : memref<512x128xf32, #tpu.memory_space<vmem>>, vector<512x128xf32>
    %62 = arith.addf %61, %60 : vector<512x128xf32>
    %c0_72 = arith.constant 0 : index
    %c0_73 = arith.constant 0 : index
    %63 = vector.load %arg11[%c0_72, %c0_73] : memref<512x128xf32, #tpu.memory_space<vmem>>, vector<512x128xf32>
    tpu.vector_store %arg11[%c0_72, %c0_73], %62 {strides = array<i32>} : memref<512x128xf32, #tpu.memory_space<vmem>>, vector<512x128xf32>,
    %c9 = arith.constant 9 : index
    %c0_74 = arith.constant 0 : index
    %64 = vector.load %arg10[%c9, %c0_74] : memref<528x256xbf16, #tpu.memory_space<vmem>>, vector<512x64xbf16>
    %c512_75 = arith.constant 512 : index
    %c0_76 = arith.constant 0 : index
    %65 = vector.load %arg5[%c512_75, %c0_76] : memref<576x128xbf16, #tpu.memory_space<vmem>>, vector<64x128xbf16>
    %cst_77 = arith.constant dense<0.000000e+00> : vector<512x128xf32>
    %66 = tpu.matmul %64, %65, %cst_77 {dimension_numbers = #tpu.dot_dimension_numbers<[1], [0], [0], [1], [0, 0, 1, 1], [], []>} : vector<512x64xbf16>, vector<64x128xbf16>, vector<512x128xf32> -> vector<512x128xf32>
    %c0_78 = arith.constant 0 : index
    %c0_79 = arith.constant 0 : index
    %67 = vector.load %arg11[%c0_78, %c0_79] : memref<512x128xf32, #tpu.memory_space<vmem>>, vector<512x128xf32>
    %68 = arith.addf %67, %66 : vector<512x128xf32>
    %c0_80 = arith.constant 0 : index
    %c0_81 = arith.constant 0 : index
    %69 = vector.load %arg11[%c0_80, %c0_81] : memref<512x128xf32, #tpu.memory_space<vmem>>, vector<512x128xf32>
    tpu.vector_store %arg11[%c0_80, %c0_81], %68 {strides = array<i32>} : memref<512x128xf32, #tpu.memory_space<vmem>>, vector<512x128xf32>,
    %c0_82 = arith.constant 0 : index
    %c0_83 = arith.constant 0 : index
    %70 = vector.load %arg6[%c0_82, %c0_83] : memref<1x128xf32, #tpu.memory_space<vmem>>, vector<1x128xf32>
    %c0_84 = arith.constant 0 : index
    %c0_85 = arith.constant 0 : index
    %71 = vector.load %arg7[%c0_84, %c0_85] : memref<64x128xf32, #tpu.memory_space<vmem>>, vector<64x128xf32>
    %c0_86 = arith.constant 0 : index
    %c0_87 = arith.constant 0 : index
    %72 = vector.load %arg11[%c0_86, %c0_87] : memref<512x128xf32, #tpu.memory_space<vmem>>, vector<64x128xf32>
    %73 = vector.broadcast %70 : vector<1x128xf32> to vector<64x128xf32>
    %74 = arith.addf %72, %73 : vector<64x128xf32>
    %cst_88 = arith.constant 0.000000e+00 : f32
    %75 = vector.broadcast %cst_88 : f32 to vector<64x128xf32>
    %76 = arith.cmpf oge, %74, %75 : vector<64x128xf32>
    %cst_89 = arith.constant 2.000000e-01 : f32
    %77 = vector.broadcast %cst_89 : f32 to vector<64x128xf32>
    %78 = arith.mulf %77, %74 : vector<64x128xf32>
    %79 = arith.select %76, %74, %78 : vector<64x128xi1>, vector<64x128xf32>
    %80 = arith.mulf %79, %71 : vector<64x128xf32>
    %cst_90 = arith.constant dense<0.000000e+00> : vector<64xf32>
    %81 = vector.multi_reduction <add>, %80, %cst_90 [1] : vector<64x128xf32> to vector<64xf32>
    %82 = vector.shape_cast %81 : vector<64xf32> to vector<64x1xf32>
    %cst_91 = arith.constant dense<0.000000e+00> : vector<1xf32>
    %83 = vector.multi_reduction <add>, %82, %cst_91 [0] : vector<64x1xf32> to vector<1xf32>
    %84 = vector.shape_cast %83 : vector<1xf32> to vector<1x1xf32>
    %c64_92 = arith.constant 64 : index
    %c0_93 = arith.constant 0 : index
    %85 = vector.load %arg11[%c64_92, %c0_93] : memref<512x128xf32, #tpu.memory_space<vmem>>, vector<64x128xf32>
    %86 = vector.broadcast %70 : vector<1x128xf32> to vector<64x128xf32>
    %87 = arith.addf %85, %86 : vector<64x128xf32>
    %cst_94 = arith.constant 0.000000e+00 : f32
    %88 = vector.broadcast %cst_94 : f32 to vector<64x128xf32>
    %89 = arith.cmpf oge, %87, %88 : vector<64x128xf32>
    %cst_95 = arith.constant 2.000000e-01 : f32
    %90 = vector.broadcast %cst_95 : f32 to vector<64x128xf32>
    %91 = arith.mulf %90, %87 : vector<64x128xf32>
    %92 = arith.select %89, %87, %91 : vector<64x128xi1>, vector<64x128xf32>
    %93 = arith.mulf %92, %71 : vector<64x128xf32>
    %cst_96 = arith.constant dense<0.000000e+00> : vector<64xf32>
    %94 = vector.multi_reduction <add>, %93, %cst_96 [1] : vector<64x128xf32> to vector<64xf32>
    %95 = vector.shape_cast %94 : vector<64xf32> to vector<64x1xf32>
    %cst_97 = arith.constant dense<0.000000e+00> : vector<1xf32>
    %96 = vector.multi_reduction <add>, %95, %cst_97 [0] : vector<64x1xf32> to vector<1xf32>
    %97 = vector.shape_cast %96 : vector<1xf32> to vector<1x1xf32>
    %c128_98 = arith.constant 128 : index
    %c0_99 = arith.constant 0 : index
    %98 = vector.load %arg11[%c128_98, %c0_99] : memref<512x128xf32, #tpu.memory_space<vmem>>, vector<64x128xf32>
    %99 = vector.broadcast %70 : vector<1x128xf32> to vector<64x128xf32>
    %100 = arith.addf %98, %99 : vector<64x128xf32>
    %cst_100 = arith.constant 0.000000e+00 : f32
    %101 = vector.broadcast %cst_100 : f32 to vector<64x128xf32>
    %102 = arith.cmpf oge, %100, %101 : vector<64x128xf32>
    %cst_101 = arith.constant 2.000000e-01 : f32
    %103 = vector.broadcast %cst_101 : f32 to vector<64x128xf32>
    %104 = arith.mulf %103, %100 : vector<64x128xf32>
    %105 = arith.select %102, %100, %104 : vector<64x128xi1>, vector<64x128xf32>
    %106 = arith.mulf %105, %71 : vector<64x128xf32>
    %cst_102 = arith.constant dense<0.000000e+00> : vector<64xf32>
    %107 = vector.multi_reduction <add>, %106, %cst_102 [1] : vector<64x128xf32> to vector<64xf32>
    %108 = vector.shape_cast %107 : vector<64xf32> to vector<64x1xf32>
    %cst_103 = arith.constant dense<0.000000e+00> : vector<1xf32>
    %109 = vector.multi_reduction <add>, %108, %cst_103 [0] : vector<64x1xf32> to vector<1xf32>
    %110 = vector.shape_cast %109 : vector<1xf32> to vector<1x1xf32>
    %c192_104 = arith.constant 192 : index
    %c0_105 = arith.constant 0 : index
    %111 = vector.load %arg11[%c192_104, %c0_105] : memref<512x128xf32, #tpu.memory_space<vmem>>, vector<64x128xf32>
    %112 = vector.broadcast %70 : vector<1x128xf32> to vector<64x128xf32>
    %113 = arith.addf %111, %112 : vector<64x128xf32>
    %cst_106 = arith.constant 0.000000e+00 : f32
    %114 = vector.broadcast %cst_106 : f32 to vector<64x128xf32>
    %115 = arith.cmpf oge, %113, %114 : vector<64x128xf32>
    %cst_107 = arith.constant 2.000000e-01 : f32
    %116 = vector.broadcast %cst_107 : f32 to vector<64x128xf32>
    %117 = arith.mulf %116, %113 : vector<64x128xf32>
    %118 = arith.select %115, %113, %117 : vector<64x128xi1>, vector<64x128xf32>
    %119 = arith.mulf %118, %71 : vector<64x128xf32>
    %cst_108 = arith.constant dense<0.000000e+00> : vector<64xf32>
    %120 = vector.multi_reduction <add>, %119, %cst_108 [1] : vector<64x128xf32> to vector<64xf32>
    %121 = vector.shape_cast %120 : vector<64xf32> to vector<64x1xf32>
    %cst_109 = arith.constant dense<0.000000e+00> : vector<1xf32>
    %122 = vector.multi_reduction <add>, %121, %cst_109 [0] : vector<64x1xf32> to vector<1xf32>
    %123 = vector.shape_cast %122 : vector<1xf32> to vector<1x1xf32>
    %c256_110 = arith.constant 256 : index
    %c0_111 = arith.constant 0 : index
    %124 = vector.load %arg11[%c256_110, %c0_111] : memref<512x128xf32, #tpu.memory_space<vmem>>, vector<64x128xf32>
    %125 = vector.broadcast %70 : vector<1x128xf32> to vector<64x128xf32>
    %126 = arith.addf %124, %125 : vector<64x128xf32>
    %cst_112 = arith.constant 0.000000e+00 : f32
    %127 = vector.broadcast %cst_112 : f32 to vector<64x128xf32>
    %128 = arith.cmpf oge, %126, %127 : vector<64x128xf32>
    %cst_113 = arith.constant 2.000000e-01 : f32
    %129 = vector.broadcast %cst_113 : f32 to vector<64x128xf32>
    %130 = arith.mulf %129, %126 : vector<64x128xf32>
    %131 = arith.select %128, %126, %130 : vector<64x128xi1>, vector<64x128xf32>
    %132 = arith.mulf %131, %71 : vector<64x128xf32>
    %cst_114 = arith.constant dense<0.000000e+00> : vector<64xf32>
    %133 = vector.multi_reduction <add>, %132, %cst_114 [1] : vector<64x128xf32> to vector<64xf32>
    %134 = vector.shape_cast %133 : vector<64xf32> to vector<64x1xf32>
    %cst_115 = arith.constant dense<0.000000e+00> : vector<1xf32>
    %135 = vector.multi_reduction <add>, %134, %cst_115 [0] : vector<64x1xf32> to vector<1xf32>
    %136 = vector.shape_cast %135 : vector<1xf32> to vector<1x1xf32>
    %c320_116 = arith.constant 320 : index
    %c0_117 = arith.constant 0 : index
    %137 = vector.load %arg11[%c320_116, %c0_117] : memref<512x128xf32, #tpu.memory_space<vmem>>, vector<64x128xf32>
    %138 = vector.broadcast %70 : vector<1x128xf32> to vector<64x128xf32>
    %139 = arith.addf %137, %138 : vector<64x128xf32>
    %cst_118 = arith.constant 0.000000e+00 : f32
    %140 = vector.broadcast %cst_118 : f32 to vector<64x128xf32>
    %141 = arith.cmpf oge, %139, %140 : vector<64x128xf32>
    %cst_119 = arith.constant 2.000000e-01 : f32
    %142 = vector.broadcast %cst_119 : f32 to vector<64x128xf32>
    %143 = arith.mulf %142, %139 : vector<64x128xf32>
    %144 = arith.select %141, %139, %143 : vector<64x128xi1>, vector<64x128xf32>
    %145 = arith.mulf %144, %71 : vector<64x128xf32>
    %cst_120 = arith.constant dense<0.000000e+00> : vector<64xf32>
    %146 = vector.multi_reduction <add>, %145, %cst_120 [1] : vector<64x128xf32> to vector<64xf32>
    %147 = vector.shape_cast %146 : vector<64xf32> to vector<64x1xf32>
    %cst_121 = arith.constant dense<0.000000e+00> : vector<1xf32>
    %148 = vector.multi_reduction <add>, %147, %cst_121 [0] : vector<64x1xf32> to vector<1xf32>
    %149 = vector.shape_cast %148 : vector<1xf32> to vector<1x1xf32>
    %c384_122 = arith.constant 384 : index
    %c0_123 = arith.constant 0 : index
    %150 = vector.load %arg11[%c384_122, %c0_123] : memref<512x128xf32, #tpu.memory_space<vmem>>, vector<64x128xf32>
    %151 = vector.broadcast %70 : vector<1x128xf32> to vector<64x128xf32>
    %152 = arith.addf %150, %151 : vector<64x128xf32>
    %cst_124 = arith.constant 0.000000e+00 : f32
    %153 = vector.broadcast %cst_124 : f32 to vector<64x128xf32>
    %154 = arith.cmpf oge, %152, %153 : vector<64x128xf32>
    %cst_125 = arith.constant 2.000000e-01 : f32
    %155 = vector.broadcast %cst_125 : f32 to vector<64x128xf32>
    %156 = arith.mulf %155, %152 : vector<64x128xf32>
    %157 = arith.select %154, %152, %156 : vector<64x128xi1>, vector<64x128xf32>
    %158 = arith.mulf %157, %71 : vector<64x128xf32>
    %cst_126 = arith.constant dense<0.000000e+00> : vector<64xf32>
    %159 = vector.multi_reduction <add>, %158, %cst_126 [1] : vector<64x128xf32> to vector<64xf32>
    %160 = vector.shape_cast %159 : vector<64xf32> to vector<64x1xf32>
    %cst_127 = arith.constant dense<0.000000e+00> : vector<1xf32>
    %161 = vector.multi_reduction <add>, %160, %cst_127 [0] : vector<64x1xf32> to vector<1xf32>
    %162 = vector.shape_cast %161 : vector<1xf32> to vector<1x1xf32>
    %c448_128 = arith.constant 448 : index
    %c0_129 = arith.constant 0 : index
    %163 = vector.load %arg11[%c448_128, %c0_129] : memref<512x128xf32, #tpu.memory_space<vmem>>, vector<64x128xf32>
    %164 = vector.broadcast %70 : vector<1x128xf32> to vector<64x128xf32>
    %165 = arith.addf %163, %164 : vector<64x128xf32>
    %cst_130 = arith.constant 0.000000e+00 : f32
    %166 = vector.broadcast %cst_130 : f32 to vector<64x128xf32>
    %167 = arith.cmpf oge, %165, %166 : vector<64x128xf32>
    %cst_131 = arith.constant 2.000000e-01 : f32
    %168 = vector.broadcast %cst_131 : f32 to vector<64x128xf32>
    %169 = arith.mulf %168, %165 : vector<64x128xf32>
    %170 = arith.select %167, %165, %169 : vector<64x128xi1>, vector<64x128xf32>
    %171 = arith.mulf %170, %71 : vector<64x128xf32>
    %cst_132 = arith.constant dense<0.000000e+00> : vector<64xf32>
    %172 = vector.multi_reduction <add>, %171, %cst_132 [1] : vector<64x128xf32> to vector<64xf32>
    %173 = vector.shape_cast %172 : vector<64xf32> to vector<64x1xf32>
    %cst_133 = arith.constant dense<0.000000e+00> : vector<1xf32>
    %174 = vector.multi_reduction <add>, %173, %cst_133 [0] : vector<64x1xf32> to vector<1xf32>
    %175 = vector.shape_cast %174 : vector<1xf32> to vector<1x1xf32>
    %176 = tpu.concatenate %84, %97, %110, %123, %136, %149, %162, %175 in 1 : vector<1x1xf32>, vector<1x1xf32>, vector<1x1xf32>, vector<1x1xf32>, vector<1x1xf32>, vector<1x1xf32>, vector<1x1xf32>, vector<1x1xf32> -> vector<1x8xf32>
    %c0_134 = arith.constant 0 : index
    %c0_135 = arith.constant 0 : index
    %177 = vector.load %arg8[%c0_134, %c0_135] : memref<1x1xf32, #tpu.memory_space<vmem>>, vector<1x1xf32>
    %178 = vector.broadcast %177 : vector<1x1xf32> to vector<1x8xf32>
    %179 = arith.addf %176, %178 : vector<1x8xf32>
    %cst_136 = arith.constant 0.000000e+00 : f32
    %180 = vector.broadcast %cst_136 : f32 to vector<1x8xf32>
    %181 = arith.subf %180, %179 : vector<1x8xf32>
    %182 = math.exp %181 : vector<1x8xf32>
    %cst_137 = arith.constant 1.000000e+00 : f32
    %183 = vector.broadcast %cst_137 : f32 to vector<1x8xf32>
    %184 = arith.addf %183, %182 : vector<1x8xf32>
    %cst_138 = arith.constant 1.000000e+00 : f32
    %185 = vector.broadcast %cst_138 : f32 to vector<1x8xf32>
    %186 = arith.divf %185, %184 : vector<1x8xf32>
    %187 = vector.shape_cast %186 : vector<1x8xf32> to vector<1x1x8xf32>
    %c0_139 = arith.constant 0 : index
    %c0_140 = arith.constant 0 : index
    %c0_141 = arith.constant 0 : index
    %188 = vector.load %arg9[%c0_139, %c0_140, %c0_141] : memref<1x1x8xf32, #tpu.memory_space<vmem>>, vector<1x1x8xf32>
    tpu.vector_store %arg9[%c0_139, %c0_140, %c0_141], %187 {strides = array<i32>} : memref<1x1x8xf32, #tpu.memory_space<vmem>>, vector<1x1x8xf32>,
    return
  }
  func.func @transform_0(%arg0: i32) -> (i32, i32) {
    %c0_i32 = arith.constant 0 : i32
    %c0_i32_0 = arith.constant 0 : i32
    return %arg0, %c0_i32 : i32, i32
  }
  func.func @transform_1(%arg0: i32) -> (i32, i32) {
    %c0_i32 = arith.constant 0 : i32
    %c0_i32_0 = arith.constant 0 : i32
    %c0_i32_1 = arith.constant 0 : i32
    return %c0_i32, %c0_i32_0 : i32, i32
  }
  func.func @transform_2(%arg0: i32) -> (i32, i32) {
    %c0_i32 = arith.constant 0 : i32
    %c0_i32_0 = arith.constant 0 : i32
    %c0_i32_1 = arith.constant 0 : i32
    return %c0_i32, %c0_i32_0 : i32, i32
  }
  func.func @transform_3(%arg0: i32) -> (i32, i32) {
    %c0_i32 = arith.constant 0 : i32
    %c0_i32_0 = arith.constant 0 : i32
    %c0_i32_1 = arith.constant 0 : i32
    return %c0_i32, %c0_i32_0 : i32, i32
  }
  func.func @transform_4(%arg0: i32) -> (i32, i32) {
    %c0_i32 = arith.constant 0 : i32
    %c0_i32_0 = arith.constant 0 : i32
    %c0_i32_1 = arith.constant 0 : i32
    return %c0_i32, %c0_i32_0 : i32, i32
  }
  func.func @transform_5(%arg0: i32) -> (i32, i32) {
    %c0_i32 = arith.constant 0 : i32
    %c0_i32_0 = arith.constant 0 : i32
    %c0_i32_1 = arith.constant 0 : i32
    return %c0_i32, %c0_i32_0 : i32, i32
  }
  func.func @transform_6(%arg0: i32) -> (i32, i32) {
    %c0_i32 = arith.constant 0 : i32
    %c0_i32_0 = arith.constant 0 : i32
    %c0_i32_1 = arith.constant 0 : i32
    return %c0_i32, %c0_i32_0 : i32, i32
  }
  func.func @transform_7(%arg0: i32) -> (i32, i32) {
    %c0_i32 = arith.constant 0 : i32
    %c0_i32_0 = arith.constant 0 : i32
    %c0_i32_1 = arith.constant 0 : i32
    return %c0_i32, %c0_i32_0 : i32, i32
  }
  func.func @transform_8(%arg0: i32) -> (i32, i32, i32) {
    %c0_i32 = arith.constant 0 : i32
    %c0_i32_0 = arith.constant 0 : i32
    %c0_i32_1 = arith.constant 0 : i32
    return %arg0, %c0_i32, %c0_i32_0 : i32, i32, i32
  }
}

</mosaic_0001>

<bundles_post_ra>
// kernel: conditional_discriminator.1
= control target key start
LH: loop header
LB: loop body
LE: loop exit
PB: predicated region body
PF: predicated region fallthrough
CT: control target
= control target key end

     0   :  { %s13360_s29 = smov 0   ;;  %s16010_s0 = inlined_call_operand.vmem [shape: bf16[1024,512], index: 0, kind: input, shape index: {}]   ;;  %s16011_s1 = inlined_call_operand.vmem [shape: bf16[512,256], index: 1, kind: input, shape index: {}]   ;;  %s16012_s2 = inlined_call_operand.vmem [shape: f32[1,256], index: 2, kind: input, shape index: {}]   ;;  %s16013_s3 = inlined_call_operand.vmem [shape: bf16[512,256], index: 3, kind: input, shape index: {}]   ;;  %s16014_s4 = inlined_call_operand.vmem [shape: bf16[576,128], index: 4, kind: input, shape index: {}]   ;;  %s16015_s5 = inlined_call_operand.vmem [shape: f32[1,128], index: 5, kind: input, shape index: {}]   ;;  %s16016_s6 = inlined_call_operand.vmem [shape: f32[64,128], index: 6, kind: input, shape index: {}]   ;;  %s16017_s7 = inlined_call_operand.<no memory space> [shape: f32[1,1], index: 7, kind: input, shape index: {}]   ;;  %s16018_s8 = inlined_call_operand.vmem [shape: f32[2,1,8], index: 8, kind: output, shape index: {}]  }
   0x1   :  { %v13_v0 = vstv %s16017_s7 }
   0x2   :  { %14 = vst [vmem:[#allocation4] sm:$0x1] %v13_v0 }
   0x3 LB: > { %s13366_s30 = sadd.s32 4294967295, %s13308_s29   ;;  %p10647_p0 = scmp.ge.s32.totalorder %s13308_s29, 1  ;;  %s13308_s29 = sphi %s13360_s29, %s20_s29  }
   0x4   : > { %p266_p1 = scmp.lt.s32.totalorder %s13308_s29, 3 }
   0x6   : > { %p267_p2 = pnand %p10647_p0, %p266_p1 }
   0x8   : > { %270 = sbr.rel (%p267_p2) target bundleno = 2009 (0x7d9), region = 52 }
   0xf   : > { %v12931_v1 = vld [vmem:[%s16011_s1 + $0x4] ss:$8 sps:$4 sm:$0xff]   ;;  %v12933_v2 = vld [vmem:[%s16011_s1] ss:$8 sps:$4 sm:$0xff]   ;;  %v12934_v3 = vld [vmem:[%s16011_s1 + $0x14] ss:$8 sps:$4 sm:$0xff]  }
  0x10   : > { %1474 = vmatprep.subr.bf16.mxu0 %v12931_v1  ;;  %v12936_v4 = vld [vmem:[%s16011_s1 + $0x10] ss:$8 sps:$4 sm:$0xff]   ;;  %v12937_v5 = vld [vmem:[%s16011_s1 + $0x24] ss:$8 sps:$4 sm:$0xff]   ;;  %s10648_s18 = sshll.u32 %s13366_s30, 6  ;;  %s13310_s26 = smov 64  }
  0x11   : > { %1475 = vmatpush1.bf16.msra.mxu0 %v12933_v2  ;;  %v12939_v6 = vld [vmem:[%s16011_s1 + $0x20] ss:$8 sps:$4 sm:$0xff]   ;;  %v12940_v7 = vld [vmem:[%s16011_s1 + $0x34] ss:$8 sps:$4 sm:$0xff]   ;;  %p300_p3 = scmp.lt.s32.totalorder %s10648_s18, 127  ;;  %p306_p4 = scmp.lt.s32.totalorder %s13366_s30, 1 }
  0x12   : > { %1476 = vmatprep.subr.bf16.mxu0 %v12934_v3  ;;  %v12942_v8 = vld [vmem:[%s16011_s1 + $0x30] ss:$8 sps:$4 sm:$0xff]   ;;  %v12943_v9 = vld [vmem:[%s16011_s1 + $0x44] ss:$8 sps:$4 sm:$0xff]   ;;  %v12945_v10 = vld [vmem:[%s16011_s1 + $0x40] ss:$8 sps:$4 sm:$0xff]  }
  0x13   : > { %s16230_s18 = smov (!%p300_p3, %s10648_s18), 127  ;;  %v12946_v11 = vld [vmem:[%s16011_s1 + $0x54] ss:$8 sps:$4 sm:$0xff]   ;;  %v12948_v12 = vld [vmem:[%s16011_s1 + $0x50] ss:$8 sps:$4 sm:$0xff]   ;;  %s16232_s30 = smov (!%p306_p4, %s13366_s30), 1 }
  0x14   : > { %s11170_s7 = sshll.u32 %s16230_s18, 4  ;;  %v12949_v13 = vld [vmem:[%s16011_s1 + $0x64] ss:$8 sps:$4 sm:$0xff]   ;;  %v12951_v15 = vld [vmem:[%s16011_s1 + $0x60] ss:$8 sps:$4 sm:$0xff]   ;;  %s308_s10 = scalar_lea.vmem %s16018_s8, %s16232_s30 }
  0x15   : > { %1477 = vmatpush1.bf16.msra.mxu0 %v12936_v4  ;;  %s13410_s15 = scalar_lea.vmem %s16010_s0, %s11170_s7  ;;  %v12952_v16 = vld [vmem:[%s16011_s1 + $0x74] ss:$8 sps:$4 sm:$0xff]   ;;  %v12954_v17 = vld [vmem:[%s16011_s1 + $0x70] ss:$8 sps:$4 sm:$0xff]   ;;  %v12955_v18 = vld [vmem:[%s16011_s1 + $0x84] ss:$8 sps:$4 sm:$0xff]  }
  0x16   : > { %1478 = vmatprep.subr.bf16.mxu0 %v12937_v5  ;;  %v12981_v14 = vld [vmem:[%s13410_s15 + $0x4] ss:$16 sps:$4 sm:$0xff]   ;;  %v12957_v19 = vld [vmem:[%s16011_s1 + $0x80] ss:$8 sps:$4 sm:$0xff]   ;;  %v12960_v21 = vld [vmem:[%s16011_s1 + $0x90] ss:$8 sps:$4 sm:$0xff]  }
  0x17   : > { %1506 = vmatprep.mubr.bf16.mxu0 %v12981_v14  ;;  %v12958_v20 = vld [vmem:[%s16011_s1 + $0x94] ss:$8 sps:$4 sm:$0xff]   ;;  %v12961_v22 = vld [vmem:[%s16011_s1 + $0xa4] ss:$8 sps:$4 sm:$0xff]   ;;  %v12963_v23 = vld [vmem:[%s16011_s1 + $0xa0] ss:$8 sps:$4 sm:$0xff]  }
  0x18   : > { %v12964_v24 = vld [vmem:[%s16011_s1 + $0xb4] ss:$8 sps:$4 sm:$0xff]   ;;  %v12966_v25 = vld [vmem:[%s16011_s1 + $0xb0] ss:$8 sps:$4 sm:$0xff]   ;;  %v12967_v26 = vld [vmem:[%s16011_s1 + $0xc4] ss:$8 sps:$4 sm:$0xff]  }
  0x19   : > { %1479 = vmatpush1.bf16.msra.mxu0 %v12939_v6  ;;  %v12969_v27 = vld [vmem:[%s16011_s1 + $0xc0] ss:$8 sps:$4 sm:$0xff]   ;;  %v12970_v28 = vld [vmem:[%s16011_s1 + $0xd4] ss:$8 sps:$4 sm:$0xff]   ;;  %v12972_v29 = vld [vmem:[%s16011_s1 + $0xd0] ss:$8 sps:$4 sm:$0xff]  }
  0x1a   : > { %1480 = vmatprep.subr.bf16.mxu0 %v12940_v7  ;;  %v12973_v30 = vld [vmem:[%s16011_s1 + $0xe4] ss:$8 sps:$4 sm:$0xff]   ;;  %v12975_v31 = vld [vmem:[%s16011_s1 + $0xe0] ss:$8 sps:$4 sm:$0xff]   ;;  %v12976_v32 = vld [vmem:[%s16011_s1 + $0xf4] ss:$8 sps:$4 sm:$0xff]  }
  0x1b   : > { %v12978_v33 = vld [vmem:[%s16011_s1 + $0xf0] ss:$8 sps:$4 sm:$0xff]   ;;  %v12984_v34 = vld [vmem:[%s16011_s1 + $0x104] ss:$8 sps:$4 sm:$0xff]   ;;  %v12982_v36 = vld [vmem:[%s16011_s1 + $0x100] ss:$8 sps:$4 sm:$0xff]  }
  0x1c   : > { %v12979_v35 = vld [vmem:[%s13410_s15] ss:$16 sps:$4 sm:$0xff]   ;;  %v12985_v37 = vld [vmem:[%s13410_s15 + $0x24] ss:$16 sps:$4 sm:$0xff]  }
  0x1d   : > { %1481 = vmatpush1.bf16.msra.mxu0 %v12942_v8  ;;  %v12993_v38 = vld [vmem:[%s16011_s1 + $0x114] ss:$8 sps:$4 sm:$0xff]   ;;  %v12991_v39 = vld [vmem:[%s16011_s1 + $0x110] ss:$8 sps:$4 sm:$0xff]   ;;  %v13002_v40 = vld [vmem:[%s16011_s1 + $0x124] ss:$8 sps:$4 sm:$0xff]  }
  0x1e   : > { %1482 = vmatprep.subr.bf16.mxu0 %v12943_v9  ;;  %v12987_v41 = vld [vmem:[%s13410_s15 + $0x20] ss:$16 sps:$4 sm:$0xff]   ;;  %v12988_v42 = vld [vmem:[%s13410_s15 + $0x44] ss:$16 sps:$4 sm:$0xff]  }
  0x1f   : > { %v13000_v43 = vld [vmem:[%s16011_s1 + $0x120] ss:$8 sps:$4 sm:$0xff]   ;;  %v13011_v44 = vld [vmem:[%s16011_s1 + $0x134] ss:$8 sps:$4 sm:$0xff]   ;;  %v13009_v45 = vld [vmem:[%s16011_s1 + $0x130] ss:$8 sps:$4 sm:$0xff]  }
  0x20   : > { %v13020_v46 = vld [vmem:[%s16011_s1 + $0x144] ss:$8 sps:$4 sm:$0xff]   ;;  %v12990_v47 = vld [vmem:[%s13410_s15 + $0x40] ss:$16 sps:$4 sm:$0xff]   ;;  %v13029_v50 = vld [vmem:[%s16011_s1 + $0x154] ss:$8 sps:$4 sm:$0xff]  }
  0x21   : > { %1483 = vmatpush1.bf16.msra.mxu0 %v12945_v10  ;;  %v12994_v48 = vld [vmem:[%s13410_s15 + $0x64] ss:$16 sps:$4 sm:$0xff]   ;;  %v13018_v49 = vld [vmem:[%s16011_s1 + $0x140] ss:$8 sps:$4 sm:$0xff]   ;;  %v13027_v51 = vld [vmem:[%s16011_s1 + $0x150] ss:$8 sps:$4 sm:$0xff]  }
  0x22   : > { %1484 = vmatprep.subr.bf16.mxu0 %v12946_v11  ;;  %v13038_v52 = vld [vmem:[%s16011_s1 + $0x164] ss:$8 sps:$4 sm:$0xff]   ;;  %v12996_v53 = vld [vmem:[%s13410_s15 + $0x60] ss:$16 sps:$4 sm:$0xff]   ;;  %v13047_v56 = vld [vmem:[%s16011_s1 + $0x174] ss:$8 sps:$4 sm:$0xff]  }
  0x23   : > { %v12997_v54 = vld [vmem:[%s13410_s15 + $0x84] ss:$16 sps:$4 sm:$0xff]   ;;  %v13036_v55 = vld [vmem:[%s16011_s1 + $0x160] ss:$8 sps:$4 sm:$0xff]   ;;  %v13045_v57 = vld [vmem:[%s16011_s1 + $0x170] ss:$8 sps:$4 sm:$0xff]  }
  0x24   : > { %v13056_v58 = vld [vmem:[%s16011_s1 + $0x184] ss:$8 sps:$4 sm:$0xff]   ;;  %v12999_v59 = vld [vmem:[%s13410_s15 + $0x80] ss:$16 sps:$4 sm:$0xff]   ;;  %v13065_v62 = vld [vmem:[%s16011_s1 + $0x194] ss:$8 sps:$4 sm:$0xff]  }
  0x25   : > { %1485 = vmatpush1.bf16.msra.mxu0 %v12948_v12  ;;  %v13003_v60 = vld [vmem:[%s13410_s15 + $0xa4] ss:$16 sps:$4 sm:$0xff]   ;;  %v13054_v61 = vld [vmem:[%s16011_s1 + $0x180] ss:$8 sps:$4 sm:$0xff]   ;;  %v13063_v63 = vld [vmem:[%s16011_s1 + $0x190] ss:$8 sps:$4 sm:$0xff]  }
  0x26   : > { %1486 = vmatprep.subr.bf16.mxu0 %v12949_v13  ;;  %v13074_v0 = vld [vmem:[%s16011_s1 + $0x1a4] ss:$8 sps:$4 sm:$0xff]   ;;  %v13005_v1 = vld [vmem:[%s13410_s15 + $0xa0] ss:$16 sps:$4 sm:$0xff]   ;;  %v13083_v7 = vld [vmem:[%s16011_s1 + $0x1b4] ss:$8 sps:$4 sm:$0xff]  }
  0x27   : > { %v13006_v2 = vld [vmem:[%s13410_s15 + $0xc4] ss:$16 sps:$4 sm:$0xff]   ;;  %v13072_v3 = vld [vmem:[%s16011_s1 + $0x1a0] ss:$8 sps:$4 sm:$0xff]   ;;  %v13081_v6 = vld [vmem:[%s16011_s1 + $0x1b0] ss:$8 sps:$4 sm:$0xff]  }
  0x28   : > { %v13008_v4 = vld [vmem:[%s13410_s15 + $0xc0] ss:$16 sps:$4 sm:$0xff]   ;;  %v13012_v5 = vld [vmem:[%s13410_s15 + $0xe4] ss:$16 sps:$4 sm:$0xff]  }
  0x29   : > { %1487 = vmatpush1.bf16.msra.mxu0 %v12951_v15  ;;  %v13014_v8 = vld [vmem:[%s13410_s15 + $0xe0] ss:$16 sps:$4 sm:$0xff]   ;;  %v13015_v9 = vld [vmem:[%s13410_s15 + $0x104] ss:$16 sps:$4 sm:$0xff]  }
  0x2a   : > { %1488 = vmatprep.subr.bf16.mxu0 %v12952_v16  ;;  %v13017_v10 = vld [vmem:[%s13410_s15 + $0x100] ss:$16 sps:$4 sm:$0xff]   ;;  %v13021_v11 = vld [vmem:[%s13410_s15 + $0x124] ss:$16 sps:$4 sm:$0xff]  }
  0x2b   : > { %v13090_v12 = vld [vmem:[%s16011_s1 + $0x1c0] ss:$8 sps:$4 sm:$0xff]   ;;  %v13092_v13 = vld [vmem:[%s16011_s1 + $0x1c4] ss:$8 sps:$4 sm:$0xff]  }
  0x2c   : > { %v13023_v14 = vld [vmem:[%s13410_s15 + $0x120] ss:$16 sps:$4 sm:$0xff]   ;;  %v13024_v15 = vld [vmem:[%s13410_s15 + $0x144] ss:$16 sps:$4 sm:$0xff]  }
  0x2d   : > { %1489 = vmatpush1.bf16.msra.mxu0 %v12954_v17  ;;  %v13026_v16 = vld [vmem:[%s13410_s15 + $0x140] ss:$16 sps:$4 sm:$0xff]   ;;  %v13030_v17 = vld [vmem:[%s13410_s15 + $0x164] ss:$16 sps:$4 sm:$0xff]  }
  0x2e   : > { %1490 = vmatprep.subr.bf16.mxu0 %v12955_v18  ;;  %v13099_v18 = vld [vmem:[%s16011_s1 + $0x1d0] ss:$8 sps:$4 sm:$0xff]  }
  0x31   : > { %1491 = vmatpush1.bf16.msra.mxu0 %v12957_v19  ;;  %v13101_v19 = vld [vmem:[%s16011_s1 + $0x1d4] ss:$8 sps:$4 sm:$0xff]  }
  0x32   : > { %1492 = vmatprep.subr.bf16.mxu0 %v12958_v20  ;;  %v13032_v20 = vld [vmem:[%s13410_s15 + $0x160] ss:$16 sps:$4 sm:$0xff]  }
  0x35   : > { %1493 = vmatpush1.bf16.msra.mxu0 %v12960_v21  ;;  %v13033_v21 = vld [vmem:[%s13410_s15 + $0x184] ss:$16 sps:$4 sm:$0xff]  }
  0x36   : > { %1494 = vmatprep.subr.bf16.mxu0 %v12961_v22  ;;  %v13035_v22 = vld [vmem:[%s13410_s15 + $0x180] ss:$16 sps:$4 sm:$0xff]  }
  0x39   : > { %1495 = vmatpush1.bf16.msra.mxu0 %v12963_v23  ;;  %v13039_v23 = vld [vmem:[%s13410_s15 + $0x1a4] ss:$16 sps:$4 sm:$0xff]  }
  0x3a   : > { %1496 = vmatprep.subr.bf16.mxu0 %v12964_v24  ;;  %v13108_v24 = vld [vmem:[%s16011_s1 + $0x1e0] ss:$8 sps:$4 sm:$0xff]  }
  0x3d   : > { %1497 = vmatpush1.bf16.msra.mxu0 %v12966_v25  ;;  %v13110_v25 = vld [vmem:[%s16011_s1 + $0x1e4] ss:$8 sps:$4 sm:$0xff]  }
  0x3e   : > { %1498 = vmatprep.subr.bf16.mxu0 %v12967_v26  ;;  %v13041_v26 = vld [vmem:[%s13410_s15 + $0x1a0] ss:$16 sps:$4 sm:$0xff]  }
  0x41   : > { %1499 = vmatpush1.bf16.msra.mxu0 %v12969_v27  ;;  %v13042_v27 = vld [vmem:[%s13410_s15 + $0x1c4] ss:$16 sps:$4 sm:$0xff]  }
  0x42   : > { %1500 = vmatprep.subr.bf16.mxu0 %v12970_v28  ;;  %v13044_v28 = vld [vmem:[%s13410_s15 + $0x1c0] ss:$16 sps:$4 sm:$0xff]  }
  0x45   : > { %1501 = vmatpush1.bf16.msra.mxu0 %v12972_v29  ;;  %v13048_v29 = vld [vmem:[%s13410_s15 + $0x1e4] ss:$16 sps:$4 sm:$0xff]  }
  0x46   : > { %1502 = vmatprep.subr.bf16.mxu0 %v12973_v30  ;;  %v13117_v30 = vld [vmem:[%s16011_s1 + $0x1f0] ss:$8 sps:$4 sm:$0xff]  }
  0x49   : > { %1503 = vmatpush1.bf16.msra.mxu0 %v12975_v31  ;;  %v13119_v31 = vld [vmem:[%s16011_s1 + $0x1f4] ss:$8 sps:$4 sm:$0xff]  }
  0x4a   : > { %1504 = vmatprep.subr.bf16.mxu0 %v12976_v32  ;;  %v13050_v32 = vld [vmem:[%s13410_s15 + $0x1e0] ss:$16 sps:$4 sm:$0xff]  }
  0x4d   : > { %1505 = vmatpush1.bf16.msra.mxu0 %v12978_v33  ;;  %v13051_v33 = vld [vmem:[%s13410_s15 + $0x204] ss:$16 sps:$4 sm:$0xff]  }
  0x4e   : > { %1827 = vmatprep.subr.bf16.mxu0 %v12984_v34  ;;  %v13053_v34 = vld [vmem:[%s13410_s15 + $0x200] ss:$16 sps:$4 sm:$0xff]  }
  0x50   : > { %1507 = vmatmul.mubr.bf16.vlgmr.msra.gmra.mrb[0].mxu0 %v12979_v35  ;;  %v13057_v35 = vld [vmem:[%s13410_s15 + $0x224] ss:$16 sps:$4 sm:$0xff]  }
  0x51   : > { %1828 = vmatpush1.bf16.msra.mxu0 %v12982_v36  ;;  %1516 = vmatprep.mubr.bf16.mxu0 %v12985_v37  ;;  %v13059_v36 = vld [vmem:[%s13410_s15 + $0x220] ss:$16 sps:$4 sm:$0xff]   ;;  %v13060_v37 = vld [vmem:[%s13410_s15 + $0x244] ss:$16 sps:$4 sm:$0xff]  }
  0x52   : > { %1829 = vmatprep.subr.bf16.mxu0 %v12993_v38  ;;  %v13062_v38 = vld [vmem:[%s13410_s15 + $0x240] ss:$16 sps:$4 sm:$0xff]  }
  0x55   : > { %1830 = vmatpush1.bf16.msra.mxu0 %v12991_v39  ;;  %v13066_v39 = vld [vmem:[%s13410_s15 + $0x264] ss:$16 sps:$4 sm:$0xff]  }
  0x56   : > { %1831 = vmatprep.subr.bf16.mxu0 %v13002_v40  ;;  %v13068_v40 = vld [vmem:[%s13410_s15 + $0x260] ss:$16 sps:$4 sm:$0xff]  }
  0x58   : > { %1517 = vmatmul.mubr.bf16.gmra.mrb[4].mxu0 %v12987_v41  ;;  %v13069_v41 = vld [vmem:[%s13410_s15 + $0x284] ss:$16 sps:$4 sm:$0xff]  }
  0x59   : > { %1526 = vmatprep.mubr.bf16.mxu0 %v12988_v42  ;;  %1832 = vmatpush1.bf16.msra.mxu0 %v13000_v43  ;;  %v13071_v42 = vld [vmem:[%s13410_s15 + $0x280] ss:$16 sps:$4 sm:$0xff]   ;;  %v13075_v43 = vld [vmem:[%s13410_s15 + $0x2a4] ss:$16 sps:$4 sm:$0xff]  }
  0x5a   : > { %1833 = vmatprep.subr.bf16.mxu0 %v13011_v44  ;;  %v13077_v44 = vld [vmem:[%s13410_s15 + $0x2a0] ss:$16 sps:$4 sm:$0xff]  }
  0x5d   : > { %1834 = vmatpush1.bf16.msra.mxu0 %v13009_v45  ;;  %v13078_v45 = vld [vmem:[%s13410_s15 + $0x2c4] ss:$16 sps:$4 sm:$0xff]  }
  0x5e   : > { %1835 = vmatprep.subr.bf16.mxu0 %v13020_v46  ;;  %v13080_v46 = vld [vmem:[%s13410_s15 + $0x2c0] ss:$16 sps:$4 sm:$0xff]  }
  0x60   : > { %1527 = vmatmul.mubr.bf16.gmra.mrb[8].mxu0 %v12990_v47  ;;  %v13084_v47 = vld [vmem:[%s13410_s15 + $0x2e4] ss:$16 sps:$4 sm:$0xff]  }
  0x61   : > { %1536 = vmatprep.mubr.bf16.mxu0 %v12994_v48  ;;  %1836 = vmatpush1.bf16.msra.mxu0 %v13018_v49  ;;  %v13086_v48 = vld [vmem:[%s13410_s15 + $0x2e0] ss:$16 sps:$4 sm:$0xff]   ;;  %v13087_v49 = vld [vmem:[%s13410_s15 + $0x304] ss:$16 sps:$4 sm:$0xff]  }
  0x62   : > { %1837 = vmatprep.subr.bf16.mxu0 %v13029_v50  ;;  %v13089_v50 = vld [vmem:[%s13410_s15 + $0x300] ss:$16 sps:$4 sm:$0xff]  }
  0x65   : > { %1838 = vmatpush1.bf16.msra.mxu0 %v13027_v51  ;;  %v13093_v51 = vld [vmem:[%s13410_s15 + $0x324] ss:$16 sps:$4 sm:$0xff]  }
  0x66   : > { %1839 = vmatprep.subr.bf16.mxu0 %v13038_v52  ;;  %v13095_v52 = vld [vmem:[%s13410_s15 + $0x320] ss:$16 sps:$4 sm:$0xff]  }
  0x68   : > { %1537 = vmatmul.mubr.bf16.gmra.mrb[12].mxu0 %v12996_v53  ;;  %v13096_v53 = vld [vmem:[%s13410_s15 + $0x344] ss:$16 sps:$4 sm:$0xff]  }
  0x69   : > { %1546 = vmatprep.mubr.bf16.mxu0 %v12997_v54  ;;  %1840 = vmatpush1.bf16.msra.mxu0 %v13036_v55  ;;  %v13098_v54 = vld [vmem:[%s13410_s15 + $0x340] ss:$16 sps:$4 sm:$0xff]   ;;  %v13102_v55 = vld [vmem:[%s13410_s15 + $0x364] ss:$16 sps:$4 sm:$0xff]  }
  0x6a   : > { %1841 = vmatprep.subr.bf16.mxu0 %v13047_v56  ;;  %v13104_v56 = vld [vmem:[%s13410_s15 + $0x360] ss:$16 sps:$4 sm:$0xff]  }
  0x6d   : > { %1842 = vmatpush1.bf16.msra.mxu0 %v13045_v57  ;;  %v13105_v57 = vld [vmem:[%s13410_s15 + $0x384] ss:$16 sps:$4 sm:$0xff]  }
  0x6e   : > { %1843 = vmatprep.subr.bf16.mxu0 %v13056_v58  ;;  %v13107_v58 = vld [vmem:[%s13410_s15 + $0x380] ss:$16 sps:$4 sm:$0xff]  }
  0x70   : > { %1547 = vmatmul.mubr.bf16.gmra.mrb[16].mxu0 %v12999_v59  ;;  %v13111_v59 = vld [vmem:[%s13410_s15 + $0x3a4] ss:$16 sps:$4 sm:$0xff]  }
  0x71   : > { %1556 = vmatprep.mubr.bf16.mxu0 %v13003_v60  ;;  %1844 = vmatpush1.bf16.msra.mxu0 %v13054_v61  ;;  %v13113_v60 = vld [vmem:[%s13410_s15 + $0x3a0] ss:$16 sps:$4 sm:$0xff]   ;;  %v13114_v61 = vld [vmem:[%s13410_s15 + $0x3c4] ss:$16 sps:$4 sm:$0xff]  }
  0x72   : > { %1845 = vmatprep.subr.bf16.mxu0 %v13065_v62  ;;  %v13116_v62 = vld [vmem:[%s13410_s15 + $0x3c0] ss:$16 sps:$4 sm:$0xff]  }
  0x75   : > { %1846 = vmatpush1.bf16.msra.mxu0 %v13063_v63  ;;  %v13120_v63 = vld [vmem:[%s13410_s15 + $0x3e4] ss:$16 sps:$4 sm:$0xff]  }
  0x76   : > { %1847 = vmatprep.subr.bf16.mxu0 %v13074_v0  ;;  %v13122_v0 = vld [vmem:[%s13410_s15 + $0x3e0] ss:$16 sps:$4 sm:$0xff]  }
  0x78   : > { %1557 = vmatmul.mubr.bf16.gmra.mrb[20].mxu0 %v13005_v1  ;;  %v13125_v1 = vld [vmem:[%s13410_s15 + $0xc] ss:$16 sps:$4 sm:$0xff]  }
  0x79   : > { %1566 = vmatprep.mubr.bf16.mxu0 %v13006_v2  ;;  %1848 = vmatpush1.bf16.msra.mxu0 %v13072_v3  ;;  %v13123_v2 = vld [vmem:[%s13410_s15 + $0x8] ss:$16 sps:$4 sm:$0xff]   ;;  %v13126_v3 = vld [vmem:[%s13410_s15 + $0x2c] ss:$16 sps:$4 sm:$0xff]  }
  0x7a   : > { %1849 = vmatprep.subr.bf16.mxu0 %v13083_v7  ;;  %v13132_v7 = vld [vmem:[%s13410_s15 + $0x6c] ss:$16 sps:$4 sm:$0xff]  }
  0x7d   : > { %1850 = vmatpush1.bf16.msra.mxu0 %v13081_v6  ;;  %v13131_v6 = vld [vmem:[%s13410_s15 + $0x48] ss:$16 sps:$4 sm:$0xff]  }
  0x7e   : > { %1851 = vmatprep.subr.bf16.mxu0 %v13092_v13  ;;  %v13141_v13 = vld [vmem:[%s13410_s15 + $0xcc] ss:$16 sps:$4 sm:$0xff]  }
  0x80   : > { %1567 = vmatmul.mubr.bf16.gmra.mrb[24].mxu0 %v13008_v4  ;;  %v13128_v4 = vld [vmem:[%s13410_s15 + $0x28] ss:$16 sps:$4 sm:$0xff]  }
  0x81   : > { %1576 = vmatprep.mubr.bf16.mxu0 %v13012_v5  ;;  %1852 = vmatpush1.bf16.msra.mxu0 %v13090_v12  ;;  %v13129_v5 = vld [vmem:[%s13410_s15 + $0x4c] ss:$16 sps:$4 sm:$0xff]   ;;  %v13140_v12 = vld [vmem:[%s13410_s15 + $0xa8] ss:$16 sps:$4 sm:$0xff]  }
  0x82   : > { %1853 = vmatprep.subr.bf16.mxu0 %v13101_v19  ;;  %v13150_v19 = vld [vmem:[%s13410_s15 + $0x12c] ss:$16 sps:$4 sm:$0xff]  }
  0x85   : > { %1854 = vmatpush1.bf16.msra.mxu0 %v13099_v18  ;;  %v13149_v18 = vld [vmem:[%s13410_s15 + $0x108] ss:$16 sps:$4 sm:$0xff]  }
  0x86   : > { %1855 = vmatprep.subr.bf16.mxu0 %v13110_v25  ;;  %v13159_v25 = vld [vmem:[%s13410_s15 + $0x18c] ss:$16 sps:$4 sm:$0xff]  }
  0x88   : > { %1577 = vmatmul.mubr.bf16.gmra.mrb[28].mxu0 %v13014_v8  ;;  %v13134_v8 = vld [vmem:[%s13410_s15 + $0x68] ss:$16 sps:$4 sm:$0xff]  }
  0x89   : > { %1586 = vmatprep.mubr.bf16.mxu0 %v13015_v9  ;;  %1856 = vmatpush1.bf16.msra.mxu0 %v13108_v24  ;;  %v13135_v9 = vld [vmem:[%s13410_s15 + $0x8c] ss:$16 sps:$4 sm:$0xff]   ;;  %v13158_v24 = vld [vmem:[%s13410_s15 + $0x168] ss:$16 sps:$4 sm:$0xff]  }
  0x8a   : > { %1857 = vmatprep.subr.bf16.mxu0 %v13119_v31  ;;  %v13168_v31 = vld [vmem:[%s13410_s15 + $0x1ec] ss:$16 sps:$4 sm:$0xff]  }
  0x8d   : > { %1858 = vmatpush1.bf16.msra.mxu0 %v13117_v30  ;;  %v13167_v30 = vld [vmem:[%s13410_s15 + $0x1c8] ss:$16 sps:$4 sm:$0xff]  }
  0x90   : > { %1587 = vmatmul.mubr.bf16.gmra.mrb[32].mxu0 %v13017_v10  ;;  %v13137_v10 = vld [vmem:[%s13410_s15 + $0x88] ss:$16 sps:$4 sm:$0xff]  }
  0x91   : > { %1596 = vmatprep.mubr.bf16.mxu0 %v13021_v11  ;;  %v13138_v11 = vld [vmem:[%s13410_s15 + $0xac] ss:$16 sps:$4 sm:$0xff]  }
  0x98   : > { %1597 = vmatmul.mubr.bf16.gmra.mrb[36].mxu0 %v13023_v14  ;;  %v13143_v14 = vld [vmem:[%s13410_s15 + $0xc8] ss:$16 sps:$4 sm:$0xff]  }
  0x99   : > { %1606 = vmatprep.mubr.bf16.mxu0 %v13024_v15  ;;  %v13144_v15 = vld [vmem:[%s13410_s15 + $0xec] ss:$16 sps:$4 sm:$0xff]  }
  0xa0   : > { %1607 = vmatmul.mubr.bf16.gmra.mrb[40].mxu0 %v13026_v16  ;;  %v13146_v16 = vld [vmem:[%s13410_s15 + $0xe8] ss:$16 sps:$4 sm:$0xff]  }
  0xa1   : > { %1616 = vmatprep.mubr.bf16.mxu0 %v13030_v17  ;;  %v13147_v17 = vld [vmem:[%s13410_s15 + $0x10c] ss:$16 sps:$4 sm:$0xff]  }
  0xa8   : > { %1617 = vmatmul.mubr.bf16.gmra.mrb[44].mxu0 %v13032_v20  ;;  %v13152_v20 = vld [vmem:[%s13410_s15 + $0x128] ss:$16 sps:$4 sm:$0xff]  }
  0xa9   : > { %1626 = vmatprep.mubr.bf16.mxu0 %v13033_v21  ;;  %v13153_v21 = vld [vmem:[%s13410_s15 + $0x14c] ss:$16 sps:$4 sm:$0xff]  }
  0xb0   : > { %1627 = vmatmul.mubr.bf16.gmra.mrb[48].mxu0 %v13035_v22  ;;  %v13155_v22 = vld [vmem:[%s13410_s15 + $0x148] ss:$16 sps:$4 sm:$0xff]  }
  0xb1   : > { %1636 = vmatprep.mubr.bf16.mxu0 %v13039_v23  ;;  %v13156_v23 = vld [vmem:[%s13410_s15 + $0x16c] ss:$16 sps:$4 sm:$0xff]  }
  0xb8   : > { %1637 = vmatmul.mubr.bf16.gmra.mrb[52].mxu0 %v13041_v26  ;;  %v13161_v26 = vld [vmem:[%s13410_s15 + $0x188] ss:$16 sps:$4 sm:$0xff]  }
  0xb9   : > { %1646 = vmatprep.mubr.bf16.mxu0 %v13042_v27  ;;  %v13162_v27 = vld [vmem:[%s13410_s15 + $0x1ac] ss:$16 sps:$4 sm:$0xff]  }
  0xc0   : > { %1647 = vmatmul.mubr.bf16.gmra.mrb[56].mxu0 %v13044_v28  ;;  %v13164_v28 = vld [vmem:[%s13410_s15 + $0x1a8] ss:$16 sps:$4 sm:$0xff]  }
  0xc1   : > { %1656 = vmatprep.mubr.bf16.mxu0 %v13048_v29  ;;  %v13165_v29 = vld [vmem:[%s13410_s15 + $0x1cc] ss:$16 sps:$4 sm:$0xff]  }
  0xc8   : > { %1657 = vmatmul.mubr.bf16.gmra.mrb[60].mxu0 %v13050_v32  ;;  %v13216_v32 = vld [vmem:[%s16014_s4] sm:$0xff]  }
  0xc9   : > { %1666 = vmatprep.mubr.bf16.mxu0 %v13051_v33  ;;  %11495 = vmatprep.subr.bf16.mxu0 %v13216_v32  ;;  %v13217_v33 = vld [vmem:[%s16014_s4 + $0x8] sm:$0xff]  }
  0xd0   : > { %1667 = vmatmul.mubr.bf16.gmra.mrb[64].mxu0 %v13053_v34  ;;  %v13170_v34 = vld [vmem:[%s13410_s15 + $0x1e8] ss:$16 sps:$4 sm:$0xff]  }
  0xd1   : > { %1676 = vmatprep.mubr.bf16.mxu0 %v13057_v35  ;;  %v13171_v35 = vld [vmem:[%s13410_s15 + $0x20c] ss:$16 sps:$4 sm:$0xff]  }
  0xd8   : > { %1677 = vmatmul.mubr.bf16.gmra.mrb[68].mxu0 %v13059_v36  ;;  %v13221_v36 = vld [vmem:[%s16014_s4 + $0x10] sm:$0xff]  }
  0xd9   : > { %1686 = vmatprep.mubr.bf16.mxu0 %v13060_v37  ;;  %v13222_v37 = vld [vmem:[%s16014_s4 + $0x18] sm:$0xff]  }
  0xe0   : > { %1687 = vmatmul.mubr.bf16.gmra.mrb[72].mxu0 %v13062_v38  ;;  %v13173_v38 = vld [vmem:[%s13410_s15 + $0x208] ss:$16 sps:$4 sm:$0xff]  }
  0xe1   : > { %1696 = vmatprep.mubr.bf16.mxu0 %v13066_v39  ;;  %v13174_v39 = vld [vmem:[%s13410_s15 + $0x22c] ss:$16 sps:$4 sm:$0xff]  }
  0xe8   : > { %1697 = vmatmul.mubr.bf16.gmra.mrb[76].mxu0 %v13068_v40  ;;  %v13176_v40 = vld [vmem:[%s13410_s15 + $0x228] ss:$16 sps:$4 sm:$0xff]  }
  0xe9   : > { %1706 = vmatprep.mubr.bf16.mxu0 %v13069_v41  ;;  %v13177_v41 = vld [vmem:[%s13410_s15 + $0x24c] ss:$16 sps:$4 sm:$0xff]  }
  0xf0   : > { %1707 = vmatmul.mubr.bf16.gmra.mrb[80].mxu0 %v13071_v42  ;;  %v13179_v42 = vld [vmem:[%s13410_s15 + $0x248] ss:$16 sps:$4 sm:$0xff]  }
  0xf1   : > { %1716 = vmatprep.mubr.bf16.mxu0 %v13075_v43  ;;  %v13180_v43 = vld [vmem:[%s13410_s15 + $0x26c] ss:$16 sps:$4 sm:$0xff]  }
  0xf8   : > { %1717 = vmatmul.mubr.bf16.gmra.mrb[84].mxu0 %v13077_v44  ;;  %v13182_v44 = vld [vmem:[%s13410_s15 + $0x268] ss:$16 sps:$4 sm:$0xff]  }
  0xf9   : > { %1726 = vmatprep.mubr.bf16.mxu0 %v13078_v45  ;;  %v13183_v45 = vld [vmem:[%s13410_s15 + $0x28c] ss:$16 sps:$4 sm:$0xff]  }
 0x100   : > { %1727 = vmatmul.mubr.bf16.gmra.mrb[88].mxu0 %v13080_v46  ;;  %v13185_v46 = vld [vmem:[%s13410_s15 + $0x288] ss:$16 sps:$4 sm:$0xff]  }
 0x101   : > { %1736 = vmatprep.mubr.bf16.mxu0 %v13084_v47  ;;  %v13186_v47 = vld [vmem:[%s13410_s15 + $0x2ac] ss:$16 sps:$4 sm:$0xff]  }
 0x108   : > { %1737 = vmatmul.mubr.bf16.gmra.mrb[92].mxu0 %v13086_v48  ;;  %v13188_v48 = vld [vmem:[%s13410_s15 + $0x2a8] ss:$16 sps:$4 sm:$0xff]  }
 0x109   : > { %1746 = vmatprep.mubr.bf16.mxu0 %v13087_v49  ;;  %v13189_v49 = vld [vmem:[%s13410_s15 + $0x2cc] ss:$16 sps:$4 sm:$0xff]  }
 0x110   : > { %1747 = vmatmul.mubr.bf16.gmra.mrb[96].mxu0 %v13089_v50  ;;  %v13191_v50 = vld [vmem:[%s13410_s15 + $0x2c8] ss:$16 sps:$4 sm:$0xff]  }
 0x111   : > { %1756 = vmatprep.mubr.bf16.mxu0 %v13093_v51  ;;  %v13192_v51 = vld [vmem:[%s13410_s15 + $0x2ec] ss:$16 sps:$4 sm:$0xff]  }
 0x118   : > { %1757 = vmatmul.mubr.bf16.gmra.mrb[100].mxu0 %v13095_v52  ;;  %v13223_v52 = vld [vmem:[%s16014_s4 + $0x40] sm:$0xff]  }
 0x119   : > { %1766 = vmatprep.mubr.bf16.mxu0 %v13096_v53  ;;  %v13194_v53 = vld [vmem:[%s13410_s15 + $0x2e8] ss:$16 sps:$4 sm:$0xff]   ;;  %12143 = vmatprep.subr.bf16.mxu1 %v13223_v52 }
 0x11a   : > { %12147 = vmatpush3.bf16.msra.mxu1 %v13223_v52 }
 0x120   : > { %1767 = vmatmul.mubr.bf16.gmra.mrb[104].mxu0 %v13098_v54  ;;  %v13195_v54 = vld [vmem:[%s13410_s15 + $0x30c] ss:$16 sps:$4 sm:$0xff]  }
 0x121   : > { %1776 = vmatprep.mubr.bf16.mxu0 %v13102_v55  ;;  %v13224_v55 = vld [vmem:[%s16014_s4 + $0x48] sm:$0xff]  }
 0x122   : > { %12144 = vmatprep.subr.bf16.mxu1 %v13224_v55 }
 0x123   : > { %12148 = vmatpush3.bf16.msra.mxu1 %v13224_v55 }
 0x128   : > { %1777 = vmatmul.mubr.bf16.gmra.mrb[108].mxu0 %v13104_v56  ;;  %v13225_v56 = vld [vmem:[%s16014_s4 + $0x50] sm:$0xff]  }
 0x129   : > { %1786 = vmatprep.mubr.bf16.mxu0 %v13105_v57  ;;  %v13197_v57 = vld [vmem:[%s13410_s15 + $0x308] ss:$16 sps:$4 sm:$0xff]   ;;  %12145 = vmatprep.subr.bf16.mxu1 %v13225_v56 }
 0x12a   : > { %12149 = vmatpush3.bf16.msra.mxu1 %v13225_v56 }
 0x130   : > { %1787 = vmatmul.mubr.bf16.gmra.mrb[112].mxu0 %v13107_v58  ;;  %v13198_v58 = vld [vmem:[%s13410_s15 + $0x32c] ss:$16 sps:$4 sm:$0xff]  }
 0x131   : > { %1796 = vmatprep.mubr.bf16.mxu0 %v13111_v59  ;;  %v13226_v59 = vld [vmem:[%s16014_s4 + $0x58] sm:$0xff]  }
 0x132   : > { %12146 = vmatprep.subr.bf16.mxu1 %v13226_v59 }
 0x133   : > { %12150 = vmatpush3.bf16.msra.mxu1 %v13226_v59 }
 0x138   : > { %1797 = vmatmul.mubr.bf16.gmra.mrb[116].mxu0 %v13113_v60  ;;  %v13200_v60 = vld [vmem:[%s13410_s15 + $0x328] ss:$16 sps:$4 sm:$0xff]  }
 0x139   : > { %1806 = vmatprep.mubr.bf16.mxu0 %v13114_v61  ;;  %v504_v61 = vlaneseq }
 0x140   : > { %1807 = vmatmul.mubr.bf16.gmra.mrb[120].mxu0 %v13116_v62  ;;  %v13201_v62 = vld [vmem:[%s13410_s15 + $0x34c] ss:$16 sps:$4 sm:$0xff]  }
 0x141   : > { %1816 = vmatprep.mubr.bf16.mxu0 %v13120_v63  ;;  %v13709_v63 = vshrl.u32 %v504_v61, 7 }
 0x143   : > { %16040 = vst [vmem:[#allocation5_spill] sm:$0xff] %v13709_v63 }
 0x148   : > { %1817 = vmatmul.mubr.bf16.gmra.mrb[124].mxu0 %v13122_v0  ;;  %v13203_v0 = vld [vmem:[%s13410_s15 + $0x348] ss:$16 sps:$4 sm:$0xff]  }
 0x149   : > { %1859 = vmatprep.mubr.bf16.mxu0 %v13125_v1  ;;  %v16019_v1 = vsub.s32 0, %v13709_v63 }
 0x150   : > { %1860 = vmatmul.mubr.bf16.vlgmr.msra.gmra.mrb[0].mxu0 %v13123_v2  ;;  %v502_v2 = vld [vmem:[%s16012_s2] sm:$0x3] }
 0x151   : > { %1869 = vmatprep.mubr.bf16.mxu0 %v13126_v3  ;;  %11496 = vmatpush3.bf16.msra.mxu0 %v13216_v32  ;;  %v510_v3 = vsub.s32 1, %v13709_v63 }
 0x152   : > { %11497 = vmatprep.subr.bf16.mxu0 %v13217_v33 }
 0x155   : > { %11498 = vmatpush3.bf16.msra.mxu0 %v13217_v33 }
 0x156   : > { %11499 = vmatprep.subr.bf16.mxu0 %v13221_v36 }
 0x158   : > { %1870 = vmatmul.mubr.bf16.gmra.mrb[4].mxu0 %v13128_v4  ;;  %v13204_v4 = vld [vmem:[%s13410_s15 + $0x36c] ss:$16 sps:$4 sm:$0xff]  }
 0x159   : > { %1879 = vmatprep.mubr.bf16.mxu0 %v13129_v5  ;;  %11500 = vmatpush3.bf16.msra.mxu0 %v13221_v36  ;;  %v13720_v5 = vrot.slane %v502_v2, %v16019_v1 }
 0x15a   : > { %11501 = vmatprep.subr.bf16.mxu0 %v13222_v37 }
 0x15d   : > { %11502 = vmatpush3.bf16.msra.mxu0 %v13222_v37 }
 0x160   : > { %1880 = vmatmul.mubr.bf16.gmra.mrb[8].mxu0 %v13131_v6  ;;  %v13722_v6 = vrot.slane %v502_v2, %v510_v3 }
 0x161   : > { %1889 = vmatprep.mubr.bf16.mxu0 %v13132_v7  ;;  %v2564_v7 = vld [vmem:[%s16013_s3] sm:$0xff] }
 0x168   : > { %1890 = vmatmul.mubr.bf16.gmra.mrb[12].mxu0 %v13134_v8 }
 0x169   : > { %1899 = vmatprep.mubr.bf16.mxu0 %v13135_v9 }
 0x170   : > { %1900 = vmatmul.mubr.bf16.gmra.mrb[16].mxu0 %v13137_v10 }
 0x171   : > { %1909 = vmatprep.mubr.bf16.mxu0 %v13138_v11  ;;  %v2565_v11 = vld [vmem:[%s16013_s3 + $0x8] sm:$0xff] }
 0x178   : > { %1910 = vmatmul.mubr.bf16.gmra.mrb[20].mxu0 %v13140_v12  ;;  %v13206_v12 = vld [vmem:[%s13410_s15 + $0x368] ss:$16 sps:$4 sm:$0xff]  }
 0x179   : > { %1919 = vmatprep.mubr.bf16.mxu0 %v13141_v13  ;;  %v2628_v13 = vunpack.c.l.bf16 %v2564_v7 }
 0x180   : > { %1920 = vmatmul.mubr.bf16.gmra.mrb[24].mxu0 %v13143_v14 }
 0x181   : > { %1929 = vmatprep.mubr.bf16.mxu0 %v13144_v15 }
 0x188   : > { %1930 = vmatmul.mubr.bf16.gmra.mrb[28].mxu0 %v13146_v16  ;;  %v13207_v16 = vld [vmem:[%s13410_s15 + $0x38c] ss:$16 sps:$4 sm:$0xff]  }
 0x189   : > { %1939 = vmatprep.mubr.bf16.mxu0 %v13147_v17 }
 0x190   : > { %1940 = vmatmul.mubr.bf16.gmra.mrb[32].mxu0 %v13149_v18  ;;  %v2629_v18 = vunpack.c.h.bf16 %v2564_v7 }
 0x191   : > { %1949 = vmatprep.mubr.bf16.mxu0 %v13150_v19 }
 0x198   : > { %1950 = vmatmul.mubr.bf16.gmra.mrb[36].mxu0 %v13152_v20 }
 0x199   : > { %1959 = vmatprep.mubr.bf16.mxu0 %v13153_v21 }
 0x1a0   : > { %1960 = vmatmul.mubr.bf16.gmra.mrb[40].mxu0 %v13155_v22  ;;  %v2630_v22 = vunpack.c.l.bf16 %v2565_v11 }
 0x1a1   : > { %1969 = vmatprep.mubr.bf16.mxu0 %v13156_v23 }
 0x1a8   : > { %1970 = vmatmul.mubr.bf16.gmra.mrb[44].mxu0 %v13158_v24 }
 0x1a9   : > { %1979 = vmatprep.mubr.bf16.mxu0 %v13159_v25 }
 0x1b0   : > { %1980 = vmatmul.mubr.bf16.gmra.mrb[48].mxu0 %v13161_v26  ;;  %v2631_v26 = vunpack.c.h.bf16 %v2565_v11 }
 0x1b1   : > { %1989 = vmatprep.mubr.bf16.mxu0 %v13162_v27 }
 0x1b8   : > { %1990 = vmatmul.mubr.bf16.gmra.mrb[52].mxu0 %v13164_v28 }
 0x1b9   : > { %1999 = vmatprep.mubr.bf16.mxu0 %v13165_v29 }
 0x1c0   : > { %2000 = vmatmul.mubr.bf16.gmra.mrb[56].mxu0 %v13167_v30  ;;  %v2566_v30 = vld [vmem:[%s16013_s3 + $0x10] sm:$0xff] }
 0x1c1   : > { %2009 = vmatprep.mubr.bf16.mxu0 %v13168_v31 }
 0x1c8   : > { %2010 = vmatmul.mubr.bf16.gmra.mrb[60].mxu0 %v13170_v34 }
 0x1c9   : > { %2019 = vmatprep.mubr.bf16.mxu0 %v13171_v35 }
 0x1d0   : > { %2020 = vmatmul.mubr.bf16.gmra.mrb[64].mxu0 %v13173_v38 }
 0x1d1   : > { %2029 = vmatprep.mubr.bf16.mxu0 %v13174_v39  ;;  %v2567_v39 = vld [vmem:[%s16013_s3 + $0x18] sm:$0xff] }
 0x1d2   : > { %v2634_v52 = vunpack.c.l.bf16 %v2567_v39  ;;  %v2635_v56 = vunpack.c.h.bf16 %v2567_v39  ;;  %v2571_v39 = vld [vmem:[%s16013_s3 + $0x38] sm:$0xff] }
 0x1d8   : > { %2030 = vmatmul.mubr.bf16.gmra.mrb[68].mxu0 %v13176_v40  ;;  %v13209_v40 = vld [vmem:[%s13410_s15 + $0x388] ss:$16 sps:$4 sm:$0xff]  }
 0x1d9   : > { %2039 = vmatprep.mubr.bf16.mxu0 %v13177_v41 }
 0x1e0   : > { %2040 = vmatmul.mubr.bf16.gmra.mrb[72].mxu0 %v13179_v42  ;;  %v2632_v42 = vunpack.c.l.bf16 %v2566_v30 }
 0x1e1   : > { %2049 = vmatprep.mubr.bf16.mxu0 %v13180_v43 }
 0x1e8   : > { %2050 = vmatmul.mubr.bf16.gmra.mrb[76].mxu0 %v13182_v44  ;;  %v2633_v44 = vunpack.c.h.bf16 %v2566_v30  ;;  %v2570_v30 = vld [vmem:[%s16013_s3 + $0x30] sm:$0xff] }
 0x1e9   : > { %2059 = vmatprep.mubr.bf16.mxu0 %v13183_v45 }
 0x1f0   : > { %2060 = vmatmul.mubr.bf16.gmra.mrb[80].mxu0 %v13185_v46  ;;  %v13210_v46 = vld [vmem:[%s13410_s15 + $0x3ac] ss:$16 sps:$4 sm:$0xff]  }
 0x1f1   : > { %2069 = vmatprep.mubr.bf16.mxu0 %v13186_v47 }
 0x1f8   : > { %2070 = vmatmul.mubr.bf16.gmra.mrb[84].mxu0 %v13188_v48 }
 0x1f9   : > { %2079 = vmatprep.mubr.bf16.mxu0 %v13189_v49 }
 0x200   : > { %2080 = vmatmul.mubr.bf16.gmra.mrb[88].mxu0 %v13191_v50 }
 0x201   : > { %2089 = vmatprep.mubr.bf16.mxu0 %v13192_v51 }
 0x208   : > { %2090 = vmatmul.mubr.bf16.gmra.mrb[92].mxu0 %v13194_v53 }
 0x209   : > { %2099 = vmatprep.mubr.bf16.mxu0 %v13195_v54 }
 0x210   : > { %2100 = vmatmul.mubr.bf16.gmra.mrb[96].mxu0 %v13197_v57 }
 0x211   : > { %2109 = vmatprep.mubr.bf16.mxu0 %v13198_v58 }
 0x218   : > { %2110 = vmatmul.mubr.bf16.gmra.mrb[100].mxu0 %v13200_v60  ;;  %v2568_v60 = vld [vmem:[%s16013_s3 + $0x20] sm:$0xff] }
 0x219   : > { %2119 = vmatprep.mubr.bf16.mxu0 %v13201_v62 }
 0x220   : > { %2120 = vmatmul.mubr.bf16.gmra.mrb[104].mxu0 %v13203_v0 }
 0x221   : > { %2129 = vmatprep.mubr.bf16.mxu0 %v13204_v4 }
 0x223   : > { %v1861_v8 = vpop.f32.mrb[0].mxu0 }
 0x224   : > { %v12151_v9 = vadd.f32 %v1861_v8, %v13720_v5  ;;  %v1863_v10 = vpop.f32.mrb[1].mxu0 }
 0x225   : > { %v12152_v14 = vadd.f32 %v1863_v10, %v13722_v6  ;;  %v1865_v15 = vpop.f32.mrb[2].mxu0  ;;  %v13212_v10 = vld [vmem:[%s13410_s15 + $0x3a8] ss:$16 sps:$4 sm:$0xff]  }
 0x226   : > { %vm2180_vm0 = vcmp.ge.f32.partialorder %v12151_v9, 0.0  ;;  %v2308_v17 = vmul.f32 0.2, %v12151_v9  ;;  %v12153_v19 = vadd.f32 %v1865_v15, %v13720_v5  ;;  %v1867_v20 = vpop.f32.mrb[3].mxu0 }
 0x227   : > { %vm2181_vm1 = vcmp.ge.f32.partialorder %v12152_v14, 0.0  ;;  %v2309_v21 = vmul.f32 0.2, %v12152_v14  ;;  %v12154_v23 = vadd.f32 %v1867_v20, %v13722_v6 }
 0x228   : > { %v2436_v24 = vsel %vm2180_vm0, %v12151_v9, %v2308_v17  ;;  %vm2182_vm2 = vcmp.ge.f32.partialorder %v12153_v19, 0.0  ;;  %v2310_v25 = vmul.f32 0.2, %v12153_v19  ;;  %2130 = vmatmul.mubr.bf16.gmra.mrb[108].mxu0 %v13206_v12  ;;  %v2569_v9 = vld [vmem:[%s16013_s3 + $0x28] sm:$0xff]  ;;  %v2636_v12 = vunpack.c.l.bf16 %v2568_v60 }
 0x229   : > { %v2437_v27 = vsel %vm2181_vm1, %v12152_v14, %v2309_v21  ;;  %vm2183_vm3 = vcmp.ge.f32.partialorder %v12154_v23, 0.0  ;;  %v2311_v28 = vmul.f32 0.2, %v12154_v23  ;;  %2139 = vmatprep.mubr.bf16.mxu0 %v13207_v16  ;;  %v2756_v31 = vmul.f32 %v2628_v13, %v2436_v24  ;;  %v13213_v16 = vld [vmem:[%s13410_s15 + $0x3cc] ss:$16 sps:$4 sm:$0xff]  }
 0x22a   : > { %v2438_v29 = vsel %vm2182_vm2, %v12153_v19, %v2310_v25  ;;  %v2757_v35 = vmul.f32 %v2629_v18, %v2437_v27  ;;  %v2637_v14 = vunpack.c.h.bf16 %v2568_v60  ;;  %v2572_v60 = vld [vmem:[%s16013_s3 + $0x40] sm:$0xff]  ;;  %vm3078_vm0 = vcmask 523264  }
 0x22b   : > { %v2758_v32 = vmul.f32 %v2630_v22, %v2438_v29  ;;  %v2439_v33 = vsel %vm2183_vm3, %v12154_v23, %v2311_v28  ;;  %v1871_v34 = vpop.f32.mrb[4].mxu0  ;;  %v2638_v22 = vunpack.c.l.bf16 %v2569_v9 }
 0x22c   : > { %v2759_v36 = vmul.f32 %v2631_v26, %v2439_v33  ;;  %v12155_v37 = vadd.f32 %v1871_v34, %v13720_v5  ;;  %v1873_v38 = vpop.f32.mrb[5].mxu0  ;;  %v2639_v26 = vunpack.c.h.bf16 %v2569_v9  ;;  %v2644_v9 = vunpack.c.l.bf16 %v2572_v60 }
 0x22d   : > { %v13744_v41 = vpack.c.bf16 %v2758_v32, %v2756_v31  ;;  %v12156_v43 = vadd.f32 %v1873_v38, %v13722_v6  ;;  %v1875_v45 = vpop.f32.mrb[6].mxu0 }
 0x22e   : > { %v2885_v47 = vpack.c.bf16 %v2759_v36, %v2757_v35  ;;  %vm2184_vm4 = vcmp.ge.f32.partialorder %v12155_v37, 0.0  ;;  %v2312_v48 = vmul.f32 0.2, %v12155_v37  ;;  %v12157_v49 = vadd.f32 %v1875_v45, %v13720_v5  ;;  %v1877_v50 = vpop.f32.mrb[7].mxu0 }
 0x22f   : > { %2948 = vst [vmem:[#allocation2] sm:$0xff] %v13744_v41  ;;  %vm2185_vm5 = vcmp.ge.f32.partialorder %v12156_v43, 0.0  ;;  %v2313_v51 = vmul.f32 0.2, %v12156_v43  ;;  %v12158_v53 = vadd.f32 %v1877_v50, %v13722_v6  ;;  %v2641_v45 = vunpack.c.h.bf16 %v2570_v30 }
 0x230   : > { %2949 = vst [vmem:[#allocation2 + $0x8] sm:$0xff] %v2885_v47  ;;  %v2440_v54 = vsel %vm2184_vm4, %v12155_v37, %v2312_v48  ;;  %vm2186_vm6 = vcmp.ge.f32.partialorder %v12157_v49, 0.0  ;;  %v2314_v55 = vmul.f32 0.2, %v12157_v49  ;;  %2140 = vmatmul.mubr.bf16.gmra.mrb[112].mxu0 %v13209_v40  ;;  %5881 = vrot.lane.b32.xlu0 %v2885_v47, %s13310_s26  ;;  %v13215_v40 = vld [vmem:[%s13410_s15 + $0x3c8] ss:$16 sps:$4 sm:$0xff]  }
 0x231   : > { %v2441_v57 = vsel %vm2185_vm5, %v12156_v43, %v2313_v51  ;;  %vm2187_vm7 = vcmp.ge.f32.partialorder %v12158_v53, 0.0  ;;  %v2315_v58 = vmul.f32 0.2, %v12158_v53  ;;  %2149 = vmatprep.mubr.bf16.mxu0 %v13210_v46  ;;  %v2760_v61 = vmul.f32 %v2632_v42, %v2440_v54  ;;  %v13218_v47 = vld [vmem:[%s13410_s15 + $0x3ec] ss:$16 sps:$4 sm:$0xff]  }
 0x232   : > { %v2442_v59 = vsel %vm2186_vm6, %v12157_v49, %v2314_v55  ;;  %v2761_v3 = vmul.f32 %v2633_v44, %v2441_v57  ;;  %v2640_v43 = vunpack.c.l.bf16 %v2570_v30  ;;  %v2643_v57 = vunpack.c.h.bf16 %v2571_v39 }
 0x233   : > { %v2762_v62 = vmul.f32 %v2634_v52, %v2442_v59  ;;  %v2443_v0 = vsel %vm2187_vm7, %v12158_v53, %v2315_v58  ;;  %v1881_v2 = vpop.f32.mrb[8].mxu0  ;;  %v2642_v53 = vunpack.c.l.bf16 %v2571_v39 }
 0x234   : > { %v2763_v4 = vmul.f32 %v2635_v56, %v2443_v0  ;;  %v12159_v7 = vadd.f32 %v1881_v2, %v13720_v5  ;;  %v1883_v8 = vpop.f32.mrb[9].mxu0 }
 0x235   : > { %v13760_v11 = vpack.c.bf16 %v2762_v62, %v2760_v61  ;;  %v12160_v13 = vadd.f32 %v1883_v8, %v13722_v6  ;;  %v1885_v15 = vpop.f32.mrb[10].mxu0 }
 0x236   : > { %v2887_v17 = vpack.c.bf16 %v2763_v4, %v2761_v3  ;;  %vm2188_vm8 = vcmp.ge.f32.partialorder %v12159_v7, 0.0  ;;  %v2316_v18 = vmul.f32 0.2, %v12159_v7  ;;  %v12161_v19 = vadd.f32 %v1885_v15, %v13720_v5  ;;  %v1887_v20 = vpop.f32.mrb[11].mxu0 }
 0x237   : > { %2950 = vst [vmem:[#allocation2 + $0x10] sm:$0xff] %v13760_v11  ;;  %vm2189_vm9 = vcmp.ge.f32.partialorder %v12160_v13, 0.0  ;;  %v2317_v21 = vmul.f32 0.2, %v12160_v13  ;;  %v12162_v23 = vadd.f32 %v1887_v20, %v13722_v6 }
 0x238   : > { %2951 = vst [vmem:[#allocation2 + $0x18] sm:$0xff] %v2887_v17  ;;  %v2444_v24 = vsel %vm2188_vm8, %v12159_v7, %v2316_v18  ;;  %vm2190_vm10 = vcmp.ge.f32.partialorder %v12161_v19, 0.0  ;;  %v2318_v25 = vmul.f32 0.2, %v12161_v19  ;;  %2150 = vmatmul.mubr.bf16.gmra.mrb[116].mxu0 %v13212_v10  ;;  %5883 = vrot.lane.b32.xlu0 %v2887_v17, %s13310_s26 }
 0x239   : > { %v2445_v27 = vsel %vm2189_vm9, %v12160_v13, %v2317_v21  ;;  %vm2191_vm11 = vcmp.ge.f32.partialorder %v12162_v23, 0.0  ;;  %v2319_v28 = vmul.f32 0.2, %v12162_v23  ;;  %2159 = vmatprep.mubr.bf16.mxu0 %v13213_v16  ;;  %v2764_v31 = vmul.f32 %v2636_v12, %v2444_v24  ;;  %v2573_v12 = vld [vmem:[%s16013_s3 + $0x48] sm:$0xff] }
 0x23a   : > { %v2446_v29 = vsel %vm2190_vm10, %v12161_v19, %v2318_v25  ;;  %v2765_v35 = vmul.f32 %v2637_v14, %v2445_v27  ;;  %v13220_v13 = vld [vmem:[%s13410_s15 + $0x3e8] ss:$16 sps:$4 sm:$0xff]   ;;  %v2645_v16 = vunpack.c.h.bf16 %v2572_v60  ;;  %v2647_v27 = vunpack.c.h.bf16 %v2573_v12  ;;  %v2576_v60 = vld [vmem:[%s16013_s3 + $0x60] sm:$0xff] }
 0x23b   : > { %v2766_v32 = vmul.f32 %v2638_v22, %v2446_v29  ;;  %v2447_v33 = vsel %vm2191_vm11, %v12162_v23, %v2319_v28  ;;  %v1891_v34 = vpop.f32.mrb[12].mxu0  ;;  %v2646_v23 = vunpack.c.l.bf16 %v2573_v12  ;;  %v2653_v12 = vunpack.c.h.bf16 %v2576_v60 }
 0x23c   : > { %v2767_v36 = vmul.f32 %v2639_v26, %v2447_v33  ;;  %v12163_v37 = vadd.f32 %v1891_v34, %v13720_v5  ;;  %v1893_v38 = vpop.f32.mrb[13].mxu0 }
 0x23d   : > { %v13776_v42 = vpack.c.bf16 %v2766_v32, %v2764_v31  ;;  %v12164_v44 = vadd.f32 %v1893_v38, %v13722_v6  ;;  %v1895_v46 = vpop.f32.mrb[14].mxu0  ;;  %v2574_v31 = vld [vmem:[%s16013_s3 + $0x50] sm:$0xff] }
 0x23e   : > { %v2889_v48 = vpack.c.bf16 %v2767_v36, %v2765_v35  ;;  %vm2192_vm12 = vcmp.ge.f32.partialorder %v12163_v37, 0.0  ;;  %v2320_v49 = vmul.f32 0.2, %v12163_v37  ;;  %v12165_v50 = vadd.f32 %v1895_v46, %v13720_v5  ;;  %v1897_v51 = vpop.f32.mrb[15].mxu0 }
 0x23f   : > { %2952 = vst [vmem:[#allocation2 + $0x20] sm:$0xff] %v13776_v42  ;;  %vm2193_vm13 = vcmp.ge.f32.partialorder %v12164_v44, 0.0  ;;  %v2321_v52 = vmul.f32 0.2, %v12164_v44  ;;  %v12166_v54 = vadd.f32 %v1897_v51, %v13722_v6 }
 0x240   : > { %2953 = vst [vmem:[#allocation2 + $0x28] sm:$0xff] %v2889_v48  ;;  %v2448_v55 = vsel %vm2192_vm12, %v12163_v37, %v2320_v49  ;;  %vm2194_vm14 = vcmp.ge.f32.partialorder %v12165_v50, 0.0  ;;  %v2322_v56 = vmul.f32 0.2, %v12165_v50  ;;  %2160 = vmatmul.mubr.bf16.gmra.mrb[120].mxu0 %v13215_v40  ;;  %5885 = vrot.lane.b32.xlu1 %v2889_v48, %s13310_s26  ;;  %v2575_v40 = vld [vmem:[%s16013_s3 + $0x58] sm:$0xff] }
 0x241   : > { %v2449_v58 = vsel %vm2193_vm13, %v12164_v44, %v2321_v52  ;;  %vm2195_vm15 = vcmp.ge.f32.partialorder %v12166_v54, 0.0  ;;  %v2323_v59 = vmul.f32 0.2, %v12166_v54  ;;  %2169 = vmatprep.mubr.bf16.mxu0 %v13218_v47  ;;  %v2768_v62 = vmul.f32 %v2640_v43, %v2448_v55 }
 0x242   : > { %v2450_v61 = vsel %vm2194_vm14, %v12165_v50, %v2322_v56  ;;  %v2769_v4 = vmul.f32 %v2641_v45, %v2449_v58  ;;  %v2649_v45 = vunpack.c.h.bf16 %v2574_v31  ;;  %v2650_v52 = vunpack.c.l.bf16 %v2575_v40 }
 0x243   : > { %v2770_v0 = vmul.f32 %v2642_v53, %v2450_v61  ;;  %v2451_v2 = vsel %vm2195_vm15, %v12166_v54, %v2323_v59  ;;  %v1901_v3 = vpop.f32.mrb[16].mxu0  ;;  %v2651_v56 = vunpack.c.h.bf16 %v2575_v40 }
 0x244   : > { %v2771_v7 = vmul.f32 %v2643_v57, %v2451_v2  ;;  %v12167_v8 = vadd.f32 %v1901_v3, %v13720_v5  ;;  %v1903_v10 = vpop.f32.mrb[17].mxu0 }
 0x245   : > { %v13792_v14 = vpack.c.bf16 %v2770_v0, %v2768_v62  ;;  %v12168_v15 = vadd.f32 %v1903_v10, %v13722_v6  ;;  %v1905_v17 = vpop.f32.mrb[18].mxu0 }
 0x246   : > { %v2891_v18 = vpack.c.bf16 %v2771_v7, %v2769_v4  ;;  %vm2196_vm1 = vcmp.ge.f32.partialorder %v12167_v8, 0.0  ;;  %v2324_v19 = vmul.f32 0.2, %v12167_v8  ;;  %v12169_v20 = vadd.f32 %v1905_v17, %v13720_v5  ;;  %v1907_v21 = vpop.f32.mrb[19].mxu0 }
 0x247   : > { %2954 = vst [vmem:[#allocation2 + $0x30] sm:$0xff] %v13792_v14  ;;  %vm2197_vm2 = vcmp.ge.f32.partialorder %v12168_v15, 0.0  ;;  %v2325_v22 = vmul.f32 0.2, %v12168_v15  ;;  %v12170_v24 = vadd.f32 %v1907_v21, %v13722_v6 }
 0x248   : > { %2955 = vst [vmem:[#allocation2 + $0x38] sm:$0xff] %v2891_v18  ;;  %v2452_v25 = vsel %vm2196_vm1, %v12167_v8, %v2324_v19  ;;  %vm2198_vm3 = vcmp.ge.f32.partialorder %v12169_v20, 0.0  ;;  %v2326_v26 = vmul.f32 0.2, %v12169_v20  ;;  %2170 = vmatmul.mubr.bf16.gmra.mrb[124].mxu0 %v13220_v13  ;;  %5887 = vrot.lane.b32.xlu1 %v2891_v18, %s13310_s26  ;;  %v2577_v8 = vld [vmem:[%s16013_s3 + $0x68] sm:$0xff] }
 0x249   : > { %v2453_v28 = vsel %vm2197_vm2, %v12168_v15, %v2325_v22  ;;  %vm2199_vm4 = vcmp.ge.f32.partialorder %v12170_v24, 0.0  ;;  %v2327_v29 = vmul.f32 0.2, %v12170_v24  ;;  %11503 = vmatprep.mubr.msk.bf16.mxu0 %vm3078_vm0, %v13744_v41  ;;  %v2772_v32 = vmul.f32 %v2644_v9, %v2452_v25 }
 0x24a   : > { %v2454_v30 = vsel %vm2198_vm3, %v12169_v20, %v2326_v26  ;;  %v2773_v36 = vmul.f32 %v2645_v16, %v2453_v28  ;;  %v2648_v41 = vunpack.c.l.bf16 %v2574_v31  ;;  %v2654_v20 = vunpack.c.l.bf16 %v2577_v8  ;;  %v2578_v28 = vld [vmem:[%s16013_s3 + $0x70] sm:$0xff] }
 0x24b   : > { %v2774_v33 = vmul.f32 %v2646_v23, %v2454_v30  ;;  %v2455_v34 = vsel %vm2199_vm4, %v12170_v24, %v2327_v29  ;;  %v1911_v35 = vpop.f32.mrb[20].mxu0  ;;  %v2655_v24 = vunpack.c.h.bf16 %v2577_v8  ;;  %v2657_v40 = vunpack.c.h.bf16 %v2578_v28 }
 0x24c   : > { %v2775_v37 = vmul.f32 %v2647_v27, %v2455_v34  ;;  %v12171_v38 = vadd.f32 %v1911_v35, %v13720_v5  ;;  %v1913_v39 = vpop.f32.mrb[21].mxu0 }
 0x24d   : > { %v2892_v43 = vpack.c.bf16 %v2774_v33, %v2772_v32  ;;  %v12172_v44 = vadd.f32 %v1913_v39, %v13722_v6  ;;  %v1915_v46 = vpop.f32.mrb[22].mxu0 }
 0x24e   : > { %v2893_v47 = vpack.c.bf16 %v2775_v37, %v2773_v36  ;;  %vm2200_vm5 = vcmp.ge.f32.partialorder %v12171_v38, 0.0  ;;  %v2328_v48 = vmul.f32 0.2, %v12171_v38  ;;  %v12173_v49 = vadd.f32 %v1915_v46, %v13720_v5  ;;  %v1917_v50 = vpop.f32.mrb[23].mxu0  ;;  %v2579_v36 = vld [vmem:[%s16013_s3 + $0x78] sm:$0xff] }
 0x24f   : > { %2956 = vst [vmem:[#allocation2 + $0x40] sm:$0xff] %v2892_v43  ;;  %vm2201_vm6 = vcmp.ge.f32.partialorder %v12172_v44, 0.0  ;;  %v2329_v51 = vmul.f32 0.2, %v12172_v44  ;;  %v12174_v53 = vadd.f32 %v1917_v50, %v13722_v6 }
 0x250   : > { %2957 = vst [vmem:[#allocation2 + $0x48] sm:$0xff] %v2893_v47  ;;  %v2456_v54 = vsel %vm2200_vm5, %v12171_v38, %v2328_v48  ;;  %vm2202_vm7 = vcmp.ge.f32.partialorder %v12173_v49, 0.0  ;;  %v2330_v55 = vmul.f32 0.2, %v12173_v49  ;;  %11504 = vmatmul.mubr.msk.bf16.vlgmr.msra.gmra.mrb[128].mxu0 %vm3078_vm0, %v13760_v11  ;;  %5889 = vrot.lane.b32.xlu0 %v2893_v47, %s13310_s26  ;;  %v2656_v38 = vunpack.c.l.bf16 %v2578_v28 }
 0x251   : > { %v2457_v57 = vsel %vm2201_vm6, %v12172_v44, %v2329_v51  ;;  %vm2203_vm8 = vcmp.ge.f32.partialorder %v12174_v53, 0.0  ;;  %v2331_v58 = vmul.f32 0.2, %v12174_v53  ;;  %11507 = vmatprep.mubr.msk.bf16.mxu0 %vm3078_vm0, %v13776_v42  ;;  %v2776_v61 = vmul.f32 %v2648_v41, %v2456_v54 }
 0x252   : > { %v2458_v59 = vsel %vm2202_vm7, %v12173_v49, %v2330_v55  ;;  %v2777_v3 = vmul.f32 %v2649_v45, %v2457_v57  ;;  %v2652_v42 = vunpack.c.l.bf16 %v2576_v60  ;;  %v2658_v48 = vunpack.c.l.bf16 %v2579_v36 }
 0x253   : > { %v2778_v62 = vmul.f32 %v2650_v52, %v2458_v59  ;;  %v2459_v0 = vsel %vm2203_vm8, %v12174_v53, %v2331_v58  ;;  %v1921_v2 = vpop.f32.mrb[24].mxu0  ;;  %v2659_v52 = vunpack.c.h.bf16 %v2579_v36 }
 0x254   : > { %v2779_v4 = vmul.f32 %v2651_v56, %v2459_v0  ;;  %v12175_v11 = vadd.f32 %v1921_v2, %v13720_v5  ;;  %v1923_v7 = vpop.f32.mrb[25].mxu0  ;;  %v2580_v56 = vld [vmem:[%s16013_s3 + $0x80] sm:$0xff] }
 0x255   : > { %v2894_v9 = vpack.c.bf16 %v2778_v62, %v2776_v61  ;;  %v12176_v10 = vadd.f32 %v1923_v7, %v13722_v6  ;;  %v1925_v13 = vpop.f32.mrb[26].mxu0  ;;  %v2661_v8 = vunpack.c.h.bf16 %v2580_v56 }
 0x256   : > { %v2895_v15 = vpack.c.bf16 %v2779_v4, %v2777_v3  ;;  %vm2204_vm9 = vcmp.ge.f32.partialorder %v12175_v11, 0.0  ;;  %v2332_v16 = vmul.f32 0.2, %v12175_v11  ;;  %v12177_v17 = vadd.f32 %v1925_v13, %v13720_v5  ;;  %v1927_v18 = vpop.f32.mrb[27].mxu0  ;;  %v2581_v3 = vld [vmem:[%s16013_s3 + $0x88] sm:$0xff] }
 0x257   : > { %2958 = vst [vmem:[#allocation2 + $0x50] sm:$0xff] %v2894_v9  ;;  %vm2205_vm10 = vcmp.ge.f32.partialorder %v12176_v10, 0.0  ;;  %v2333_v19 = vmul.f32 0.2, %v12176_v10  ;;  %v12178_v21 = vadd.f32 %v1927_v18, %v13722_v6 }
 0x258   : > { %2959 = vst [vmem:[#allocation2 + $0x58] sm:$0xff] %v2895_v15  ;;  %v2460_v22 = vsel %vm2204_vm9, %v12175_v11, %v2332_v16  ;;  %vm2206_vm11 = vcmp.ge.f32.partialorder %v12177_v17, 0.0  ;;  %v2334_v23 = vmul.f32 0.2, %v12177_v17  ;;  %11508 = vmatmul.mubr.msk.bf16.gmra.mrb[132].mxu0 %vm3078_vm0, %v13792_v14  ;;  %5891 = vrot.lane.b32.xlu1 %v2895_v15, %s13310_s26  ;;  %v2660_v11 = vunpack.c.l.bf16 %v2580_v56 }
 0x259   : > { %v2461_v25 = vsel %vm2205_vm10, %v12176_v10, %v2333_v19  ;;  %vm2207_vm12 = vcmp.ge.f32.partialorder %v12178_v21, 0.0  ;;  %v2335_v26 = vmul.f32 0.2, %v12178_v21  ;;  %11511 = vmatprep.mubr.msk.bf16.mxu0 %vm3078_vm0, %v2892_v43  ;;  %v2780_v29 = vmul.f32 %v2652_v42, %v2460_v22 }
 0x25a   : > { %v2462_v27 = vsel %vm2206_vm11, %v12177_v17, %v2334_v23  ;;  %v2781_v33 = vmul.f32 %v2653_v12, %v2461_v25  ;;  %v2662_v16 = vunpack.c.l.bf16 %v2581_v3 }
 0x25b   : > { %v2782_v30 = vmul.f32 %v2654_v20, %v2462_v27  ;;  %v2463_v31 = vsel %vm2207_vm12, %v12178_v21, %v2335_v26  ;;  %v1931_v32 = vpop.f32.mrb[28].mxu0  ;;  %v2663_v20 = vunpack.c.h.bf16 %v2581_v3 }
 0x25c   : > { %v2783_v34 = vmul.f32 %v2655_v24, %v2463_v31  ;;  %v12179_v14 = vadd.f32 %v1931_v32, %v13720_v5  ;;  %v1933_v35 = vpop.f32.mrb[29].mxu0  ;;  %v2582_v24 = vld [vmem:[%s16013_s3 + $0x90] sm:$0xff] }
 0x25d   : > { %v2896_v37 = vpack.c.bf16 %v2782_v30, %v2780_v29  ;;  %v12180_v39 = vadd.f32 %v1933_v35, %v13722_v6  ;;  %v1935_v43 = vpop.f32.mrb[30].mxu0  ;;  %v2665_v36 = vunpack.c.h.bf16 %v2582_v24 }
 0x25e   : > { %v2897_v41 = vpack.c.bf16 %v2783_v34, %v2781_v33  ;;  %vm2208_vm13 = vcmp.ge.f32.partialorder %v12179_v14, 0.0  ;;  %v2336_v44 = vmul.f32 0.2, %v12179_v14  ;;  %v12181_v45 = vadd.f32 %v1935_v43, %v13720_v5  ;;  %v1937_v46 = vpop.f32.mrb[31].mxu0  ;;  %v2583_v33 = vld [vmem:[%s16013_s3 + $0x98] sm:$0xff] }
 0x25f   : > { %2960 = vst [vmem:[#allocation2 + $0x60] sm:$0xff] %v2896_v37  ;;  %vm2209_vm14 = vcmp.ge.f32.partialorder %v12180_v39, 0.0  ;;  %v2337_v47 = vmul.f32 0.2, %v12180_v39  ;;  %v12182_v49 = vadd.f32 %v1937_v46, %v13722_v6 }
 0x260   : > { %2961 = vst [vmem:[#allocation2 + $0x68] sm:$0xff] %v2897_v41  ;;  %v2464_v50 = vsel %vm2208_vm13, %v12179_v14, %v2336_v44  ;;  %vm2210_vm15 = vcmp.ge.f32.partialorder %v12181_v45, 0.0  ;;  %v2338_v51 = vmul.f32 0.2, %v12181_v45  ;;  %11512 = vmatmul.mubr.msk.bf16.gmra.mrb[136].mxu0 %vm3078_vm0, %v2894_v9  ;;  %5893 = vrot.lane.b32.xlu0 %v2897_v41, %s13310_s26  ;;  %v2664_v14 = vunpack.c.l.bf16 %v2582_v24 }
 0x261   : > { %v2465_v53 = vsel %vm2209_vm14, %v12180_v39, %v2337_v47  ;;  %vm2211_vm1 = vcmp.ge.f32.partialorder %v12182_v49, 0.0  ;;  %v2339_v54 = vmul.f32 0.2, %v12182_v49  ;;  %11515 = vmatprep.mubr.msk.bf16.mxu0 %vm3078_vm0, %v2896_v37  ;;  %v2784_v57 = vmul.f32 %v2656_v38, %v2464_v50 }
 0x262   : > { %v2466_v55 = vsel %vm2210_vm15, %v12181_v45, %v2338_v51  ;;  %v2785_v61 = vmul.f32 %v2657_v40, %v2465_v53  ;;  %v2666_v44 = vunpack.c.l.bf16 %v2583_v33  ;;  %v2584_v53 = vld [vmem:[%s16013_s3 + $0xa0] sm:$0xff] }
 0x263   : > { %v2786_v58 = vmul.f32 %v2658_v48, %v2466_v55  ;;  %v2467_v59 = vsel %vm2211_vm1, %v12182_v49, %v2339_v54  ;;  %v1941_v60 = vpop.f32.mrb[32].mxu0  ;;  %v2667_v48 = vunpack.c.h.bf16 %v2583_v33  ;;  %v13870_v49 = vld [vmem:[%s16014_s4 + $0x60] sm:$0xff]  }
 0x264   : > { %v2787_v62 = vmul.f32 %v2659_v52, %v2467_v59  ;;  %v12183_v0 = vadd.f32 %v1941_v60, %v13720_v5  ;;  %v1943_v2 = vpop.f32.mrb[33].mxu0  ;;  %11711 = vmatprep.subr.bf16.mxu1 %v13870_v49 }
 0x265   : > { %v2898_v4 = vpack.c.bf16 %v2786_v58, %v2784_v57  ;;  %v12184_v7 = vadd.f32 %v1943_v2, %v13722_v6  ;;  %v1945_v9 = vpop.f32.mrb[34].mxu0  ;;  %v2668_v2 = vunpack.c.l.bf16 %v2584_v53 }
 0x266   : > { %v2899_v42 = vpack.c.bf16 %v2787_v62, %v2785_v61  ;;  %vm2212_vm2 = vcmp.ge.f32.partialorder %v12183_v0, 0.0  ;;  %v2340_v10 = vmul.f32 0.2, %v12183_v0  ;;  %v12185_v12 = vadd.f32 %v1945_v9, %v13720_v5  ;;  %v1947_v13 = vpop.f32.mrb[35].mxu0  ;;  %v2585_v62 = vld [vmem:[%s16013_s3 + $0xa8] sm:$0xff] }
 0x267   : > { %2962 = vst [vmem:[#allocation2 + $0x70] sm:$0xff] %v2898_v4  ;;  %vm2213_vm3 = vcmp.ge.f32.partialorder %v12184_v7, 0.0  ;;  %v2341_v15 = vmul.f32 0.2, %v12184_v7  ;;  %v12186_v17 = vadd.f32 %v1947_v13, %v13722_v6 }
 0x268   : > { %2963 = vst [vmem:[#allocation2 + $0x78] sm:$0xff] %v2899_v42  ;;  %v2468_v18 = vsel %vm2212_vm2, %v12183_v0, %v2340_v10  ;;  %vm2214_vm4 = vcmp.ge.f32.partialorder %v12185_v12, 0.0  ;;  %v2342_v19 = vmul.f32 0.2, %v12185_v12  ;;  %11516 = vmatmul.mubr.msk.bf16.gmra.mrb[140].mxu0 %vm3078_vm0, %v2898_v4  ;;  %5895 = vrot.lane.b32.xlu1 %v2899_v42, %s13310_s26  ;;  %v2669_v4 = vunpack.c.h.bf16 %v2584_v53 }
 0x269   : > { %v2469_v21 = vsel %vm2213_vm3, %v12184_v7, %v2341_v15  ;;  %vm2215_vm5 = vcmp.ge.f32.partialorder %v12186_v17, 0.0  ;;  %v2343_v22 = vmul.f32 0.2, %v12186_v17  ;;  %v2788_v25 = vmul.f32 %v2660_v11, %v2468_v18 }
 0x26a   : > { %v2470_v23 = vsel %vm2214_vm4, %v12185_v12, %v2342_v19  ;;  %v2789_v29 = vmul.f32 %v2661_v8, %v2469_v21  ;;  %v2670_v12 = vunpack.c.l.bf16 %v2585_v62  ;;  %v2586_v21 = vld [vmem:[%s16013_s3 + $0xb0] sm:$0xff] }
 0x26b   : > { %v2790_v26 = vmul.f32 %v2662_v16, %v2470_v23  ;;  %v2471_v27 = vsel %vm2215_vm5, %v12186_v17, %v2343_v22  ;;  %v1951_v28 = vpop.f32.mrb[36].mxu0  ;;  %v2671_v17 = vunpack.c.h.bf16 %v2585_v62 }
 0x26c   : > { %v2791_v30 = vmul.f32 %v2663_v20, %v2471_v27  ;;  %v12187_v31 = vadd.f32 %v1951_v28, %v13720_v5  ;;  %v1953_v32 = vpop.f32.mrb[37].mxu0 }
 0x26d   : > { %v2900_v34 = vpack.c.bf16 %v2790_v26, %v2788_v25  ;;  %v12188_v35 = vadd.f32 %v1953_v32, %v13722_v6  ;;  %v1955_v37 = vpop.f32.mrb[38].mxu0  ;;  %v2672_v32 = vunpack.c.l.bf16 %v2586_v21 }
 0x26e   : > { %v2901_v38 = vpack.c.bf16 %v2791_v30, %v2789_v29  ;;  %vm2216_vm6 = vcmp.ge.f32.partialorder %v12187_v31, 0.0  ;;  %v2344_v39 = vmul.f32 0.2, %v12187_v31  ;;  %v12189_v40 = vadd.f32 %v1955_v37, %v13720_v5  ;;  %v1957_v43 = vpop.f32.mrb[39].mxu0  ;;  %v2587_v30 = vld [vmem:[%s16013_s3 + $0xb8] sm:$0xff] }
 0x26f   : > { %2964 = vst [vmem:[#allocation2 + $0x80] sm:$0xff] %v2900_v34  ;;  %vm2217_vm7 = vcmp.ge.f32.partialorder %v12188_v35, 0.0  ;;  %v2345_v41 = vmul.f32 0.2, %v12188_v35  ;;  %v12190_v45 = vadd.f32 %v1957_v43, %v13722_v6  ;;  %11519 = vmatprep.mubr.msk.bf16.mxu0 %vm3078_vm0, %v2900_v34  ;;  %v2673_v34 = vunpack.c.h.bf16 %v2586_v21 }
 0x270   : > { %2965 = vst [vmem:[#allocation2 + $0x88] sm:$0xff] %v2901_v38  ;;  %v2472_v46 = vsel %vm2216_vm6, %v12187_v31, %v2344_v39  ;;  %vm2218_vm8 = vcmp.ge.f32.partialorder %v12189_v40, 0.0  ;;  %v2346_v47 = vmul.f32 0.2, %v12189_v40  ;;  %5897 = vrot.lane.b32.xlu0 %v2901_v38, %s13310_s26 }
 0x271   : > { %v2473_v50 = vsel %vm2217_vm7, %v12188_v35, %v2345_v41  ;;  %vm2219_vm9 = vcmp.ge.f32.partialorder %v12190_v45, 0.0  ;;  %v2347_v51 = vmul.f32 0.2, %v12190_v45  ;;  %v2792_v54 = vmul.f32 %v2664_v14, %v2472_v46  ;;  %v13901_v41 = vld [vmem:[%s16013_s3 + $0xc0] sm:$0xff] }
 0x272   : > { %v2474_v52 = vsel %vm2218_vm8, %v12189_v40, %v2346_v47  ;;  %v2793_v58 = vmul.f32 %v2665_v36, %v2473_v50  ;;  %v2674_v40 = vunpack.c.l.bf16 %v2587_v30  ;;  %v2675_v46 = vunpack.c.h.bf16 %v2587_v30  ;;  %v2589_v50 = vld [vmem:[%s16013_s3 + $0xc8] sm:$0xff] }
 0x273   : > { %v2794_v55 = vmul.f32 %v2666_v44, %v2474_v52  ;;  %v2475_v56 = vsel %vm2219_vm9, %v12190_v45, %v2347_v51  ;;  %v1961_v57 = vpop.f32.mrb[40].mxu0  ;;  %v2676_v53 = vunpack.c.l.bf16 %v13901_v41  ;;  %vm4306_vm7 = vsmask.f32 7424 }
 0x274   : > { %v2795_v59 = vmul.f32 %v2667_v48, %v2475_v56  ;;  %v12191_v60 = vadd.f32 %v1961_v57, %v13720_v5  ;;  %v1963_v61 = vpop.f32.mrb[41].mxu0 }
 0x275   : > { %v2902_v0 = vpack.c.bf16 %v2794_v55, %v2792_v54  ;;  %v12192_v3 = vadd.f32 %v1963_v61, %v13722_v6  ;;  %v1965_v11 = vpop.f32.mrb[42].mxu0 }
 0x276   : > { %v2903_v7 = vpack.c.bf16 %v2795_v59, %v2793_v58  ;;  %vm2220_vm10 = vcmp.ge.f32.partialorder %v12191_v60, 0.0  ;;  %v2348_v8 = vmul.f32 0.2, %v12191_v60  ;;  %v12193_v9 = vadd.f32 %v1965_v11, %v13720_v5  ;;  %v1967_v42 = vpop.f32.mrb[43].mxu0 }
 0x277   : > { %2966 = vst [vmem:[#allocation2 + $0x90] sm:$0xff] %v2902_v0  ;;  %vm2221_vm11 = vcmp.ge.f32.partialorder %v12192_v3, 0.0  ;;  %v2349_v10 = vmul.f32 0.2, %v12192_v3  ;;  %v12194_v13 = vadd.f32 %v1967_v42, %v13722_v6  ;;  %11520 = vmatmul.mubr.msk.bf16.gmra.mrb[144].mxu0 %vm3078_vm0, %v2902_v0  ;;  %v2677_v58 = vunpack.c.h.bf16 %v13901_v41 }
 0x278   : > { %2967 = vst [vmem:[#allocation2 + $0x98] sm:$0xff] %v2903_v7  ;;  %v2476_v15 = vsel %vm2220_vm10, %v12191_v60, %v2348_v8  ;;  %vm2222_vm12 = vcmp.ge.f32.partialorder %v12193_v9, 0.0  ;;  %v2350_v16 = vmul.f32 0.2, %v12193_v9  ;;  %5899 = vrot.lane.b32.xlu1 %v2903_v7, %s13310_s26  ;;  %v2678_v0 = vunpack.c.l.bf16 %v2589_v50 }
 0x279   : > { %v2477_v18 = vsel %vm2221_vm11, %v12192_v3, %v2349_v10  ;;  %vm2223_vm13 = vcmp.ge.f32.partialorder %v12194_v13, 0.0  ;;  %v2351_v19 = vmul.f32 0.2, %v12194_v13  ;;  %v2796_v22 = vmul.f32 %v2668_v2, %v2476_v15  ;;  %v13924_v15 = vld [vmem:[%s16013_s3 + $0xd0] sm:$0xff] }
 0x27a   : > { %v2478_v20 = vsel %vm2222_vm12, %v12193_v9, %v2350_v16  ;;  %v2797_v26 = vmul.f32 %v2669_v4, %v2477_v18  ;;  %v2679_v11 = vunpack.c.h.bf16 %v2589_v50 }
 0x27b   : > { %v2798_v23 = vmul.f32 %v2670_v12, %v2478_v20  ;;  %v2479_v24 = vsel %vm2223_vm13, %v12194_v13, %v2351_v19  ;;  %v1971_v25 = vpop.f32.mrb[44].mxu0 }
 0x27c   : > { %v2799_v27 = vmul.f32 %v2671_v17, %v2479_v24  ;;  %v12195_v28 = vadd.f32 %v1971_v25, %v13720_v5  ;;  %v1973_v29 = vpop.f32.mrb[45].mxu0  ;;  %v2591_v24 = vld [vmem:[%s16013_s3 + $0xd8] sm:$0xff] }
 0x27d   : > { %v13892_v31 = vpack.c.bf16 %v2798_v23, %v2796_v22  ;;  %v12196_v33 = vadd.f32 %v1973_v29, %v13722_v6  ;;  %v1975_v14 = vpop.f32.mrb[46].mxu0  ;;  %v2680_v23 = vunpack.c.l.bf16 %v13924_v15 }
 0x27e   : > { %v2905_v35 = vpack.c.bf16 %v2799_v27, %v2797_v26  ;;  %vm2224_vm14 = vcmp.ge.f32.partialorder %v12195_v28, 0.0  ;;  %v2352_v36 = vmul.f32 0.2, %v12195_v28  ;;  %v12197_v37 = vadd.f32 %v1975_v14, %v13720_v5  ;;  %v1977_v38 = vpop.f32.mrb[47].mxu0 }
 0x27f   : > { %2968 = vst [vmem:[#allocation2 + $0xa0] sm:$0xff] %v13892_v31  ;;  %vm2225_vm15 = vcmp.ge.f32.partialorder %v12196_v33, 0.0  ;;  %v2353_v39 = vmul.f32 0.2, %v12196_v33  ;;  %v12198_v43 = vadd.f32 %v1977_v38, %v13722_v6  ;;  %11523 = vmatprep.mubr.msk.bf16.mxu0 %vm3078_vm0, %v13892_v31  ;;  %v4387_v51 = vshll.u32 %v13892_v31, 16 }
 0x280   : > { %2969 = vst [vmem:[#allocation2 + $0xa8] sm:$0xff] %v2905_v35  ;;  %v2480_v44 = vsel %vm2224_vm14, %v12195_v28, %v2352_v36  ;;  %vm2226_vm1 = vcmp.ge.f32.partialorder %v12197_v37, 0.0  ;;  %v2354_v45 = vmul.f32 0.2, %v12197_v37  ;;  %5901 = vrot.lane.b32.xlu0 %v2905_v35, %s13310_s26  ;;  %v4391_v19 = vshrl.u32 %v13892_v31, 16 }
 0x281   : > { %v2481_v47 = vsel %vm2225_vm15, %v12196_v33, %v2353_v39  ;;  %vm2227_vm2 = vcmp.ge.f32.partialorder %v12198_v43, 0.0  ;;  %v2355_v48 = vmul.f32 0.2, %v12198_v43  ;;  %v2800_v54 = vmul.f32 %v2672_v32, %v2480_v44 }
 0x282   : > { %v2482_v52 = vsel %vm2226_vm1, %v12197_v37, %v2354_v45  ;;  %v2801_v59 = vmul.f32 %v2673_v34, %v2481_v47  ;;  %v13916_v7 = vrot.slane %v4387_v51, 1  ;;  %v2681_v31 = vunpack.c.h.bf16 %v13924_v15 }
 0x283   : > { %v2802_v55 = vmul.f32 %v2674_v40, %v2482_v52  ;;  %v2483_v56 = vsel %vm2227_vm2, %v12198_v43, %v2355_v48  ;;  %v1981_v57 = vpop.f32.mrb[48].mxu0  ;;  %v2682_v39 = vunpack.c.l.bf16 %v2591_v24  ;;  %v2683_v40 = vunpack.c.h.bf16 %v2591_v24  ;;  %v13949_v48 = vld [vmem:[%s16013_s3 + $0xe0] sm:$0xff]  ;;  %v13977_v24 = vld [vmem:[%s16013_s3 + $0xf0] sm:$0xff] }
 0x284   : > { %v2803_v60 = vmul.f32 %v2675_v46, %v2483_v56  ;;  %v12199_v61 = vadd.f32 %v1981_v57, %v13720_v5  ;;  %v1983_v62 = vpop.f32.mrb[49].mxu0  ;;  %16041 = vst [vmem:[#allocation6_spill] sm:$0xff] %v13916_v7  ;;  %v4393_v25 = vor.u32 %v4391_v19, %v13916_v7  ;;  %v2684_v57 = vunpack.c.l.bf16 %v13949_v48 }
 0x285   : > { %v13913_v2 = vpack.c.bf16 %v2802_v55, %v2800_v54  ;;  %v12200_v3 = vadd.f32 %v1983_v62, %v13722_v6  ;;  %v1985_v4 = vpop.f32.mrb[50].mxu0 }
 0x286   : > { %v2907_v8 = vpack.c.bf16 %v2803_v60, %v2801_v59  ;;  %vm2228_vm3 = vcmp.ge.f32.partialorder %v12199_v61, 0.0  ;;  %v2356_v9 = vmul.f32 0.2, %v12199_v61  ;;  %v12201_v42 = vadd.f32 %v1985_v4, %v13720_v5  ;;  %v1987_v10 = vpop.f32.mrb[51].mxu0  ;;  %v2593_v59 = vld [vmem:[%s16013_s3 + $0xe8] sm:$0xff] }
 0x287   : > { %2970 = vst [vmem:[#allocation2 + $0xb0] sm:$0xff] %v13913_v2  ;;  %vm2229_vm4 = vcmp.ge.f32.partialorder %v12200_v3, 0.0  ;;  %v2357_v12 = vmul.f32 0.2, %v12200_v3  ;;  %v12202_v13 = vadd.f32 %v1987_v10, %v13722_v6  ;;  %11524 = vmatmul.mubr.msk.bf16.gmra.mrb[148].mxu0 %vm3078_vm0, %v13913_v2  ;;  %v4395_v16 = vshll.u32 %v13913_v2, 16  ;;  %v13228_v4 = vld [vmem:[%s16014_s4 + $0x68] sm:$0xff]  }
 0x288   : > { %2971 = vst [vmem:[#allocation2 + $0xb8] sm:$0xff] %v2907_v8  ;;  %v2484_v17 = vsel %vm2228_vm3, %v12199_v61, %v2356_v9  ;;  %vm2230_vm5 = vcmp.ge.f32.partialorder %v12201_v42, 0.0  ;;  %v2358_v18 = vmul.f32 0.2, %v12201_v42  ;;  %5903 = vrot.lane.b32.xlu1 %v2907_v8, %s13310_s26 }
 0x289   : > { %v2485_v20 = vsel %vm2229_vm4, %v12200_v3, %v2357_v12  ;;  %vm2231_vm6 = vcmp.ge.f32.partialorder %v12202_v13, 0.0  ;;  %v2359_v21 = vmul.f32 0.2, %v12202_v13  ;;  %v4397_v26 = vrot.slane %v4395_v16, 1 }
 0x28a   : > { %v2486_v22 = vsel %vm2230_vm5, %v12201_v42, %v2358_v18  ;;  %v2804_v27 = vmul.f32 %v2676_v53, %v2484_v17  ;;  %v2805_v32 = vmul.f32 %v2677_v58, %v2485_v20  ;;  %v4399_v53 = vshrl.u32 %v13913_v2, 16 }
 0x28b   : > { %v2806_v28 = vmul.f32 %v2678_v0, %v2486_v22  ;;  %v2487_v29 = vsel %vm2231_vm6, %v12202_v13, %v2359_v21  ;;  %v1991_v30 = vpop.f32.mrb[52].mxu0  ;;  %v4398_v35 = vsel %vm4306_vm7, %v4393_v25, %v4397_v26  ;;  %v2685_v2 = vunpack.c.h.bf16 %v13949_v48 }
 0x28c   : > { %v2807_v33 = vmul.f32 %v2679_v11, %v2487_v29  ;;  %v12203_v34 = vadd.f32 %v1991_v30, %v13720_v5  ;;  %v1993_v14 = vpop.f32.mrb[53].mxu0  ;;  %11667 = vmatprep.mubr.msk.bf16.mxu1 %vm3078_vm0, %v4398_v35  ;;  %v4401_v58 = vor.u32 %v4399_v53, %v4397_v26  ;;  %v2686_v16 = vunpack.c.l.bf16 %v2593_v59 }
 0x28d   : > { %v13939_v36 = vpack.c.bf16 %v2806_v28, %v2804_v27  ;;  %v12204_v37 = vadd.f32 %v1993_v14, %v13722_v6  ;;  %v1995_v38 = vpop.f32.mrb[54].mxu0  ;;  %v2687_v17 = vunpack.c.h.bf16 %v2593_v59  ;;  %v13229_v28 = vld [vmem:[%s16014_s4 + $0x70] sm:$0xff]  }
 0x28e   : > { %v2909_v43 = vpack.c.bf16 %v2807_v33, %v2805_v32  ;;  %vm2232_vm8 = vcmp.ge.f32.partialorder %v12203_v34, 0.0  ;;  %v2360_v41 = vmul.f32 0.2, %v12203_v34  ;;  %v12205_v44 = vadd.f32 %v1995_v38, %v13720_v5  ;;  %v1997_v45 = vpop.f32.mrb[55].mxu0  ;;  %v2595_v33 = vld [vmem:[%s16013_s3 + $0xf8] sm:$0xff] }
 0x28f   : > { %2972 = vst [vmem:[#allocation2 + $0xc0] sm:$0xff] %v13939_v36  ;;  %vm2233_vm9 = vcmp.ge.f32.partialorder %v12204_v37, 0.0  ;;  %v2361_v46 = vmul.f32 0.2, %v12204_v37  ;;  %v12206_v47 = vadd.f32 %v1997_v45, %v13722_v6  ;;  %11527 = vmatprep.mubr.msk.bf16.mxu0 %vm3078_vm0, %v13939_v36  ;;  %v4403_v50 = vshll.u32 %v13939_v36, 16 }
 0x290   : > { %2973 = vst [vmem:[#allocation2 + $0xc8] sm:$0xff] %v2909_v43  ;;  %v2488_v51 = vsel %vm2232_vm8, %v12203_v34, %v2360_v41  ;;  %vm2234_vm10 = vcmp.ge.f32.partialorder %v12205_v44, 0.0  ;;  %v2362_v52 = vmul.f32 0.2, %v12205_v44  ;;  %5905 = vrot.lane.b32.xlu0 %v2909_v43, %s13310_s26  ;;  %v4407_v27 = vshrl.u32 %v13939_v36, 16 }
 0x291   : > { %v2489_v54 = vsel %vm2233_vm9, %v12204_v37, %v2361_v46  ;;  %vm2235_vm11 = vcmp.ge.f32.partialorder %v12206_v47, 0.0  ;;  %v2363_v55 = vmul.f32 0.2, %v12206_v47  ;;  %v4405_v60 = vrot.slane %v4403_v50, 1 }
 0x292   : > { %v2490_v56 = vsel %vm2234_vm10, %v12205_v44, %v2362_v52  ;;  %v2808_v61 = vmul.f32 %v2680_v23, %v2488_v51  ;;  %v2809_v11 = vmul.f32 %v2681_v31, %v2489_v54  ;;  %v2688_v32 = vunpack.c.l.bf16 %v13977_v24 }
 0x293   : > { %v2810_v62 = vmul.f32 %v2682_v39, %v2490_v56  ;;  %v2491_v0 = vsel %vm2235_vm11, %v12206_v47, %v2363_v55  ;;  %v2001_v3 = vpop.f32.mrb[56].mxu0  ;;  %v4406_v10 = vsel %vm4306_vm7, %v4401_v58, %v4405_v60  ;;  %v4409_v34 = vor.u32 %v4407_v27, %v4405_v60  ;;  %v14002_v56 = vld [vmem:[%s16013_s3 + $0x100] sm:$0xff] }
 0x294   : > { %v2811_v8 = vmul.f32 %v2683_v40, %v2491_v0  ;;  %v12207_v9 = vadd.f32 %v2001_v3, %v13720_v5  ;;  %v2003_v42 = vpop.f32.mrb[57].mxu0  ;;  %11668 = vmatmul.mubr.msk.bf16.vlgmr.msra.gmra.mrb[0].mxu1 %vm3078_vm0, %v4406_v10  ;;  %v2689_v39 = vunpack.c.h.bf16 %v13977_v24  ;;  %v2690_v50 = vunpack.c.l.bf16 %v2595_v33 }
 0x295   : > { %v13966_v12 = vpack.c.bf16 %v2810_v62, %v2808_v61  ;;  %v12208_v13 = vadd.f32 %v2003_v42, %v13722_v6  ;;  %v2005_v15 = vpop.f32.mrb[58].mxu0  ;;  %11712 = vmatpush3.bf16.msra.mxu1 %v13870_v49  ;;  %v2691_v51 = vunpack.c.h.bf16 %v2595_v33  ;;  %v14012_v62 = vld [vmem:[%s16013_s3 + $0x108] sm:$0xff] }
 0x296   : > { %v2911_v18 = vpack.c.bf16 %v2811_v8, %v2809_v11  ;;  %vm2236_vm12 = vcmp.ge.f32.partialorder %v12207_v9, 0.0  ;;  %v2364_v19 = vmul.f32 0.2, %v12207_v9  ;;  %v12209_v20 = vadd.f32 %v2005_v15, %v13720_v5  ;;  %v2007_v21 = vpop.f32.mrb[59].mxu0  ;;  %11713 = vmatprep.subr.bf16.mxu1 %v13228_v4 }
 0x297   : > { %2974 = vst [vmem:[#allocation2 + $0xd0] sm:$0xff] %v13966_v12  ;;  %vm2237_vm13 = vcmp.ge.f32.partialorder %v12208_v13, 0.0  ;;  %v2365_v22 = vmul.f32 0.2, %v12208_v13  ;;  %v12210_v23 = vadd.f32 %v2007_v21, %v13722_v6  ;;  %11528 = vmatmul.mubr.msk.bf16.gmra.mrb[152].mxu0 %vm3078_vm0, %v13966_v12  ;;  %v4411_v25 = vshll.u32 %v13966_v12, 16 }
 0x298   : > { %2975 = vst [vmem:[#allocation2 + $0xd8] sm:$0xff] %v2911_v18  ;;  %v2492_v26 = vsel %vm2236_vm12, %v12207_v9, %v2364_v19  ;;  %vm2238_vm14 = vcmp.ge.f32.partialorder %v12209_v20, 0.0  ;;  %v2366_v49 = vmul.f32 0.2, %v12209_v20  ;;  %5907 = vrot.lane.b32.xlu1 %v2911_v18, %s13310_s26  ;;  %v4415_v0 = vshrl.u32 %v13966_v12, 16 }
 0x299   : > { %v2493_v29 = vsel %vm2237_vm13, %v12208_v13, %v2365_v22  ;;  %vm2239_vm15 = vcmp.ge.f32.partialorder %v12210_v23, 0.0  ;;  %v2367_v30 = vmul.f32 0.2, %v12210_v23  ;;  %v4413_v14 = vrot.slane %v4411_v25, 1  ;;  %11714 = vmatpush3.bf16.msra.mxu1 %v13228_v4 }
 0x29a   : > { %v2494_v31 = vsel %vm2238_vm14, %v12209_v20, %v2366_v49  ;;  %v2812_v35 = vmul.f32 %v2684_v57, %v2492_v26  ;;  %11715 = vmatprep.subr.bf16.mxu1 %v13229_v28  ;;  %v2813_v40 = vmul.f32 %v2685_v2, %v2493_v29  ;;  %v2692_v4 = vunpack.c.l.bf16 %v14002_v56 }
 0x29b   : > { %v2814_v37 = vmul.f32 %v2686_v16, %v2494_v31  ;;  %v2495_v36 = vsel %vm2239_vm15, %v12210_v23, %v2367_v30  ;;  %v2011_v38 = vpop.f32.mrb[60].mxu0  ;;  %v4414_v45 = vsel %vm4306_vm7, %v4409_v34, %v4413_v14  ;;  %v2693_v8 = vunpack.c.h.bf16 %v14002_v56 }
 0x29c   : > { %v2815_v43 = vmul.f32 %v2687_v17, %v2495_v36  ;;  %v12211_v41 = vadd.f32 %v2011_v38, %v13720_v5  ;;  %v2013_v44 = vpop.f32.mrb[61].mxu0  ;;  %11671 = vmatprep.mubr.msk.bf16.mxu1 %vm3078_vm0, %v4414_v45  ;;  %v4417_v9 = vor.u32 %v4415_v0, %v4413_v14  ;;  %v2694_v17 = vunpack.c.l.bf16 %v14012_v62 }
 0x29d   : > { %v13994_v46 = vpack.c.bf16 %v2814_v37, %v2812_v35  ;;  %v12212_v47 = vadd.f32 %v2013_v44, %v13722_v6  ;;  %v2015_v48 = vpop.f32.mrb[62].mxu0  ;;  %11716 = vmatpush3.bf16.msra.mxu1 %v13229_v28  ;;  %v2695_v25 = vunpack.c.h.bf16 %v14012_v62  ;;  %v13311_v29 = vmov 0   ;;  %v13230_v37 = vld [vmem:[%s16014_s4 + $0x78] sm:$0xff]  }
 0x29e   : > { %v2913_v52 = vpack.c.bf16 %v2815_v43, %v2813_v40  ;;  %vm2240_vm1 = vcmp.ge.f32.partialorder %v12211_v41, 0.0  ;;  %v2368_v53 = vmul.f32 0.2, %v12211_v41  ;;  %v12213_v54 = vadd.f32 %v2015_v48, %v13720_v5  ;;  %v2017_v55 = vpop.f32.mrb[63].mxu0  ;;  %3012 = vst [vmem:[#allocation2 + $0x200] sm:$0xff] %v13311_v29  ;;  %3013 = vst [vmem:[#allocation2 + $0x208] sm:$0xff] %v13311_v29  ;;  %12929 = vset.pattern.permute.xlu1 %v13311_v29 }
 0x29f   : > { %2976 = vst [vmem:[#allocation2 + $0xe0] sm:$0xff] %v13994_v46  ;;  %vm2241_vm2 = vcmp.ge.f32.partialorder %v12212_v47, 0.0  ;;  %v2369_v57 = vmul.f32 0.2, %v12212_v47  ;;  %v12214_v58 = vadd.f32 %v2017_v55, %v13722_v6  ;;  %11531 = vmatprep.mubr.msk.bf16.mxu0 %vm3078_vm0, %v13994_v46  ;;  %v4419_v59 = vshll.u32 %v13994_v46, 16  ;;  %12930 = vset.pattern.permute.xlu0 %v13311_v29  ;;  %v2599_v43 = vld [vmem:[%s16013_s3 + $0x118] sm:$0xff] }
 0x2a0   : > { %2977 = vst [vmem:[#allocation2 + $0xe8] sm:$0xff] %v2913_v52  ;;  %v2496_v60 = vsel %vm2240_vm1, %v12211_v41, %v2368_v53  ;;  %vm2242_vm3 = vcmp.ge.f32.partialorder %v12213_v54, 0.0  ;;  %v2370_v61 = vmul.f32 0.2, %v12213_v54  ;;  %5909 = vrot.lane.b32.xlu0 %v2913_v52, %s13310_s26  ;;  %v4423_v35 = vshrl.u32 %v13994_v46, 16  ;;  %11717 = vmatprep.subr.bf16.mxu1 %v13230_v37 }
 0x2a1   : > { %v2497_v3 = vsel %vm2241_vm2, %v12212_v47, %v2369_v57  ;;  %vm2243_vm4 = vcmp.ge.f32.partialorder %v12214_v58, 0.0  ;;  %v2371_v2 = vmul.f32 0.2, %v12214_v58  ;;  %v4421_v42 = vrot.slane %v4419_v59, 1  ;;  %11718 = vmatpush3.bf16.msra.mxu1 %v13230_v37 }
 0x2a2   : > { %v2498_v11 = vsel %vm2242_vm3, %v12213_v54, %v2370_v61  ;;  %v2816_v10 = vmul.f32 %v2688_v32, %v2496_v60  ;;  %v2817_v18 = vmul.f32 %v2689_v39, %v2497_v3  ;;  %v14032_v32 = vld [vmem:[%s16013_s3 + $0x110] sm:$0xff]  ;;  %v2698_v59 = vunpack.c.l.bf16 %v2599_v43 }
 0x2a3   : > { %v2818_v13 = vmul.f32 %v2690_v50, %v2498_v11  ;;  %v2499_v15 = vsel %vm2243_vm4, %v12214_v58, %v2371_v2  ;;  %v2021_v16 = vpop.f32.mrb[64].mxu0  ;;  %v4422_v21 = vsel %vm4306_vm7, %v4417_v9, %v4421_v42  ;;  %v2696_v40 = vunpack.c.l.bf16 %v14032_v32  ;;  %v14060_v11 = vld [vmem:[%s16013_s3 + $0x120] sm:$0xff] }
 0x2a4   : > { %v2819_v19 = vmul.f32 %v2691_v51, %v2499_v15  ;;  %v12215_v12 = vadd.f32 %v2021_v16, %v13720_v5  ;;  %v2023_v20 = vpop.f32.mrb[65].mxu0  ;;  %11672 = vmatmul.mubr.msk.bf16.gmra.mrb[4].mxu1 %vm3078_vm0, %v4422_v21  ;;  %v4425_v41 = vor.u32 %v4423_v35, %v4421_v42  ;;  %v2697_v50 = vunpack.c.h.bf16 %v14032_v32 }
 0x2a5   : > { %v14021_v22 = vpack.c.bf16 %v2818_v13, %v2816_v10  ;;  %v12216_v23 = vadd.f32 %v2023_v20, %v13722_v6  ;;  %v2025_v24 = vpop.f32.mrb[66].mxu0  ;;  %v2699_v60 = vunpack.c.h.bf16 %v2599_v43 }
 0x2a6   : > { %v2915_v26 = vpack.c.bf16 %v2819_v19, %v2817_v18  ;;  %vm2244_vm5 = vcmp.ge.f32.partialorder %v12215_v12, 0.0  ;;  %v2372_v49 = vmul.f32 0.2, %v12215_v12  ;;  %v12217_v27 = vadd.f32 %v2025_v24, %v13720_v5  ;;  %v2027_v28 = vpop.f32.mrb[67].mxu0  ;;  %v2601_v18 = vld [vmem:[%s16013_s3 + $0x128] sm:$0xff] }
 0x2a7   : > { %2978 = vst [vmem:[#allocation2 + $0xf0] sm:$0xff] %v14021_v22  ;;  %vm2245_vm6 = vcmp.ge.f32.partialorder %v12216_v23, 0.0  ;;  %v2373_v30 = vmul.f32 0.2, %v12216_v23  ;;  %v12218_v31 = vadd.f32 %v2027_v28, %v13722_v6  ;;  %11532 = vmatmul.mubr.msk.bf16.gmra.mrb[156].mxu0 %vm3078_vm0, %v14021_v22  ;;  %v4427_v33 = vshll.u32 %v14021_v22, 16 }
 0x2a8   : > { %2979 = vst [vmem:[#allocation2 + $0xf8] sm:$0xff] %v2915_v26  ;;  %v2500_v34 = vsel %vm2244_vm5, %v12215_v12, %v2372_v49  ;;  %vm2246_vm8 = vcmp.ge.f32.partialorder %v12217_v27, 0.0  ;;  %v2374_v14 = vmul.f32 0.2, %v12217_v27  ;;  %5911 = vrot.lane.b32.xlu1 %v2915_v26, %s13310_s26  ;;  %v4431_v10 = vshrl.u32 %v14021_v22, 16 }
 0x2a9   : > { %v2501_v36 = vsel %vm2245_vm6, %v12216_v23, %v2373_v30  ;;  %vm2247_vm9 = vcmp.ge.f32.partialorder %v12218_v31, 0.0  ;;  %v2375_v38 = vmul.f32 0.2, %v12218_v31  ;;  %v4429_v44 = vrot.slane %v4427_v33, 1 }
 0x2aa   : > { %v2502_v39 = vsel %vm2246_vm8, %v12217_v27, %v2374_v14  ;;  %v2820_v45 = vmul.f32 %v2692_v4, %v2500_v34  ;;  %v2821_v51 = vmul.f32 %v2693_v8, %v2501_v36  ;;  %v2702_v32 = vunpack.c.l.bf16 %v2601_v18  ;;  %v13231_v36 = vld [vmem:[%s16014_s4 + $0x80] sm:$0xff]  }
 0x2ab   : > { %v2822_v47 = vmul.f32 %v2694_v17, %v2502_v39  ;;  %v2503_v46 = vsel %vm2247_vm9, %v12218_v31, %v2375_v38  ;;  %v2031_v48 = vpop.f32.mrb[68].mxu0  ;;  %v4430_v55 = vsel %vm4306_vm7, %v4425_v41, %v4429_v44  ;;  %v2700_v17 = vunpack.c.l.bf16 %v14060_v11  ;;  %11783 = vmatprep.subr.bf16.mxu1 %v13231_v36 }
 0x2ac   : > { %v2823_v52 = vmul.f32 %v2695_v25, %v2503_v46  ;;  %v12219_v53 = vadd.f32 %v2031_v48, %v13720_v5  ;;  %v2033_v54 = vpop.f32.mrb[69].mxu0  ;;  %11675 = vmatprep.mubr.msk.bf16.mxu1 %vm3078_vm0, %v4430_v55  ;;  %v4433_v19 = vor.u32 %v4431_v10, %v4429_v44  ;;  %v2701_v25 = vunpack.c.h.bf16 %v14060_v11 }
 0x2ad   : > { %v14050_v56 = vpack.c.bf16 %v2822_v47, %v2820_v45  ;;  %v12220_v57 = vadd.f32 %v2033_v54, %v13722_v6  ;;  %v2035_v58 = vpop.f32.mrb[70].mxu0  ;;  %v2703_v33 = vunpack.c.h.bf16 %v2601_v18 }
 0x2ae   : > { %v2917_v61 = vpack.c.bf16 %v2823_v52, %v2821_v51  ;;  %vm2248_vm10 = vcmp.ge.f32.partialorder %v12219_v53, 0.0  ;;  %v2376_v62 = vmul.f32 0.2, %v12219_v53  ;;  %v12221_v0 = vadd.f32 %v2035_v58, %v13720_v5  ;;  %v2037_v3 = vpop.f32.mrb[71].mxu0  ;;  %v2603_v51 = vld [vmem:[%s16013_s3 + $0x138] sm:$0xff] }
 0x2af   : > { %2980 = vst [vmem:[#allocation2 + $0x100] sm:$0xff] %v14050_v56  ;;  %vm2249_vm11 = vcmp.ge.f32.partialorder %v12220_v57, 0.0  ;;  %v2377_v2 = vmul.f32 0.2, %v12220_v57  ;;  %v12222_v4 = vadd.f32 %v2037_v3, %v13722_v6  ;;  %11535 = vmatprep.mubr.msk.bf16.mxu0 %vm3078_vm0, %v14050_v56  ;;  %v4435_v8 = vshll.u32 %v14050_v56, 16 }
 0x2b0   : > { %2981 = vst [vmem:[#allocation2 + $0x108] sm:$0xff] %v2917_v61  ;;  %v2504_v9 = vsel %vm2248_vm10, %v12219_v53, %v2376_v62  ;;  %vm2250_vm12 = vcmp.ge.f32.partialorder %v12221_v0, 0.0  ;;  %v2378_v42 = vmul.f32 0.2, %v12221_v0  ;;  %5913 = vrot.lane.b32.xlu0 %v2917_v61, %s13310_s26  ;;  %v4439_v45 = vshrl.u32 %v14050_v56, 16 }
 0x2b1   : > { %v2505_v13 = vsel %vm2249_vm11, %v12220_v57, %v2377_v2  ;;  %vm2251_vm13 = vcmp.ge.f32.partialorder %v12222_v4, 0.0  ;;  %v2379_v15 = vmul.f32 0.2, %v12222_v4  ;;  %v4437_v12 = vrot.slane %v4435_v8, 1 }
 0x2b2   : > { %v2506_v16 = vsel %vm2250_vm12, %v12221_v0, %v2378_v42  ;;  %v2824_v20 = vmul.f32 %v2696_v40, %v2504_v9  ;;  %v2825_v26 = vmul.f32 %v2697_v50, %v2505_v13  ;;  %v14087_v40 = vld [vmem:[%s16013_s3 + $0x130] sm:$0xff]  ;;  %v2706_v11 = vunpack.c.l.bf16 %v2603_v51 }
 0x2b3   : > { %v2826_v21 = vmul.f32 %v2698_v59, %v2506_v16  ;;  %v2507_v23 = vsel %vm2251_vm13, %v12222_v4, %v2379_v15  ;;  %v2041_v24 = vpop.f32.mrb[72].mxu0  ;;  %v4438_v28 = vsel %vm4306_vm7, %v4433_v19, %v4437_v12  ;;  %v2704_v50 = vunpack.c.l.bf16 %v14087_v40 }
 0x2b4   : > { %v2827_v22 = vmul.f32 %v2699_v60, %v2507_v23  ;;  %v12223_v49 = vadd.f32 %v2041_v24, %v13720_v5  ;;  %v2043_v27 = vpop.f32.mrb[73].mxu0  ;;  %11676 = vmatmul.mubr.msk.bf16.gmra.mrb[8].mxu1 %vm3078_vm0, %v4438_v28  ;;  %v4441_v52 = vor.u32 %v4439_v45, %v4437_v12  ;;  %v2705_v59 = vunpack.c.h.bf16 %v14087_v40 }
 0x2b5   : > { %v14074_v29 = vpack.c.bf16 %v2826_v21, %v2824_v20  ;;  %v12224_v30 = vadd.f32 %v2043_v27, %v13722_v6  ;;  %v2045_v31 = vpop.f32.mrb[74].mxu0  ;;  %v2707_v8 = vunpack.c.h.bf16 %v2603_v51 }
 0x2b6   : > { %v2919_v34 = vpack.c.bf16 %v2827_v22, %v2825_v26  ;;  %vm2252_vm14 = vcmp.ge.f32.partialorder %v12223_v49, 0.0  ;;  %v2380_v14 = vmul.f32 0.2, %v12223_v49  ;;  %v12225_v35 = vadd.f32 %v2045_v31, %v13720_v5  ;;  %v2047_v37 = vpop.f32.mrb[75].mxu0  ;;  %v2605_v26 = vld [vmem:[%s16013_s3 + $0x148] sm:$0xff] }
 0x2b7   : > { %2982 = vst [vmem:[#allocation2 + $0x110] sm:$0xff] %v14074_v29  ;;  %vm2253_vm15 = vcmp.ge.f32.partialorder %v12224_v30, 0.0  ;;  %v2381_v38 = vmul.f32 0.2, %v12224_v30  ;;  %v12226_v39 = vadd.f32 %v2047_v37, %v13722_v6  ;;  %11536 = vmatmul.mubr.msk.bf16.gmra.mrb[160].mxu0 %vm3078_vm0, %v14074_v29  ;;  %v4443_v43 = vshll.u32 %v14074_v29, 16 }
 0x2b8   : > { %2983 = vst [vmem:[#allocation2 + $0x118] sm:$0xff] %v2919_v34  ;;  %v2508_v41 = vsel %vm2252_vm14, %v12223_v49, %v2380_v14  ;;  %vm2254_vm1 = vcmp.ge.f32.partialorder %v12225_v35, 0.0  ;;  %v2382_v44 = vmul.f32 0.2, %v12225_v35  ;;  %5915 = vrot.lane.b32.xlu1 %v2919_v34, %s13310_s26  ;;  %v4447_v20 = vshrl.u32 %v14074_v29, 16 }
 0x2b9   : > { %v2509_v47 = vsel %vm2253_vm15, %v12224_v30, %v2381_v38  ;;  %vm2255_vm2 = vcmp.ge.f32.partialorder %v12226_v39, 0.0  ;;  %v2383_v46 = vmul.f32 0.2, %v12226_v39  ;;  %v4445_v53 = vrot.slane %v4443_v43, 1 }
 0x2ba   : > { %v2510_v48 = vsel %vm2254_vm1, %v12225_v35, %v2382_v44  ;;  %v2828_v54 = vmul.f32 %v2700_v17, %v2508_v41  ;;  %v2829_v56 = vmul.f32 %v2701_v25, %v2509_v47  ;;  %v14111_v17 = vld [vmem:[%s16013_s3 + $0x140] sm:$0xff]  ;;  %v2711_v40 = vunpack.c.h.bf16 %v2605_v26 }
 0x2bb   : > { %v2830_v55 = vmul.f32 %v2702_v32, %v2510_v48  ;;  %v2511_v57 = vsel %vm2255_vm2, %v12226_v39, %v2383_v46  ;;  %v2051_v58 = vpop.f32.mrb[76].mxu0  ;;  %v4446_v0 = vsel %vm4306_vm7, %v4441_v52, %v4445_v53  ;;  %v2708_v25 = vunpack.c.l.bf16 %v14111_v17  ;;  %v14135_v48 = vld [vmem:[%s16013_s3 + $0x150] sm:$0xff] }
 0x2bc   : > { %v2831_v60 = vmul.f32 %v2703_v33, %v2511_v57  ;;  %v12227_v61 = vadd.f32 %v2051_v58, %v13720_v5  ;;  %v2053_v62 = vpop.f32.mrb[77].mxu0  ;;  %11679 = vmatprep.mubr.msk.bf16.mxu1 %vm3078_vm0, %v4446_v0  ;;  %v4449_v22 = vor.u32 %v4447_v20, %v4445_v53  ;;  %v2709_v32 = vunpack.c.h.bf16 %v14111_v17 }
 0x2bd   : > { %v14101_v3 = vpack.c.bf16 %v2830_v55, %v2828_v54  ;;  %v12228_v2 = vadd.f32 %v2053_v62, %v13722_v6  ;;  %v2055_v4 = vpop.f32.mrb[78].mxu0  ;;  %v2710_v39 = vunpack.c.l.bf16 %v2605_v26  ;;  %v2712_v58 = vunpack.c.l.bf16 %v14135_v48 }
 0x2be   : > { %v2921_v9 = vpack.c.bf16 %v2831_v60, %v2829_v56  ;;  %vm2256_vm3 = vcmp.ge.f32.partialorder %v12227_v61, 0.0  ;;  %v2384_v42 = vmul.f32 0.2, %v12227_v61  ;;  %v12229_v10 = vadd.f32 %v2055_v4, %v13720_v5  ;;  %v2057_v13 = vpop.f32.mrb[79].mxu0 }
 0x2bf   : > { %2984 = vst [vmem:[#allocation2 + $0x120] sm:$0xff] %v14101_v3  ;;  %vm2257_vm4 = vcmp.ge.f32.partialorder %v12228_v2, 0.0  ;;  %v2385_v15 = vmul.f32 0.2, %v12228_v2  ;;  %v12230_v16 = vadd.f32 %v2057_v13, %v13722_v6  ;;  %11539 = vmatprep.mubr.msk.bf16.mxu0 %vm3078_vm0, %v14101_v3  ;;  %v4451_v18 = vshll.u32 %v14101_v3, 16 }
 0x2c0   : > { %2985 = vst [vmem:[#allocation2 + $0x128] sm:$0xff] %v2921_v9  ;;  %v2512_v19 = vsel %vm2256_vm3, %v12227_v61, %v2384_v42  ;;  %vm2258_vm5 = vcmp.ge.f32.partialorder %v12229_v10, 0.0  ;;  %v2386_v12 = vmul.f32 0.2, %v12229_v10  ;;  %5917 = vrot.lane.b32.xlu0 %v2921_v9, %s13310_s26  ;;  %v4455_v53 = vshrl.u32 %v14101_v3, 16 }
 0x2c1   : > { %v2513_v21 = vsel %vm2257_vm4, %v12228_v2, %v2385_v15  ;;  %vm2259_vm6 = vcmp.ge.f32.partialorder %v12230_v16, 0.0  ;;  %v2387_v23 = vmul.f32 0.2, %v12230_v16  ;;  %v4453_v49 = vrot.slane %v4451_v18, 1 }
 0x2c2   : > { %v2514_v24 = vsel %vm2258_vm5, %v12229_v10, %v2386_v12  ;;  %v2832_v27 = vmul.f32 %v2704_v50, %v2512_v19  ;;  %v2833_v33 = vmul.f32 %v2705_v59, %v2513_v21  ;;  %v2607_v59 = vld [vmem:[%s16013_s3 + $0x158] sm:$0xff]  ;;  %v2713_v4 = vunpack.c.h.bf16 %v14135_v48 }
 0x2c3   : > { %v2834_v28 = vmul.f32 %v2706_v11, %v2514_v24  ;;  %v2515_v30 = vsel %vm2259_vm6, %v12230_v16, %v2387_v23  ;;  %v2061_v31 = vpop.f32.mrb[80].mxu0  ;;  %v4454_v35 = vsel %vm4306_vm7, %v4449_v22, %v4453_v49  ;;  %v4457_v56 = vor.u32 %v4455_v53, %v4453_v49  ;;  %v14159_v24 = vld [vmem:[%s16013_s3 + $0x160] sm:$0xff] }
 0x2c4   : > { %v2835_v29 = vmul.f32 %v2707_v8, %v2515_v30  ;;  %v12231_v34 = vadd.f32 %v2061_v31, %v13720_v5  ;;  %v2063_v14 = vpop.f32.mrb[81].mxu0  ;;  %11680 = vmatmul.mubr.msk.bf16.gmra.mrb[12].mxu1 %vm3078_vm0, %v4454_v35  ;;  %v2714_v16 = vunpack.c.l.bf16 %v2607_v59  ;;  %v2715_v17 = vunpack.c.h.bf16 %v2607_v59 }
 0x2c5   : > { %v14125_v37 = vpack.c.bf16 %v2834_v28, %v2832_v27  ;;  %v12232_v36 = vadd.f32 %v2063_v14, %v13722_v6  ;;  %v2065_v38 = vpop.f32.mrb[82].mxu0  ;;  %v2716_v31 = vunpack.c.l.bf16 %v14159_v24 }
 0x2c6   : > { %v2923_v43 = vpack.c.bf16 %v2835_v29, %v2833_v33  ;;  %vm2260_vm8 = vcmp.ge.f32.partialorder %v12231_v34, 0.0  ;;  %v2388_v41 = vmul.f32 0.2, %v12231_v34  ;;  %v12233_v44 = vadd.f32 %v2065_v38, %v13720_v5  ;;  %v2067_v45 = vpop.f32.mrb[83].mxu0 }
 0x2c7   : > { %2986 = vst [vmem:[#allocation2 + $0x130] sm:$0xff] %v14125_v37  ;;  %vm2261_vm9 = vcmp.ge.f32.partialorder %v12232_v36, 0.0  ;;  %v2389_v47 = vmul.f32 0.2, %v12232_v36  ;;  %v12234_v46 = vadd.f32 %v2067_v45, %v13722_v6  ;;  %11540 = vmatmul.mubr.msk.bf16.gmra.mrb[164].mxu0 %vm3078_vm0, %v14125_v37  ;;  %v4459_v50 = vshll.u32 %v14125_v37, 16 }
 0x2c8   : > { %2987 = vst [vmem:[#allocation2 + $0x138] sm:$0xff] %v2923_v43  ;;  %v2516_v51 = vsel %vm2260_vm8, %v12231_v34, %v2388_v41  ;;  %vm2262_vm10 = vcmp.ge.f32.partialorder %v12233_v44, 0.0  ;;  %v2390_v52 = vmul.f32 0.2, %v12233_v44  ;;  %5919 = vrot.lane.b32.xlu1 %v2923_v43, %s13310_s26  ;;  %v4463_v49 = vshrl.u32 %v14125_v37, 16 }
 0x2c9   : > { %v2517_v54 = vsel %vm2261_vm9, %v12232_v36, %v2389_v47  ;;  %vm2263_vm11 = vcmp.ge.f32.partialorder %v12234_v46, 0.0  ;;  %v2391_v55 = vmul.f32 0.2, %v12234_v46  ;;  %v4461_v60 = vrot.slane %v4459_v50, 1 }
 0x2ca   : > { %v2518_v57 = vsel %vm2262_vm10, %v12233_v44, %v2390_v52  ;;  %v2836_v61 = vmul.f32 %v2708_v25, %v2516_v51  ;;  %v2837_v11 = vmul.f32 %v2709_v32, %v2517_v54  ;;  %v2609_v32 = vld [vmem:[%s16013_s3 + $0x168] sm:$0xff]  ;;  %v2717_v38 = vunpack.c.h.bf16 %v14159_v24 }
 0x2cb   : > { %v2838_v62 = vmul.f32 %v2710_v39, %v2518_v57  ;;  %v2519_v0 = vsel %vm2263_vm11, %v12234_v46, %v2391_v55  ;;  %v2071_v2 = vpop.f32.mrb[84].mxu0  ;;  %v4462_v42 = vsel %vm4306_vm7, %v4457_v56, %v4461_v60  ;;  %v4465_v33 = vor.u32 %v4463_v49, %v4461_v60  ;;  %v14183_v57 = vld [vmem:[%s16013_s3 + $0x170] sm:$0xff] }
 0x2cc   : > { %v2839_v3 = vmul.f32 %v2711_v40, %v2519_v0  ;;  %v12235_v8 = vadd.f32 %v2071_v2, %v13720_v5  ;;  %v2073_v9 = vpop.f32.mrb[85].mxu0  ;;  %11683 = vmatprep.mubr.msk.bf16.mxu1 %vm3078_vm0, %v4462_v42  ;;  %v2718_v46 = vunpack.c.l.bf16 %v2609_v32  ;;  %v2719_v48 = vunpack.c.h.bf16 %v2609_v32 }
 0x2cd   : > { %v14149_v10 = vpack.c.bf16 %v2838_v62, %v2836_v61  ;;  %v12236_v13 = vadd.f32 %v2073_v9, %v13722_v6  ;;  %v2075_v15 = vpop.f32.mrb[86].mxu0  ;;  %v2720_v2 = vunpack.c.l.bf16 %v14183_v57 }
 0x2ce   : > { %v2925_v18 = vpack.c.bf16 %v2839_v3, %v2837_v11  ;;  %vm2264_vm12 = vcmp.ge.f32.partialorder %v12235_v8, 0.0  ;;  %v2392_v19 = vmul.f32 0.2, %v12235_v8  ;;  %v12237_v12 = vadd.f32 %v2075_v15, %v13720_v5  ;;  %v2077_v20 = vpop.f32.mrb[87].mxu0 }
 0x2cf   : > { %2988 = vst [vmem:[#allocation2 + $0x140] sm:$0xff] %v14149_v10  ;;  %vm2265_vm13 = vcmp.ge.f32.partialorder %v12236_v13, 0.0  ;;  %v2393_v21 = vmul.f32 0.2, %v12236_v13  ;;  %v12238_v23 = vadd.f32 %v2077_v20, %v13722_v6  ;;  %11543 = vmatprep.mubr.msk.bf16.mxu0 %vm3078_vm0, %v14149_v10  ;;  %v4467_v25 = vshll.u32 %v14149_v10, 16 }
 0x2d0   : > { %2989 = vst [vmem:[#allocation2 + $0x148] sm:$0xff] %v2925_v18  ;;  %v2520_v26 = vsel %vm2264_vm12, %v12235_v8, %v2392_v19  ;;  %vm2266_vm14 = vcmp.ge.f32.partialorder %v12237_v12, 0.0  ;;  %v2394_v22 = vmul.f32 0.2, %v12237_v12  ;;  %5921 = vrot.lane.b32.xlu0 %v2925_v18, %s13310_s26  ;;  %v4471_v60 = vshrl.u32 %v14149_v10, 16 }
 0x2d1   : > { %v2521_v27 = vsel %vm2265_vm13, %v12236_v13, %v2393_v21  ;;  %vm2267_vm15 = vcmp.ge.f32.partialorder %v12238_v23, 0.0  ;;  %v2395_v28 = vmul.f32 0.2, %v12238_v23  ;;  %v4469_v29 = vrot.slane %v4467_v25, 1 }
 0x2d2   : > { %v2522_v30 = vsel %vm2266_vm14, %v12237_v12, %v2394_v22  ;;  %v2840_v34 = vmul.f32 %v2712_v58, %v2520_v26  ;;  %v2841_v39 = vmul.f32 %v2713_v4, %v2521_v27  ;;  %v2611_v4 = vld [vmem:[%s16013_s3 + $0x178] sm:$0xff]  ;;  %v2721_v15 = vunpack.c.h.bf16 %v14183_v57 }
 0x2d3   : > { %v2842_v14 = vmul.f32 %v2714_v16, %v2522_v30  ;;  %v2523_v35 = vsel %vm2267_vm15, %v12238_v23, %v2395_v28  ;;  %v2081_v36 = vpop.f32.mrb[88].mxu0  ;;  %v4470_v41 = vsel %vm4306_vm7, %v4465_v33, %v4469_v29  ;;  %v4473_v11 = vor.u32 %v4471_v60, %v4469_v29  ;;  %v14207_v30 = vld [vmem:[%s16013_s3 + $0x180] sm:$0xff] }
 0x2d4   : > { %v2843_v37 = vmul.f32 %v2715_v17, %v2523_v35  ;;  %v12239_v40 = vadd.f32 %v2081_v36, %v13720_v5  ;;  %v2083_v43 = vpop.f32.mrb[89].mxu0  ;;  %11684 = vmatmul.mubr.msk.bf16.gmra.mrb[16].mxu1 %vm3078_vm0, %v4470_v41  ;;  %v2722_v23 = vunpack.c.l.bf16 %v2611_v4  ;;  %v2723_v24 = vunpack.c.h.bf16 %v2611_v4 }
 0x2d5   : > { %v14173_v44 = vpack.c.bf16 %v2842_v14, %v2840_v34  ;;  %v12240_v45 = vadd.f32 %v2083_v43, %v13722_v6  ;;  %v2085_v47 = vpop.f32.mrb[90].mxu0  ;;  %v2724_v36 = vunpack.c.l.bf16 %v14207_v30 }
 0x2d6   : > { %v2927_v50 = vpack.c.bf16 %v2843_v37, %v2841_v39  ;;  %vm2268_vm1 = vcmp.ge.f32.partialorder %v12239_v40, 0.0  ;;  %v2396_v51 = vmul.f32 0.2, %v12239_v40  ;;  %v12241_v52 = vadd.f32 %v2085_v47, %v13720_v5  ;;  %v2087_v53 = vpop.f32.mrb[91].mxu0 }
 0x2d7   : > { %2990 = vst [vmem:[#allocation2 + $0x150] sm:$0xff] %v14173_v44  ;;  %vm2269_vm2 = vcmp.ge.f32.partialorder %v12240_v45, 0.0  ;;  %v2397_v54 = vmul.f32 0.2, %v12240_v45  ;;  %v12242_v55 = vadd.f32 %v2087_v53, %v13722_v6  ;;  %11544 = vmatmul.mubr.msk.bf16.gmra.mrb[168].mxu0 %vm3078_vm0, %v14173_v44  ;;  %v4475_v58 = vshll.u32 %v14173_v44, 16 }
 0x2d8   : > { %2991 = vst [vmem:[#allocation2 + $0x158] sm:$0xff] %v2927_v50  ;;  %v2524_v59 = vsel %vm2268_vm1, %v12239_v40, %v2396_v51  ;;  %vm2270_vm3 = vcmp.ge.f32.partialorder %v12241_v52, 0.0  ;;  %v2398_v56 = vmul.f32 0.2, %v12241_v52  ;;  %5923 = vrot.lane.b32.xlu1 %v2927_v50, %s13310_s26  ;;  %v4479_v29 = vshrl.u32 %v14173_v44, 16 }
 0x2d9   : > { %v2525_v61 = vsel %vm2269_vm2, %v12240_v45, %v2397_v54  ;;  %vm2271_vm4 = vcmp.ge.f32.partialorder %v12242_v55, 0.0  ;;  %v2399_v62 = vmul.f32 0.2, %v12242_v55  ;;  %v4477_v3 = vrot.slane %v4475_v58, 1 }
 0x2da   : > { %v2526_v0 = vsel %vm2270_vm3, %v12241_v52, %v2398_v56  ;;  %v2844_v8 = vmul.f32 %v2716_v31, %v2524_v59  ;;  %v2845_v16 = vmul.f32 %v2717_v38, %v2525_v61  ;;  %v2613_v38 = vld [vmem:[%s16013_s3 + $0x188] sm:$0xff]  ;;  %v2725_v47 = vunpack.c.h.bf16 %v14207_v30  ;;  %v14229_v61 = vld [vmem:[%s16013_s3 + $0x190] sm:$0xff] }
 0x2db   : > { %v2846_v9 = vmul.f32 %v2718_v46, %v2526_v0  ;;  %v2527_v42 = vsel %vm2271_vm4, %v12242_v55, %v2399_v62  ;;  %v2091_v13 = vpop.f32.mrb[92].mxu0  ;;  %v4478_v19 = vsel %vm4306_vm7, %v4473_v11, %v4477_v3  ;;  %v4481_v39 = vor.u32 %v4479_v29, %v4477_v3  ;;  %v2615_v3 = vld [vmem:[%s16013_s3 + $0x198] sm:$0xff] }
 0x2dc   : > { %v2847_v10 = vmul.f32 %v2719_v48, %v2527_v42  ;;  %v12243_v17 = vadd.f32 %v2091_v13, %v13720_v5  ;;  %v2093_v18 = vpop.f32.mrb[93].mxu0  ;;  %11687 = vmatprep.mubr.msk.bf16.mxu1 %vm3078_vm0, %v4478_v19  ;;  %v2726_v55 = vunpack.c.l.bf16 %v2613_v38  ;;  %v2727_v57 = vunpack.c.h.bf16 %v2613_v38  ;;  %v14261_v38 = vld [vmem:[%s16013_s3 + $0x1a8] sm:$0xff] }
 0x2dd   : > { %v14197_v12 = vpack.c.bf16 %v2846_v9, %v2844_v8  ;;  %v12244_v20 = vadd.f32 %v2093_v18, %v13722_v6  ;;  %v2095_v21 = vpop.f32.mrb[94].mxu0  ;;  %v2728_v13 = vunpack.c.l.bf16 %v14229_v61 }
 0x2de   : > { %v2929_v25 = vpack.c.bf16 %v2847_v10, %v2845_v16  ;;  %vm2272_vm5 = vcmp.ge.f32.partialorder %v12243_v17, 0.0  ;;  %v2400_v26 = vmul.f32 0.2, %v12243_v17  ;;  %v12245_v22 = vadd.f32 %v2095_v21, %v13720_v5  ;;  %v2097_v49 = vpop.f32.mrb[95].mxu0  ;;  %v14246_v10 = vld [vmem:[%s16013_s3 + $0x1a0] sm:$0xff] }
 0x2df   : > { %2992 = vst [vmem:[#allocation2 + $0x160] sm:$0xff] %v14197_v12  ;;  %vm2273_vm6 = vcmp.ge.f32.partialorder %v12244_v20, 0.0  ;;  %v2401_v27 = vmul.f32 0.2, %v12244_v20  ;;  %v12246_v28 = vadd.f32 %v2097_v49, %v13722_v6  ;;  %11547 = vmatprep.mubr.msk.bf16.mxu0 %vm3078_vm0, %v14197_v12  ;;  %v4483_v31 = vshll.u32 %v14197_v12, 16 }
 0x2e0   : > { %2993 = vst [vmem:[#allocation2 + $0x168] sm:$0xff] %v2929_v25  ;;  %v2528_v32 = vsel %vm2272_vm5, %v12243_v17, %v2400_v26  ;;  %vm2274_vm8 = vcmp.ge.f32.partialorder %v12245_v22, 0.0  ;;  %v2402_v33 = vmul.f32 0.2, %v12245_v22  ;;  %5925 = vrot.lane.b32.xlu0 %v2929_v25, %s13310_s26  ;;  %v4487_v8 = vshrl.u32 %v14197_v12, 16 }
 0x2e1   : > { %v2529_v34 = vsel %vm2273_vm6, %v12244_v20, %v2401_v27  ;;  %vm2275_vm9 = vcmp.ge.f32.partialorder %v12246_v28, 0.0  ;;  %v2403_v14 = vmul.f32 0.2, %v12246_v28  ;;  %v4485_v37 = vrot.slane %v4483_v31, 1 }
 0x2e2   : > { %v2530_v35 = vsel %vm2274_vm8, %v12245_v22, %v2402_v33  ;;  %v2848_v40 = vmul.f32 %v2720_v2, %v2528_v32  ;;  %v2849_v46 = vmul.f32 %v2721_v15, %v2529_v34  ;;  %v2729_v16 = vunpack.c.h.bf16 %v14229_v61 }
 0x2e3   : > { %v2850_v43 = vmul.f32 %v2722_v23, %v2530_v35  ;;  %v2531_v41 = vsel %vm2275_vm9, %v12246_v28, %v2403_v14  ;;  %v2101_v45 = vpop.f32.mrb[96].mxu0  ;;  %v4486_v51 = vsel %vm4306_vm7, %v4481_v39, %v4485_v37  ;;  %v4489_v17 = vor.u32 %v4487_v8, %v4485_v37 }
 0x2e4   : > { %v2851_v44 = vmul.f32 %v2723_v24, %v2531_v41  ;;  %v12247_v48 = vadd.f32 %v2101_v45, %v13720_v5  ;;  %v2103_v50 = vpop.f32.mrb[97].mxu0  ;;  %11688 = vmatmul.mubr.msk.bf16.gmra.mrb[20].mxu1 %vm3078_vm0, %v4486_v51  ;;  %v2730_v12 = vunpack.c.l.bf16 %v2615_v3  ;;  %v2731_v31 = vunpack.c.h.bf16 %v2615_v3 }
 0x2e5   : > { %v14221_v52 = vpack.c.bf16 %v2850_v43, %v2848_v40  ;;  %v12248_v53 = vadd.f32 %v2103_v50, %v13722_v6  ;;  %v2105_v54 = vpop.f32.mrb[98].mxu0  ;;  %v2732_v32 = vunpack.c.l.bf16 %v14246_v10  ;;  %vm7522_vm8 = vcmask 1043456  }
 0x2e6   : > { %v2931_v58 = vpack.c.bf16 %v2851_v44, %v2849_v46  ;;  %vm2276_vm10 = vcmp.ge.f32.partialorder %v12247_v48, 0.0  ;;  %v2404_v59 = vmul.f32 0.2, %v12247_v48  ;;  %v12249_v56 = vadd.f32 %v2105_v54, %v13720_v5  ;;  %v2107_v60 = vpop.f32.mrb[99].mxu0 }
 0x2e7   : > { %2994 = vst [vmem:[#allocation2 + $0x170] sm:$0xff] %v14221_v52  ;;  %vm2277_vm11 = vcmp.ge.f32.partialorder %v12248_v53, 0.0  ;;  %v2405_v62 = vmul.f32 0.2, %v12248_v53  ;;  %v12250_v0 = vadd.f32 %v2107_v60, %v13722_v6  ;;  %11548 = vmatmul.mubr.msk.bf16.gmra.mrb[172].mxu0 %vm3078_vm0, %v14221_v52  ;;  %v4491_v2 = vshll.u32 %v14221_v52, 16 }
 0x2e8   : > { %2995 = vst [vmem:[#allocation2 + $0x178] sm:$0xff] %v2931_v58  ;;  %v2532_v4 = vsel %vm2276_vm10, %v12247_v48, %v2404_v59  ;;  %vm2278_vm12 = vcmp.ge.f32.partialorder %v12249_v56, 0.0  ;;  %v2406_v11 = vmul.f32 0.2, %v12249_v56  ;;  %5927 = vrot.lane.b32.xlu1 %v2931_v58, %s13310_s26  ;;  %v4495_v43 = vshrl.u32 %v14221_v52, 16  ;;  %v14273_v48 = vld [vmem:[%s16013_s3 + $0x1b0] sm:$0xff] }
 0x2e9   : > { %v2533_v9 = vsel %vm2277_vm11, %v12248_v53, %v2405_v62  ;;  %vm2279_vm13 = vcmp.ge.f32.partialorder %v12250_v0, 0.0  ;;  %v2407_v42 = vmul.f32 0.2, %v12250_v0  ;;  %v4493_v18 = vrot.slane %v4491_v2, 1 }
 0x2ea   : > { %v2534_v15 = vsel %vm2278_vm12, %v12249_v56, %v2406_v11  ;;  %v2852_v19 = vmul.f32 %v2724_v36, %v2532_v4  ;;  %v2853_v24 = vmul.f32 %v2725_v47, %v2533_v9  ;;  %v2733_v47 = vunpack.c.h.bf16 %v14246_v10 }
 0x2eb   : > { %v2854_v20 = vmul.f32 %v2726_v55, %v2534_v15  ;;  %v2535_v21 = vsel %vm2279_vm13, %v12250_v0, %v2407_v42  ;;  %v2111_v23 = vpop.f32.mrb[100].mxu0  ;;  %v4494_v49 = vsel %vm4306_vm7, %v4489_v17, %v4493_v18  ;;  %v2734_v44 = vunpack.c.l.bf16 %v14261_v38 }
 0x2ec   : > { %v2855_v25 = vmul.f32 %v2727_v57, %v2535_v21  ;;  %v12251_v26 = vadd.f32 %v2111_v23, %v13720_v5  ;;  %v2113_v22 = vpop.f32.mrb[101].mxu0  ;;  %11691 = vmatprep.mubr.msk.bf16.mxu1 %vm3078_vm0, %v4494_v49  ;;  %v4497_v50 = vor.u32 %v4495_v43, %v4493_v18  ;;  %v2735_v52 = vunpack.c.h.bf16 %v14261_v38 }
 0x2ed   : > { %v14250_v27 = vpack.c.bf16 %v2854_v20, %v2852_v19  ;;  %v12252_v28 = vadd.f32 %v2113_v22, %v13722_v6  ;;  %v2115_v30 = vpop.f32.mrb[102].mxu0  ;;  %v2736_v4 = vunpack.c.l.bf16 %v14273_v48  ;;  %v2737_v11 = vunpack.c.h.bf16 %v14273_v48  ;;  %v14299_v20 = vld [vmem:[%s16013_s3 + $0x1c0] sm:$0xff] }
 0x2ee   : > { %v2933_v33 = vpack.c.bf16 %v2855_v25, %v2853_v24  ;;  %vm2280_vm14 = vcmp.ge.f32.partialorder %v12251_v26, 0.0  ;;  %v2408_v29 = vmul.f32 0.2, %v12251_v26  ;;  %v12253_v34 = vadd.f32 %v2115_v30, %v13720_v5  ;;  %v2117_v14 = vpop.f32.mrb[103].mxu0 }
 0x2ef   : > { %2996 = vst [vmem:[#allocation2 + $0x180] sm:$0xff] %v14250_v27  ;;  %vm2281_vm15 = vcmp.ge.f32.partialorder %v12252_v28, 0.0  ;;  %v2409_v35 = vmul.f32 0.2, %v12252_v28  ;;  %v12254_v36 = vadd.f32 %v2117_v14, %v13722_v6  ;;  %11551 = vmatprep.mubr.msk.bf16.mxu0 %vm3078_vm0, %v14250_v27  ;;  %v4499_v39 = vshll.u32 %v14250_v27, 16 }
 0x2f0   : > { %2997 = vst [vmem:[#allocation2 + $0x188] sm:$0xff] %v2933_v33  ;;  %v2536_v37 = vsel %vm2280_vm14, %v12251_v26, %v2408_v29  ;;  %vm2282_vm1 = vcmp.ge.f32.partialorder %v12253_v34, 0.0  ;;  %v2410_v40 = vmul.f32 0.2, %v12253_v34  ;;  %5929 = vrot.lane.b32.xlu0 %v2933_v33, %s13310_s26  ;;  %v4503_v21 = vshrl.u32 %v14250_v27, 16 }
 0x2f1   : > { %v2537_v41 = vsel %vm2281_vm15, %v12252_v28, %v2409_v35  ;;  %vm2283_vm2 = vcmp.ge.f32.partialorder %v12254_v36, 0.0  ;;  %v2411_v45 = vmul.f32 0.2, %v12254_v36  ;;  %v4501_v51 = vrot.slane %v4499_v39, 1  ;;  %v14307_v28 = vld [vmem:[%s16013_s3 + $0x1c8] sm:$0xff] }
 0x2f2   : > { %v2538_v46 = vsel %vm2282_vm1, %v12253_v34, %v2410_v40  ;;  %v2856_v53 = vmul.f32 %v2728_v13, %v2536_v37  ;;  %v2857_v58 = vmul.f32 %v2729_v16, %v2537_v41  ;;  %v14288_v13 = vld [vmem:[%s16013_s3 + $0x1b8] sm:$0xff]  ;;  %v2740_v29 = vunpack.c.l.bf16 %v14299_v20 }
 0x2f3   : > { %v2858_v54 = vmul.f32 %v2730_v12, %v2538_v46  ;;  %v2539_v55 = vsel %vm2283_vm2, %v12254_v36, %v2411_v45  ;;  %v2121_v57 = vpop.f32.mrb[104].mxu0  ;;  %v4502_v61 = vsel %vm4306_vm7, %v4497_v50, %v4501_v51  ;;  %v2738_v24 = vunpack.c.l.bf16 %v14288_v13 }
 0x2f4   : > { %v2859_v59 = vmul.f32 %v2731_v31, %v2539_v55  ;;  %v12255_v56 = vadd.f32 %v2121_v57, %v13720_v5  ;;  %v2123_v60 = vpop.f32.mrb[105].mxu0  ;;  %11692 = vmatmul.mubr.msk.bf16.gmra.mrb[24].mxu1 %vm3078_vm0, %v4502_v61  ;;  %v2739_v26 = vunpack.c.h.bf16 %v14288_v13  ;;  %v4505_v22 = vor.u32 %v4503_v21, %v4501_v51 }
 0x2f5   : > { %v14278_v62 = vpack.c.bf16 %v2858_v54, %v2856_v53  ;;  %v12256_v0 = vadd.f32 %v2123_v60, %v13722_v6  ;;  %v2125_v2 = vpop.f32.mrb[106].mxu0  ;;  %v2741_v10 = vunpack.c.h.bf16 %v14299_v20 }
 0x2f6   : > { %v2935_v3 = vpack.c.bf16 %v2859_v59, %v2857_v58  ;;  %vm2284_vm3 = vcmp.ge.f32.partialorder %v12255_v56, 0.0  ;;  %v2412_v8 = vmul.f32 0.2, %v12255_v56  ;;  %v12257_v9 = vadd.f32 %v2125_v2, %v13720_v5  ;;  %v2127_v42 = vpop.f32.mrb[107].mxu0  ;;  %v14332_v59 = vld [vmem:[%s16013_s3 + $0x1d0] sm:$0xff] }
 0x2f7   : > { %2998 = vst [vmem:[#allocation2 + $0x190] sm:$0xff] %v14278_v62  ;;  %vm2285_vm4 = vcmp.ge.f32.partialorder %v12256_v0, 0.0  ;;  %v2413_v15 = vmul.f32 0.2, %v12256_v0  ;;  %v12258_v16 = vadd.f32 %v2127_v42, %v13722_v6  ;;  %11552 = vmatmul.mubr.msk.bf16.gmra.mrb[176].mxu0 %vm3078_vm0, %v14278_v62  ;;  %v4507_v17 = vshll.u32 %v14278_v62, 16 }
 0x2f8   : > { %2999 = vst [vmem:[#allocation2 + $0x198] sm:$0xff] %v2935_v3  ;;  %v2540_v18 = vsel %vm2284_vm3, %v12255_v56, %v2412_v8  ;;  %vm2286_vm5 = vcmp.ge.f32.partialorder %v12257_v9, 0.0  ;;  %v2414_v19 = vmul.f32 0.2, %v12257_v9  ;;  %5931 = vrot.lane.b32.xlu1 %v2935_v3, %s13310_s26  ;;  %v4511_v54 = vshrl.u32 %v14278_v62, 16 }
 0x2f9   : > { %v2541_v23 = vsel %vm2285_vm4, %v12256_v0, %v2413_v15  ;;  %vm2287_vm6 = vcmp.ge.f32.partialorder %v12258_v16, 0.0  ;;  %v2415_v12 = vmul.f32 0.2, %v12258_v16  ;;  %v4509_v49 = vrot.slane %v4507_v17, 1 }
 0x2fa   : > { %v2542_v25 = vsel %vm2286_vm5, %v12257_v9, %v2414_v19  ;;  %v2860_v30 = vmul.f32 %v2732_v32, %v2540_v18  ;;  %v2861_v34 = vmul.f32 %v2733_v47, %v2541_v23  ;;  %v2742_v32 = vunpack.c.l.bf16 %v14307_v28 }
 0x2fb   : > { %v2862_v31 = vmul.f32 %v2734_v44, %v2542_v25  ;;  %v2543_v27 = vsel %vm2287_vm6, %v12258_v16, %v2415_v12  ;;  %v2131_v33 = vpop.f32.mrb[108].mxu0  ;;  %v4510_v38 = vsel %vm4306_vm7, %v4505_v22, %v4509_v49  ;;  %v4513_v56 = vor.u32 %v4511_v54, %v4509_v49 }
 0x2fc   : > { %v2863_v14 = vmul.f32 %v2735_v52, %v2543_v27  ;;  %v12259_v35 = vadd.f32 %v2131_v33, %v13720_v5  ;;  %v2133_v36 = vpop.f32.mrb[109].mxu0  ;;  %11695 = vmatprep.mubr.msk.bf16.mxu1 %vm3078_vm0, %v4510_v38  ;;  %v2743_v52 = vunpack.c.h.bf16 %v14307_v28  ;;  %v16021_v9 = vrot.slane %v14278_v62, 4 }
 0x2fd   : > { %v14314_v39 = vpack.c.bf16 %v2862_v31, %v2860_v30  ;;  %v12260_v37 = vadd.f32 %v2133_v36, %v13722_v6  ;;  %v2135_v40 = vpop.f32.mrb[110].mxu0  ;;  %v2623_v31 = vld [vmem:[%s16013_s3 + $0x1d8] sm:$0xff] }
 0x2fe   : > { %v2937_v43 = vpack.c.bf16 %v2863_v14, %v2861_v34  ;;  %vm2288_vm9 = vcmp.ge.f32.partialorder %v12259_v35, 0.0  ;;  %v2416_v41 = vmul.f32 0.2, %v12259_v35  ;;  %v12261_v45 = vadd.f32 %v2135_v40, %v13720_v5  ;;  %v2137_v47 = vpop.f32.mrb[111].mxu0 }
 0x2ff   : > { %3000 = vst [vmem:[#allocation2 + $0x1a0] sm:$0xff] %v14314_v39  ;;  %vm2289_vm10 = vcmp.ge.f32.partialorder %v12260_v37, 0.0  ;;  %v2417_v46 = vmul.f32 0.2, %v12260_v37  ;;  %v12262_v44 = vadd.f32 %v2137_v47, %v13722_v6  ;;  %11555 = vmatprep.mubr.msk.bf16.mxu0 %vm3078_vm0, %v14314_v39  ;;  %v4515_v50 = vshll.u32 %v14314_v39, 16 }
 0x300   : > { %3001 = vst [vmem:[#allocation2 + $0x1a8] sm:$0xff] %v2937_v43  ;;  %v2544_v51 = vsel %vm2288_vm9, %v12259_v35, %v2416_v41  ;;  %vm2290_vm11 = vcmp.ge.f32.partialorder %v12261_v45, 0.0  ;;  %v2418_v53 = vmul.f32 0.2, %v12261_v45  ;;  %5933 = vrot.lane.b32.xlu0 %v2937_v43, %s13310_s26  ;;  %v8314_v61 = vrot.slane %v14314_v39, 4 }
 0x301   : > { %v2545_v55 = vsel %vm2289_vm10, %v12260_v37, %v2417_v46  ;;  %vm2291_vm12 = vcmp.ge.f32.partialorder %v12262_v44, 0.0  ;;  %v2419_v57 = vmul.f32 0.2, %v12262_v44  ;;  %v4517_v60 = vrot.slane %v4515_v50, 1 }
 0x302   : > { %v2546_v58 = vsel %vm2290_vm11, %v12261_v45, %v2418_v53  ;;  %v2864_v0 = vmul.f32 %v2736_v4, %v2544_v51  ;;  %v2865_v42 = vmul.f32 %v2737_v11, %v2545_v55  ;;  %v2744_v4 = vunpack.c.l.bf16 %v14332_v59 }
 0x303   : > { %v2866_v2 = vmul.f32 %v2738_v24, %v2546_v58  ;;  %v2547_v3 = vsel %vm2291_vm12, %v12262_v44, %v2419_v57  ;;  %v2141_v8 = vpop.f32.mrb[112].mxu0  ;;  %v4518_v17 = vsel %vm4306_vm7, %v4513_v56, %v4517_v60  ;;  %v14350_v48 = vsel %vm7522_vm8, %v16021_v9, %v8314_v61 }
 0x304   : > { %v2867_v13 = vmul.f32 %v2739_v26, %v2547_v3  ;;  %v12263_v15 = vadd.f32 %v2141_v8, %v13720_v5  ;;  %v2143_v16 = vpop.f32.mrb[113].mxu0  ;;  %11696 = vmatmul.mubr.msk.bf16.gmra.mrb[28].mxu1 %vm3078_vm0, %v4518_v17  ;;  %v4519_v27 = vshrl.u32 %v14314_v39, 16  ;;  %v2745_v14 = vunpack.c.h.bf16 %v14332_v59  ;;  %v2625_v17 = vld [vmem:[%s16013_s3 + $0x1e8] sm:$0xff] }
 0x305   : > { %v14342_v18 = vpack.c.bf16 %v2866_v2, %v2864_v0  ;;  %v12264_v19 = vadd.f32 %v2143_v16, %v13722_v6  ;;  %v2145_v21 = vpop.f32.mrb[114].mxu0  ;;  %v2746_v47 = vunpack.c.l.bf16 %v2623_v31  ;;  %v2747_v55 = vunpack.c.h.bf16 %v2623_v31 }
 0x306   : > { %v2939_v11 = vpack.c.bf16 %v2867_v13, %v2865_v42  ;;  %vm2292_vm13 = vcmp.ge.f32.partialorder %v12263_v15, 0.0  ;;  %v2420_v23 = vmul.f32 0.2, %v12263_v15  ;;  %v12265_v12 = vadd.f32 %v2145_v21, %v13720_v5  ;;  %v2147_v24 = vpop.f32.mrb[115].mxu0 }
 0x307   : > { %3002 = vst [vmem:[#allocation2 + $0x1b0] sm:$0xff] %v14342_v18  ;;  %vm2293_vm14 = vcmp.ge.f32.partialorder %v12264_v19, 0.0  ;;  %v2421_v25 = vmul.f32 0.2, %v12264_v19  ;;  %v12266_v26 = vadd.f32 %v2147_v24, %v13722_v6  ;;  %11556 = vmatmul.mubr.msk.bf16.gmra.mrb[180].mxu0 %vm3078_vm0, %v14342_v18  ;;  %v4523_v22 = vshll.u32 %v14342_v18, 16 }
 0x308   : > { %3003 = vst [vmem:[#allocation2 + $0x1b8] sm:$0xff] %v2939_v11  ;;  %v2548_v49 = vsel %vm2292_vm13, %v12263_v15, %v2420_v23  ;;  %vm2294_vm15 = vcmp.ge.f32.partialorder %v12265_v12, 0.0  ;;  %v2422_v30 = vmul.f32 0.2, %v12265_v12  ;;  %5935 = vrot.lane.b32.xlu1 %v2939_v11, %s13310_s26  ;;  %v4521_v36 = vor.u32 %v4519_v27, %v4517_v60  ;;  %v14390_v60 = vld [vmem:[%s16013_s3 + $0x1e0] sm:$0xff] }
 0x309   : > { %v2549_v33 = vsel %vm2293_vm14, %v12264_v19, %v2421_v25  ;;  %vm2295_vm1 = vcmp.ge.f32.partialorder %v12266_v26, 0.0  ;;  %v2423_v34 = vmul.f32 0.2, %v12266_v26  ;;  %v4525_v38 = vrot.slane %v4523_v22, 1 }
 0x30a   : > { %v2550_v35 = vsel %vm2294_vm15, %v12265_v12, %v2422_v30  ;;  %v16020_v37 = vrot.slane %v14342_v18, 4  ;;  %v2868_v40 = vmul.f32 %v2740_v29, %v2548_v49  ;;  %v2869_v39 = vmul.f32 %v2741_v10, %v2549_v33 }
 0x30b   : > { %v2870_v43 = vmul.f32 %v2742_v32, %v2550_v35  ;;  %v2551_v41 = vsel %vm2295_vm1, %v12266_v26, %v2423_v34  ;;  %v2151_v45 = vpop.f32.mrb[116].mxu0  ;;  %v4526_v51 = vsel %vm4306_vm7, %v4521_v36, %v4525_v38  ;;  %v4527_v3 = vshrl.u32 %v14342_v18, 16 }
 0x30c   : > { %v2871_v46 = vmul.f32 %v2743_v52, %v2551_v41  ;;  %v12267_v44 = vadd.f32 %v2151_v45, %v13720_v5  ;;  %v2153_v50 = vpop.f32.mrb[117].mxu0  ;;  %11699 = vmatprep.mubr.msk.bf16.mxu1 %vm3078_vm0, %v4526_v51  ;;  %v14380_v28 = vsel %vm7522_vm8, %v8314_v61, %v16020_v37  ;;  %v14383_v52 = vld [vmem:[#allocation2] sm:$0xf0]  ;;  %v2748_v16 = vunpack.c.l.bf16 %v14390_v60  ;;  %v14419_v45 = vld [vmem:[%s16013_s3 + $0x1f0] sm:$0xff] }
 0x30d   : > { %v14373_v53 = vpack.c.bf16 %v2870_v43, %v2868_v40  ;;  %v12268_v54 = vadd.f32 %v2153_v50, %v13722_v6  ;;  %v2155_v29 = vpop.f32.mrb[118].mxu0  ;;  %v8263_v13 = vrot.slane %v14383_v52, 4  ;;  %v4529_v19 = vor.u32 %v4527_v3, %v4525_v38  ;;  %v14412_v40 = vld [vmem:[#allocation2 + $0x10] sm:$0xff] }
 0x30e   : > { %v2941_v20 = vpack.c.bf16 %v2871_v46, %v2869_v39  ;;  %vm2296_vm2 = vcmp.ge.f32.partialorder %v12267_v44, 0.0  ;;  %v2424_v10 = vmul.f32 0.2, %v12267_v44  ;;  %v12269_v32 = vadd.f32 %v2155_v29, %v13720_v5  ;;  %v2157_v57 = vpop.f32.mrb[119].mxu0 }
 0x30f   : > { %3004 = vst [vmem:[#allocation2 + $0x1c0] sm:$0xff] %v14373_v53  ;;  %vm2297_vm3 = vcmp.ge.f32.partialorder %v12268_v54, 0.0  ;;  %v2425_v58 = vmul.f32 0.2, %v12268_v54  ;;  %v12270_v56 = vadd.f32 %v2157_v57, %v13722_v6  ;;  %11559 = vmatprep.mubr.msk.bf16.mxu0 %vm3078_vm0, %v14373_v53  ;;  %v4531_v61 = vshll.u32 %v14373_v53, 16 }
 0x310   : > { %3005 = vst [vmem:[#allocation2 + $0x1c8] sm:$0xff] %v2941_v20  ;;  %v2552_v0 = vsel %vm2296_vm2, %v12267_v44, %v2424_v10  ;;  %vm2298_vm4 = vcmp.ge.f32.partialorder %v12269_v32, 0.0  ;;  %v2426_v2 = vmul.f32 0.2, %v12269_v32  ;;  %5937 = vrot.lane.b32.xlu0 %v2941_v20, %s13310_s26  ;;  %v2749_v25 = vunpack.c.h.bf16 %v14390_v60  ;;  %v2627_v20 = vld [vmem:[%s16013_s3 + $0x1f8] sm:$0xff] }
 0x311   : > { %v2553_v8 = vsel %vm2297_vm3, %v12268_v54, %v2425_v58  ;;  %vm2299_vm5 = vcmp.ge.f32.partialorder %v12270_v56, 0.0  ;;  %v2427_v42 = vmul.f32 0.2, %v12270_v56  ;;  %v4533_v21 = vrot.slane %v4531_v61, 1 }
 0x312   : > { %v2554_v15 = vsel %vm2298_vm4, %v12269_v32, %v2426_v2  ;;  %v2872_v11 = vmul.f32 %v2744_v4, %v2552_v0  ;;  %v2873_v26 = vmul.f32 %v2745_v14, %v2553_v8  ;;  %v2750_v35 = vunpack.c.l.bf16 %v2625_v17 }
 0x313   : > { %v2874_v23 = vmul.f32 %v2746_v47, %v2554_v15  ;;  %v2555_v12 = vsel %vm2299_vm5, %v12270_v56, %v2427_v42  ;;  %v2161_v24 = vpop.f32.mrb[120].mxu0  ;;  %v4534_v31 = vsel %vm4306_vm7, %v4529_v19, %v4533_v21  ;;  %v2751_v59 = vunpack.c.h.bf16 %v2625_v17 }
 0x314   : > { %v2875_v22 = vmul.f32 %v2747_v55, %v2555_v12  ;;  %v12271_v49 = vadd.f32 %v2161_v24, %v13720_v5  ;;  %v2163_v30 = vpop.f32.mrb[121].mxu0  ;;  %11700 = vmatmul.mubr.msk.bf16.gmra.mrb[32].mxu1 %vm3078_vm0, %v4534_v31  ;;  %v4535_v44 = vshrl.u32 %v14373_v53, 16  ;;  %v8264_v54 = vrot.slane %v14412_v40, 4  ;;  %v14450_v31 = vld [vmem:[#allocation2 + $0x30] sm:$0xff] }
 0x315   : > { %v14407_v27 = vpack.c.bf16 %v2874_v23, %v2872_v11  ;;  %v12272_v33 = vadd.f32 %v2163_v30, %v13722_v6  ;;  %v2165_v34 = vpop.f32.mrb[122].mxu0  ;;  %v2752_v55 = vunpack.c.l.bf16 %v14419_v45  ;;  %v2753_v61 = vunpack.c.h.bf16 %v14419_v45 }
 0x316   : > { %v2943_v4 = vpack.c.bf16 %v2875_v22, %v2873_v26  ;;  %vm2300_vm6 = vcmp.ge.f32.partialorder %v12271_v49, 0.0  ;;  %v2428_v36 = vmul.f32 0.2, %v12271_v49  ;;  %v12273_v14 = vadd.f32 %v2165_v34, %v13720_v5  ;;  %v2167_v38 = vpop.f32.mrb[123].mxu0 }
 0x317   : > { %3006 = vst [vmem:[#allocation2 + $0x1d0] sm:$0xff] %v14407_v27  ;;  %vm2301_vm9 = vcmp.ge.f32.partialorder %v12272_v33, 0.0  ;;  %v2429_v43 = vmul.f32 0.2, %v12272_v33  ;;  %v12274_v41 = vadd.f32 %v2167_v38, %v13722_v6  ;;  %11560 = vmatmul.mubr.msk.bf16.gmra.mrb[184].mxu0 %vm3078_vm0, %v14407_v27  ;;  %v4539_v47 = vshll.u32 %v14407_v27, 16  ;;  %v14459_v38 = vld [vmem:[#allocation2 + $0xa8] sm:$0xff] }
 0x318   : > { %3007 = vst [vmem:[#allocation2 + $0x1d8] sm:$0xff] %v2943_v4  ;;  %v2556_v39 = vsel %vm2300_vm6, %v12271_v49, %v2428_v36  ;;  %vm2302_vm10 = vcmp.ge.f32.partialorder %v12273_v14, 0.0  ;;  %v2430_v46 = vmul.f32 0.2, %v12273_v14  ;;  %5939 = vrot.lane.b32.xlu1 %v2943_v4, %s13310_s26  ;;  %v4537_v10 = vor.u32 %v4535_v44, %v4533_v21  ;;  %v14457_v36 = vld [vmem:[#allocation2 + $0x20] sm:$0xff] }
 0x319   : > { %v2557_v50 = vsel %vm2301_vm9, %v12272_v33, %v2429_v43  ;;  %vm2303_vm11 = vcmp.ge.f32.partialorder %v12274_v41, 0.0  ;;  %v2431_v51 = vmul.f32 0.2, %v12274_v41  ;;  %v4541_v32 = vrot.slane %v4539_v47, 1 }
 0x31a   : > { %v2558_v29 = vsel %vm2302_vm10, %v12273_v14, %v2430_v46  ;;  %v2876_v57 = vmul.f32 %v2748_v16, %v2556_v39  ;;  %v2877_v0 = vmul.f32 %v2749_v25, %v2557_v50  ;;  %v2754_v21 = vunpack.c.l.bf16 %v2627_v20  ;;  %v4297_v14 = vld [vmem:[#allocation2 + $0x200] sm:$0x1] }
 0x31b   : > { %v2878_v58 = vmul.f32 %v2750_v35, %v2558_v29  ;;  %v2559_v56 = vsel %vm2303_vm11, %v12274_v41, %v2431_v51  ;;  %v2171_v60 = vpop.f32.mrb[124].mxu0  ;;  %v4542_v42 = vsel %vm4306_vm7, %v4537_v10, %v4541_v32  ;;  %v2755_v11 = vunpack.c.h.bf16 %v2627_v20  ;;  %v14470_v29 = vld [vmem:[#allocation2 + $0xb8] sm:$0xff] }
 0x31c   : > { %v2879_v2 = vmul.f32 %v2751_v59, %v2559_v56  ;;  %v12275_v3 = vadd.f32 %v2171_v60, %v13720_v5  ;;  %v2173_v8 = vpop.f32.mrb[125].mxu0  ;;  %11703 = vmatprep.mubr.msk.bf16.mxu1 %vm3078_vm0, %v4542_v42  ;;  %v8265_v4 = vsel %vm7522_vm8, %v8263_v13, %v8264_v54  ;;  %v8268_v47 = vrot.slane %v14450_v31, 4  ;;  %v14468_v13 = vld [vmem:[#allocation2 + $0x50] sm:$0xff] }
 0x31d   : > { %v14434_v15 = vpack.c.bf16 %v2878_v58, %v2876_v57  ;;  %v12276_v17 = vadd.f32 %v2173_v8, %v13722_v6  ;;  %v2175_v19 = vpop.f32.mrb[126].mxu0  ;;  %v8266_v52 = vrot.slane %v14457_v36, 4  ;;  %v4563_v51 = vshll.u32 %v4297_v14, 16  ;;  %v14481_v58 = vld [vmem:[#allocation2 + $0x40] sm:$0xff]  ;;  %v14488_v60 = vld [vmem:[#allocation2 + $0x70] sm:$0xff] }
 0x31e   : > { %v14438_v16 = vpack.c.bf16 %v2879_v2, %v2877_v0  ;;  %vm2304_vm12 = vcmp.ge.f32.partialorder %v12275_v3, 0.0  ;;  %v2432_v23 = vmul.f32 0.2, %v12275_v3  ;;  %v12277_v12 = vadd.f32 %v2175_v19, %v13720_v5  ;;  %v2177_v24 = vpop.f32.mrb[127].mxu0  ;;  %v14495_v19 = vld [vmem:[#allocation2 + $0xc8] sm:$0xff] }
 0x31f   : > { %3008 = vst [vmem:[#allocation2 + $0x1e0] sm:$0xff] %v14434_v15  ;;  %vm2305_vm13 = vcmp.ge.f32.partialorder %v12276_v17, 0.0  ;;  %v2433_v25 = vmul.f32 0.2, %v12276_v17  ;;  %v12278_v26 = vadd.f32 %v2177_v24, %v13722_v6  ;;  %11563 = vmatprep.mubr.msk.bf16.mxu0 %vm3078_vm0, %v14434_v15  ;;  %v4547_v22 = vshll.u32 %v14434_v15, 16 }
 0x320   : > { %3009 = vst [vmem:[#allocation2 + $0x1e8] sm:$0xff] %v14438_v16  ;;  %v2560_v49 = vsel %vm2304_vm12, %v12275_v3, %v2432_v23  ;;  %vm2306_vm14 = vcmp.ge.f32.partialorder %v12277_v12, 0.0  ;;  %v2434_v30 = vmul.f32 0.2, %v12277_v12  ;;  %5941 = vrot.lane.b32.xlu0 %v14438_v16, %s13310_s26  ;;  %v4543_v5 = vshrl.u32 %v14407_v27, 16 }
 0x321   : > { %v2561_v33 = vsel %vm2305_vm13, %v12276_v17, %v2433_v25  ;;  %vm2307_vm15 = vcmp.ge.f32.partialorder %v12278_v26, 0.0  ;;  %v2435_v6 = vmul.f32 0.2, %v12278_v26  ;;  %v4549_v59 = vrot.slane %v4547_v22, 1 }
 0x322   : > { %v2562_v34 = vsel %vm2306_vm14, %v12277_v12, %v2434_v30  ;;  %v4545_v35 = vor.u32 %v4543_v5, %v4541_v32  ;;  %v2880_v43 = vmul.f32 %v2752_v55, %v2560_v49  ;;  %v2881_v39 = vmul.f32 %v2753_v61, %v2561_v33  ;;  %v14506_v49 = vld [vmem:[#allocation2 + $0xd8] sm:$0xff] }
 0x323   : > { %v2882_v41 = vmul.f32 %v2754_v21, %v2562_v34  ;;  %v2563_v45 = vsel %vm2307_vm15, %v12278_v26, %v2435_v6  ;;  %v6667_v55 = vshll.u32 %v14459_v38, 16  ;;  %v8269_v10 = vsel %vm7522_vm8, %v8266_v52, %v8268_v47 }
 0x324   : > { %v2883_v46 = vmul.f32 %v2755_v11, %v2563_v45  ;;  %v4550_v44 = vsel %vm4306_vm7, %v4545_v35, %v4549_v59  ;;  %8328 = vrot.lane.b32.xlu0 %v8265_v4, %s13310_s26  ;;  %v4551_v32 = vshrl.u32 %v14434_v15, 16  ;;  %v8272_v56 = vrot.slane %v14468_v13, 4  ;;  %v14498_v11 = vld [vmem:[#allocation2 + $0x60] sm:$0xff]  ;;  %v14519_v35 = vld [vmem:[#allocation2 + $0x90] sm:$0xff]  ;;  %v14522_v4 = vld [vmem:[#allocation2 + $0xe8] sm:$0xff] }
 0x325   : > { %v14464_v50 = vpack.c.bf16 %v2882_v41, %v2880_v43  ;;  %11704 = vmatmul.mubr.msk.bf16.gmra.mrb[36].mxu1 %vm3078_vm0, %v4550_v44  ;;  %v14490_v61 = vrot.slane %v6667_v55, 1  ;;  %v6671_v0 = vshrl.u32 %v14459_v38, 16  ;;  %v6675_v2 = vshll.u32 %v14470_v29, 16  ;;  %v14529_v44 = vld [vmem:[#allocation2 + $0x80] sm:$0xff] }
 0x326   : > { %v14473_v20 = vpack.c.bf16 %v2883_v46, %v2881_v39  ;;  %v4553_v3 = vor.u32 %v4551_v32, %v4549_v59  ;;  %v4565_v17 = vrot.slane %v4563_v51, 1  ;;  %v8270_v21 = vrot.slane %v14481_v58, 4  ;;  %v5168_v59 = vld [vmem:[#allocation2 + $0x8] sm:$0xff]  ;;  %v14533_v51 = vld [vmem:[#allocation2 + $0xf8] sm:$0xff] }
 0x327   : > { %3010 = vst [vmem:[#allocation2 + $0x1f0] sm:$0xff] %v14464_v50  ;;  %11564 = vmatmul.mubr.msk.bf16.gmra.mrb[188].mxu0 %vm3078_vm0, %v14464_v50  ;;  %v4555_v57 = vshll.u32 %v14464_v50, 16  ;;  %16042 = vst [vmem:[#allocation7_spill] sm:$0xff] %v14490_v61  ;;  %v4559_v42 = vshrl.u32 %v14464_v50, 16  ;;  %v6673_v23 = vor.u32 %v6671_v0, %v14490_v61  ;;  %v6677_v12 = vrot.slane %v6675_v2, 1  ;;  %v14754_v61 = vld [vmem:[#allocation2 + $0x180] sm:$0xff] }
 0x328   : > { %3011 = vst [vmem:[#allocation2 + $0x1f8] sm:$0xff] %v14473_v20  ;;  %5943 = vrot.lane.b32.xlu1 %v14473_v20, %s13310_s26  ;;  %8332 = vrot.lane.b32.xlu0 %v8269_v10, %s13310_s26  ;;  %v8267_v25 = vsel %vm7522_vm8, %v8264_v54, %v8266_v52  ;;  %v8276_v22 = vrot.slane %v14488_v60, 4  ;;  %v8273_v30 = vsel %vm7522_vm8, %v8270_v21, %v8272_v56  ;;  %v6679_v33 = vshrl.u32 %v14470_v29, 16 }
 0x329   : > { %v4557_v8 = vrot.slane %v4555_v57, 1  ;;  %v14512_v5 = vsel %vm4306_vm7, %v6673_v23, %v6677_v12  ;;  %v6683_v6 = vshll.u32 %v14495_v19, 16  ;;  %v8274_v34 = vrot.slane %v14498_v11, 4  ;;  %v14539_v57 = vld [vmem:[#allocation2 + $0xb0] sm:$0xff] }
 0x32a   : > { %16043 = vst [vmem:[#allocation8_spill] sm:$0xff] %v14512_v5  ;;  %v6681_v14 = vor.u32 %v6679_v33, %v6677_v12  ;;  %v6687_v41 = vshrl.u32 %v14495_v19, 16  ;;  %v6691_v45 = vshll.u32 %v14506_v49, 16  ;;  %v8271_v39 = vsel %vm7522_vm8, %v8268_v47, %v8270_v21  ;;  %v14541_v47 = vld [vmem:[#allocation2 + $0x108] sm:$0xff]  ;;  %v5169_v33 = vld [vmem:[#allocation2 + $0x18] sm:$0xff] }
 0x32b   : > { %v4558_v24 = vsel %vm4306_vm7, %v4553_v3, %v4557_v8  ;;  %v4561_v26 = vor.u32 %v4559_v42, %v4557_v8  ;;  %v6685_v43 = vrot.slane %v6683_v6, 1  ;;  %v8277_v46 = vsel %vm7522_vm8, %v8274_v34, %v8276_v22  ;;  %v14562_v6 = vld [vmem:[#allocation2 + $0xd0] sm:$0xff] }
 0x32c   : > { %11707 = vmatprep.mubr.msk.bf16.mxu1 %vm3078_vm0, %v4558_v24  ;;  %8330 = vrot.lane.b32.xlu1 %v8267_v25, %s13310_s26  ;;  %v8280_v52 = vrot.slane %v14519_v35, 4  ;;  %v6693_v32 = vrot.slane %v6691_v45, 1  ;;  %v6695_v0 = vshrl.u32 %v14506_v49, 16  ;;  %v6699_v2 = vshll.u32 %v14522_v4, 16 }
 0x32d   : > { %8336 = vrot.lane.b32.xlu0 %v8273_v30, %s13310_s26  ;;  %v4566_v54 = vsel %vm4306_vm7, %v4561_v26, %v4565_v17  ;;  %v14536_v55 = vsel %vm4306_vm7, %v6681_v14, %v6685_v43  ;;  %v6689_v10 = vor.u32 %v6687_v41, %v6685_v43  ;;  %v8275_v3 = vsel %vm7522_vm8, %v8272_v56, %v8274_v34  ;;  %v14550_v17 = vld [vmem:[#allocation2 + $0xa0] sm:$0xff]  ;;  %v13232_v56 = vld [vmem:[%s16014_s4 + $0x88] sm:$0xff]  }
 0x32e   : > { %11708 = vmatmul.mubr.msk.bf16.gmra.mrb[40].mxu1 %vm3078_vm0, %v4566_v54  ;;  %16044 = vst [vmem:[#allocation9_spill] sm:$0xff] %v14536_v55  ;;  %v8278_v8 = vrot.slane %v14529_v44, 4  ;;  %v6697_v21 = vor.u32 %v6695_v0, %v6693_v32  ;;  %v6701_v23 = vrot.slane %v6699_v2, 1  ;;  %v6703_v12 = vshrl.u32 %v14522_v4, 16  ;;  %v5170_v43 = vld [vmem:[#allocation2 + $0x28] sm:$0xff]  ;;  %v14740_v55 = vpop.permute.xlu0 %5881 }
 0x32f   : > { %11719 = vmatprep.mubr.msk.bf16.mxu1 %vm3078_vm0, %v5168_v59  ;;  %v14548_v42 = vsel %vm4306_vm7, %v6689_v10, %v6693_v32  ;;  %v6707_v24 = vshll.u32 %v14533_v51, 16  ;;  %v8284_v26 = vrot.slane %v14539_v57, 4  ;;  %v6715_v30 = vshll.u32 %v14541_v47, 16  ;;  %v14577_v10 = vld [vmem:[#allocation2 + $0xc0] sm:$0xff] }
 0x330   : > { %8334 = vrot.lane.b32.xlu1 %v8271_v39, %s13310_s26  ;;  %16045 = vst [vmem:[#allocation10_spill] sm:$0xff] %v14548_v42  ;;  %v8281_v25 = vsel %vm7522_vm8, %v8278_v8, %v8280_v52  ;;  %v14565_v54 = vsel %vm4306_vm7, %v6697_v21, %v6701_v23  ;;  %v6705_v34 = vor.u32 %v6703_v12, %v6701_v23  ;;  %v6711_v14 = vshrl.u32 %v14533_v51, 16  ;;  %v13259_v39 = vld [vmem:[%s16014_s4 + $0x80] sm:$0xff]  }
 0x331   : > { %8340 = vrot.lane.b32.xlu0 %v8277_v46, %s13310_s26  ;;  %16046 = vst [vmem:[#allocation11_spill] sm:$0xff] %v14565_v54  ;;  %v6709_v59 = vrot.slane %v6707_v24, 1  ;;  %v8282_v41 = vrot.slane %v14550_v17, 4  ;;  %v14570_v45 = vrot.slane %v6715_v30, 1  ;;  %v8279_v46 = vsel %vm7522_vm8, %v8276_v22, %v8278_v8  ;;  %v13236_v32 = vld [vmem:[%s16014_s4 + $0x20] sm:$0xff]   ;;  %v13233_v22 = vld [vmem:[%s16014_s4 + $0x90] sm:$0xff]  }
 0x332   : > { %v8288_v21 = vrot.slane %v14562_v6, 4  ;;  %v14592_v8 = vld [vmem:[#allocation2 + $0xf0] sm:$0xff]  ;;  %11567 = vmatprep.subr.bf16.mxu0 %v13236_v32  ;;  %v8286_v12 = vrot.slane %v14577_v10, 4  ;;  %v13237_v30 = vld [vmem:[%s16014_s4 + $0x28] sm:$0xff]   ;;  %vm9034_vm1 = vsmask.f32 3328 }
 0x333   : > { %16047 = vst [vmem:[#allocation12_spill] sm:$0xff] %v14570_v45  ;;  %v14583_v0 = vsel %vm4306_vm7, %v6705_v34, %v6709_v59  ;;  %v6713_v2 = vor.u32 %v6711_v14, %v6709_v59  ;;  %11568 = vmatpush3.bf16.msra.mxu0 %v13236_v32  ;;  %v8283_v24 = vsel %vm7522_vm8, %v8280_v52, %v8282_v41  ;;  %v8292_v34 = vrot.slane %v14592_v8, 4  ;;  %v14608_v59 = vld [vmem:[#allocation2 + $0x110] sm:$0xff]  ;;  %v13234_v52 = vld [vmem:[%s16014_s4 + $0x98] sm:$0xff]   ;;  %v5172_v14 = vld [vmem:[#allocation2 + $0x48] sm:$0xff] }
 0x334   : > { %8338 = vrot.lane.b32.xlu1 %v8275_v3, %s13310_s26  ;;  %16048 = vst [vmem:[#allocation13_spill] sm:$0xff] %v14583_v0  ;;  %v8285_v3 = vsel %vm7522_vm8, %v8282_v41, %v8284_v26  ;;  %11569 = vmatprep.subr.bf16.mxu0 %v13237_v30  ;;  %v14616_v41 = vld [vmem:[#allocation2 + $0x100] sm:$0xff]  ;;  %v8287_v32 = vsel %vm7522_vm8, %v8284_v26, %v8286_v12  ;;  %v14671_v0 = vld [vmem:[#allocation2 + $0x58] sm:$0xff] }
 0x335   : > { %8344 = vrot.lane.b32.xlu0 %v8281_v25, %s13310_s26  ;;  %v14596_v23 = vsel %vm4306_vm7, %v6713_v2, %v14570_v45  ;;  %v14600_v25 = vld [vmem:[#allocation2 + $0xe0] sm:$0xff]  ;;  %v8296_v2 = vrot.slane %v14608_v59, 4  ;;  %16058 = vst [vmem:[#allocation23_spill] sm:$0xff] %v14671_v0 }
 0x336   : > { %11720 = vmatmul.mubr.msk.bf16.vlgmr.msra.gmra.mrb[44].mxu1 %vm3078_vm0, %v5169_v33  ;;  %16049 = vst [vmem:[#allocation14_spill] sm:$0xff] %v14596_v23  ;;  %v8289_v33 = vsel %vm7522_vm8, %v8286_v12, %v8288_v21  ;;  %v14637_v26 = vld [vmem:[%s16014_s4 + $0xa0] sm:$0xff]  }
 0x337   : > { %11723 = vmatprep.mubr.msk.bf16.mxu1 %vm3078_vm0, %v5170_v43  ;;  %11784 = vmatpush3.bf16.msra.mxu1 %v13259_v39  ;;  %v8290_v43 = vrot.slane %v14600_v25, 4  ;;  %v14618_v39 = vld [vmem:[#allocation2 + $0x40] sm:$0xff] }
 0x338   : > { %8342 = vrot.lane.b32.xlu1 %v8279_v46, %s13310_s26  ;;  %11785 = vmatprep.subr.bf16.mxu1 %v13232_v56  ;;  %16050 = vst [vmem:[#allocation15_spill] sm:$0xff] %v14618_v39  ;;  %v4270_v46 = vld [vmem:[#allocation2 + $0x50] sm:$0xff]  ;;  %v14641_v12 = vld [vmem:[#allocation2 + $0x80] sm:$0xff] }
 0x339   : > { %8348 = vrot.lane.b32.xlu0 %v8285_v3, %s13310_s26  ;;  %11570 = vmatpush3.bf16.msra.mxu0 %v13237_v30  ;;  %v13238_v3 = vld [vmem:[%s16014_s4 + $0x30] sm:$0xff]   ;;  %v8293_v30 = vsel %vm7522_vm8, %v8290_v43, %v8292_v34  ;;  %16053 = vst [vmem:[#allocation18_spill] sm:$0xff] %v14641_v12  ;;  %v7532_v1 = vrot.slane %v4270_v46, 4  ;;  %v8291_v63 = vsel %vm7522_vm8, %v8288_v21, %v8290_v43 }
 0x33a   : > { %11571 = vmatprep.subr.bf16.mxu0 %v13238_v3 }
 0x33b   : > { %11786 = vmatpush3.bf16.msra.mxu1 %v13232_v56  ;;  %v5171_v56 = vld [vmem:[#allocation2 + $0x38] sm:$0xff] }
 0x33c   : > { %8346 = vrot.lane.b32.xlu1 %v8283_v24, %s13310_s26  ;;  %11787 = vmatprep.subr.bf16.mxu1 %v13233_v22  ;;  %v14626_v24 = vld [vmem:[#allocation2 + $0x60] sm:$0xff] }
 0x33d   : > { %8352 = vrot.lane.b32.xlu0 %v8289_v33, %s13310_s26  ;;  %16051 = vst [vmem:[#allocation16_spill] sm:$0xff] %v14626_v24  ;;  %v14628_v33 = vld [vmem:[#allocation2 + $0x70] sm:$0xff]  ;;  %11572 = vmatpush3.bf16.msra.mxu0 %v13238_v3  ;;  %v7534_v37 = vrot.slane %v14626_v24, 4  ;;  %v13239_v3 = vld [vmem:[%s16014_s4 + $0x38] sm:$0xff]  }
 0x33e   : > { %11724 = vmatmul.mubr.msk.bf16.gmra.mrb[48].mxu1 %vm3078_vm0, %v5171_v56  ;;  %16052 = vst [vmem:[#allocation17_spill] sm:$0xff] %v14628_v33  ;;  %v14632_v56 = vld [vmem:[#allocation2 + $0x130] sm:$0xff]  ;;  %v7536_v9 = vrot.slane %v14628_v33, 4  ;;  %11573 = vmatprep.subr.bf16.mxu0 %v13239_v3  ;;  %v16063_v7 = vshrl.u32 %v14628_v33, 16 }
 0x33f   : > { %11727 = vmatprep.mubr.msk.bf16.mxu1 %vm3078_vm0, %v5172_v14  ;;  %11788 = vmatpush3.bf16.msra.mxu1 %v13233_v22  ;;  %v8294_v22 = vrot.slane %v14616_v41, 4  ;;  %v14643_v14 = vld [vmem:[#allocation2 + $0x90] sm:$0xff]  ;;  %v8300_v45 = vrot.slane %v14632_v56, 4  ;;  %v14664_v21 = vsel %vm7522_vm8, %v7532_v1, %v7534_v37 }
 0x340   : > { %8350 = vrot.lane.b32.xlu1 %v8287_v32, %s13310_s26  ;;  %11789 = vmatprep.subr.bf16.mxu1 %v13234_v52  ;;  %16054 = vst [vmem:[#allocation19_spill] sm:$0xff] %v14643_v14  ;;  %v16024_v32 = vrot.slane %v14618_v39, 4  ;;  %16056 = vst [vmem:[#allocation21_spill] sm:$0xff] %v14664_v21  ;;  %v14667_v43 = vsel %vm7522_vm8, %v7534_v37, %v7536_v9  ;;  %v16061_v39 = vshrl.u32 %v14626_v24, 16  ;;  %v9100_v54 = vrot.slane %v16063_v7, 4 }
 0x341   : > { %8356 = vrot.lane.b32.xlu0 %v8293_v30, %s13310_s26  ;;  %v8297_v23 = vsel %vm7522_vm8, %v8294_v22, %v8296_v2  ;;  %v14650_v30 = vld [vmem:[#allocation2 + $0x120] sm:$0xff]  ;;  %16057 = vst [vmem:[#allocation22_spill] sm:$0xff] %v14667_v43  ;;  %11574 = vmatpush3.bf16.msra.mxu0 %v13239_v3  ;;  %v8295_v37 = vsel %vm7522_vm8, %v8292_v34, %v8294_v22  ;;  %v14698_v34 = vld [vmem:[#allocation2 + $0x150] sm:$0xff] }
 0x342   : > { %v14661_v46 = vsel %vm7522_vm8, %v16024_v32, %v7532_v1  ;;  %v5174_v32 = vld [vmem:[#allocation2 + $0x68] sm:$0xff]  ;;  %v14695_v3 = vld [vmem:[#allocation2 + $0x140] sm:$0xff]  ;;  %v9091_v21 = vrot.slane %v16061_v39, 4  ;;  %v16065_v39 = vshrl.u32 %v14641_v12, 16 }
 0x343   : > { %11790 = vmatpush3.bf16.msra.mxu1 %v13234_v52  ;;  %16055 = vst [vmem:[#allocation20_spill] sm:$0xff] %v14661_v46  ;;  %v7538_v52 = vrot.slane %v14641_v12, 4  ;;  %v8298_v46 = vrot.slane %v14650_v30, 4 }
 0x344   : > { %8354 = vrot.lane.b32.xlu1 %v8291_v63, %s13310_s26  ;;  %11855 = vmatprep.subr.bf16.mxu1 %v14637_v26  ;;  %v16025_v63 = vrot.slane %v14643_v14, 4 }
 0x345   : > { %8360 = vrot.lane.b32.xlu0 %v8297_v23, %s13310_s26  ;;  %v14678_v1 = vsel %vm7522_vm8, %v7536_v9, %v7538_v52  ;;  %v14685_v23 = vld [vmem:[%s16014_s4 + $0x40] sm:$0xff]   ;;  %v8301_v9 = vsel %vm7522_vm8, %v8298_v46, %v8300_v45  ;;  %v8299_v22 = vsel %vm7522_vm8, %v8296_v2, %v8298_v46 }
 0x346   : > { %11728 = vmatmul.mubr.msk.bf16.gmra.mrb[52].mxu1 %vm3078_vm0, %v14671_v0  ;;  %16059 = vst [vmem:[#allocation24_spill] sm:$0xff] %v14678_v1  ;;  %11639 = vmatprep.subr.bf16.mxu0 %v14685_v23  ;;  %v14691_v43 = vsel %vm7522_vm8, %v7538_v52, %v16025_v63  ;;  %v14703_v1 = vld [vmem:[#allocation2] sm:$0xff]  ;;  %v8304_v52 = vrot.slane %v14698_v34, 4  ;;  %v5176_v63 = vld [vmem:[#allocation2 + $0x88] sm:$0xff] }
 0x347   : > { %11731 = vmatprep.mubr.msk.bf16.mxu1 %vm3078_vm0, %v5174_v32  ;;  %16060 = vst [vmem:[#allocation25_spill] sm:$0xff] %v14691_v43  ;;  %v8302_v32 = vrot.slane %v14695_v3, 4  ;;  %v14713_v46 = vld [vmem:[#allocation2 + $0x160] sm:$0xff]  ;;  %v14717_v43 = vld [vmem:[#allocation2 + $0x170] sm:$0xff] }
 0x348   : > { %8358 = vrot.lane.b32.xlu1 %v8295_v37, %s13310_s26  ;;  %v5175_v37 = vld [vmem:[#allocation2 + $0x78] sm:$0xff] }
 0x349   : > { %8364 = vrot.lane.b32.xlu0 %v8301_v9, %s13310_s26  ;;  %v8303_v9 = vsel %vm7522_vm8, %v8300_v45, %v8302_v32  ;;  %v8305_v2 = vsel %vm7522_vm8, %v8302_v32, %v8304_v52  ;;  %v8306_v32 = vrot.slane %v14713_v46, 4  ;;  %v7458_v45 = vld [vmem:[#allocation2 + $0xa0] sm:$0xff] }
 0x34c   : > { %8362 = vrot.lane.b32.xlu1 %v8299_v22, %s13310_s26  ;;  %v8308_v22 = vrot.slane %v14717_v43, 4 }
 0x34d   : > { %3600 = vrot.lane.b32.xlu0 %v14703_v1, %s13310_s26 }
 0x34e   : > { %11732 = vmatmul.mubr.msk.bf16.gmra.mrb[56].mxu1 %vm3078_vm0, %v5175_v37  ;;  %v5177_v37 = vld [vmem:[#allocation2 + $0x98] sm:$0xff] }
 0x34f   : > { %11735 = vmatprep.mubr.msk.bf16.mxu1 %vm3078_vm0, %v5176_v63 }
 0x350   : > { %8366 = vrot.lane.b32.xlu1 %v8303_v9, %s13310_s26  ;;  %v16062_v9 = vshll.u32 %v14626_v24, 16 }
 0x351   : > { %8368 = vrot.lane.b32.xlu0 %v8305_v2, %s13310_s26  ;;  %v9109_v2 = vrot.slane %v16065_v39, 4 }
 0x352   : > { %v9094_v63 = vrot.slane %v16062_v9, 5  ;;  %v8307_v9 = vsel %vm7522_vm8, %v8304_v52, %v8306_v32  ;;  %v16069_v52 = vshll.u32 %v14643_v14, 16 }
 0x354   : > { %3602 = vrot.lane.b32.xlu1 %v14412_v40, %s13310_s26  ;;  %v16064_v40 = vshll.u32 %v14628_v33, 16  ;;  %v14750_v7 = vor.u32 %v9094_v63, %v9091_v21  ;;  %v9121_v21 = vrot.slane %v16069_v52, 5  ;;  %v14761_v63 = vpop.permute.xlu0 %5883 }
 0x355   : > { %3604 = vrot.lane.b32.xlu0 %v14457_v36, %s13310_s26  ;;  %v16066_v36 = vshll.u32 %v14641_v12, 16 }
 0x356   : > { %v9103_v42 = vrot.slane %v16064_v40, 5  ;;  %11736 = vmatmul.mubr.msk.bf16.gmra.mrb[60].mxu1 %vm3078_vm0, %v5177_v37  ;;  %16067 = vst [vmem:[#allocation26_spill] sm:$0xff] %v14750_v7  ;;  %v8309_v40 = vsel %vm7522_vm8, %v8306_v32, %v8308_v22  ;;  %v7459_v37 = vld [vmem:[#allocation2 + $0xb0] sm:$0xff] }
 0x357   : > { %v9112_v5 = vrot.slane %v16066_v36, 5  ;;  %11739 = vmatprep.mubr.msk.bf16.mxu1 %vm3078_vm0, %v14459_v38  ;;  %v7460_v36 = vld [vmem:[#allocation2 + $0xc0] sm:$0xff]  ;;  %v16068_v38 = vshrl.u32 %v14643_v14, 16  ;;  %v9134_v24 = vshrl.u32 %v7459_v37, 16  ;;  %v9137_v14 = vshll.u32 %v7459_v37, 16 }
 0x358   : > { %8370 = vrot.lane.b32.xlu1 %v8307_v9, %s13310_s26  ;;  %v9104_v33 = vor.u32 %v9103_v42, %v9100_v54  ;;  %v7461_v9 = vld [vmem:[#allocation2 + $0xd0] sm:$0xff]  ;;  %v9128_v54 = vshll.u32 %v7458_v45, 16  ;;  %v9143_v0 = vshrl.u32 %v7460_v36, 16 }
 0x359   : > { %v9113_v39 = vor.u32 %v9112_v5, %v9109_v2  ;;  %8372 = vrot.lane.b32.xlu0 %v8309_v40, %s13310_s26  ;;  %v9118_v12 = vrot.slane %v16068_v38, 4  ;;  %v9125_v5 = vshrl.u32 %v7458_v45, 16  ;;  %v8310_v2 = vrot.slane %v14754_v61, 4 }
 0x35a   : > { %v14765_v32 = vsel %vm9034_vm1, %v14750_v7, %v9104_v33  ;;  %v9130_v52 = vrot.slane %v9128_v54, 5  ;;  %v9152_v45 = vshrl.u32 %v7461_v9, 16  ;;  %v14778_v7 = vpop.permute.xlu1 %5885  ;;  %v9139_v37 = vrot.slane %v9137_v14, 5 }
 0x35b   : > { %16070 = vst [vmem:[#allocation27_spill] sm:$0xff] %v14765_v32  ;;  %v14768_v42 = vsel %vm9034_vm1, %v9104_v33, %v9113_v39  ;;  %v9122_v40 = vor.u32 %v9121_v21, %v9118_v12  ;;  %v9127_v38 = vrot.slane %v9125_v5, 4  ;;  %v9136_v33 = vrot.slane %v9134_v24, 4  ;;  %v14780_v12 = vpop.permute.xlu0 %5889 }
 0x35c   : > { %16071 = vst [vmem:[#allocation28_spill] sm:$0xff] %v14768_v42  ;;  %3606 = vrot.lane.b32.xlu1 %v14450_v31, %s13310_s26  ;;  %v9146_v42 = vshll.u32 %v7460_v36, 16  ;;  %v7462_v31 = vld [vmem:[#allocation2 + $0xe0] sm:$0xff]  ;;  %v9145_v5 = vrot.slane %v9143_v0, 4  ;;  %v16073_v24 = vrot.slane %v14278_v62, 4  ;;  %v7463_v36 = vld [vmem:[#allocation2 + $0xf0] sm:$0xff] }
 0x35d   : > { %3608 = vrot.lane.b32.xlu0 %v14481_v58, %s13310_s26  ;;  %v14776_v32 = vsel %vm9034_vm1, %v9113_v39, %v9122_v40  ;;  %v9131_v21 = vor.u32 %v9130_v52, %v9127_v38  ;;  %v8311_v58 = vsel %vm7522_vm8, %v8308_v22, %v8310_v2  ;;  %v9154_v38 = vrot.slane %v9152_v45, 4 }
 0x35e   : > { %16072 = vst [vmem:[#allocation29_spill] sm:$0xff] %v14776_v32  ;;  %11740 = vmatmul.mubr.msk.bf16.gmra.mrb[0].mxu1 %vm3078_vm0, %v14470_v29  ;;  %v8313_v39 = vsel %vm7522_vm8, %v8310_v2, %v16073_v24  ;;  %v9148_v54 = vrot.slane %v9146_v42, 5  ;;  %v9140_v29 = vor.u32 %v9139_v37, %v9136_v33  ;;  %v9155_v14 = vshll.u32 %v7461_v9, 16  ;;  %v14795_v22 = vpop.permute.xlu1 %5887  ;;  %v7464_v2 = vld [vmem:[#allocation2 + $0x100] sm:$0xff]  ;;  %v7465_v24 = vld [vmem:[#allocation2 + $0x110] sm:$0xff] }
 0x35f   : > { %11743 = vmatprep.mubr.msk.bf16.mxu1 %vm3078_vm0, %v14495_v19  ;;  %v14792_v32 = vsel %vm9034_vm1, %v9122_v40, %v9131_v21  ;;  %v9161_v19 = vshrl.u32 %v7462_v31, 16  ;;  %v9164_v52 = vshll.u32 %v7462_v31, 16  ;;  %v14797_v62 = vpop.permute.xlu0 %5893  ;;  %v9170_v40 = vshrl.u32 %v7463_v36, 16 }
 0x360   : > { %8374 = vrot.lane.b32.xlu1 %v8311_v58, %s13310_s26  ;;  %16074 = vst [vmem:[#allocation30_spill] sm:$0xff] %v14792_v32  ;;  %v9149_v0 = vor.u32 %v9148_v54, %v9145_v5  ;;  %v14800_v42 = vsel %vm9034_vm1, %v9131_v21, %v9140_v29  ;;  %v9157_v58 = vrot.slane %v9155_v14, 5  ;;  %v9173_v32 = vshll.u32 %v7463_v36, 16 }
 0x361   : > { %8376 = vrot.lane.b32.xlu0 %v8313_v39, %s13310_s26  ;;  %16075 = vst [vmem:[#allocation31_spill] sm:$0xff] %v14800_v42  ;;  %v9163_v9 = vrot.slane %v9161_v19, 4  ;;  %v9166_v31 = vrot.slane %v9164_v52, 5  ;;  %v9172_v37 = vrot.slane %v9170_v40, 4  ;;  %v9179_v39 = vshrl.u32 %v7464_v2, 16  ;;  %v7468_v19 = vld [vmem:[#allocation2 + $0x140] sm:$0xff] }
 0x362   : > { %v14803_v33 = vsel %vm9034_vm1, %v9140_v29, %v9149_v0  ;;  %v9158_v45 = vor.u32 %v9157_v58, %v9154_v38  ;;  %v9175_v5 = vrot.slane %v9173_v32, 5  ;;  %v9182_v21 = vshll.u32 %v7464_v2, 16  ;;  %v14809_v42 = vpop.permute.xlu1 %5891  ;;  %v7466_v29 = vld [vmem:[#allocation2 + $0x120] sm:$0xff] }
 0x363   : > { %16076 = vst [vmem:[#allocation32_spill] sm:$0xff] %v14803_v33  ;;  %v9188_v54 = vshrl.u32 %v7465_v24, 16  ;;  %v9191_v14 = vshll.u32 %v7465_v24, 16  ;;  %v14811_v36 = vpop.permute.xlu0 %5897  ;;  %v9167_v38 = vor.u32 %v9166_v31, %v9163_v9  ;;  %v9181_v52 = vrot.slane %v9179_v39, 4  ;;  %v13262_v33 = vld [vmem:[#allocation2 + $0x1c8] sm:$0xff] }
 0x364   : > { %3610 = vrot.lane.b32.xlu1 %v14468_v13, %s13310_s26  ;;  %v14816_v13 = vsel %vm9034_vm1, %v9149_v0, %v9158_v45  ;;  %v9176_v32 = vor.u32 %v9175_v5, %v9172_v37  ;;  %v9184_v2 = vrot.slane %v9182_v21, 5  ;;  %v9200_v37 = vshll.u32 %v7466_v29, 16 }
 0x365   : > { %3612 = vrot.lane.b32.xlu0 %v14498_v11, %s13310_s26  ;;  %16077 = vst [vmem:[#allocation33_spill] sm:$0xff] %v14816_v13  ;;  %v7467_v11 = vld [vmem:[#allocation2 + $0x130] sm:$0xff]  ;;  %v14823_v24 = vsel %vm9034_vm1, %v9158_v45, %v9167_v38  ;;  %v9190_v0 = vrot.slane %v9188_v54, 4  ;;  %v9193_v40 = vrot.slane %v9191_v14, 5  ;;  %v9215_v39 = vshrl.u32 %v7468_v19, 16  ;;  %v13261_v13 = vld [vmem:[#allocation2 + $0x1c0] sm:$0xff] }
 0x366   : > { %11744 = vmatmul.mubr.msk.bf16.gmra.mrb[4].mxu1 %vm3078_vm0, %v14506_v49  ;;  %16078 = vst [vmem:[#allocation34_spill] sm:$0xff] %v14823_v24  ;;  %v14826_v49 = vsel %vm9034_vm1, %v9167_v38, %v9176_v32  ;;  %v9185_v58 = vor.u32 %v9184_v2, %v9181_v52  ;;  %v14830_v9 = vpop.permute.xlu1 %5895  ;;  %v9206_v5 = vshrl.u32 %v7467_v11, 16  ;;  %v8318_v45 = vrot.slane %v14373_v53, 4 }
 0x367   : > { %11747 = vmatprep.mubr.msk.bf16.mxu1 %vm3078_vm0, %v14522_v4  ;;  %16079 = vst [vmem:[#allocation35_spill] sm:$0xff] %v14826_v49  ;;  %v9197_v4 = vshrl.u32 %v7466_v29, 16  ;;  %v14832_v31 = vpop.permute.xlu0 %5901  ;;  %v8320_v21 = vrot.slane %v14407_v27, 4  ;;  %v9194_v38 = vor.u32 %v9193_v40, %v9190_v0  ;;  %v9202_v14 = vrot.slane %v9200_v37, 5 }
 0x368   : > { %8378 = vrot.lane.b32.xlu1 %v14350_v48, %s13310_s26  ;;  %v9209_v48 = vshll.u32 %v7467_v11, 16  ;;  %v14837_v54 = vsel %vm9034_vm1, %v9176_v32, %v9185_v58  ;;  %v9208_v52 = vrot.slane %v9206_v5, 4  ;;  %v9217_v53 = vrot.slane %v9215_v39, 4 }
 0x369   : > { %8380 = vrot.lane.b32.xlu0 %v14380_v28, %s13310_s26  ;;  %16080 = vst [vmem:[#allocation36_spill] sm:$0xff] %v14837_v54  ;;  %v9199_v28 = vrot.slane %v9197_v4, 4  ;;  %v14844_v29 = vsel %vm9034_vm1, %v9185_v58, %v9194_v38  ;;  %v9218_v11 = vshll.u32 %v7468_v19, 16  ;;  %v16082_v40 = vrot.slane %v14342_v18, 4  ;;  %v7469_v58 = vld [vmem:[#allocation2 + $0x150] sm:$0xff] }
 0x36a   : > { %v9211_v2 = vrot.slane %v9209_v48, 5  ;;  %16081 = vst [vmem:[#allocation37_spill] sm:$0xff] %v14844_v29  ;;  %v14846_v27 = vpop.permute.xlu1 %5899  ;;  %v8321_v19 = vsel %vm7522_vm8, %v8318_v45, %v8320_v21  ;;  %v9224_v48 = vshrl.u32 %v7469_v58, 16  ;;  %v9227_v39 = vshll.u32 %v7469_v58, 16 }
 0x36b   : > { %v14848_v32 = vpop.permute.xlu0 %5905  ;;  %v9220_v4 = vrot.slane %v9218_v11, 5 }
 0x36c   : > { %3614 = vrot.lane.b32.xlu1 %v14488_v60, %s13310_s26  ;;  %v9203_v60 = vor.u32 %v9202_v14, %v9199_v28  ;;  %v9212_v0 = vor.u32 %v9211_v2, %v9208_v52  ;;  %v8322_v28 = vrot.slane %v14434_v15, 4  ;;  %v9229_v52 = vrot.slane %v9227_v39, 5  ;;  %v14879_v2 = vld [vmem:[#allocation2 + $0x118] sm:$0xff] }
 0x36d   : > { %3616 = vrot.lane.b32.xlu0 %v14529_v44, %s13310_s26  ;;  %v8319_v44 = vsel %vm7522_vm8, %v16082_v40, %v8318_v45  ;;  %v9221_v5 = vor.u32 %v9220_v4, %v9217_v53  ;;  %v8324_v45 = vrot.slane %v14464_v50, 4  ;;  %v7470_v40 = vld [vmem:[#allocation2 + $0x160] sm:$0xff] }
 0x36e   : > { %11748 = vmatmul.mubr.msk.bf16.gmra.mrb[8].mxu1 %vm3078_vm0, %v14533_v51  ;;  %v14860_v37 = vsel %vm9034_vm1, %v9194_v38, %v9203_v60  ;;  %v14863_v51 = vsel %vm9034_vm1, %v9203_v60, %v9212_v0  ;;  %v9226_v38 = vrot.slane %v9224_v48, 4  ;;  %v14887_v60 = vld [vmem:[#allocation2 + $0x128] sm:$0xff]  ;;  %v9233_v48 = vshrl.u32 %v7470_v40, 16 }
 0x36f   : > { %11751 = vmatprep.mubr.msk.bf16.mxu1 %vm3078_vm0, %v14541_v47  ;;  %16083 = vst [vmem:[#allocation38_spill] sm:$0xff] %v14860_v37  ;;  %16084 = vst [vmem:[#allocation39_spill] sm:$0xff] %v14863_v51  ;;  %v14866_v47 = vpop.permute.xlu1 %5903  ;;  %v14868_v18 = vpop.permute.xlu0 %5909  ;;  %v14872_v14 = vsel %vm9034_vm1, %v9212_v0, %v9221_v5  ;;  %v9236_v39 = vshll.u32 %v7470_v40, 16 }
 0x370   : > { %8382 = vrot.lane.b32.xlu1 %v8319_v44, %s13310_s26  ;;  %16085 = vst [vmem:[#allocation40_spill] sm:$0xff] %v14872_v14  ;;  %v9230_v0 = vor.u32 %v9229_v52, %v9226_v38  ;;  %v8221_v44 = vld [vmem:[#allocation2 + $0x200] sm:$0xf] }
 0x371   : > { %8384 = vrot.lane.b32.xlu0 %v8321_v19, %s13310_s26  ;;  %v8326_v38 = vrot.slane %v8221_v44, 4  ;;  %v9238_v52 = vrot.slane %v9236_v39, 5  ;;  %v7471_v44 = vld [vmem:[#allocation2 + $0x170] sm:$0xff] }
 0x372   : > { %v14895_v58 = vsel %vm9034_vm1, %v9221_v5, %v9230_v0 }
 0x373   : > { %v14881_v53 = vpop.permute.xlu1 %5907  ;;  %v14883_v11 = vpop.permute.xlu0 %5913  ;;  %16086 = vst [vmem:[#allocation41_spill] sm:$0xff] %v14895_v58  ;;  %v9242_v58 = vshrl.u32 %v7471_v44, 16 }
 0x374   : > { %3618 = vrot.lane.b32.xlu1 %v14519_v35, %s13310_s26  ;;  %v8323_v35 = vsel %vm7522_vm8, %v8320_v21, %v8322_v28  ;;  %v9235_v21 = vrot.slane %v9233_v48, 4 }
 0x375   : > { %3620 = vrot.lane.b32.xlu0 %v14550_v17, %s13310_s26  ;;  %v8325_v17 = vsel %vm7522_vm8, %v8322_v28, %v8324_v45  ;;  %v14906_v28 = vld [vmem:[#allocation2 + $0x138] sm:$0xff] }
 0x376   : > { %11752 = vmatmul.mubr.msk.bf16.gmra.mrb[12].mxu1 %vm3078_vm0, %v14879_v2  ;;  %v9239_v40 = vor.u32 %v9238_v52, %v9235_v21  ;;  %v9245_v21 = vshll.u32 %v7471_v44, 16  ;;  %v9244_v52 = vrot.slane %v9242_v58, 4 }
 0x377   : > { %11755 = vmatprep.mubr.msk.bf16.mxu1 %vm3078_vm0, %v14887_v60  ;;  %v14898_v4 = vpop.permute.xlu1 %5911  ;;  %v14900_v19 = vpop.permute.xlu0 %5917 }
 0x378   : > { %8386 = vrot.lane.b32.xlu1 %v8323_v35, %s13310_s26 }
 0x379   : > { %8388 = vrot.lane.b32.xlu0 %v8325_v17, %s13310_s26  ;;  %v14914_v17 = vld [vmem:[#allocation2 + $0x148] sm:$0xff] }
 0x37b   : > { %v14908_v5 = vpop.permute.xlu1 %5915  ;;  %v14910_v35 = vpop.permute.xlu0 %5921 }
 0x37c   : > { %3622 = vrot.lane.b32.xlu1 %v14539_v57, %s13310_s26  ;;  %v8327_v57 = vsel %vm7522_vm8, %v8324_v45, %v8326_v38  ;;  %v9247_v45 = vrot.slane %v9245_v21, 5  ;;  %v14933_v38 = vld [vmem:[#allocation2 + $0x158] sm:$0xff] }
 0x37d   : > { %3624 = vrot.lane.b32.xlu0 %v14577_v10, %s13310_s26  ;;  %v14921_v10 = vsel %vm9034_vm1, %v9230_v0, %v9239_v40 }
 0x37e   : > { %11756 = vmatmul.mubr.msk.bf16.gmra.mrb[16].mxu1 %vm3078_vm0, %v14906_v28  ;;  %16087 = vst [vmem:[#allocation42_spill] sm:$0xff] %v14921_v10  ;;  %v9248_v44 = vor.u32 %v9247_v45, %v9244_v52 }
 0x37f   : > { %11759 = vmatprep.mubr.msk.bf16.mxu1 %vm3078_vm0, %v14914_v17  ;;  %v14925_v48 = vpop.permute.xlu1 %5919  ;;  %v14927_v39 = vpop.permute.xlu0 %5925 }
 0x380   : > { %8390 = vrot.lane.b32.xlu1 %v8327_v57, %s13310_s26 }
 0x381   : > { %3628 = vrot.lane.b32.xlu0 %v14600_v25, %s13310_s26  ;;  %v14941_v25 = vld [vmem:[#allocation2 + $0x168] sm:$0xff] }
 0x383   : > { %v14935_v0 = vpop.permute.xlu1 %5923  ;;  %v14937_v57 = vpop.permute.xlu0 %5929 }
 0x384   : > { %3626 = vrot.lane.b32.xlu1 %v14562_v6, %s13310_s26  ;;  %v7472_v6 = vld [vmem:[#allocation2 + $0x180] sm:$0xff] }
 0x385   : > { %3632 = vrot.lane.b32.xlu0 %v14616_v41, %s13310_s26  ;;  %v14948_v41 = vsel %vm9034_vm1, %v9239_v40, %v9248_v44  ;;  %v9251_v10 = vshrl.u32 %v7472_v6, 16  ;;  %v9254_v14 = vshll.u32 %v7472_v6, 16 }
 0x386   : > { %11760 = vmatmul.mubr.msk.bf16.gmra.mrb[20].mxu1 %vm3078_vm0, %v14933_v38  ;;  %16088 = vst [vmem:[#allocation43_spill] sm:$0xff] %v14948_v41 }
 0x387   : > { %11763 = vmatprep.mubr.msk.bf16.mxu1 %vm3078_vm0, %v14941_v25  ;;  %v14952_v58 = vpop.permute.xlu1 %5927  ;;  %v14954_v21 = vpop.permute.xlu0 %5933  ;;  %v9253_v52 = vrot.slane %v9251_v10, 4  ;;  %v9256_v45 = vrot.slane %v9254_v14, 5 }
 0x388   : > { %3630 = vrot.lane.b32.xlu1 %v14592_v8, %s13310_s26  ;;  %v14960_v8 = vld [vmem:[#allocation2 + $0x178] sm:$0xff] }
 0x389   : > { %3636 = vrot.lane.b32.xlu0 %v14650_v30, %s13310_s26  ;;  %v14968_v30 = vld [vmem:[#allocation2 + $0x188] sm:$0xff]  ;;  %v9257_v6 = vor.u32 %v9256_v45, %v9253_v52 }
 0x38b   : > { %v14962_v40 = vpop.permute.xlu1 %5931  ;;  %v14964_v41 = vpop.permute.xlu0 %5937 }
 0x38c   : > { %3634 = vrot.lane.b32.xlu1 %v14608_v59, %s13310_s26  ;;  %v7473_v59 = vld [vmem:[#allocation2 + $0x190] sm:$0xff] }
 0x38d   : > { %3640 = vrot.lane.b32.xlu0 %v14695_v3, %s13310_s26  ;;  %v14975_v3 = vsel %vm9034_vm1, %v9248_v44, %v9257_v6  ;;  %v9260_v51 = vshrl.u32 %v7473_v59, 16  ;;  %v9263_v37 = vshll.u32 %v7473_v59, 16 }
 0x38e   : > { %11764 = vmatmul.mubr.msk.bf16.gmra.mrb[24].mxu1 %vm3078_vm0, %v14960_v8  ;;  %16089 = vst [vmem:[#allocation44_spill] sm:$0xff] %v14975_v3  ;;  %v14995_v3 = vld [vmem:[#allocation2 + $0x1a8] sm:$0xff] }
 0x38f   : > { %11767 = vmatprep.mubr.msk.bf16.mxu1 %vm3078_vm0, %v14968_v30  ;;  %v14979_v14 = vpop.permute.xlu1 %5935  ;;  %v9262_v52 = vrot.slane %v9260_v51, 4  ;;  %v9265_v45 = vrot.slane %v9263_v37, 5 }
 0x390   : > { %3638 = vrot.lane.b32.xlu1 %v14632_v56, %s13310_s26  ;;  %v14987_v56 = vld [vmem:[#allocation2 + $0x198] sm:$0xff] }
 0x391   : > { %3644 = vrot.lane.b32.xlu0 %v14713_v46, %s13310_s26  ;;  %v9266_v59 = vor.u32 %v9265_v45, %v9262_v52  ;;  %v3553_v52 = vld [vmem:[#allocation2 + $0x190] sm:$0xff] }
 0x392   : > { %v14981_v10 = vpop.permute.xlu0 %5941 }
 0x393   : > { %v14989_v44 = vpop.permute.xlu1 %5939  ;;  %v15002_v37 = vsel %vm9034_vm1, %v9257_v6, %v9266_v59 }
 0x394   : > { %3642 = vrot.lane.b32.xlu1 %v14698_v34, %s13310_s26  ;;  %v7474_v34 = vld [vmem:[#allocation2 + $0x1a0] sm:$0xff]  ;;  %16090 = vst [vmem:[#allocation45_spill] sm:$0xff] %v15002_v37 }
 0x395   : > { %3648 = vrot.lane.b32.xlu0 %v14754_v61, %s13310_s26  ;;  %v3554_v61 = vld [vmem:[#allocation2 + $0x1a0] sm:$0xff]  ;;  %v9269_v54 = vshrl.u32 %v7474_v34, 16  ;;  %v9272_v49 = vshll.u32 %v7474_v34, 16  ;;  %v3555_v34 = vld [vmem:[#allocation2 + $0x1b0] sm:$0xff] }
 0x396   : > { %11768 = vmatmul.mubr.msk.bf16.gmra.mrb[28].mxu1 %vm3078_vm0, %v14987_v56  ;;  %v14993_v46 = vpop.permute.xlu0 %8328 }
 0x397   : > { %11771 = vmatprep.mubr.msk.bf16.mxu1 %vm3078_vm0, %v14995_v3  ;;  %v9271_v45 = vrot.slane %v9269_v54, 4  ;;  %v9274_v24 = vrot.slane %v9272_v49, 5 }
 0x398   : > { %3646 = vrot.lane.b32.xlu1 %v14717_v43, %s13310_s26  ;;  %v15011_v43 = vld [vmem:[#allocation2 + $0x1b8] sm:$0xff] }
 0x399   : > { %3652 = vrot.lane.b32.xlu0 %v3554_v61, %s13310_s26  ;;  %v9275_v61 = vor.u32 %v9274_v24, %v9271_v45  ;;  %v13263_v45 = vld [vmem:[#allocation2 + $0x1d0] sm:$0xff] }
 0x39a   : > { %v15005_v51 = vpop.permute.xlu1 %5943  ;;  %v15007_v29 = vpop.permute.xlu0 %8332 }
 0x39b   : > { %16091 = vst [vmem:[#allocation46_spill] sm:$0xff] %v15007_v29  ;;  %v15022_v49 = vsel %vm9034_vm1, %v9266_v59, %v9275_v61 }
 0x39c   : > { %3650 = vrot.lane.b32.xlu1 %v3553_v52, %s13310_s26  ;;  %v7475_v52 = vld [vmem:[#allocation2 + $0x1b0] sm:$0xff]  ;;  %16094 = vst [vmem:[#allocation49_spill] sm:$0xff] %v15022_v49 }
 0x39d   : > { %3656 = vrot.lane.b32.xlu0 %v13261_v13, %s13310_s26  ;;  %v9278_v54 = vshrl.u32 %v7475_v52, 16  ;;  %v9281_v29 = vshll.u32 %v7475_v52, 16 }
 0x39e   : > { %v15013_v6 = vpop.permute.xlu1 %8330  ;;  %11772 = vmatmul.mubr.msk.bf16.gmra.mrb[32].mxu1 %vm3078_vm0, %v15011_v43 }
 0x39f   : > { %16092 = vst [vmem:[#allocation47_spill] sm:$0xff] %v15013_v6  ;;  %v15017_v37 = vpop.permute.xlu0 %8336  ;;  %11775 = vmatprep.mubr.msk.bf16.mxu1 %vm3078_vm0, %v13262_v33  ;;  %v9280_v33 = vrot.slane %v9278_v54, 4 }
 0x3a0   : > { %16093 = vst [vmem:[#allocation48_spill] sm:$0xff] %v15017_v37  ;;  %3654 = vrot.lane.b32.xlu1 %v3555_v34, %s13310_s26  ;;  %v9283_v37 = vrot.slane %v9281_v29, 5  ;;  %v13264_v34 = vld [vmem:[#allocation2 + $0x1d8] sm:$0xff] }
 0x3a1   : > { %3660 = vrot.lane.b32.xlu0 %v14434_v15, %s13310_s26  ;;  %v7476_v15 = vld [vmem:[#allocation2 + $0x1c0] sm:$0xff] }
 0x3a2   : > { %v15026_v13 = vpop.permute.xlu1 %8334  ;;  %v9284_v59 = vor.u32 %v9283_v37, %v9280_v33  ;;  %v9287_v29 = vshrl.u32 %v7476_v15, 16 }
 0x3a3   : > { %v15028_v24 = vpop.permute.xlu0 %8340 }
 0x3a4   : > { %16095 = vst [vmem:[#allocation50_spill] sm:$0xff] %v15028_v24  ;;  %3658 = vrot.lane.b32.xlu1 %v13263_v45, %s13310_s26  ;;  %v15041_v52 = vsel %vm9034_vm1, %v9275_v61, %v9284_v59  ;;  %v9290_v45 = vshll.u32 %v7476_v15, 16 }
 0x3a5   : > { %16097 = vst [vmem:[#allocation52_spill] sm:$0xff] %v15041_v52 }
 0x3a6   : > { %v15031_v6 = vpop.permute.xlu1 %8338  ;;  %11776 = vmatmul.mubr.msk.bf16.gmra.mrb[36].mxu1 %vm3078_vm0, %v13264_v34  ;;  %v9289_v34 = vrot.slane %v9287_v29, 4  ;;  %v9292_v37 = vrot.slane %v9290_v45, 5 }
 0x3a7   : > { %v15034_v49 = vpop.permute.xlu0 %8344  ;;  %11779 = vmatprep.mubr.msk.bf16.mxu1 %vm3078_vm0, %v14438_v16 }
 0x3a8   : > { %16096 = vst [vmem:[#allocation51_spill] sm:$0xff] %v15034_v49  ;;  %3662 = vrot.lane.b32.xlu1 %v14464_v50, %s13310_s26  ;;  %v9293_v16 = vor.u32 %v9292_v37, %v9289_v34  ;;  %v7477_v50 = vld [vmem:[#allocation2 + $0x1d0] sm:$0xff] }
 0x3a9   : > { %v9296_v52 = vshrl.u32 %v7477_v50, 16  ;;  %v9299_v29 = vshll.u32 %v7477_v50, 16  ;;  %v7478_v50 = vld [vmem:[#allocation2 + $0x1e0] sm:$0xff] }
 0x3aa   : > { %v15043_v54 = vpop.permute.xlu1 %8342  ;;  %v15056_v61 = vsel %vm9034_vm1, %v9284_v59, %v9293_v16 }
 0x3ab   : > { %v15045_v24 = vpop.permute.xlu0 %8348  ;;  %16099 = vst [vmem:[#allocation54_spill] sm:$0xff] %v15056_v61  ;;  %v9298_v34 = vrot.slane %v9296_v52, 4  ;;  %v9301_v37 = vrot.slane %v9299_v29, 5  ;;  %v13241_v52 = vld [vmem:[%s16014_s4 + $0xb0] sm:$0xff]  }
 0x3ae   : > { %v15047_v33 = vpop.permute.xlu1 %8346  ;;  %11780 = vmatmul.mubr.msk.bf16.gmra.mrb[40].mxu1 %vm3078_vm0, %v14473_v20  ;;  %v13240_v20 = vld [vmem:[%s16014_s4 + $0xa8] sm:$0xff]  }
 0x3af   : > { %v15051_v49 = vpop.permute.xlu0 %8352  ;;  %11791 = vmatprep.mubr.msk.bf16.mxu1 %vm3078_vm0, %v14740_v55  ;;  %v9302_v55 = vor.u32 %v9301_v37, %v9298_v34  ;;  %v9308_v34 = vshll.u32 %v7478_v50, 16 }
 0x3b0   : > { %16098 = vst [vmem:[#allocation53_spill] sm:$0xff] %v15051_v49 }
 0x3b1   : > { %v15078_v29 = vsel %vm9034_vm1, %v9293_v16, %v9302_v55 }
 0x3b2   : > { %v15058_v15 = vpop.permute.xlu1 %8350  ;;  %16102 = vst [vmem:[#allocation57_spill] sm:$0xff] %v15078_v29 }
 0x3b3   : > { %v15060_v45 = vpop.permute.xlu0 %8356 }
 0x3b4   : > { %16100 = vst [vmem:[#allocation55_spill] sm:$0xff] %v15060_v45 }
 0x3b6   : > { %v15065_v49 = vpop.permute.xlu1 %8354  ;;  %11792 = vmatmul.mubr.msk.bf16.vlgmr.msra.gmra.mrb[44].mxu1 %vm3078_vm0, %v14761_v63  ;;  %v9305_v63 = vshrl.u32 %v7478_v50, 16  ;;  %v15093_v50 = vld [vmem:[#allocation2 + $0x1f0] sm:$0xff] }
 0x3b7   : > { %v15069_v59 = vpop.permute.xlu0 %8360  ;;  %11795 = vmatprep.mubr.msk.bf16.mxu1 %vm3078_vm0, %v14778_v7  ;;  %11856 = vmatpush3.bf16.msra.mxu1 %v14637_v26  ;;  %v13242_v26 = vld [vmem:[%s16014_s4 + $0xb8] sm:$0xff]  }
 0x3b8   : > { %16101 = vst [vmem:[#allocation56_spill] sm:$0xff] %v15069_v59  ;;  %11857 = vmatprep.subr.bf16.mxu1 %v13240_v20  ;;  %v9307_v7 = vrot.slane %v9305_v63, 4  ;;  %v9310_v59 = vrot.slane %v9308_v34, 5 }
 0x3ba   : > { %v15080_v61 = vpop.permute.xlu1 %8358  ;;  %v9311_v16 = vor.u32 %v9310_v59, %v9307_v7  ;;  %v9314_v59 = vshrl.u32 %v15093_v50, 16 }
 0x3bb   : > { %v15082_v37 = vpop.permute.xlu0 %8364  ;;  %11858 = vmatpush3.bf16.msra.mxu1 %v13240_v20  ;;  %v15099_v20 = vld [vmem:[%s16014_s4 + $0xc0] sm:$0xff]  }
 0x3bc   : > { %16103 = vst [vmem:[#allocation58_spill] sm:$0xff] %v15082_v37  ;;  %11859 = vmatprep.subr.bf16.mxu1 %v13241_v52  ;;  %v15102_v63 = vsel %vm9034_vm1, %v9302_v55, %v9311_v16 }
 0x3bd   : > { %16104 = vst [vmem:[#allocation59_spill] sm:$0xff] %v15102_v63 }
 0x3be   : > { %v15087_v45 = vpop.permute.xlu1 %8362  ;;  %11796 = vmatmul.mubr.msk.bf16.gmra.mrb[48].mxu1 %vm3078_vm0, %v14795_v22 }
 0x3bf   : > { %v3601_v29 = vpop.permute.xlu0 %3600  ;;  %11799 = vmatprep.mubr.msk.bf16.mxu1 %vm3078_vm0, %v14780_v12  ;;  %11860 = vmatpush3.bf16.msra.mxu1 %v13241_v52  ;;  %v9317_v12 = vshll.u32 %v15093_v50, 16 }
 0x3c0   : > { %11575 = vmatprep.mubr.msk.bf16.mxu0 %vm3078_vm0, %v3601_v29  ;;  %11861 = vmatprep.subr.bf16.mxu1 %v13242_v26  ;;  %v9316_v29 = vrot.slane %v9314_v59, 4 }
 0x3c1   : > { %v9319_v34 = vrot.slane %v9317_v12, 5 }
 0x3c2   : > { %v15104_v22 = vpop.permute.xlu1 %8366 }
 0x3c3   : > { %v15108_v52 = vpop.permute.xlu0 %8368  ;;  %11862 = vmatpush3.bf16.msra.mxu1 %v13242_v26  ;;  %v15113_v37 = vor.u32 %v9319_v34, %v9316_v29  ;;  %v13267_v29 = vld [vmem:[%s16014_s4 + $0x58] sm:$0xff]  }
 0x3c4   : > { %11927 = vmatprep.subr.bf16.mxu1 %v15099_v20 }
 0x3c5   : > { %16105 = vst [vmem:[#allocation60_spill] sm:$0xff] %v15113_v37  ;;  %v15122_v26 = vsel %vm9034_vm1, %v9311_v16, %v15113_v37  ;;  %v13277_v37 = vld [vmem:[#allocation2 + $0x40] sm:$0xff] }
 0x3c6   : > { %v3603_v7 = vpop.permute.xlu1 %3602  ;;  %11800 = vmatmul.mubr.msk.bf16.gmra.mrb[52].mxu1 %vm3078_vm0, %v14809_v42  ;;  %16106 = vst [vmem:[#allocation61_spill] sm:$0xff] %v15122_v26  ;;  %v13265_v42 = vld [vmem:[%s16014_s4 + $0x48] sm:$0xff]   ;;  %v4339_v26 = vshll.u32 %v13277_v37, 16 }
 0x3c7   : > { %v3605_v55 = vpop.permute.xlu0 %3604  ;;  %11576 = vmatmul.mubr.msk.bf16.vlgmr.msra.gmra.mrb[128].mxu0 %vm3078_vm0, %v3603_v7  ;;  %11803 = vmatprep.mubr.msk.bf16.mxu1 %vm3078_vm0, %v14797_v62  ;;  %v13266_v62 = vld [vmem:[%s16014_s4 + $0x50] sm:$0xff]  }
 0x3c8   : > { %11579 = vmatprep.mubr.msk.bf16.mxu0 %vm3078_vm0, %v3605_v55  ;;  %11640 = vmatpush3.bf16.msra.mxu0 %v14685_v23 }
 0x3c9   : > { %11641 = vmatprep.subr.bf16.mxu0 %v13265_v42 }
 0x3ca   : > { %v15127_v59 = vpop.permute.xlu1 %8370 }
 0x3cb   : > { %v15129_v12 = vpop.permute.xlu0 %8372 }
 0x3cc   : > { %11642 = vmatpush3.bf16.msra.mxu0 %v13265_v42 }
 0x3cd   : > { %11643 = vmatprep.subr.bf16.mxu0 %v13266_v62 }
 0x3ce   : > { %v3607_v23 = vpop.permute.xlu1 %3606  ;;  %11804 = vmatmul.mubr.msk.bf16.gmra.mrb[56].mxu1 %vm3078_vm0, %v14830_v9 }
 0x3cf   : > { %v3609_v16 = vpop.permute.xlu0 %3608  ;;  %11580 = vmatmul.mubr.msk.bf16.gmra.mrb[132].mxu0 %vm3078_vm0, %v3607_v23  ;;  %11807 = vmatprep.mubr.msk.bf16.mxu1 %vm3078_vm0, %v14811_v36 }
 0x3d0   : > { %11583 = vmatprep.mubr.msk.bf16.mxu0 %vm3078_vm0, %v3609_v16  ;;  %11644 = vmatpush3.bf16.msra.mxu0 %v13266_v62 }
 0x3d1   : > { %11645 = vmatprep.subr.bf16.mxu0 %v13267_v29 }
 0x3d2   : > { %v15143_v34 = vpop.permute.xlu1 %8374 }
 0x3d3   : > { %v15145_v7 = vpop.permute.xlu0 %8376 }
 0x3d4   : > { %11646 = vmatpush3.bf16.msra.mxu0 %v13267_v29 }
 0x3d6   : > { %v3611_v9 = vpop.permute.xlu1 %3610  ;;  %11808 = vmatmul.mubr.msk.bf16.gmra.mrb[60].mxu1 %vm3078_vm0, %v14846_v27 }
 0x3d7   : > { %v3613_v55 = vpop.permute.xlu0 %3612  ;;  %11584 = vmatmul.mubr.msk.bf16.gmra.mrb[136].mxu0 %vm3078_vm0, %v3611_v9  ;;  %11811 = vmatprep.mubr.msk.bf16.mxu1 %vm3078_vm0, %v14832_v31 }
 0x3d8   : > { %11587 = vmatprep.mubr.msk.bf16.mxu0 %vm3078_vm0, %v3613_v55 }
 0x3da   : > { %v15153_v36 = vpop.permute.xlu1 %8378 }
 0x3db   : > { %v15155_v42 = vpop.permute.xlu0 %8380 }
 0x3de   : > { %v3615_v62 = vpop.permute.xlu1 %3614  ;;  %11812 = vmatmul.mubr.msk.bf16.gmra.mrb[0].mxu1 %vm3078_vm0, %v14866_v47 }
 0x3df   : > { %v3617_v23 = vpop.permute.xlu0 %3616  ;;  %11588 = vmatmul.mubr.msk.bf16.gmra.mrb[140].mxu0 %vm3078_vm0, %v3615_v62  ;;  %11815 = vmatprep.mubr.msk.bf16.mxu1 %vm3078_vm0, %v14848_v32 }
 0x3e0   : > { %11591 = vmatprep.mubr.msk.bf16.mxu0 %vm3078_vm0, %v3617_v23 }
 0x3e2   : > { %v15163_v27 = vpop.permute.xlu1 %8382 }
 0x3e3   : > { %v15165_v31 = vpop.permute.xlu0 %8384 }
 0x3e6   : > { %v3619_v16 = vpop.permute.xlu1 %3618  ;;  %11816 = vmatmul.mubr.msk.bf16.gmra.mrb[4].mxu1 %vm3078_vm0, %v14881_v53 }
 0x3e7   : > { %v3621_v29 = vpop.permute.xlu0 %3620  ;;  %11592 = vmatmul.mubr.msk.bf16.gmra.mrb[144].mxu0 %vm3078_vm0, %v3619_v16  ;;  %11819 = vmatprep.mubr.msk.bf16.mxu1 %vm3078_vm0, %v14868_v18 }
 0x3e8   : > { %11595 = vmatprep.mubr.msk.bf16.mxu0 %vm3078_vm0, %v3621_v29 }
 0x3ea   : > { %v15173_v47 = vpop.permute.xlu1 %8386 }
 0x3eb   : > { %v15175_v32 = vpop.permute.xlu0 %8388 }
 0x3ee   : > { %v3623_v9 = vpop.permute.xlu1 %3622  ;;  %11820 = vmatmul.mubr.msk.bf16.gmra.mrb[8].mxu1 %vm3078_vm0, %v14898_v4 }
 0x3ef   : > { %v3625_v55 = vpop.permute.xlu0 %3624  ;;  %11596 = vmatmul.mubr.msk.bf16.gmra.mrb[148].mxu0 %vm3078_vm0, %v3623_v9  ;;  %11823 = vmatprep.mubr.msk.bf16.mxu1 %vm3078_vm0, %v14883_v11 }
 0x3f0   : > { %11599 = vmatprep.mubr.msk.bf16.mxu0 %vm3078_vm0, %v3625_v55 }
 0x3f2   : > { %v15183_v53 = vpop.permute.xlu1 %8390 }
 0x3f3   : > { %16107 = vst [vmem:[#allocation62_spill] sm:$0xff] %v15183_v53  ;;  %v3629_v62 = vpop.permute.xlu0 %3628 }
 0x3f6   : > { %v3627_v18 = vpop.permute.xlu1 %3626  ;;  %11824 = vmatmul.mubr.msk.bf16.gmra.mrb[12].mxu1 %vm3078_vm0, %v14908_v5 }
 0x3f7   : > { %11600 = vmatmul.mubr.msk.bf16.gmra.mrb[152].mxu0 %vm3078_vm0, %v3627_v18  ;;  %11827 = vmatprep.mubr.msk.bf16.mxu1 %vm3078_vm0, %v14900_v19  ;;  %v3633_v11 = vpop.permute.xlu0 %3632 }
 0x3f8   : > { %11603 = vmatprep.mubr.msk.bf16.mxu0 %vm3078_vm0, %v3629_v62  ;;  %v13270_v62 = vld [vmem:[#allocation2 + $0x28] sm:$0xff] }
 0x3fa   : > { %v3631_v4 = vpop.permute.xlu1 %3630 }
 0x3fb   : > { %v3637_v23 = vpop.permute.xlu0 %3636 }
 0x3fe   : > { %11828 = vmatmul.mubr.msk.bf16.gmra.mrb[16].mxu1 %vm3078_vm0, %v14925_v48  ;;  %v3635_v5 = vpop.permute.xlu1 %3634 }
 0x3ff   : > { %11604 = vmatmul.mubr.msk.bf16.gmra.mrb[156].mxu0 %vm3078_vm0, %v3631_v4  ;;  %11831 = vmatprep.mubr.msk.bf16.mxu1 %vm3078_vm0, %v14910_v35  ;;  %v3641_v48 = vpop.permute.xlu0 %3640  ;;  %v6603_v4 = vshll.u32 %v13270_v62, 16 }
 0x400   : > { %11607 = vmatprep.mubr.msk.bf16.mxu0 %vm3078_vm0, %v3633_v11 }
 0x402   : > { %v3639_v19 = vpop.permute.xlu1 %3638 }
 0x406   : > { %11832 = vmatmul.mubr.msk.bf16.gmra.mrb[20].mxu1 %vm3078_vm0, %v14935_v0  ;;  %v3643_v35 = vpop.permute.xlu1 %3642  ;;  %v3645_v0 = vpop.permute.xlu0 %3644 }
 0x407   : > { %11608 = vmatmul.mubr.msk.bf16.gmra.mrb[160].mxu0 %vm3078_vm0, %v3635_v5  ;;  %11835 = vmatprep.mubr.msk.bf16.mxu1 %vm3078_vm0, %v14927_v39  ;;  %v13271_v5 = vld [vmem:[#allocation2 + $0x38] sm:$0xff] }
 0x408   : > { %11611 = vmatprep.mubr.msk.bf16.mxu0 %vm3078_vm0, %v3637_v23  ;;  %v6611_v23 = vshll.u32 %v13271_v5, 16 }
 0x40a   : > { %v3647_v39 = vpop.permute.xlu1 %3646 }
 0x40e   : > { %11836 = vmatmul.mubr.msk.bf16.gmra.mrb[24].mxu1 %vm3078_vm0, %v14952_v58  ;;  %v3649_v58 = vpop.permute.xlu0 %3648  ;;  %v3651_v16 = vpop.permute.xlu1 %3650 }
 0x40f   : > { %11612 = vmatmul.mubr.msk.bf16.gmra.mrb[164].mxu0 %vm3078_vm0, %v3639_v19  ;;  %11839 = vmatprep.mubr.msk.bf16.mxu1 %vm3078_vm0, %v14937_v57  ;;  %v13268_v57 = vld [vmem:[#allocation2 + $0x8] sm:$0xff] }
 0x410   : > { %11615 = vmatprep.mubr.msk.bf16.mxu0 %vm3078_vm0, %v3641_v48 }
 0x412   : > { %v3653_v9 = vpop.permute.xlu0 %3652  ;;  %v3655_v11 = vpop.permute.xlu1 %3654 }
 0x416   : > { %11840 = vmatmul.mubr.msk.bf16.gmra.mrb[28].mxu1 %vm3078_vm0, %v14962_v40  ;;  %v6590_v40 = vshll.u32 %v13268_v57, 16  ;;  %v3657_v19 = vpop.permute.xlu0 %3656 }
 0x417   : > { %11616 = vmatmul.mubr.msk.bf16.gmra.mrb[168].mxu0 %vm3078_vm0, %v3643_v35  ;;  %11843 = vmatprep.mubr.msk.bf16.mxu1 %vm3078_vm0, %v14954_v21  ;;  %v13269_v21 = vld [vmem:[#allocation2 + $0x18] sm:$0xff]  ;;  %v6607_v35 = vshrl.u32 %v13270_v62, 16 }
 0x418   : > { %11619 = vmatprep.mubr.msk.bf16.mxu0 %vm3078_vm0, %v3645_v0  ;;  %v6595_v29 = vshll.u32 %v13269_v21, 16  ;;  %v6599_v48 = vshrl.u32 %v13269_v21, 16  ;;  %v6613_v0 = vrot.slane %v6611_v23, 1  ;;  %v13245_v23 = vld [vmem:[%s16014_s4 + $0xd0] sm:$0xff]  }
 0x41a   : > { %v6597_v55 = vrot.slane %v6595_v29, 1  ;;  %v4310_v29 = vshll.u32 %v14703_v1, 16 }
 0x41e   : > { %11844 = vmatmul.mubr.msk.bf16.gmra.mrb[32].mxu1 %vm3078_vm0, %v14979_v14  ;;  %v6592_v14 = vrot.slane %v6590_v40, 1 }
 0x41f   : > { %11620 = vmatmul.mubr.msk.bf16.gmra.mrb[172].mxu0 %vm3078_vm0, %v3647_v39  ;;  %11847 = vmatprep.mubr.msk.bf16.mxu1 %vm3078_vm0, %v14964_v41  ;;  %v6588_v41 = vshrl.u32 %v13268_v57, 16  ;;  %v6601_v39 = vor.u32 %v6599_v48, %v6597_v55  ;;  %v13272_v57 = vld [vmem:[#allocation2 + $0x48] sm:$0xff]  ;;  %v15251_v48 = vld [vmem:[#allocation2 + $0x20] sm:$0xff] }
 0x420   : > { %11623 = vmatprep.mubr.msk.bf16.mxu0 %vm3078_vm0, %v3649_v58  ;;  %v6619_v40 = vshll.u32 %v13272_v57, 16 }
 0x421   : > { %v6593_v18 = vor.u32 %v6592_v14, %v6588_v41  ;;  %v3659_v14 = vpop.permute.xlu1 %3658  ;;  %v16108_v41 = vld [vmem:[#allocation23_spill] sm:$0xff] }
 0x426   : > { %11848 = vmatmul.mubr.msk.bf16.gmra.mrb[36].mxu1 %vm3078_vm0, %v14989_v44  ;;  %v6598_v44 = vsel %vm4306_vm7, %v6593_v18, %v6597_v55  ;;  %v6627_v55 = vshll.u32 %v16108_v41, 16  ;;  %v3661_v18 = vpop.permute.xlu0 %3660  ;;  %v13274_v41 = vld [vmem:[#allocation2 + $0x78] sm:$0xff] }
 0x427   : > { %11624 = vmatmul.mubr.msk.bf16.gmra.mrb[176].mxu0 %vm3078_vm0, %v3651_v16  ;;  %11851 = vmatprep.mubr.msk.bf16.mxu1 %vm3078_vm0, %v14981_v10  ;;  %v6605_v10 = vrot.slane %v6603_v4, 1  ;;  %v6621_v4 = vrot.slane %v6619_v40, 1 }
 0x428   : > { %11627 = vmatprep.mubr.msk.bf16.mxu0 %vm3078_vm0, %v3653_v9  ;;  %v13244_v9 = vld [vmem:[%s16014_s4 + $0xc8] sm:$0xff]  }
 0x429   : > { %v6609_v58 = vor.u32 %v6607_v35, %v6605_v10  ;;  %v6606_v16 = vsel %vm4306_vm7, %v6601_v39, %v6605_v10  ;;  %v6629_v10 = vrot.slane %v6627_v55, 1  ;;  %v4308_v39 = vshrl.u32 %v14703_v1, 16 }
 0x42a   : > { %v6643_v55 = vshll.u32 %v13274_v41, 16 }
 0x42b   : > { %v6614_v21 = vsel %vm4306_vm7, %v6609_v58, %v6613_v0 }
 0x42e   : > { %11852 = vmatmul.mubr.msk.bf16.gmra.mrb[40].mxu1 %vm3078_vm0, %v15005_v51  ;;  %v15233_v51 = vld [vmem:[#allocation2 + $0x10] sm:$0xff] }
 0x42f   : > { %11628 = vmatmul.mubr.msk.bf16.gmra.mrb[180].mxu0 %vm3078_vm0, %v3655_v11  ;;  %11863 = vmatprep.mubr.msk.bf16.mxu1 %vm3078_vm0, %v6598_v44  ;;  %v4315_v62 = vshll.u32 %v15233_v51, 16  ;;  %v6615_v11 = vshrl.u32 %v13271_v5, 16  ;;  %v4312_v44 = vrot.slane %v4310_v29, 1  ;;  %v4323_v29 = vshll.u32 %v15251_v48, 16 }
 0x430   : > { %11631 = vmatprep.mubr.msk.bf16.mxu0 %vm3078_vm0, %v3657_v19  ;;  %v6623_v19 = vshrl.u32 %v13272_v57, 16  ;;  %v13246_v57 = vld [vmem:[%s16014_s4 + $0xd8] sm:$0xff]  }
 0x431   : > { %v6617_v35 = vor.u32 %v6615_v11, %v6613_v0  ;;  %v4317_v58 = vrot.slane %v4315_v62, 1  ;;  %v4313_v40 = vor.u32 %v4312_v44, %v4308_v39  ;;  %v3663_v0 = vpop.permute.xlu1 %3662  ;;  %v4325_v44 = vrot.slane %v4323_v29, 1 }
 0x433   : > { %v6622_v5 = vsel %vm4306_vm7, %v6617_v35, %v6621_v4  ;;  %v4319_v35 = vshrl.u32 %v15233_v51, 16 }
 0x436   : > { %11864 = vmatmul.mubr.msk.bf16.vlgmr.msra.gmra.mrb[44].mxu1 %vm3078_vm0, %v6606_v16  ;;  %v6625_v16 = vor.u32 %v6623_v19, %v6621_v4  ;;  %v13275_v4 = vld [vmem:[#allocation2 + $0x58] sm:$0xff]  ;;  %v15271_v19 = vld [vmem:[%s16014_s4 + $0xe0] sm:$0xff]  }
 0x437   : > { %11632 = vmatmul.mubr.msk.bf16.gmra.mrb[184].mxu0 %vm3078_vm0, %v3659_v14  ;;  %11867 = vmatprep.mubr.msk.bf16.mxu1 %vm3078_vm0, %v6614_v21  ;;  %v15254_v21 = vld [vmem:[#allocation2 + $0x30] sm:$0xff]  ;;  %v6631_v11 = vshrl.u32 %v13275_v4, 16 }
 0x438   : > { %11928 = vmatpush3.bf16.msra.mxu1 %v15099_v20  ;;  %11635 = vmatprep.mubr.msk.bf16.mxu0 %vm3078_vm0, %v3661_v18  ;;  %v13273_v20 = vld [vmem:[#allocation2 + $0x68] sm:$0xff]  ;;  %v6630_v1 = vsel %vm4306_vm7, %v6625_v16, %v6629_v10  ;;  %v4331_v18 = vshll.u32 %v15254_v21, 16  ;;  %v6645_v16 = vrot.slane %v6643_v55, 1  ;;  %v13278_v55 = vld [vmem:[#allocation2 + $0x98] sm:$0xff] }
 0x439   : > { %11929 = vmatprep.subr.bf16.mxu1 %v13244_v9  ;;  %v6635_v14 = vshll.u32 %v13273_v20, 16  ;;  %v6639_v39 = vshrl.u32 %v13273_v20, 16 }
 0x43b   : > { %v6637_v62 = vrot.slane %v6635_v14, 1 }
 0x43c   : > { %11930 = vmatpush3.bf16.msra.mxu1 %v13244_v9  ;;  %v4318_v9 = vsel %vm4306_vm7, %v4313_v40, %v4317_v58  ;;  %v4327_v40 = vshrl.u32 %v15251_v48, 16 }
 0x43d   : > { %11931 = vmatprep.subr.bf16.mxu1 %v13245_v23  ;;  %v6641_v14 = vor.u32 %v6639_v39, %v6637_v62  ;;  %v4341_v39 = vrot.slane %v4339_v26, 1 }
 0x43e   : > { %11868 = vmatmul.mubr.msk.bf16.gmra.mrb[48].mxu1 %vm3078_vm0, %v6622_v5  ;;  %v6633_v5 = vor.u32 %v6631_v11, %v6629_v10  ;;  %v4329_v4 = vor.u32 %v4327_v40, %v4325_v44 }
 0x43f   : > { %11636 = vmatmul.mubr.msk.bf16.gmra.mrb[188].mxu0 %vm3078_vm0, %v3663_v0  ;;  %11871 = vmatprep.mubr.msk.bf16.mxu1 %vm3078_vm0, %v6630_v1  ;;  %v4333_v0 = vrot.slane %v4331_v18, 1  ;;  %v4321_v1 = vor.u32 %v4319_v35, %v4317_v58  ;;  %v6646_v10 = vsel %vm4306_vm7, %v6641_v14, %v6645_v16  ;;  %v6659_v18 = vshll.u32 %v13278_v55, 16 }
 0x440   : > { %11647 = vmatprep.mubr.msk.bf16.mxu0 %vm3078_vm0, %v4318_v9  ;;  %11932 = vmatpush3.bf16.msra.mxu1 %v13245_v23  ;;  %v13276_v23 = vld [vmem:[#allocation2 + $0x88] sm:$0xff]  ;;  %v6638_v29 = vsel %vm4306_vm7, %v6633_v5, %v6637_v62  ;;  %v6647_v35 = vshrl.u32 %v13274_v41, 16  ;;  %v4335_v5 = vshrl.u32 %v15254_v21, 16  ;;  %v4343_v14 = vshrl.u32 %v13277_v37, 16 }
 0x441   : > { %11933 = vmatprep.subr.bf16.mxu1 %v13246_v57  ;;  %v6651_v9 = vshll.u32 %v13276_v23, 16  ;;  %v4326_v20 = vsel %vm4306_vm7, %v4321_v1, %v4325_v44  ;;  %v4334_v58 = vsel %vm4306_vm7, %v4329_v4, %v4333_v0  ;;  %v6655_v44 = vshrl.u32 %v13276_v23, 16  ;;  %v16109_v41 = vld [vmem:[#allocation16_spill] sm:$0xff] }
 0x442   : > { %v6661_v40 = vrot.slane %v6659_v18, 1  ;;  %v6649_v1 = vor.u32 %v6647_v35, %v6645_v16  ;;  %v4337_v63 = vor.u32 %v4335_v5, %v4333_v0  ;;  %v4345_v53 = vor.u32 %v4343_v14, %v4341_v39  ;;  %v16113_v35 = vld [vmem:[#allocation7_spill] sm:$0xff] }
 0x443   : > { %v6653_v11 = vrot.slane %v6651_v9, 1  ;;  %v6663_v37 = vshrl.u32 %v13278_v55, 16  ;;  %v16110_v16 = vshll.u32 %v16109_v41, 16  ;;  %v16114_v5 = vshrl.u32 %v16109_v41, 16  ;;  %v16115_v55 = vld [vmem:[#allocation8_spill] sm:$0xff]  ;;  %v16122_v41 = vld [vmem:[#allocation9_spill] sm:$0xff] }
 0x444   : > { %11934 = vmatpush3.bf16.msra.mxu1 %v13246_v57  ;;  %v13279_v57 = vld [vmem:[#allocation2 + $0x50] sm:$0xff]  ;;  %v4342_v4 = vsel %vm4306_vm7, %v4337_v63, %v4341_v39 }
 0x445   : > { %11999 = vmatprep.subr.bf16.mxu1 %v15271_v19  ;;  %v4347_v62 = vshll.u32 %v13279_v57, 16  ;;  %v4357_v0 = vrot.slane %v16110_v16, 1  ;;  %v4351_v23 = vshrl.u32 %v13279_v57, 16  ;;  %v6665_v18 = vor.u32 %v6663_v37, %v6661_v40 }
 0x446   : > { %11872 = vmatmul.mubr.msk.bf16.gmra.mrb[52].mxu1 %vm3078_vm0, %v6638_v29 }
 0x447   : > { %11648 = vmatmul.mubr.msk.bf16.vlgmr.msra.gmra.mrb[128].mxu0 %vm3078_vm0, %v4326_v20  ;;  %11875 = vmatprep.mubr.msk.bf16.mxu1 %vm3078_vm0, %v6646_v10  ;;  %v4349_v29 = vrot.slane %v4347_v62, 1  ;;  %v6657_v20 = vor.u32 %v6655_v44, %v6653_v11  ;;  %v6654_v10 = vsel %vm4306_vm7, %v6649_v1, %v6653_v11  ;;  %v6670_v39 = vsel %vm4306_vm7, %v6665_v18, %v16113_v35 }
 0x448   : > { %11651 = vmatprep.mubr.msk.bf16.mxu0 %vm3078_vm0, %v4334_v58  ;;  %v16111_v58 = vld [vmem:[#allocation17_spill] sm:$0xff]  ;;  %v4361_v44 = vor.u32 %v16114_v5, %v4357_v0  ;;  %v6723_v35 = vshll.u32 %v14879_v2, 16  ;;  %v13280_v5 = vld [vmem:[#allocation2 + $0x108] sm:$0xff] }
 0x449   : > { %v6662_v9 = vsel %vm4306_vm7, %v6657_v20, %v6661_v40  ;;  %v4350_v26 = vsel %vm4306_vm7, %v4345_v53, %v4349_v29  ;;  %v16112_v62 = vshll.u32 %v16111_v58, 16  ;;  %v4353_v63 = vor.u32 %v4351_v23, %v4349_v29  ;;  %v16116_v40 = vld [vmem:[#allocation18_spill] sm:$0xff]  ;;  %v16118_v29 = vld [vmem:[#allocation19_spill] sm:$0xff] }
 0x44a   : > { %v16117_v1 = vshll.u32 %v16116_v40, 16  ;;  %v16119_v20 = vshll.u32 %v16118_v29, 16  ;;  %v16124_v18 = vshrl.u32 %v16118_v29, 16 }
 0x44b   : > { %v4365_v11 = vrot.slane %v16112_v62, 1  ;;  %v4358_v53 = vsel %vm4306_vm7, %v4353_v63, %v4357_v0  ;;  %v16123_v0 = vld [vmem:[#allocation10_spill] sm:$0xff]  ;;  %v16125_v62 = vld [vmem:[#allocation11_spill] sm:$0xff] }
 0x44c   : > { %v4373_v14 = vrot.slane %v16117_v1, 1  ;;  %v16129_v1 = vld [vmem:[#allocation14_spill] sm:$0xff] }
 0x44d   : > { %v4366_v57 = vsel %vm4306_vm7, %v4361_v44, %v4365_v11  ;;  %v6719_v44 = vshrl.u32 %v13280_v5, 16 }
 0x44e   : > { %11876 = vmatmul.mubr.msk.bf16.gmra.mrb[56].mxu1 %vm3078_vm0, %v6654_v10  ;;  %v4381_v10 = vrot.slane %v16119_v20, 1  ;;  %v6739_v20 = vshll.u32 %v14906_v28, 16 }
 0x44f   : > { %11652 = vmatmul.mubr.msk.bf16.gmra.mrb[132].mxu0 %vm3078_vm0, %v4342_v4  ;;  %11879 = vmatprep.mubr.msk.bf16.mxu1 %vm3078_vm0, %v6662_v9  ;;  %v16120_v4 = vshrl.u32 %v16111_v58, 16 }
 0x450   : > { %11655 = vmatprep.mubr.msk.bf16.mxu0 %vm3078_vm0, %v4350_v26  ;;  %v16121_v26 = vshrl.u32 %v16116_v40, 16  ;;  %v4385_v58 = vor.u32 %v16124_v18, %v4381_v10  ;;  %v6731_v40 = vshll.u32 %v14887_v60, 16  ;;  %v6755_v18 = vshll.u32 %v14933_v38, 16 }
 0x451   : > { %v4369_v9 = vor.u32 %v16120_v4, %v4365_v11  ;;  %v16126_v11 = vld [vmem:[#allocation6_spill] sm:$0xff]  ;;  %v6727_v4 = vshrl.u32 %v14879_v2, 16  ;;  %v6743_v2 = vshrl.u32 %v14906_v28, 16  ;;  %v6759_v28 = vshrl.u32 %v14933_v38, 16 }
 0x452   : > { %v4377_v37 = vor.u32 %v16121_v26, %v4373_v14  ;;  %v4390_v63 = vsel %vm4306_vm7, %v4385_v58, %v16126_v11  ;;  %v6741_v26 = vrot.slane %v6739_v20, 1  ;;  %v6775_v38 = vshrl.u32 %v14960_v8, 16 }
 0x453   : > { %v4374_v16 = vsel %vm4306_vm7, %v4369_v9, %v4373_v14  ;;  %v6735_v9 = vshrl.u32 %v14887_v60, 16  ;;  %v6751_v60 = vshrl.u32 %v14914_v17, 16 }
 0x454   : > { %v4382_v23 = vsel %vm4306_vm7, %v4377_v37, %v4381_v10  ;;  %v6733_v10 = vrot.slane %v6731_v40, 1  ;;  %v6745_v11 = vor.u32 %v6743_v2, %v6741_v26 }
 0x456   : > { %11880 = vmatmul.mubr.msk.bf16.gmra.mrb[60].mxu1 %vm3078_vm0, %v6670_v39  ;;  %v16127_v39 = vld [vmem:[#allocation13_spill] sm:$0xff] }
 0x457   : > { %11656 = vmatmul.mubr.msk.bf16.gmra.mrb[136].mxu0 %vm3078_vm0, %v4358_v53  ;;  %11883 = vmatprep.mubr.msk.bf16.mxu1 %vm3078_vm0, %v16115_v55  ;;  %v6725_v53 = vrot.slane %v6723_v35, 1  ;;  %v16128_v55 = vld [vmem:[#allocation12_spill] sm:$0xff]  ;;  %v6763_v35 = vshll.u32 %v14941_v25, 16 }
 0x458   : > { %11659 = vmatprep.mubr.msk.bf16.mxu0 %vm3078_vm0, %v4366_v57  ;;  %v6721_v57 = vor.u32 %v6719_v44, %v16128_v55  ;;  %v6771_v44 = vshll.u32 %v14960_v8, 16  ;;  %v6791_v8 = vshrl.u32 %v14987_v56, 16 }
 0x459   : > { %v6729_v37 = vor.u32 %v6727_v4, %v6725_v53 }
 0x45a   : > { %v6726_v14 = vsel %vm4306_vm7, %v6721_v57, %v6725_v53  ;;  %v6765_v53 = vrot.slane %v6763_v35, 1  ;;  %v6773_v55 = vrot.slane %v6771_v44, 1 }
 0x45e   : > { %11884 = vmatmul.mubr.msk.bf16.gmra.mrb[0].mxu1 %vm3078_vm0, %v16122_v41  ;;  %v6737_v41 = vor.u32 %v6735_v9, %v6733_v10 }
 0x45f   : > { %11660 = vmatmul.mubr.msk.bf16.gmra.mrb[140].mxu0 %vm3078_vm0, %v4374_v16  ;;  %11887 = vmatprep.mubr.msk.bf16.mxu1 %vm3078_vm0, %v16123_v0  ;;  %v6747_v16 = vshll.u32 %v14914_v17, 16  ;;  %v6734_v0 = vsel %vm4306_vm7, %v6729_v37, %v6733_v10  ;;  %v6767_v17 = vshrl.u32 %v14941_v25, 16  ;;  %v6787_v10 = vshll.u32 %v14987_v56, 16 }
 0x460   : > { %11663 = vmatprep.mubr.msk.bf16.mxu0 %vm3078_vm0, %v4382_v23  ;;  %v6742_v23 = vsel %vm4306_vm7, %v6737_v41, %v6741_v26  ;;  %v6783_v25 = vshrl.u32 %v14968_v30, 16  ;;  %v6777_v26 = vor.u32 %v6775_v38, %v6773_v55  ;;  %v6795_v41 = vshll.u32 %v14995_v3, 16 }
 0x461   : > { %v6749_v58 = vrot.slane %v6747_v16, 1  ;;  %v6769_v40 = vor.u32 %v6767_v17, %v6765_v53  ;;  %v6789_v9 = vrot.slane %v6787_v10, 1  ;;  %v6807_v56 = vshrl.u32 %v15011_v43, 16 }
 0x463   : > { %v6774_v20 = vsel %vm4306_vm7, %v6769_v40, %v6773_v55  ;;  %v6577_v55 = vld [vmem:[#allocation2 + $0x1f8] sm:$0xff] }
 0x466   : > { %11888 = vmatmul.mubr.msk.bf16.gmra.mrb[4].mxu1 %vm3078_vm0, %v16125_v62  ;;  %v6757_v62 = vrot.slane %v6755_v18, 1  ;;  %v6797_v18 = vrot.slane %v6795_v41, 1 }
 0x467   : > { %11664 = vmatmul.mubr.msk.bf16.gmra.mrb[144].mxu0 %vm3078_vm0, %v4390_v63  ;;  %11891 = vmatprep.mubr.msk.bf16.mxu1 %vm3078_vm0, %v16127_v39  ;;  %v6753_v63 = vor.u32 %v6751_v60, %v6749_v58  ;;  %v6750_v39 = vsel %vm4306_vm7, %v6745_v11, %v6749_v58  ;;  %v6574_v58 = vld [vmem:[#allocation2 + $0x1c8] sm:$0xff]  ;;  %v6793_v60 = vor.u32 %v6791_v8, %v6789_v9  ;;  %v7448_v8 = vld [vmem:[#allocation2] sm:$0xf0] }
 0x468   : > { %v6761_v57 = vor.u32 %v6759_v28, %v6757_v62  ;;  %v6815_v28 = vshrl.u32 %v6574_v58, 16 }
 0x469   : > { %v6758_v5 = vsel %vm4306_vm7, %v6753_v63, %v6757_v62  ;;  %v6575_v62 = vld [vmem:[#allocation2 + $0x1d8] sm:$0xff]  ;;  %v6811_v63 = vshll.u32 %v6574_v58, 16  ;;  %v6798_v35 = vsel %vm4306_vm7, %v6793_v60, %v6797_v18  ;;  %v7524_v58 = vrot.slane %v15233_v51, 4 }
 0x46b   : > { %v6813_v44 = vrot.slane %v6811_v63, 1  ;;  %v13248_v63 = vld [vmem:[%s16014_s4 + $0xe8] sm:$0xff]  }
 0x46e   : > { %11892 = vmatmul.mubr.msk.bf16.gmra.mrb[8].mxu1 %vm3078_vm0, %v16129_v1  ;;  %v6779_v1 = vshll.u32 %v14968_v30, 16  ;;  %v6799_v30 = vshrl.u32 %v14995_v3, 16 }
 0x46f   : > { %11895 = vmatprep.mubr.msk.bf16.mxu1 %vm3078_vm0, %v6726_v14  ;;  %v6766_v14 = vsel %vm4306_vm7, %v6761_v57, %v6765_v53  ;;  %v6576_v53 = vld [vmem:[#allocation2 + $0x1e8] sm:$0xff]  ;;  %v6817_v57 = vor.u32 %v6815_v28, %v6813_v44 }
 0x470   : > { %v6781_v4 = vrot.slane %v6779_v1, 1  ;;  %v6801_v11 = vor.u32 %v6799_v30, %v6797_v18  ;;  %v6827_v40 = vshll.u32 %v6576_v53, 16  ;;  %v6831_v38 = vshrl.u32 %v6576_v53, 16 }
 0x471   : > { %v7523_v30 = vrot.slane %v7448_v8, 4  ;;  %v13283_v8 = vld [vmem:[#allocation2 + $0xc0] sm:$0xff] }
 0x472   : > { %v6785_v37 = vor.u32 %v6783_v25, %v6781_v4  ;;  %v6782_v16 = vsel %vm4306_vm7, %v6777_v26, %v6781_v4  ;;  %v6829_v10 = vrot.slane %v6827_v40, 1  ;;  %v6823_v4 = vshrl.u32 %v6575_v62, 16  ;;  %v6578_v25 = vld [vmem:[#allocation2 + $0x208] sm:$0x1] }
 0x473   : > { %v6843_v41 = vshll.u32 %v6578_v25, 16  ;;  %v7525_v60 = vsel %vm7522_vm8, %v7523_v30, %v7524_v58 }
 0x474   : > { %v6833_v26 = vor.u32 %v6831_v38, %v6829_v10  ;;  %v13281_v38 = vld [vmem:[#allocation2 + $0xa0] sm:$0xff] }
 0x475   : > { %v6845_v18 = vrot.slane %v6843_v41, 1 }
 0x476   : > { %11896 = vmatmul.mubr.msk.bf16.gmra.mrb[12].mxu1 %vm3078_vm0, %v6734_v0  ;;  %v6790_v0 = vsel %vm4306_vm7, %v6785_v37, %v6789_v9 }
 0x477   : > { %11899 = vmatprep.mubr.msk.bf16.mxu1 %vm3078_vm0, %v6742_v23  ;;  %v6803_v23 = vshll.u32 %v15011_v43, 16 }
 0x479   : > { %v6805_v2 = vrot.slane %v6803_v23, 1 }
 0x47b   : > { %v6809_v17 = vor.u32 %v6807_v56, %v6805_v2  ;;  %v16132_v56 = vld [vmem:[#allocation20_spill] sm:$0xff] }
 0x47d   : > { %v6814_v1 = vsel %vm4306_vm7, %v6809_v17, %v6813_v44 }
 0x47e   : > { %11900 = vmatmul.mubr.msk.bf16.gmra.mrb[16].mxu1 %vm3078_vm0, %v6750_v39  ;;  %v6806_v39 = vsel %vm4306_vm7, %v6801_v11, %v6805_v2  ;;  %v7528_v11 = vrot.slane %v15254_v21, 4  ;;  %v13250_v21 = vld [vmem:[%s16014_s4 + $0xf8] sm:$0xff]  }
 0x47f   : > { %11903 = vmatprep.mubr.msk.bf16.mxu1 %vm3078_vm0, %v6758_v5  ;;  %v6819_v5 = vshll.u32 %v6575_v62, 16  ;;  %v7526_v62 = vrot.slane %v15251_v48, 4  ;;  %v13249_v48 = vld [vmem:[%s16014_s4 + $0xf0] sm:$0xff]  }
 0x481   : > { %v6821_v3 = vrot.slane %v6819_v5, 1  ;;  %v7529_v51 = vsel %vm7522_vm8, %v7526_v62, %v7528_v11 }
 0x483   : > { %v6825_v9 = vor.u32 %v6823_v4, %v6821_v3  ;;  %v16136_v4 = vld [vmem:[#allocation25_spill] sm:$0xff] }
 0x485   : > { %v6830_v37 = vsel %vm4306_vm7, %v6825_v9, %v6829_v10  ;;  %v16135_v10 = vld [vmem:[#allocation24_spill] sm:$0xff] }
 0x486   : > { %11904 = vmatmul.mubr.msk.bf16.gmra.mrb[20].mxu1 %vm3078_vm0, %v6766_v14  ;;  %v6822_v14 = vsel %vm4306_vm7, %v6817_v57, %v6821_v3  ;;  %v16134_v57 = vld [vmem:[#allocation22_spill] sm:$0xff]  ;;  %v13282_v9 = vld [vmem:[#allocation2 + $0xb0] sm:$0xff] }
 0x487   : > { %11907 = vmatprep.mubr.msk.bf16.mxu1 %vm3078_vm0, %v6774_v20  ;;  %v6835_v20 = vshll.u32 %v6577_v55, 16 }
 0x489   : > { %v6837_v43 = vrot.slane %v6835_v20, 1 }
 0x48e   : > { %11908 = vmatmul.mubr.msk.bf16.gmra.mrb[24].mxu1 %vm3078_vm0, %v6782_v16  ;;  %v6838_v16 = vsel %vm4306_vm7, %v6833_v26, %v6837_v43  ;;  %v7544_v26 = vrot.slane %v13282_v9, 4  ;;  %v13288_v9 = vld [vmem:[#allocation2 + $0x110] sm:$0xff] }
 0x48f   : > { %11911 = vmatprep.mubr.msk.bf16.mxu1 %vm3078_vm0, %v6790_v0  ;;  %v6839_v0 = vshrl.u32 %v6577_v55, 16  ;;  %v16133_v55 = vld [vmem:[#allocation21_spill] sm:$0xff] }
 0x491   : > { %v6841_v23 = vor.u32 %v6839_v0, %v6837_v43  ;;  %v7542_v43 = vrot.slane %v13281_v38, 4  ;;  %v16137_v0 = vrot.slane %v16118_v29, 4 }
 0x493   : > { %v6846_v2 = vsel %vm4306_vm7, %v6841_v23, %v6845_v18  ;;  %v7543_v23 = vsel %vm7522_vm8, %v16137_v0, %v7542_v43  ;;  %v7545_v18 = vsel %vm7522_vm8, %v7542_v43, %v7544_v26 }
 0x496   : > { %11912 = vmatmul.mubr.msk.bf16.gmra.mrb[28].mxu1 %vm3078_vm0, %v6798_v35  ;;  %v7527_v35 = vsel %vm7522_vm8, %v7524_v58, %v7526_v62  ;;  %v7546_v58 = vrot.slane %v13283_v8, 4 }
 0x497   : > { %11915 = vmatprep.mubr.msk.bf16.mxu1 %vm3078_vm0, %v6806_v39  ;;  %v16130_v39 = vld [vmem:[#allocation15_spill] sm:$0xff] }
 0x498   : > { %v16131_v5 = vrot.slane %v16130_v39, 4  ;;  %v7547_v29 = vsel %vm7522_vm8, %v7544_v26, %v7546_v58  ;;  %v13286_v39 = vld [vmem:[#allocation2 + $0xf0] sm:$0xff]  ;;  %v7556_v26 = vrot.slane %v13288_v9, 4 }
 0x49a   : > { %v7531_v44 = vsel %vm7522_vm8, %v7528_v11, %v16131_v5  ;;  %v7552_v5 = vrot.slane %v13286_v39, 4 }
 0x49e   : > { %11916 = vmatmul.mubr.msk.bf16.gmra.mrb[32].mxu1 %vm3078_vm0, %v6814_v1 }
 0x49f   : > { %11919 = vmatprep.mubr.msk.bf16.mxu1 %vm3078_vm0, %v6822_v14 }
 0x4a6   : > { %11920 = vmatmul.mubr.msk.bf16.gmra.mrb[36].mxu1 %vm3078_vm0, %v6830_v37 }
 0x4a7   : > { %11923 = vmatprep.mubr.msk.bf16.mxu1 %vm3078_vm0, %v6838_v16 }
 0x4ae   : > { %11924 = vmatmul.mubr.msk.bf16.gmra.mrb[40].mxu1 %vm3078_vm0, %v6846_v2  ;;  %v13284_v2 = vld [vmem:[#allocation2 + $0xd0] sm:$0xff] }
 0x4af   : > { %11935 = vmatprep.mubr.msk.bf16.mxu1 %vm3078_vm0, %v7525_v60  ;;  %v7548_v60 = vrot.slane %v13284_v2, 4  ;;  %v13289_v2 = vld [vmem:[#allocation2 + $0x120] sm:$0xff] }
 0x4b6   : > { %11936 = vmatmul.mubr.msk.bf16.vlgmr.msra.gmra.mrb[44].mxu1 %vm3078_vm0, %v7527_v35  ;;  %v7549_v35 = vsel %vm7522_vm8, %v7546_v58, %v7548_v60 }
 0x4b7   : > { %11939 = vmatprep.mubr.msk.bf16.mxu1 %vm3078_vm0, %v7529_v51  ;;  %12000 = vmatpush3.bf16.msra.mxu1 %v15271_v19  ;;  %v15418_v19 = vld [vmem:[%s16014_s4 + $0x100] sm:$0xff]  }
 0x4b8   : > { %12001 = vmatprep.subr.bf16.mxu1 %v13248_v63  ;;  %v13285_v51 = vld [vmem:[#allocation2 + $0xe0] sm:$0xff] }
 0x4bb   : > { %12002 = vmatpush3.bf16.msra.mxu1 %v13248_v63 }
 0x4bc   : > { %12003 = vmatprep.subr.bf16.mxu1 %v13249_v48 }
 0x4be   : > { %11940 = vmatmul.mubr.msk.bf16.gmra.mrb[48].mxu1 %vm3078_vm0, %v7531_v44 }
 0x4bf   : > { %11943 = vmatprep.mubr.msk.bf16.mxu1 %vm3078_vm0, %v16132_v56  ;;  %12004 = vmatpush3.bf16.msra.mxu1 %v13249_v48  ;;  %v7550_v48 = vrot.slane %v13285_v51, 4 }
 0x4c0   : > { %12005 = vmatprep.subr.bf16.mxu1 %v13250_v21 }
 0x4c2   : > { %v15420_v53 = vpop.f32.mrb[148].mxu0 }
 0x4c3   : > { %v15422_v28 = vpop.f32.mrb[149].mxu0  ;;  %12006 = vmatpush3.bf16.msra.mxu1 %v13250_v21 }
 0x4c4   : > { %v15424_v3 = vpop.f32.mrb[150].mxu0  ;;  %12071 = vmatprep.subr.bf16.mxu1 %v15418_v19 }
 0x4c5   : > { %v15427_v17 = vpop.f32.mrb[151].mxu0 }
 0x4c6   : > { %11944 = vmatmul.mubr.msk.bf16.gmra.mrb[52].mxu1 %vm3078_vm0, %v16133_v55 }
 0x4c7   : > { %11947 = vmatprep.mubr.msk.bf16.mxu1 %vm3078_vm0, %v16134_v57  ;;  %v7551_v57 = vsel %vm7522_vm8, %v7548_v60, %v7550_v48  ;;  %v7558_v60 = vrot.slane %v13289_v2, 4 }
 0x4ca   : > { %v15433_v40 = vpop.f32.mrb[152].mxu0 }
 0x4cb   : > { %v15435_v1 = vpop.f32.mrb[153].mxu0 }
 0x4cc   : > { %v15437_v14 = vpop.f32.mrb[154].mxu0 }
 0x4cd   : > { %v15439_v20 = vpop.f32.mrb[155].mxu0 }
 0x4ce   : > { %11948 = vmatmul.mubr.msk.bf16.gmra.mrb[56].mxu1 %vm3078_vm0, %v16135_v10  ;;  %v7553_v10 = vsel %vm7522_vm8, %v7550_v48, %v7552_v5 }
 0x4cf   : > { %11951 = vmatprep.mubr.msk.bf16.mxu1 %vm3078_vm0, %v16136_v4  ;;  %v13287_v4 = vld [vmem:[#allocation2 + $0x100] sm:$0xff] }
 0x4d0   : > { %v7554_v38 = vrot.slane %v13287_v4, 4  ;;  %v13291_v4 = vld [vmem:[#allocation2 + $0x140] sm:$0xff] }
 0x4d2   : > { %v15445_v25 = vpop.f32.mrb[156].mxu0  ;;  %v7555_v8 = vsel %vm7522_vm8, %v7552_v5, %v7554_v38  ;;  %v7557_v58 = vsel %vm7522_vm8, %v7554_v38, %v7556_v26  ;;  %v7559_v5 = vsel %vm7522_vm8, %v7556_v26, %v7558_v60  ;;  %v7562_v38 = vrot.slane %v13291_v4, 4 }
 0x4d3   : > { %v15447_v37 = vpop.f32.mrb[157].mxu0 }
 0x4d4   : > { %v15449_v41 = vpop.f32.mrb[158].mxu0 }
 0x4d5   : > { %v15451_v16 = vpop.f32.mrb[159].mxu0 }
 0x4d6   : > { %11952 = vmatmul.mubr.msk.bf16.gmra.mrb[60].mxu1 %vm3078_vm0, %v7543_v23 }
 0x4d7   : > { %11955 = vmatprep.mubr.msk.bf16.mxu1 %vm3078_vm0, %v7545_v18 }
 0x4da   : > { %v15459_v30 = vpop.f32.mrb[160].mxu0 }
 0x4db   : > { %v15461_v62 = vpop.f32.mrb[161].mxu0 }
 0x4dc   : > { %v15463_v11 = vpop.f32.mrb[162].mxu0 }
 0x4dd   : > { %v15465_v63 = vpop.f32.mrb[163].mxu0 }
 0x4de   : > { %11956 = vmatmul.mubr.msk.bf16.gmra.mrb[0].mxu1 %vm3078_vm0, %v7547_v29 }
 0x4df   : > { %11959 = vmatprep.mubr.msk.bf16.mxu1 %vm3078_vm0, %v7549_v35  ;;  %v13290_v35 = vld [vmem:[#allocation2 + $0x130] sm:$0xff] }
 0x4e0   : > { %v7560_v51 = vrot.slane %v13290_v35, 4 }
 0x4e2   : > { %v15471_v21 = vpop.f32.mrb[164].mxu0  ;;  %v7563_v26 = vsel %vm7522_vm8, %v7560_v51, %v7562_v38 }
 0x4e3   : > { %v15473_v44 = vpop.f32.mrb[165].mxu0 }
 0x4e4   : > { %v15475_v56 = vpop.f32.mrb[166].mxu0 }
 0x4e5   : > { %16138 = vst [vmem:[#allocation23_spill] sm:$0xff] %v15475_v56  ;;  %v15477_v55 = vpop.f32.mrb[167].mxu0  ;;  %v16168_v56 = vld [vmem:[#allocation51_spill] sm:$0xff] }
 0x4e6   : > { %16139 = vst [vmem:[#allocation16_spill] sm:$0xff] %v15477_v55  ;;  %11960 = vmatmul.mubr.msk.bf16.gmra.mrb[4].mxu1 %vm3078_vm0, %v7551_v57 }
 0x4e7   : > { %11963 = vmatprep.mubr.msk.bf16.mxu1 %vm3078_vm0, %v7553_v10  ;;  %v7561_v10 = vsel %vm7522_vm8, %v7558_v60, %v7560_v51 }
 0x4ea   : > { %v15483_v43 = vpop.f32.mrb[168].mxu0 }
 0x4eb   : > { %16140 = vst [vmem:[#allocation17_spill] sm:$0xff] %v15483_v43  ;;  %v15485_v0 = vpop.f32.mrb[169].mxu0  ;;  %v16164_v43 = vld [vmem:[#allocation47_spill] sm:$0xff] }
 0x4ec   : > { %16141 = vst [vmem:[#allocation7_spill] sm:$0xff] %v15485_v0  ;;  %v15487_v23 = vpop.f32.mrb[170].mxu0 }
 0x4ed   : > { %16142 = vst [vmem:[#allocation8_spill] sm:$0xff] %v15487_v23  ;;  %v15489_v18 = vpop.f32.mrb[171].mxu0 }
 0x4ee   : > { %16143 = vst [vmem:[#allocation18_spill] sm:$0xff] %v15489_v18  ;;  %11964 = vmatmul.mubr.msk.bf16.gmra.mrb[8].mxu1 %vm3078_vm0, %v7555_v8  ;;  %v13292_v8 = vld [vmem:[#allocation2 + $0x150] sm:$0xff] }
 0x4ef   : > { %11967 = vmatprep.mubr.msk.bf16.mxu1 %vm3078_vm0, %v7557_v58  ;;  %v7564_v58 = vrot.slane %v13292_v8, 4 }
 0x4f1   : > { %v7565_v60 = vsel %vm7522_vm8, %v7562_v38, %v7564_v58 }
 0x4f2   : > { %v15495_v29 = vpop.f32.mrb[172].mxu0 }
 0x4f3   : > { %16144 = vst [vmem:[#allocation19_spill] sm:$0xff] %v15495_v29  ;;  %v15497_v48 = vpop.f32.mrb[173].mxu0 }
 0x4f4   : > { %16145 = vst [vmem:[#allocation9_spill] sm:$0xff] %v15497_v48  ;;  %v15499_v39 = vpop.f32.mrb[174].mxu0 }
 0x4f5   : > { %16146 = vst [vmem:[#allocation10_spill] sm:$0xff] %v15499_v39  ;;  %v15501_v57 = vpop.f32.mrb[175].mxu0 }
 0x4f6   : > { %16147 = vst [vmem:[#allocation11_spill] sm:$0xff] %v15501_v57  ;;  %11968 = vmatmul.mubr.msk.bf16.gmra.mrb[12].mxu1 %vm3078_vm0, %v7559_v5  ;;  %v13293_v5 = vld [vmem:[#allocation2 + $0x160] sm:$0xff] }
 0x4f7   : > { %11971 = vmatprep.mubr.msk.bf16.mxu1 %vm3078_vm0, %v7561_v10  ;;  %v7566_v10 = vrot.slane %v13293_v5, 4 }
 0x4f9   : > { %v7567_v51 = vsel %vm7522_vm8, %v7564_v58, %v7566_v10 }
 0x4fa   : > { %v15507_v9 = vpop.f32.mrb[176].mxu0 }
 0x4fb   : > { %16148 = vst [vmem:[#allocation6_spill] sm:$0xff] %v15507_v9  ;;  %v15509_v2 = vpop.f32.mrb[177].mxu0  ;;  %v13294_v9 = vld [vmem:[#allocation2 + $0x170] sm:$0xff] }
 0x4fc   : > { %16149 = vst [vmem:[#allocation13_spill] sm:$0xff] %v15509_v2  ;;  %v15511_v35 = vpop.f32.mrb[178].mxu0  ;;  %v7568_v8 = vrot.slane %v13294_v9, 4 }
 0x4fd   : > { %16150 = vst [vmem:[#allocation12_spill] sm:$0xff] %v15511_v35  ;;  %v15513_v39 = vpop.f32.mrb[179].mxu0 }
 0x4fe   : > { %16151 = vst [vmem:[#allocation14_spill] sm:$0xff] %v15513_v39  ;;  %11972 = vmatmul.mubr.msk.bf16.gmra.mrb[16].mxu1 %vm3078_vm0, %v7563_v26  ;;  %v7569_v38 = vsel %vm7522_vm8, %v7566_v10, %v7568_v8  ;;  %v13295_v26 = vld [vmem:[#allocation2 + $0x180] sm:$0xff] }
 0x4ff   : > { %11975 = vmatprep.mubr.msk.bf16.mxu1 %vm3078_vm0, %v7565_v60  ;;  %v7570_v60 = vrot.slane %v13295_v26, 4 }
 0x501   : > { %v7571_v58 = vsel %vm7522_vm8, %v7568_v8, %v7570_v60 }
 0x502   : > { %v15519_v4 = vpop.f32.mrb[180].mxu0 }
 0x503   : > { %16152 = vst [vmem:[#allocation15_spill] sm:$0xff] %v15519_v4  ;;  %v15521_v57 = vpop.f32.mrb[181].mxu0  ;;  %v13296_v4 = vld [vmem:[#allocation2 + $0x190] sm:$0xff] }
 0x504   : > { %16153 = vst [vmem:[#allocation20_spill] sm:$0xff] %v15521_v57  ;;  %v15523_v2 = vpop.f32.mrb[182].mxu0  ;;  %v7572_v9 = vrot.slane %v13296_v4, 4 }
 0x505   : > { %16154 = vst [vmem:[#allocation21_spill] sm:$0xff] %v15523_v2  ;;  %v15525_v35 = vpop.f32.mrb[183].mxu0 }
 0x506   : > { %16155 = vst [vmem:[#allocation22_spill] sm:$0xff] %v15525_v35  ;;  %11976 = vmatmul.mubr.msk.bf16.gmra.mrb[20].mxu1 %vm3078_vm0, %v7567_v51  ;;  %v7573_v10 = vsel %vm7522_vm8, %v7570_v60, %v7572_v9  ;;  %v13297_v51 = vld [vmem:[#allocation2 + $0x1a0] sm:$0xff] }
 0x507   : > { %11979 = vmatprep.mubr.msk.bf16.mxu1 %vm3078_vm0, %v7569_v38  ;;  %v7574_v38 = vrot.slane %v13297_v51, 4 }
 0x509   : > { %v7575_v8 = vsel %vm7522_vm8, %v7572_v9, %v7574_v38 }
 0x50a   : > { %v15531_v5 = vpop.f32.mrb[184].mxu0 }
 0x50b   : > { %16156 = vst [vmem:[#allocation24_spill] sm:$0xff] %v15531_v5  ;;  %v15533_v39 = vpop.f32.mrb[185].mxu0  ;;  %v13298_v5 = vld [vmem:[#allocation2 + $0x1b0] sm:$0xff] }
 0x50c   : > { %16157 = vst [vmem:[#allocation25_spill] sm:$0xff] %v15533_v39  ;;  %v15535_v57 = vpop.f32.mrb[186].mxu0  ;;  %v7576_v4 = vrot.slane %v13298_v5, 4 }
 0x50d   : > { %16158 = vst [vmem:[#allocation63_spill] sm:$0xff] %v15535_v57  ;;  %v15537_v2 = vpop.f32.mrb[187].mxu0 }
 0x50e   : > { %16159 = vst [vmem:[#allocation64_spill] sm:$0xff] %v15537_v2  ;;  %11980 = vmatmul.mubr.msk.bf16.gmra.mrb[24].mxu1 %vm3078_vm0, %v7571_v58  ;;  %v7577_v60 = vsel %vm7522_vm8, %v7574_v38, %v7576_v4  ;;  %v13299_v58 = vld [vmem:[#allocation2 + $0x1c0] sm:$0xff] }
 0x50f   : > { %11983 = vmatprep.mubr.msk.bf16.mxu1 %vm3078_vm0, %v7573_v10  ;;  %v7578_v10 = vrot.slane %v13299_v58, 4 }
 0x511   : > { %v7579_v9 = vsel %vm7522_vm8, %v7576_v4, %v7578_v10 }
 0x512   : > { %v15543_v26 = vpop.f32.mrb[188].mxu0 }
 0x513   : > { %16160 = vst [vmem:[#allocation65_spill] sm:$0xff] %v15543_v26  ;;  %v15545_v35 = vpop.f32.mrb[189].mxu0  ;;  %v13300_v26 = vld [vmem:[#allocation2 + $0x1d0] sm:$0xff] }
 0x514   : > { %16161 = vst [vmem:[#allocation66_spill] sm:$0xff] %v15545_v35  ;;  %v15547_v39 = vpop.f32.mrb[190].mxu0  ;;  %v7580_v5 = vrot.slane %v13300_v26, 4  ;;  %v7584_v26 = vrot.slane %v15093_v50, 4 }
 0x515   : > { %16162 = vst [vmem:[#allocation67_spill] sm:$0xff] %v15547_v39  ;;  %v15549_v57 = vpop.f32.mrb[191].mxu0 }
 0x516   : > { %16163 = vst [vmem:[#allocation68_spill] sm:$0xff] %v15549_v57  ;;  %11984 = vmatmul.mubr.msk.bf16.gmra.mrb[28].mxu1 %vm3078_vm0, %v7575_v8  ;;  %v7581_v38 = vsel %vm7522_vm8, %v7578_v10, %v7580_v5  ;;  %v13301_v8 = vld [vmem:[#allocation2 + $0x1e0] sm:$0xff] }
 0x517   : > { %11987 = vmatprep.mubr.msk.bf16.mxu1 %vm3078_vm0, %v7577_v60  ;;  %v7582_v60 = vrot.slane %v13301_v8, 4 }
 0x519   : > { %v7583_v4 = vsel %vm7522_vm8, %v7580_v5, %v7582_v60  ;;  %v7585_v10 = vsel %vm7522_vm8, %v7582_v60, %v7584_v26 }
 0x51a   : > { %v15555_v51 = vpop.f32.mrb[128].mxu0 }
 0x51b   : > { %v15557_v2 = vpop.f32.mrb[129].mxu0 }
 0x51c   : > { %v15559_v35 = vpop.f32.mrb[130].mxu0 }
 0x51d   : > { %v15561_v39 = vpop.f32.mrb[131].mxu0 }
 0x51e   : > { %11988 = vmatmul.mubr.msk.bf16.gmra.mrb[32].mxu1 %vm3078_vm0, %v7579_v9  ;;  %v7480_v9 = vld [vmem:[#allocation2 + $0x200] sm:$0xf] }
 0x51f   : > { %11991 = vmatprep.mubr.msk.bf16.mxu1 %vm3078_vm0, %v7581_v38  ;;  %v7586_v38 = vrot.slane %v7480_v9, 4 }
 0x521   : > { %v7587_v0 = vsel %vm7522_vm8, %v7584_v26, %v7586_v38  ;;  %v16165_v26 = vld [vmem:[#allocation46_spill] sm:$0xff] }
 0x522   : > { %v15567_v58 = vpop.f32.mrb[132].mxu0 }
 0x523   : > { %v15570_v57 = vpop.f32.mrb[133].mxu0 }
 0x524   : > { %v15572_v48 = vpop.f32.mrb[134].mxu0 }
 0x525   : > { %v15574_v29 = vpop.f32.mrb[135].mxu0 }
 0x526   : > { %11992 = vmatmul.mubr.msk.bf16.gmra.mrb[36].mxu1 %vm3078_vm0, %v7583_v4 }
 0x527   : > { %11995 = vmatprep.mubr.msk.bf16.mxu1 %vm3078_vm0, %v7585_v10  ;;  %v13252_v10 = vld [vmem:[%s16014_s4 + $0x108] sm:$0xff]  }
 0x52a   : > { %v15580_v8 = vpop.f32.mrb[136].mxu0 }
 0x52b   : > { %v15582_v18 = vpop.f32.mrb[137].mxu0 }
 0x52c   : > { %v15584_v50 = vpop.f32.mrb[138].mxu0 }
 0x52d   : > { %v15586_v23 = vpop.f32.mrb[139].mxu0 }
 0x52e   : > { %11996 = vmatmul.mubr.msk.bf16.gmra.mrb[40].mxu1 %vm3078_vm0, %v7587_v0 }
 0x52f   : > { %12007 = vmatprep.mubr.msk.bf16.mxu1 %vm3078_vm0, %v14993_v46  ;;  %v13253_v46 = vld [vmem:[%s16014_s4 + $0x110] sm:$0xff]  }
 0x532   : > { %v15592_v5 = vpop.f32.mrb[140].mxu0 }
 0x533   : > { %v15594_v60 = vpop.f32.mrb[141].mxu0 }
 0x534   : > { %v15596_v4 = vpop.f32.mrb[142].mxu0 }
 0x535   : > { %v15601_v9 = vpop.f32.mrb[143].mxu0 }
 0x536   : > { %12008 = vmatmul.mubr.msk.bf16.vlgmr.msra.gmra.mrb[44].mxu1 %vm3078_vm0, %v16164_v43  ;;  %v13254_v43 = vld [vmem:[%s16014_s4 + $0x118] sm:$0xff]  }
 0x537   : > { %12011 = vmatprep.mubr.msk.bf16.mxu1 %vm3078_vm0, %v16165_v26  ;;  %12072 = vmatpush3.bf16.msra.mxu1 %v15418_v19  ;;  %v16166_v19 = vld [vmem:[#allocation48_spill] sm:$0xff] }
 0x538   : > { %12073 = vmatprep.subr.bf16.mxu1 %v13252_v10 }
 0x53a   : > { %v15611_v0 = vpop.f32.mrb[144].mxu0 }
 0x53b   : > { %v15613_v38 = vpop.f32.mrb[145].mxu0  ;;  %12074 = vmatpush3.bf16.msra.mxu1 %v13252_v10  ;;  %v16167_v10 = vld [vmem:[#allocation50_spill] sm:$0xff] }
 0x53c   : > { %v15615_v55 = vpop.f32.mrb[146].mxu0  ;;  %12075 = vmatprep.subr.bf16.mxu1 %v13253_v46 }
 0x53d   : > { %v15620_v26 = vpop.f32.mrb[147].mxu0 }
 0x53e   : > { %12012 = vmatmul.mubr.msk.bf16.gmra.mrb[48].mxu1 %vm3078_vm0, %v15026_v13  ;;  %v16169_v13 = vld [vmem:[#allocation53_spill] sm:$0xff] }
 0x53f   : > { %12015 = vmatprep.mubr.msk.bf16.mxu1 %vm3078_vm0, %v16166_v19  ;;  %12076 = vmatpush3.bf16.msra.mxu1 %v13253_v46 }
 0x540   : > { %12077 = vmatprep.subr.bf16.mxu1 %v13254_v43 }
 0x543   : > { %12078 = vmatpush3.bf16.msra.mxu1 %v13254_v43 }
 0x546   : > { %12016 = vmatmul.mubr.msk.bf16.gmra.mrb[52].mxu1 %vm3078_vm0, %v15031_v6  ;;  %v16170_v6 = vld [vmem:[#allocation55_spill] sm:$0xff] }
 0x547   : > { %12019 = vmatprep.mubr.msk.bf16.mxu1 %vm3078_vm0, %v16167_v10 }
 0x54e   : > { %12020 = vmatmul.mubr.msk.bf16.gmra.mrb[56].mxu1 %vm3078_vm0, %v15043_v54  ;;  %v16171_v54 = vld [vmem:[#allocation56_spill] sm:$0xff] }
 0x54f   : > { %12023 = vmatprep.mubr.msk.bf16.mxu1 %vm3078_vm0, %v16168_v56 }
 0x556   : > { %12024 = vmatmul.mubr.msk.bf16.gmra.mrb[60].mxu1 %vm3078_vm0, %v15047_v33  ;;  %v8993_v33 = vld [vmem:[#allocation2] sm:$0xf0] }
 0x557   : > { %12027 = vmatprep.mubr.msk.bf16.mxu1 %vm3078_vm0, %v15045_v24  ;;  %v16172_v24 = vld [vmem:[#allocation58_spill] sm:$0xff] }
 0x55e   : > { %12028 = vmatmul.mubr.msk.bf16.gmra.mrb[0].mxu1 %vm3078_vm0, %v15058_v15 }
 0x55f   : > { %12031 = vmatprep.mubr.msk.bf16.mxu1 %vm3078_vm0, %v16169_v13  ;;  %v16173_v13 = vld [vmem:[#allocation62_spill] sm:$0xff] }
 0x566   : > { %12032 = vmatmul.mubr.msk.bf16.gmra.mrb[4].mxu1 %vm3078_vm0, %v15065_v49  ;;  %v8994_v49 = vld [vmem:[#allocation2 + $0x10] sm:$0xff] }
 0x567   : > { %12035 = vmatprep.mubr.msk.bf16.mxu1 %vm3078_vm0, %v16170_v6  ;;  %v9047_v15 = vshll.u32 %v8994_v49, 16 }
 0x56e   : > { %12036 = vmatmul.mubr.msk.bf16.gmra.mrb[8].mxu1 %vm3078_vm0, %v15080_v61  ;;  %v9044_v61 = vshrl.u32 %v8994_v49, 16 }
 0x56f   : > { %12039 = vmatprep.mubr.msk.bf16.mxu1 %vm3078_vm0, %v16171_v54 }
 0x576   : > { %12040 = vmatmul.mubr.msk.bf16.gmra.mrb[12].mxu1 %vm3078_vm0, %v15087_v45  ;;  %v9036_v45 = vshrl.u32 %v8993_v33, 16 }
 0x577   : > { %12043 = vmatprep.mubr.msk.bf16.mxu1 %vm3078_vm0, %v16172_v24  ;;  %v8997_v24 = vld [vmem:[#allocation2 + $0x40] sm:$0xff] }
 0x57e   : > { %12044 = vmatmul.mubr.msk.bf16.gmra.mrb[16].mxu1 %vm3078_vm0, %v15104_v22  ;;  %v9039_v22 = vshll.u32 %v8993_v33, 16  ;;  %v9071_v33 = vshrl.u32 %v8997_v24, 16 }
 0x57f   : > { %12047 = vmatprep.mubr.msk.bf16.mxu1 %vm3078_vm0, %v15108_v52  ;;  %v9046_v52 = vrot.slane %v9044_v61, 4  ;;  %v9074_v61 = vshll.u32 %v8997_v24, 16  ;;  %v16181_v24 = vld [vmem:[#allocation33_spill] sm:$0xff] }
 0x586   : > { %12048 = vmatmul.mubr.msk.bf16.gmra.mrb[20].mxu1 %vm3078_vm0, %v15127_v59  ;;  %v9049_v59 = vrot.slane %v9047_v15, 5 }
 0x587   : > { %12051 = vmatprep.mubr.msk.bf16.mxu1 %vm3078_vm0, %v15129_v12  ;;  %v8995_v12 = vld [vmem:[#allocation2 + $0x20] sm:$0xff] }
 0x58e   : > { %12052 = vmatmul.mubr.msk.bf16.gmra.mrb[24].mxu1 %vm3078_vm0, %v15143_v34  ;;  %v8996_v34 = vld [vmem:[#allocation2 + $0x30] sm:$0xff] }
 0x58f   : > { %12055 = vmatprep.mubr.msk.bf16.mxu1 %vm3078_vm0, %v15145_v7  ;;  %v9038_v7 = vrot.slane %v9036_v45, 4  ;;  %v9062_v56 = vshrl.u32 %v8996_v34, 16  ;;  %v9065_v46 = vshll.u32 %v8996_v34, 16 }
 0x591   : > { %v9064_v6 = vrot.slane %v9062_v56, 4  ;;  %v9067_v54 = vrot.slane %v9065_v46, 5 }
 0x593   : > { %v9068_v15 = vor.u32 %v9067_v54, %v9064_v6  ;;  %v16179_v6 = vld [vmem:[#allocation31_spill] sm:$0xff]  ;;  %v16180_v54 = vld [vmem:[#allocation32_spill] sm:$0xff] }
 0x596   : > { %12056 = vmatmul.mubr.msk.bf16.gmra.mrb[28].mxu1 %vm3078_vm0, %v15153_v36  ;;  %v9041_v36 = vrot.slane %v9039_v22, 5 }
 0x597   : > { %12059 = vmatprep.mubr.msk.bf16.mxu1 %vm3078_vm0, %v15155_v42  ;;  %v9053_v42 = vshrl.u32 %v8995_v12, 16 }
 0x598   : > { %v9042_v43 = vor.u32 %v9041_v36, %v9038_v7 }
 0x599   : > { %v9055_v19 = vrot.slane %v9053_v42, 4 }
 0x59e   : > { %12060 = vmatmul.mubr.msk.bf16.gmra.mrb[32].mxu1 %vm3078_vm0, %v15163_v27  ;;  %v9056_v27 = vshll.u32 %v8995_v12, 16  ;;  %v9076_v12 = vrot.slane %v9074_v61, 5  ;;  %v16185_v61 = vld [vmem:[#allocation37_spill] sm:$0xff] }
 0x59f   : > { %12063 = vmatprep.mubr.msk.bf16.mxu1 %vm3078_vm0, %v15165_v31  ;;  %v9050_v31 = vor.u32 %v9049_v59, %v9046_v52  ;;  %v9073_v59 = vrot.slane %v9071_v33, 4  ;;  %v16184_v33 = vld [vmem:[#allocation36_spill] sm:$0xff] }
 0x5a0   : > { %v9058_v10 = vrot.slane %v9056_v27, 5 }
 0x5a1   : > { %v9077_v42 = vor.u32 %v9076_v12, %v9073_v59  ;;  %v16190_v59 = vld [vmem:[#allocation42_spill] sm:$0xff]  ;;  %v16191_v12 = vld [vmem:[#allocation43_spill] sm:$0xff] }
 0x5a2   : > { %v9059_v49 = vor.u32 %v9058_v10, %v9055_v19  ;;  %v16175_v19 = vld [vmem:[#allocation27_spill] sm:$0xff]  ;;  %v16176_v10 = vld [vmem:[#allocation28_spill] sm:$0xff] }
 0x5a3   : > { %v9078_v56 = vsel %vm9034_vm1, %v9068_v15, %v9077_v42 }
 0x5a4   : > { %v9060_v52 = vsel %vm9034_vm1, %v9050_v31, %v9059_v49  ;;  %v9069_v34 = vsel %vm9034_vm1, %v9059_v49, %v9068_v15  ;;  %v16183_v49 = vld [vmem:[#allocation35_spill] sm:$0xff]  ;;  %v16186_v15 = vld [vmem:[#allocation38_spill] sm:$0xff] }
 0x5a6   : > { %12064 = vmatmul.mubr.msk.bf16.gmra.mrb[36].mxu1 %vm3078_vm0, %v15173_v47  ;;  %v9051_v47 = vsel %vm9034_vm1, %v9042_v43, %v9050_v31  ;;  %v16174_v31 = vld [vmem:[#allocation26_spill] sm:$0xff] }
 0x5a7   : > { %12067 = vmatprep.mubr.msk.bf16.mxu1 %vm3078_vm0, %v15175_v32  ;;  %v8998_v32 = vld [vmem:[#allocation2 + $0x50] sm:$0xff] }
 0x5a8   : > { %v9080_v45 = vshrl.u32 %v8998_v32, 16  ;;  %v9083_v22 = vshll.u32 %v8998_v32, 16  ;;  %v16182_v32 = vld [vmem:[#allocation34_spill] sm:$0xff] }
 0x5aa   : > { %v9082_v7 = vrot.slane %v9080_v45, 4  ;;  %v9085_v36 = vrot.slane %v9083_v22, 5  ;;  %v16187_v45 = vld [vmem:[#allocation39_spill] sm:$0xff]  ;;  %v16188_v22 = vld [vmem:[#allocation40_spill] sm:$0xff] }
 0x5ac   : > { %v9086_v27 = vor.u32 %v9085_v36, %v9082_v7  ;;  %v16193_v7 = vld [vmem:[#allocation45_spill] sm:$0xff] }
 0x5ad   : > { %v16194_v36 = vld [vmem:[#allocation49_spill] sm:$0xff] }
 0x5ae   : > { %12068 = vmatmul.mubr.msk.bf16.gmra.mrb[40].mxu1 %vm3078_vm0, %v16173_v13  ;;  %v9087_v46 = vsel %vm9034_vm1, %v9077_v42, %v9086_v27  ;;  %v9096_v43 = vsel %vm9034_vm1, %v9086_v27, %v16174_v31  ;;  %v16177_v13 = vld [vmem:[#allocation29_spill] sm:$0xff]  ;;  %v16195_v42 = vld [vmem:[#allocation52_spill] sm:$0xff]  ;;  %v16196_v27 = vld [vmem:[#allocation54_spill] sm:$0xff] }
 0x5af   : > { %12079 = vmatprep.mubr.msk.bf16.mxu1 %vm3078_vm0, %v9051_v47  ;;  %v16178_v47 = vld [vmem:[#allocation30_spill] sm:$0xff] }
 0x5b6   : > { %12080 = vmatmul.mubr.msk.bf16.vlgmr.msra.gmra.mrb[44].mxu1 %vm3078_vm0, %v9060_v52  ;;  %v16189_v52 = vld [vmem:[#allocation41_spill] sm:$0xff] }
 0x5b7   : > { %12083 = vmatprep.mubr.msk.bf16.mxu1 %vm3078_vm0, %v9069_v34  ;;  %v16192_v34 = vld [vmem:[#allocation44_spill] sm:$0xff] }
 0x5be   : > { %12084 = vmatmul.mubr.msk.bf16.gmra.mrb[48].mxu1 %vm3078_vm0, %v9078_v56  ;;  %v9025_v56 = vld [vmem:[#allocation2 + $0x200] sm:$0x1f] }
 0x5bf   : > { %12087 = vmatprep.mubr.msk.bf16.mxu1 %vm3078_vm0, %v9087_v46  ;;  %v16197_v46 = vld [vmem:[#allocation57_spill] sm:$0xff]  ;;  %v9323_v31 = vshrl.u32 %v9025_v56, 16 }
 0x5c6   : > { %12088 = vmatmul.mubr.msk.bf16.gmra.mrb[52].mxu1 %vm3078_vm0, %v9096_v43  ;;  %v9326_v43 = vshll.u32 %v9025_v56, 16 }
 0x5c7   : > { %12091 = vmatprep.mubr.msk.bf16.mxu1 %vm3078_vm0, %v16175_v19  ;;  %v9325_v19 = vrot.slane %v9323_v31, 4 }
 0x5ce   : > { %12092 = vmatmul.mubr.msk.bf16.gmra.mrb[56].mxu1 %vm3078_vm0, %v16176_v10  ;;  %v9328_v10 = vrot.slane %v9326_v43, 5 }
 0x5cf   : > { %12095 = vmatprep.mubr.msk.bf16.mxu1 %vm3078_vm0, %v16177_v13  ;;  %v16198_v13 = vld [vmem:[#allocation59_spill] sm:$0xff] }
 0x5d6   : > { %12096 = vmatmul.mubr.msk.bf16.gmra.mrb[60].mxu1 %vm3078_vm0, %v16178_v47  ;;  %v16199_v47 = vld [vmem:[#allocation61_spill] sm:$0xff] }
 0x5d7   : > { %12099 = vmatprep.mubr.msk.bf16.mxu1 %vm3078_vm0, %v16179_v6  ;;  %v9329_v6 = vor.u32 %v9328_v10, %v9325_v19  ;;  %v15774_v10 = vld [vmem:[%s16016_s6] sm:$0xff] }
 0x5de   : > { %12100 = vmatmul.mubr.msk.bf16.gmra.mrb[0].mxu1 %vm3078_vm0, %v16180_v54  ;;  %v16200_v54 = vld [vmem:[#allocation60_spill] sm:$0xff] }
 0x5df   : > { %12103 = vmatprep.mubr.msk.bf16.mxu1 %vm3078_vm0, %v16181_v24  ;;  %v9330_v24 = vsel %vm9034_vm1, %v16200_v54, %v9329_v6 }
 0x5e6   : > { %12104 = vmatmul.mubr.msk.bf16.gmra.mrb[4].mxu1 %vm3078_vm0, %v16182_v32 }
 0x5e7   : > { %12107 = vmatprep.mubr.msk.bf16.mxu1 %vm3078_vm0, %v16183_v49  ;;  %v15749_v49 = vld [vmem:[%s16015_s5] ss:$0 sm:$0xff] }
 0x5ee   : > { %12108 = vmatmul.mubr.msk.bf16.gmra.mrb[8].mxu1 %vm3078_vm0, %v16184_v33 }
 0x5ef   : > { %12111 = vmatprep.mubr.msk.bf16.mxu1 %vm3078_vm0, %v16185_v61 }
 0x5f6   : > { %12112 = vmatmul.mubr.msk.bf16.gmra.mrb[12].mxu1 %vm3078_vm0, %v16186_v15 }
 0x5f7   : > { %12115 = vmatprep.mubr.msk.bf16.mxu1 %vm3078_vm0, %v16187_v45 }
 0x5fe   : > { %12116 = vmatmul.mubr.msk.bf16.gmra.mrb[16].mxu1 %vm3078_vm0, %v16188_v22 }
 0x5ff   : > { %12119 = vmatprep.mubr.msk.bf16.mxu1 %vm3078_vm0, %v16189_v52 }
 0x606   : > { %12120 = vmatmul.mubr.msk.bf16.gmra.mrb[20].mxu1 %vm3078_vm0, %v16190_v59 }
 0x607   : > { %12123 = vmatprep.mubr.msk.bf16.mxu1 %vm3078_vm0, %v16191_v12 }
 0x60e   : > { %12124 = vmatmul.mubr.msk.bf16.gmra.mrb[24].mxu1 %vm3078_vm0, %v16192_v34 }
 0x60f   : > { %12127 = vmatprep.mubr.msk.bf16.mxu1 %vm3078_vm0, %v16193_v7 }
 0x616   : > { %12128 = vmatmul.mubr.msk.bf16.gmra.mrb[28].mxu1 %vm3078_vm0, %v16194_v36  ;;  %v15761_v36 = vld [vmem:[%s16016_s6 + $0x10] sm:$0xff] }
 0x617   : > { %12131 = vmatprep.mubr.msk.bf16.mxu1 %vm3078_vm0, %v16195_v42 }
 0x61e   : > { %12132 = vmatmul.mubr.msk.bf16.gmra.mrb[32].mxu1 %vm3078_vm0, %v16196_v27 }
 0x61f   : > { %12135 = vmatprep.mubr.msk.bf16.mxu1 %vm3078_vm0, %v16197_v46 }
 0x626   : > { %12136 = vmatmul.mubr.msk.bf16.gmra.mrb[36].mxu1 %vm3078_vm0, %v16198_v13 }
 0x627   : > { %12139 = vmatprep.mubr.msk.bf16.mxu1 %vm3078_vm0, %v16199_v47 }
 0x62e   : > { %12140 = vmatmul.mubr.msk.bf16.gmra.mrb[40].mxu1 %vm3078_vm0, %v9330_v24 }
 0x689   : > { %v12081_v32 = vpop.f32.mrb[44].mxu1 }
 0x68a   : > { %v12279_v33 = vadd.f32 %v12081_v32, %v15555_v51  ;;  %v9485_v61 = vpop.f32.mrb[45].mxu1 }
 0x68b   : > { %v12280_v15 = vadd.f32 %v9485_v61, %v15557_v2  ;;  %v12082_v45 = vpop.f32.mrb[46].mxu1 }
 0x68c   : > { %v9957_v22 = vadd.f32 %v12279_v33, %v15749_v49  ;;  %v12281_v52 = vadd.f32 %v12082_v45, %v15559_v35  ;;  %v9488_v59 = vpop.f32.mrb[47].mxu1 }
 0x68d   : > { %v9955_v12 = vadd.f32 %v12280_v15, %v15749_v49  ;;  %v12282_v34 = vadd.f32 %v9488_v59, %v15561_v39  ;;  %v15768_v39 = vld [vmem:[%s16016_s6 + $0x8] sm:$0xff]  ;;  %v15793_v59 = vld [vmem:[%s16016_s6 + $0x30] sm:$0xff] }
 0x68e   : > { %v9958_v7 = vadd.f32 %v12281_v52, %v15749_v49  ;;  %vm9965_vm0 = vcmp.ge.f32.partialorder %v9957_v22, 0.0  ;;  %v9973_v51 = vmul.f32 0.2, %v9957_v22  ;;  %v15787_v52 = vld [vmem:[%s16016_s6 + $0x18] sm:$0xff] }
 0x68f   : > { %vm9963_vm7 = vcmp.ge.f32.partialorder %v9955_v12, 0.0  ;;  %v9971_v2 = vmul.f32 0.2, %v9955_v12  ;;  %v9956_v42 = vadd.f32 %v12282_v34, %v15749_v49 }
 0x690   : > { %v9981_v27 = vsel %vm9965_vm0, %v9957_v22, %v9973_v51  ;;  %v9974_v31 = vmul.f32 0.2, %v9958_v7  ;;  %vm9966_vm2 = vcmp.ge.f32.partialorder %v9958_v7, 0.0 }
 0x691   : > { %v12085_v35 = vpop.f32.mrb[48].mxu1  ;;  %v9989_v56 = vmul.f32 %v9981_v27, %v15761_v36  ;;  %vm9964_vm8 = vcmp.ge.f32.partialorder %v9956_v42, 0.0  ;;  %v9972_v46 = vmul.f32 0.2, %v9956_v42  ;;  %v9979_v13 = vsel %vm9963_vm7, %v9955_v12, %v9971_v2 }
 0x692   : > { %v12283_v43 = vadd.f32 %v12085_v35, %v15567_v58  ;;  %v9501_v19 = vpop.f32.mrb[49].mxu1  ;;  %v9987_v45 = vmul.f32 %v9979_v13, %v15774_v10 }
 0x693   : > { %v12284_v47 = vadd.f32 %v9501_v19, %v15570_v57  ;;  %v12086_v6 = vpop.f32.mrb[50].mxu1  ;;  %9999 = vadd.xlane.f32.xlu0 %v9989_v56  ;;  %v9980_v54 = vsel %vm9964_vm8, %v9956_v42, %v9972_v46  ;;  %v15802_v46 = vld [vmem:[%s16016_s6 + $0x20] sm:$0xff] }
 0x694   : > { %v9961_v24 = vadd.f32 %v12283_v43, %v15749_v49  ;;  %v12285_v32 = vadd.f32 %v12086_v6, %v15572_v48  ;;  %v9504_v33 = vpop.f32.mrb[51].mxu1  ;;  %v9988_v58 = vmul.f32 %v9980_v54, %v15768_v39  ;;  %v9982_v48 = vsel %vm9966_vm2, %v9958_v7, %v9974_v31  ;;  %v15807_v43 = vld [vmem:[%s16016_s6 + $0x38] sm:$0xff] }
 0x695   : > { %v9959_v61 = vadd.f32 %v12284_v47, %v15749_v49  ;;  %v12286_v15 = vadd.f32 %v9504_v33, %v15574_v29  ;;  %v9990_v42 = vmul.f32 %v9982_v48, %v15787_v52 }
 0x696   : > { %vm9969_vm3 = vcmp.ge.f32.partialorder %v9961_v24, 0.0  ;;  %v9977_v22 = vmul.f32 0.2, %v9961_v24  ;;  %v9962_v57 = vadd.f32 %v12285_v32, %v15749_v49  ;;  %9997 = vadd.xlane.f32.xlu1 %v9988_v58 }
 0x697   : > { %vm9967_vm4 = vcmp.ge.f32.partialorder %v9959_v61, 0.0  ;;  %v9975_v29 = vmul.f32 0.2, %v9959_v61  ;;  %v9960_v12 = vadd.f32 %v12286_v15, %v15749_v49  ;;  %9995 = vadd.xlane.f32.xlu0 %v9987_v45  ;;  %v15820_v15 = vld [vmem:[%s16016_s6 + $0x28] sm:$0xff] }
 0x698   : > { %vm9970_vm5 = vcmp.ge.f32.partialorder %v9962_v57, 0.0  ;;  %v9978_v34 = vmul.f32 0.2, %v9962_v57  ;;  %v9985_v51 = vsel %vm9969_vm3, %v9961_v24, %v9977_v22 }
 0x699   : > { %v12089_v2 = vpop.f32.mrb[52].mxu1  ;;  %v9993_v27 = vmul.f32 %v9985_v51, %v15793_v59  ;;  %v9976_v35 = vmul.f32 0.2, %v9960_v12  ;;  %v9983_v31 = vsel %vm9967_vm4, %v9959_v61, %v9975_v29  ;;  %vm9968_vm6 = vcmp.ge.f32.partialorder %v9960_v12, 0.0 }
 0x69a   : > { %v12287_v7 = vadd.f32 %v12089_v2, %v15580_v8  ;;  %v9517_v56 = vpop.f32.mrb[53].mxu1  ;;  %v9986_v19 = vsel %vm9970_vm5, %v9962_v57, %v9978_v34  ;;  %v9991_v33 = vmul.f32 %v9983_v31, %v15802_v46 }
 0x69b   : > { %v12288_v13 = vadd.f32 %v9517_v56, %v15582_v18  ;;  %v12090_v47 = vpop.f32.mrb[54].mxu1  ;;  %10001 = vadd.xlane.f32.xlu0 %v9990_v42  ;;  %10007 = vadd.xlane.f32.xlu1 %v9993_v27  ;;  %v9994_v58 = vmul.f32 %v9986_v19, %v15807_v43 }
 0x69c   : > { %v10034_v8 = vadd.f32 %v12287_v7, %v15749_v49  ;;  %v12289_v6 = vadd.f32 %v12090_v47, %v15584_v50  ;;  %v9520_v54 = vpop.f32.mrb[55].mxu1  ;;  %v9984_v50 = vsel %vm9968_vm6, %v9960_v12, %v9976_v35 }
 0x69d   : > { %v10032_v24 = vadd.f32 %v12288_v13, %v15749_v49  ;;  %v12290_v32 = vadd.f32 %v9520_v54, %v15586_v23  ;;  %v9992_v29 = vmul.f32 %v9984_v50, %v15820_v15 }
 0x69e   : > { %vm10042_vm9 = vcmp.ge.f32.partialorder %v10034_v8, 0.0  ;;  %v10050_v61 = vmul.f32 0.2, %v10034_v8  ;;  %v10035_v18 = vadd.f32 %v12289_v6, %v15749_v49 }
 0x69f   : > { %vm10040_vm10 = vcmp.ge.f32.partialorder %v10032_v24, 0.0  ;;  %v10048_v45 = vmul.f32 0.2, %v10032_v24  ;;  %v10033_v22 = vadd.f32 %v12290_v32, %v15749_v49  ;;  %10003 = vadd.xlane.f32.xlu1 %v9991_v33  ;;  %10009 = vadd.xlane.f32.xlu0 %v9994_v58 }
 0x6a0   : > { %v10058_v23 = vsel %vm10042_vm9, %v10034_v8, %v10050_v61  ;;  %v10051_v51 = vmul.f32 0.2, %v10035_v18  ;;  %vm10043_vm12 = vcmp.ge.f32.partialorder %v10035_v18, 0.0 }
 0x6a1   : > { %vm10041_vm11 = vcmp.ge.f32.partialorder %v10033_v22, 0.0  ;;  %v10049_v57 = vmul.f32 0.2, %v10033_v22  ;;  %v12093_v48 = vpop.f32.mrb[56].mxu1  ;;  %v10066_v34 = vmul.f32 %v10058_v23, %v15761_v36  ;;  %v10056_v27 = vsel %vm10040_vm10, %v10032_v24, %v10048_v45 }
 0x6a2   : > { %v12291_v2 = vadd.f32 %v12093_v48, %v15592_v5  ;;  %v9533_v42 = vpop.f32.mrb[57].mxu1  ;;  %v10064_v8 = vmul.f32 %v10056_v27, %v15774_v10  ;;  %v10059_v54 = vsel %vm10043_vm12, %v10035_v18, %v10051_v51 }
 0x6a3   : > { %v12292_v12 = vadd.f32 %v9533_v42, %v15594_v60  ;;  %v12094_v35 = vpop.f32.mrb[58].mxu1  ;;  %10005 = vadd.xlane.f32.xlu0 %v9992_v29  ;;  %10076 = vadd.xlane.f32.xlu1 %v10066_v34  ;;  %v10057_v7 = vsel %vm10041_vm11, %v10033_v22, %v10049_v57  ;;  %v10067_v61 = vmul.f32 %v10059_v54, %v15787_v52 }
 0x6a4   : > { %v10038_v56 = vadd.f32 %v12291_v2, %v15749_v49  ;;  %v12293_v31 = vadd.f32 %v12094_v35, %v15596_v4  ;;  %v9536_v19 = vpop.f32.mrb[59].mxu1  ;;  %v10065_v13 = vmul.f32 %v10057_v7, %v15768_v39 }
 0x6a5   : > { %v10036_v47 = vadd.f32 %v12292_v12, %v15749_v49  ;;  %v12294_v5 = vadd.f32 %v9536_v19, %v15601_v9 }
 0x6a6   : > { %vm10046_vm13 = vcmp.ge.f32.partialorder %v10038_v56, 0.0  ;;  %v10054_v6 = vmul.f32 0.2, %v10038_v56  ;;  %v10039_v60 = vadd.f32 %v12293_v31, %v15749_v49 }
 0x6a7   : > { %vm10044_vm14 = vcmp.ge.f32.partialorder %v10036_v47, 0.0  ;;  %v10052_v24 = vmul.f32 0.2, %v10036_v47  ;;  %10072 = vadd.xlane.f32.xlu1 %v10064_v8  ;;  %10074 = vadd.xlane.f32.xlu0 %v10065_v13  ;;  %v10037_v4 = vadd.f32 %v12294_v5, %v15749_v49 }
 0x6a8   : > { %v10062_v32 = vsel %vm10046_vm13, %v10038_v56, %v10054_v6  ;;  %v10055_v33 = vmul.f32 0.2, %v10039_v60  ;;  %vm10047_vm15 = vcmp.ge.f32.partialorder %v10039_v60, 0.0 }
 0x6a9   : > { %v12097_v58 = vpop.f32.mrb[60].mxu1  ;;  %v10070_v9 = vmul.f32 %v10062_v32, %v15793_v59  ;;  %v10060_v22 = vsel %vm10044_vm14, %v10036_v47, %v10052_v24  ;;  %v10053_v57 = vmul.f32 0.2, %v10037_v4  ;;  %vm10045_vm1 = vcmp.ge.f32.partialorder %v10037_v4, 0.0 }
 0x6aa   : > { %v12295_v50 = vadd.f32 %v12097_v58, %v15611_v0  ;;  %v9549_v45 = vpop.f32.mrb[61].mxu1  ;;  %v10068_v2 = vmul.f32 %v10060_v22, %v15802_v46  ;;  %v10063_v42 = vsel %vm10047_vm15, %v10039_v60, %v10055_v33 }
 0x6ab   : > { %v12296_v18 = vadd.f32 %v9549_v45, %v15613_v38  ;;  %v12098_v23 = vpop.f32.mrb[62].mxu1  ;;  %10078 = vadd.xlane.f32.xlu1 %v10067_v61  ;;  %10084 = vadd.xlane.f32.xlu0 %v10070_v9  ;;  %v10071_v12 = vmul.f32 %v10063_v42, %v15807_v43  ;;  %v10061_v7 = vsel %vm10045_vm1, %v10037_v4, %v10053_v57 }
 0x6ac   : > { %v10111_v48 = vadd.f32 %v12295_v50, %v15749_v49  ;;  %v12297_v29 = vadd.f32 %v12098_v23, %v15615_v55  ;;  %v9552_v34 = vpop.f32.mrb[63].mxu1  ;;  %v10069_v4 = vmul.f32 %v10061_v7, %v15820_v15 }
 0x6ad   : > { %v12298_v51 = vadd.f32 %v9552_v34, %v15620_v26  ;;  %v10109_v27 = vadd.f32 %v12296_v18, %v15749_v49 }
 0x6ae   : > { %vm10119_vm0 = vcmp.ge.f32.partialorder %v10111_v48, 0.0  ;;  %v10127_v0 = vmul.f32 0.2, %v10111_v48  ;;  %v10112_v55 = vadd.f32 %v12297_v29, %v15749_v49 }
 0x6af   : > { %v10110_v38 = vadd.f32 %v12298_v51, %v15749_v49  ;;  %10080 = vadd.xlane.f32.xlu1 %v10068_v2  ;;  %v10125_v19 = vmul.f32 0.2, %v10109_v27  ;;  %vm10117_vm8 = vcmp.ge.f32.partialorder %v10109_v27, 0.0 }
 0x6b0   : > { %v10135_v35 = vsel %vm10119_vm0, %v10111_v48, %v10127_v0  ;;  %vm10120_vm2 = vcmp.ge.f32.partialorder %v10112_v55, 0.0  ;;  %v10128_v33 = vmul.f32 0.2, %v10112_v55 }
 0x6b1   : > { %vm10118_vm7 = vcmp.ge.f32.partialorder %v10110_v38, 0.0  ;;  %v10126_v56 = vmul.f32 0.2, %v10110_v38  ;;  %v12101_v31 = vpop.f32.mrb[0].mxu1  ;;  %v10143_v26 = vmul.f32 %v10135_v35, %v15761_v36  ;;  %v10133_v9 = vsel %vm10117_vm8, %v10109_v27, %v10125_v19 }
 0x6b2   : > { %v12299_v13 = vadd.f32 %v12101_v31, %v15420_v53  ;;  %v9565_v47 = vpop.f32.mrb[1].mxu1  ;;  %v10141_v18 = vmul.f32 %v10133_v9, %v15774_v10 }
 0x6b3   : > { %v12300_v5 = vadd.f32 %v9565_v47, %v15422_v28  ;;  %v12102_v8 = vpop.f32.mrb[2].mxu1  ;;  %10086 = vadd.xlane.f32.xlu1 %v10071_v12  ;;  %10153 = vadd.xlane.f32.xlu0 %v10143_v26  ;;  %v10134_v6 = vsel %vm10118_vm7, %v10110_v38, %v10126_v56 }
 0x6b4   : > { %v10115_v60 = vadd.f32 %v12299_v13, %v15749_v49  ;;  %v12301_v54 = vadd.f32 %v12102_v8, %v15424_v3  ;;  %v9568_v24 = vpop.f32.mrb[3].mxu1  ;;  %v10142_v32 = vmul.f32 %v10134_v6, %v15768_v39 }
 0x6b5   : > { %v10113_v53 = vadd.f32 %v12300_v5, %v15749_v49  ;;  %v12302_v58 = vadd.f32 %v9568_v24, %v15427_v17  ;;  %v10136_v17 = vsel %vm10120_vm2, %v10112_v55, %v10128_v33 }
 0x6b6   : > { %vm10123_vm3 = vcmp.ge.f32.partialorder %v10115_v60, 0.0  ;;  %v10131_v28 = vmul.f32 0.2, %v10115_v60  ;;  %v10116_v61 = vadd.f32 %v12301_v54, %v15749_v49  ;;  %v10144_v38 = vmul.f32 %v10136_v17, %v15787_v52 }
 0x6b7   : > { %vm10121_vm4 = vcmp.ge.f32.partialorder %v10113_v53, 0.0  ;;  %v10129_v50 = vmul.f32 0.2, %v10113_v53  ;;  %10082 = vadd.xlane.f32.xlu1 %v10069_v4  ;;  %10151 = vadd.xlane.f32.xlu0 %v10142_v32  ;;  %v10114_v3 = vadd.f32 %v12302_v58, %v15749_v49 }
 0x6b8   : > { %v10139_v45 = vsel %vm10123_vm3, %v10115_v60, %v10131_v28  ;;  %v10132_v57 = vmul.f32 0.2, %v10116_v61  ;;  %vm10124_vm5 = vcmp.ge.f32.partialorder %v10116_v61, 0.0 }
 0x6b9   : > { %v12105_v22 = vpop.f32.mrb[4].mxu1  ;;  %v10147_v23 = vmul.f32 %v10139_v45, %v15793_v59  ;;  %v10137_v34 = vsel %vm10121_vm4, %v10113_v53, %v10129_v50  ;;  %vm10122_vm6 = vcmp.ge.f32.partialorder %v10114_v3, 0.0  ;;  %v10130_v12 = vmul.f32 0.2, %v10114_v3 }
 0x6ba   : > { %v12303_v48 = vadd.f32 %v12105_v22, %v15433_v40  ;;  %v9581_v29 = vpop.f32.mrb[5].mxu1  ;;  %v10145_v7 = vmul.f32 %v10137_v34, %v15802_v46  ;;  %v10140_v56 = vsel %vm10124_vm5, %v10116_v61, %v10132_v57 }
 0x6bb   : > { %v12304_v51 = vadd.f32 %v9581_v29, %v15435_v1  ;;  %v12106_v2 = vpop.f32.mrb[6].mxu1  ;;  %10149 = vadd.xlane.f32.xlu1 %v10141_v18  ;;  %10161 = vadd.xlane.f32.xlu0 %v10147_v23  ;;  %v10148_v13 = vmul.f32 %v10140_v56, %v15807_v43  ;;  %v10138_v47 = vsel %vm10122_vm6, %v10114_v3, %v10130_v12 }
 0x6bc   : > { %v10188_v42 = vadd.f32 %v12303_v48, %v15749_v49  ;;  %v12305_v0 = vadd.f32 %v12106_v2, %v15437_v14  ;;  %v9584_v27 = vpop.f32.mrb[7].mxu1  ;;  %v10146_v28 = vmul.f32 %v10138_v47, %v15820_v15 }
 0x6bd   : > { %v10186_v35 = vadd.f32 %v12304_v51, %v15749_v49  ;;  %v12306_v40 = vadd.f32 %v9584_v27, %v15439_v20 }
 0x6be   : > { %vm10196_vm9 = vcmp.ge.f32.partialorder %v10188_v42, 0.0  ;;  %v10204_v1 = vmul.f32 0.2, %v10188_v42  ;;  %v10189_v55 = vadd.f32 %v12305_v0, %v15749_v49 }
 0x6bf   : > { %vm10194_vm10 = vcmp.ge.f32.partialorder %v10186_v35, 0.0  ;;  %v10202_v31 = vmul.f32 0.2, %v10186_v35  ;;  %v10187_v14 = vadd.f32 %v12306_v40, %v15749_v49  ;;  %10155 = vadd.xlane.f32.xlu1 %v10144_v38  ;;  %10157 = vadd.xlane.f32.xlu0 %v10145_v7 }
 0x6c0   : > { %v10212_v26 = vsel %vm10196_vm9, %v10188_v42, %v10204_v1  ;;  %v10205_v5 = vmul.f32 0.2, %v10189_v55  ;;  %vm10197_vm11 = vcmp.ge.f32.partialorder %v10189_v55, 0.0 }
 0x6c1   : > { %v12109_v19 = vpop.f32.mrb[8].mxu1  ;;  %v10220_v20 = vmul.f32 %v10212_v26, %v15761_v36  ;;  %v10203_v8 = vmul.f32 0.2, %v10187_v14  ;;  %v10210_v54 = vsel %vm10194_vm10, %v10186_v35, %v10202_v31  ;;  %vm10195_vm12 = vcmp.ge.f32.partialorder %v10187_v14, 0.0 }
 0x6c2   : > { %v12307_v6 = vadd.f32 %v12109_v19, %v15445_v25  ;;  %v9597_v60 = vpop.f32.mrb[9].mxu1  ;;  %v10218_v25 = vmul.f32 %v10210_v54, %v15774_v10  ;;  %v10213_v3 = vsel %vm10197_vm11, %v10189_v55, %v10205_v5 }
 0x6c3   : > { %v12308_v24 = vadd.f32 %v9597_v60, %v15447_v37  ;;  %v12110_v4 = vpop.f32.mrb[10].mxu1  ;;  %10163 = vadd.xlane.f32.xlu1 %v10148_v13  ;;  %10230 = vadd.xlane.f32.xlu0 %v10220_v20  ;;  %v10211_v50 = vsel %vm10195_vm12, %v10187_v14, %v10203_v8  ;;  %v16201_v8 = vld [vmem:[#allocation23_spill] sm:$0xff] }
 0x6c4   : > { %v10192_v32 = vadd.f32 %v12307_v6, %v15749_v49  ;;  %v12309_v33 = vadd.f32 %v12110_v4, %v15449_v41  ;;  %v9600_v53 = vpop.f32.mrb[11].mxu1  ;;  %v10219_v22 = vmul.f32 %v10211_v50, %v15768_v39 }
 0x6c5   : > { %v12310_v58 = vadd.f32 %v9600_v53, %v15451_v16  ;;  %v10190_v9 = vadd.f32 %v12308_v24, %v15749_v49  ;;  %v10221_v16 = vmul.f32 %v10213_v3, %v15787_v52  ;;  %v16202_v24 = vld [vmem:[#allocation16_spill] sm:$0xff] }
 0x6c6   : > { %v10208_v61 = vmul.f32 0.2, %v10192_v32  ;;  %vm10200_vm13 = vcmp.ge.f32.partialorder %v10192_v32, 0.0  ;;  %v10193_v23 = vadd.f32 %v12309_v33, %v15749_v49 }
 0x6c7   : > { %v10191_v37 = vadd.f32 %v12310_v58, %v15749_v49  ;;  %10159 = vadd.xlane.f32.xlu1 %v10146_v28  ;;  %10226 = vadd.xlane.f32.xlu0 %v10218_v25  ;;  %v10206_v18 = vmul.f32 0.2, %v10190_v9  ;;  %vm10198_vm15 = vcmp.ge.f32.partialorder %v10190_v9, 0.0 }
 0x6c8   : > { %v10216_v48 = vsel %vm10200_vm13, %v10192_v32, %v10208_v61  ;;  %v10209_v35 = vmul.f32 0.2, %v10193_v23  ;;  %vm10201_vm1 = vcmp.ge.f32.partialorder %v10193_v23, 0.0 }
 0x6c9   : > { %vm10199_vm14 = vcmp.ge.f32.partialorder %v10191_v37, 0.0  ;;  %v10207_v45 = vmul.f32 0.2, %v10191_v37  ;;  %v12113_v41 = vpop.f32.mrb[12].mxu1  ;;  %v10224_v12 = vmul.f32 %v10216_v48, %v15793_v59  ;;  %v10214_v40 = vsel %vm10198_vm15, %v10190_v9, %v10206_v18  ;;  %v16204_v18 = vld [vmem:[#allocation7_spill] sm:$0xff] }
 0x6ca   : > { %v12311_v17 = vadd.f32 %v12113_v41, %v15459_v30  ;;  %v9613_v57 = vpop.f32.mrb[13].mxu1  ;;  %v10222_v31 = vmul.f32 %v10214_v40, %v15802_v46  ;;  %v10217_v13 = vsel %vm10201_vm1, %v10193_v23, %v10209_v35 }
 0x6cb   : > { %v12312_v29 = vadd.f32 %v9613_v57, %v15461_v62  ;;  %v12114_v34 = vpop.f32.mrb[14].mxu1  ;;  %10228 = vadd.xlane.f32.xlu1 %v10219_v22  ;;  %10232 = vadd.xlane.f32.xlu0 %v10221_v16  ;;  %v10215_v51 = vsel %vm10199_vm14, %v10191_v37, %v10207_v45  ;;  %v10225_v32 = vmul.f32 %v10217_v13, %v15807_v43  ;;  %v16203_v45 = vld [vmem:[#allocation17_spill] sm:$0xff] }
 0x6cc   : > { %v12313_v2 = vadd.f32 %v12114_v34, %v15463_v11  ;;  %v9616_v42 = vpop.f32.mrb[15].mxu1  ;;  %v10223_v0 = vmul.f32 %v10215_v51, %v15820_v15  ;;  %v10265_v27 = vadd.f32 %v12311_v17, %v15749_v49  ;;  %v16208_v13 = vld [vmem:[#allocation9_spill] sm:$0xff] }
 0x6cd   : > { %v10263_v38 = vadd.f32 %v12312_v29, %v15749_v49  ;;  %v12314_v30 = vadd.f32 %v9616_v42, %v15465_v63  ;;  %v16205_v29 = vld [vmem:[#allocation8_spill] sm:$0xff] }
 0x6ce   : > { %v10266_v62 = vadd.f32 %v12313_v2, %v15749_v49  ;;  %v10281_v1 = vmul.f32 0.2, %v10265_v27  ;;  %vm10273_vm8 = vcmp.ge.f32.partialorder %v10265_v27, 0.0 }
 0x6cf   : > { %vm10271_vm0 = vcmp.ge.f32.partialorder %v10263_v38, 0.0  ;;  %v10279_v7 = vmul.f32 0.2, %v10263_v38  ;;  %10236 = vadd.xlane.f32.xlu1 %v10223_v0  ;;  %10238 = vadd.xlane.f32.xlu0 %v10224_v12  ;;  %v10264_v55 = vadd.f32 %v12314_v30, %v15749_v49  ;;  %v16206_v0 = vld [vmem:[#allocation18_spill] sm:$0xff] }
 0x6d0   : > { %vm10274_vm7 = vcmp.ge.f32.partialorder %v10266_v62, 0.0  ;;  %v10282_v11 = vmul.f32 0.2, %v10266_v62 }
 0x6d1   : > { %v12117_v56 = vpop.f32.mrb[16].mxu1  ;;  %v10287_v63 = vsel %vm10271_vm0, %v10263_v38, %v10279_v7  ;;  %v10280_v54 = vmul.f32 0.2, %v10264_v55  ;;  %vm10272_vm2 = vcmp.ge.f32.partialorder %v10264_v55, 0.0 }
 0x6d2   : > { %v12315_v14 = vadd.f32 %v12117_v56, %v15471_v21  ;;  %v9629_v26 = vpop.f32.mrb[17].mxu1  ;;  %v10295_v19 = vmul.f32 %v10287_v63, %v15774_v10  ;;  %v10290_v5 = vsel %vm10274_vm7, %v10266_v62, %v10282_v11  ;;  %v10289_v21 = vsel %vm10273_vm8, %v10265_v27, %v10281_v1  ;;  %v16207_v63 = vld [vmem:[#allocation19_spill] sm:$0xff] }
 0x6d3   : > { %v12316_v20 = vadd.f32 %v9629_v26, %v15473_v44  ;;  %v12118_v47 = vpop.f32.mrb[18].mxu1  ;;  %10234 = vadd.xlane.f32.xlu0 %v10222_v31  ;;  %v10298_v44 = vmul.f32 %v10290_v5, %v15787_v52  ;;  %v10297_v9 = vmul.f32 %v10289_v21, %v15761_v36  ;;  %v10288_v50 = vsel %vm10272_vm2, %v10264_v55, %v10280_v54  ;;  %v16210_v21 = vld [vmem:[#allocation11_spill] sm:$0xff] }
 0x6d4   : > { %v12317_v6 = vadd.f32 %v12118_v47, %v16201_v8  ;;  %v9632_v60 = vpop.f32.mrb[19].mxu1  ;;  %10303 = vadd.xlane.f32.xlu1 %v10295_v19  ;;  %v10269_v33 = vadd.f32 %v12315_v14, %v15749_v49  ;;  %v10296_v38 = vmul.f32 %v10288_v50, %v15768_v39 }
 0x6d5   : > { %v12318_v4 = vadd.f32 %v9632_v60, %v16202_v24  ;;  %v10267_v37 = vadd.f32 %v12316_v20, %v15749_v49  ;;  %v16209_v60 = vld [vmem:[#allocation10_spill] sm:$0xff] }
 0x6d6   : > { %v10270_v53 = vadd.f32 %v12317_v6, %v15749_v49  ;;  %v10285_v3 = vmul.f32 0.2, %v10269_v33  ;;  %vm10277_vm5 = vcmp.ge.f32.partialorder %v10269_v33, 0.0 }
 0x6d7   : > { %v10268_v58 = vadd.f32 %v12318_v4, %v15749_v49  ;;  %10240 = vadd.xlane.f32.xlu0 %v10225_v32  ;;  %v10283_v30 = vmul.f32 0.2, %v10267_v37  ;;  %vm10275_vm9 = vcmp.ge.f32.partialorder %v10267_v37, 0.0 }
 0x6d8   : > { %vm10278_vm3 = vcmp.ge.f32.partialorder %v10270_v53, 0.0  ;;  %v10286_v28 = vmul.f32 0.2, %v10270_v53  ;;  %10309 = vadd.xlane.f32.xlu1 %v10298_v44  ;;  %v10293_v35 = vsel %vm10277_vm5, %v10269_v33, %v10285_v3 }
 0x6d9   : > { %vm10276_vm4 = vcmp.ge.f32.partialorder %v10268_v58, 0.0  ;;  %v10284_v25 = vmul.f32 0.2, %v10268_v58  ;;  %v12121_v61 = vpop.f32.mrb[20].mxu1  ;;  %v10301_v56 = vmul.f32 %v10293_v35, %v15793_v59  ;;  %v10291_v19 = vsel %vm10275_vm9, %v10267_v37, %v10283_v30  ;;  %v16211_v37 = vld [vmem:[#allocation6_spill] sm:$0xff] }
 0x6da   : > { %v12319_v41 = vadd.f32 %v12121_v61, %v16203_v45  ;;  %v9645_v22 = vpop.f32.mrb[21].mxu1  ;;  %v10294_v16 = vsel %vm10278_vm3, %v10270_v53, %v10286_v28  ;;  %v10299_v53 = vmul.f32 %v10291_v19, %v15802_v46 }
 0x6db   : > { %v12320_v23 = vadd.f32 %v9645_v22, %v16204_v18  ;;  %v12122_v17 = vpop.f32.mrb[22].mxu1  ;;  %10307 = vadd.xlane.f32.xlu0 %v10297_v9  ;;  %v10302_v57 = vmul.f32 %v10294_v16, %v15807_v43  ;;  %v10292_v2 = vsel %vm10276_vm4, %v10268_v58, %v10284_v25 }
 0x6dc   : > { %v10342_v48 = vadd.f32 %v12319_v41, %v15749_v49  ;;  %v12321_v34 = vadd.f32 %v12122_v17, %v16205_v29  ;;  %v9648_v51 = vpop.f32.mrb[23].mxu1  ;;  %v10300_v40 = vmul.f32 %v10292_v2, %v15820_v15 }
 0x6dd   : > { %v10340_v42 = vadd.f32 %v12320_v23, %v15749_v49  ;;  %v12322_v27 = vadd.f32 %v9648_v51, %v16206_v0  ;;  %10317 = vadd.xlane.f32.xlu1 %v10302_v57  ;;  %v16212_v23 = vld [vmem:[#allocation13_spill] sm:$0xff]  ;;  %v16214_v0 = vld [vmem:[#allocation14_spill] sm:$0xff] }
 0x6de   : > { %vm10350_vm6 = vcmp.ge.f32.partialorder %v10342_v48, 0.0  ;;  %v10358_v12 = vmul.f32 0.2, %v10342_v48  ;;  %v10343_v11 = vadd.f32 %v12321_v34, %v15749_v49  ;;  %v16213_v34 = vld [vmem:[#allocation12_spill] sm:$0xff] }
 0x6df   : > { %v10341_v62 = vadd.f32 %v12322_v27, %v15749_v49  ;;  %10305 = vadd.xlane.f32.xlu0 %v10296_v38  ;;  %v10356_v7 = vmul.f32 0.2, %v10340_v42  ;;  %vm10348_vm10 = vcmp.ge.f32.partialorder %v10340_v42, 0.0 }
 0x6e0   : > { %v10366_v1 = vsel %vm10350_vm6, %v10342_v48, %v10358_v12  ;;  %v10359_v8 = vmul.f32 0.2, %v10343_v11  ;;  %vm10351_vm12 = vcmp.ge.f32.partialorder %v10343_v11, 0.0 }
 0x6e1   : > { %v12125_v55 = vpop.f32.mrb[24].mxu1  ;;  %10313 = vadd.xlane.f32.xlu1 %v10300_v40  ;;  %v10357_v31 = vmul.f32 0.2, %v10341_v62  ;;  %vm10349_vm11 = vcmp.ge.f32.partialorder %v10341_v62, 0.0  ;;  %v10374_v5 = vmul.f32 %v10366_v1, %v15761_v36  ;;  %v10364_v4 = vsel %vm10348_vm10, %v10340_v42, %v10356_v7 }
 0x6e2   : > { %v12323_v14 = vadd.f32 %v12125_v55, %v16207_v63  ;;  %v9661_v26 = vpop.f32.mrb[25].mxu1  ;;  %v10372_v25 = vmul.f32 %v10364_v4, %v15774_v10  ;;  %v10367_v9 = vsel %vm10351_vm12, %v10343_v11, %v10359_v8 }
 0x6e3   : > { %v12324_v20 = vadd.f32 %v9661_v26, %v16208_v13  ;;  %v12126_v47 = vpop.f32.mrb[26].mxu1  ;;  %10315 = vadd.xlane.f32.xlu0 %v10301_v56  ;;  %v10365_v44 = vsel %vm10349_vm11, %v10341_v62, %v10357_v31  ;;  %v10375_v48 = vmul.f32 %v10367_v9, %v15787_v52  ;;  %v16215_v31 = vld [vmem:[#allocation15_spill] sm:$0xff]  ;;  %v16216_v13 = vld [vmem:[#allocation20_spill] sm:$0xff] }
 0x6e4   : > { %v10346_v6 = vadd.f32 %v12323_v14, %v15749_v49  ;;  %v12325_v54 = vadd.f32 %v12126_v47, %v16209_v60  ;;  %v9664_v24 = vpop.f32.mrb[27].mxu1  ;;  %v10373_v3 = vmul.f32 %v10365_v44, %v15768_v39 }
 0x6e5   : > { %v10344_v32 = vadd.f32 %v12324_v20, %v15749_v49  ;;  %v12326_v33 = vadd.f32 %v9664_v24, %v16210_v21  ;;  %10384 = vadd.xlane.f32.xlu1 %v10374_v5 }
 0x6e6   : > { %v10347_v28 = vadd.f32 %v12325_v54, %v15749_v49  ;;  %v10362_v61 = vmul.f32 0.2, %v10346_v6  ;;  %vm10354_vm14 = vcmp.ge.f32.partialorder %v10346_v6, 0.0  ;;  %v16217_v54 = vld [vmem:[#allocation21_spill] sm:$0xff] }
 0x6e7   : > { %vm10352_vm13 = vcmp.ge.f32.partialorder %v10344_v32, 0.0  ;;  %v10360_v58 = vmul.f32 0.2, %v10344_v32  ;;  %10311 = vadd.xlane.f32.xlu0 %v10299_v53  ;;  %v10345_v18 = vadd.f32 %v12326_v33, %v15749_v49  ;;  %v16218_v33 = vld [vmem:[#allocation22_spill] sm:$0xff] }
 0x6e8   : > { %v10363_v16 = vmul.f32 0.2, %v10347_v28  ;;  %vm10355_vm15 = vcmp.ge.f32.partialorder %v10347_v28, 0.0  ;;  %v10370_v42 = vsel %vm10354_vm14, %v10346_v6, %v10362_v61 }
 0x6e9   : > { %v12129_v50 = vpop.f32.mrb[28].mxu1  ;;  %10380 = vadd.xlane.f32.xlu1 %v10372_v25  ;;  %v10368_v22 = vsel %vm10352_vm13, %v10344_v32, %v10360_v58  ;;  %v10361_v12 = vmul.f32 0.2, %v10345_v18  ;;  %v10378_v62 = vmul.f32 %v10370_v42, %v15793_v59  ;;  %vm10353_vm0 = vcmp.ge.f32.partialorder %v10345_v18, 0.0 }
 0x6ea   : > { %v12327_v45 = vadd.f32 %v12129_v50, %v16211_v37  ;;  %v9677_v41 = vpop.f32.mrb[29].mxu1  ;;  %v10376_v38 = vmul.f32 %v10368_v22, %v15802_v46  ;;  %v10371_v40 = vsel %vm10355_vm15, %v10347_v28, %v10363_v16 }
 0x6eb   : > { %v12328_v17 = vadd.f32 %v9677_v41, %v16212_v23  ;;  %v12130_v57 = vpop.f32.mrb[30].mxu1  ;;  %10382 = vadd.xlane.f32.xlu0 %v10373_v3  ;;  %v10379_v26 = vmul.f32 %v10371_v40, %v15807_v43  ;;  %v10369_v8 = vsel %vm10353_vm0, %v10345_v18, %v10361_v12  ;;  %v16220_v23 = vld [vmem:[#allocation25_spill] sm:$0xff]  ;;  %vm10563_vm0 = vcmask 7168  }
 0x6ec   : > { %v10419_v29 = vadd.f32 %v12327_v45, %v15749_v49  ;;  %v12329_v51 = vadd.f32 %v12130_v57, %v16213_v34  ;;  %v9680_v2 = vpop.f32.mrb[31].mxu1  ;;  %v10377_v28 = vmul.f32 %v10369_v8, %v15820_v15  ;;  %v16219_v45 = vld [vmem:[#allocation24_spill] sm:$0xff] }
 0x6ed   : > { %v12330_v27 = vadd.f32 %v9680_v2, %v16214_v0  ;;  %10386 = vadd.xlane.f32.xlu1 %v10375_v48  ;;  %v10417_v7 = vadd.f32 %v12328_v17, %v15749_v49 }
 0x6ee   : > { %vm10427_vm1 = vcmp.ge.f32.partialorder %v10419_v29, 0.0  ;;  %v10435_v30 = vmul.f32 0.2, %v10419_v29  ;;  %v10420_v19 = vadd.f32 %v12329_v51, %v15749_v49  ;;  %v16221_v51 = vld [vmem:[#allocation63_spill] sm:$0xff] }
 0x6ef   : > { %v10418_v35 = vadd.f32 %v12330_v27, %v15749_v49  ;;  %10388 = vadd.xlane.f32.xlu0 %v10376_v38  ;;  %v10433_v6 = vmul.f32 0.2, %v10417_v7  ;;  %vm10425_vm8 = vcmp.ge.f32.partialorder %v10417_v7, 0.0  ;;  %v16222_v38 = vld [vmem:[#allocation64_spill] sm:$0xff] }
 0x6f0   : > { %v10443_v11 = vsel %vm10427_vm1, %v10419_v29, %v10435_v30  ;;  %v10436_v25 = vmul.f32 0.2, %v10420_v19  ;;  %vm10428_vm4 = vcmp.ge.f32.partialorder %v10420_v19, 0.0 }
 0x6f1   : > { %vm10426_vm7 = vcmp.ge.f32.partialorder %v10418_v35, 0.0  ;;  %v10434_v1 = vmul.f32 0.2, %v10418_v35  ;;  %v12133_v55 = vpop.f32.mrb[32].mxu1  ;;  %10392 = vadd.xlane.f32.xlu1 %v10378_v62  ;;  %v10451_v56 = vmul.f32 %v10443_v11, %v15761_v36  ;;  %v10441_v50 = vsel %vm10425_vm8, %v10417_v7, %v10433_v6 }
 0x6f2   : > { %v12331_v63 = vadd.f32 %v12133_v55, %v16215_v31  ;;  %v9693_v14 = vpop.f32.mrb[33].mxu1  ;;  %v10449_v48 = vmul.f32 %v10441_v50, %v15774_v10  ;;  %v10444_v0 = vsel %vm10428_vm4, %v10420_v19, %v10436_v25  ;;  %vm10567_vm8 = vcmask 23552  }
 0x6f3   : > { %v12332_v20 = vadd.f32 %v9693_v14, %v16216_v13  ;;  %v12134_v47 = vpop.f32.mrb[34].mxu1  ;;  %10461 = vadd.xlane.f32.xlu0 %v10451_v56  ;;  %v10442_v5 = vsel %vm10426_vm7, %v10418_v35, %v10434_v1  ;;  %v10452_v7 = vmul.f32 %v10444_v0, %v15787_v52  ;;  %v16224_v13 = vld [vmem:[#allocation66_spill] sm:$0xff]  ;;  %vm10565_vm7 = vcmask 15360  }
 0x6f4   : > { %v10423_v60 = vadd.f32 %v12331_v63, %v15749_v49  ;;  %v12333_v24 = vadd.f32 %v12134_v47, %v16217_v54  ;;  %v9696_v4 = vpop.f32.mrb[35].mxu1  ;;  %v10450_v32 = vmul.f32 %v10442_v5, %v15768_v39  ;;  %v16223_v63 = vld [vmem:[#allocation65_spill] sm:$0xff]  ;;  %vm10573_vm4 = vcmask 48128  }
 0x6f5   : > { %v10421_v21 = vadd.f32 %v12332_v20, %v15749_v49  ;;  %v12334_v53 = vadd.f32 %v9696_v4, %v16218_v33  ;;  %10394 = vadd.xlane.f32.xlu1 %v10379_v26 }
 0x6f6   : > { %vm10431_vm2 = vcmp.ge.f32.partialorder %v10423_v60, 0.0  ;;  %v10439_v44 = vmul.f32 0.2, %v10423_v60  ;;  %v10424_v61 = vadd.f32 %v12333_v24, %v15749_v49  ;;  %v16225_v24 = vld [vmem:[#allocation67_spill] sm:$0xff] }
 0x6f7   : > { %vm10429_vm3 = vcmp.ge.f32.partialorder %v10421_v21, 0.0  ;;  %v10437_v58 = vmul.f32 0.2, %v10421_v21  ;;  %10459 = vadd.xlane.f32.xlu0 %v10450_v32  ;;  %v10422_v18 = vadd.f32 %v12334_v53, %v15749_v49 }
 0x6f8   : > { %v10447_v9 = vsel %vm10431_vm2, %v10423_v60, %v10439_v44  ;;  %v10440_v29 = vmul.f32 0.2, %v10424_v61  ;;  %vm10432_vm5 = vcmp.ge.f32.partialorder %v10424_v61, 0.0  ;;  %vm10569_vm2 = vcmask 31744  }
 0x6f9   : > { %v12137_v3 = vpop.f32.mrb[36].mxu1  ;;  %10390 = vadd.xlane.f32.xlu1 %v10377_v28  ;;  %v10455_v37 = vmul.f32 %v10447_v9, %v15793_v59  ;;  %v10445_v16 = vsel %vm10429_vm3, %v10421_v21, %v10437_v58  ;;  %v10438_v62 = vmul.f32 0.2, %v10422_v18  ;;  %vm10430_vm10 = vcmp.ge.f32.partialorder %v10422_v18, 0.0  ;;  %v16226_v21 = vld [vmem:[#allocation68_spill] sm:$0xff] }
 0x6fa   : > { %v12335_v41 = vadd.f32 %v12137_v3, %v16219_v45  ;;  %v9709_v22 = vpop.f32.mrb[37].mxu1  ;;  %v10453_v12 = vmul.f32 %v10445_v16, %v15802_v46  ;;  %v10448_v55 = vsel %vm10432_vm5, %v10424_v61, %v10440_v29  ;;  %vm10571_vm3 = vcmask 39936  }
 0x6fb   : > { %v12336_v17 = vadd.f32 %v9709_v22, %v16220_v23  ;;  %v12138_v57 = vpop.f32.mrb[38].mxu1  ;;  %10469 = vadd.xlane.f32.xlu0 %v10455_v37  ;;  %v10456_v5 = vmul.f32 %v10448_v55, %v15807_v43  ;;  %v10446_v8 = vsel %vm10430_vm10, %v10422_v18, %v10438_v62  ;;  %vm10575_vm5 = vcmask 56320  }
 0x6fc   : > { %v10496_v34 = vadd.f32 %v12335_v41, %v15749_v49  ;;  %v12337_v2 = vadd.f32 %v12138_v57, %v16221_v51  ;;  %v9712_v42 = vpop.f32.mrb[39].mxu1  ;;  %v10454_v25 = vmul.f32 %v10446_v8, %v15820_v15 }
 0x6fd   : > { %v10494_v27 = vadd.f32 %v12336_v17, %v15749_v49  ;;  %v12338_v30 = vadd.f32 %v9712_v42, %v16222_v38  ;;  %10457 = vadd.xlane.f32.xlu1 %v10449_v48  ;;  %v10577_v48 = vld [vmem:[#allocation4] sm:$0x1] }
 0x6fe   : > { %vm10504_vm6 = vcmp.ge.f32.partialorder %v10496_v34, 0.0  ;;  %v10512_v35 = vmul.f32 0.2, %v10496_v34  ;;  %v10497_v11 = vadd.f32 %v12337_v2, %v15749_v49 }
 0x6ff   : > { %vm10502_vm9 = vcmp.ge.f32.partialorder %v10494_v27, 0.0  ;;  %v10510_v40 = vmul.f32 0.2, %v10494_v27  ;;  %10465 = vadd.xlane.f32.xlu0 %v10453_v12  ;;  %v10495_v60 = vadd.f32 %v12338_v30, %v15749_v49 }
 0x700   : > { %v10520_v1 = vsel %vm10504_vm6, %v10496_v34, %v10512_v35  ;;  %v10513_v6 = vmul.f32 0.2, %v10497_v11  ;;  %vm10505_vm11 = vcmp.ge.f32.partialorder %v10497_v11, 0.0  ;;  %vm10594_vm6 = vcmask 57344  }
 0x701   : > { %v12141_v56 = vpop.f32.mrb[40].mxu1  ;;  %10463 = vadd.xlane.f32.xlu1 %v10452_v7  ;;  %v10528_v31 = vmul.f32 %v10520_v1, %v15761_v36  ;;  %v10518_v19 = vsel %vm10502_vm9, %v10494_v27, %v10510_v40  ;;  %v10511_v61 = vmul.f32 0.2, %v10495_v60  ;;  %vm10503_vm14 = vcmp.ge.f32.partialorder %v10495_v60, 0.0 }
 0x702   : > { %v12339_v14 = vadd.f32 %v12141_v56, %v16223_v63  ;;  %v9725_v26 = vpop.f32.mrb[41].mxu1  ;;  %v10526_v53 = vmul.f32 %v10518_v19, %v15774_v10  ;;  %v10521_v50 = vsel %vm10505_vm11, %v10497_v11, %v10513_v6 }
 0x703   : > { %v12340_v20 = vadd.f32 %v9725_v26, %v16224_v13  ;;  %v12142_v47 = vpop.f32.mrb[42].mxu1  ;;  %10538 = vadd.xlane.f32.xlu0 %v10528_v31  ;;  %v10529_v41 = vmul.f32 %v10521_v50, %v15787_v52  ;;  %v10519_v22 = vsel %vm10503_vm14, %v10495_v60, %v10511_v61 }
 0x704   : > { %v10500_v54 = vadd.f32 %v12339_v14, %v15749_v49  ;;  %v12341_v4 = vadd.f32 %v12142_v47, %v16225_v24  ;;  %v9728_v32 = vpop.f32.mrb[43].mxu1  ;;  %v10527_v17 = vmul.f32 %v10519_v22, %v15768_v39 }
 0x705   : > { %v10498_v36 = vadd.f32 %v12340_v20, %v15749_v49  ;;  %v12342_v33 = vadd.f32 %v9728_v32, %v16226_v21  ;;  %10471 = vadd.xlane.f32.xlu1 %v10456_v5 }
 0x706   : > { %vm10508_vm12 = vcmp.ge.f32.partialorder %v10500_v54, 0.0  ;;  %v10516_v44 = vmul.f32 0.2, %v10500_v54  ;;  %v10501_v37 = vadd.f32 %v12341_v4, %v15749_v49 }
 0x707   : > { %vm10506_vm13 = vcmp.ge.f32.partialorder %v10498_v36, 0.0  ;;  %v10514_v58 = vmul.f32 0.2, %v10498_v36  ;;  %v10499_v28 = vadd.f32 %v12342_v33, %v15749_v49  ;;  %10534 = vadd.xlane.f32.xlu0 %v10526_v53 }
 0x708   : > { %v10524_v9 = vsel %vm10508_vm12, %v10500_v54, %v10516_v44  ;;  %v10517_v18 = vmul.f32 0.2, %v10501_v37  ;;  %vm10509_vm1 = vcmp.ge.f32.partialorder %v10501_v37, 0.0 }
 0x709   : > { %10467 = vadd.xlane.f32.xlu1 %v10454_v25  ;;  %v10532_v3 = vmul.f32 %v10524_v9, %v15793_v59  ;;  %v10515_v45 = vmul.f32 0.2, %v10499_v28  ;;  %v10522_v10 = vsel %vm10506_vm13, %v10498_v36, %v10514_v58  ;;  %vm10507_vm15 = vcmp.ge.f32.partialorder %v10499_v28, 0.0 }
 0x70a   : > { %v10530_v16 = vmul.f32 %v10522_v10, %v15802_v46  ;;  %v10525_v49 = vsel %vm10509_vm1, %v10501_v37, %v10517_v18 }
 0x70b   : > { %10546 = vadd.xlane.f32.xlu0 %v10532_v3  ;;  %v10523_v23 = vsel %vm10507_vm15, %v10499_v28, %v10515_v45  ;;  %v10533_v57 = vmul.f32 %v10525_v49, %v15807_v43 }
 0x70c   : > { %v10531_v59 = vmul.f32 %v10523_v23, %v15820_v15 }
 0x70d   : > { %10540 = vadd.xlane.f32.xlu1 %v10529_v41 }
 0x70f   : > { %10542 = vadd.xlane.f32.xlu0 %v10530_v16 }
 0x711   : > { %10536 = vadd.xlane.f32.xlu1 %v10527_v17 }
 0x713   : > { %10544 = vadd.xlane.f32.xlu0 %v10531_v59 }
 0x717   : > { %10548 = vadd.xlane.f32.xlu0 %v10533_v57 }
 0x720   : > { %v10000_v52 = vpop.xlane.xlu0 %9999 }
 0x722   : > { %10580 = vperm.xlu1 %12929, %v10577_v48  }
 0x723   : > { %v9998_v29 = vpop.xlane.xlu1 %9997 }
 0x724   : > { %v9996_v34 = vpop.xlane.xlu0 %9995 }
 0x725   : > { %v10011_v46 = vadd.f32 %v9998_v29, %v9996_v34 }
 0x727   : > { %v10012_v51 = vadd.f32 %v10011_v46, %v10000_v52 }
 0x728   : > { %v10002_v2 = vpop.xlane.xlu0 %10001  ;;  %v10008_v42 = vpop.xlane.xlu1 %10007 }
 0x729   : > { %v10013_v0 = vadd.f32 %v10012_v51, %v10002_v2 }
 0x72c   : > { %v10004_v27 = vpop.xlane.xlu1 %10003  ;;  %v10010_v39 = vpop.xlane.xlu0 %10009 }
 0x72d   : > { %v10014_v38 = vadd.f32 %v10013_v0, %v10004_v27 }
 0x730   : > { %v10006_v30 = vpop.xlane.xlu0 %10005  ;;  %v10077_v15 = vpop.xlane.xlu1 %10076 }
 0x731   : > { %v10015_v12 = vadd.f32 %v10014_v38, %v10006_v30 }
 0x733   : > { %v10016_v35 = vadd.f32 %v10015_v12, %v10008_v42 }
 0x734   : > { %v10073_v62 = vpop.xlane.xlu1 %10072  ;;  %v10075_v43 = vpop.xlane.xlu0 %10074 }
 0x735   : > { %v10017_v40 = vadd.f32 %v10016_v35, %v10010_v39  ;;  %v10088_v7 = vadd.f32 %v10075_v43, %v10073_v62 }
 0x737   : > { %v10089_v11 = vadd.f32 %v10088_v7, %v10077_v15  ;;  %v10018_v19 = vrot.slane %v10017_v40, 4 }
 0x738   : > { %v10079_v1 = vpop.xlane.xlu1 %10078  ;;  %v10085_v56 = vpop.xlane.xlu0 %10084 }
 0x739   : > { %v10090_v55 = vadd.f32 %v10089_v11, %v10079_v1  ;;  %v10019_v47 = vadd.f32 %v10018_v19, %v10017_v40 }
 0x73b   : > { %v10020_v54 = vrot.slane %v10019_v47, 2 }
 0x73c   : > { %v10081_v31 = vpop.xlane.xlu1 %10080 }
 0x73d   : > { %v10091_v63 = vadd.f32 %v10090_v55, %v10081_v31  ;;  %v10021_v53 = vadd.f32 %v10020_v54, %v10019_v47 }
 0x73f   : > { %v10022_v50 = vrot.slane %v10021_v53, 1 }
 0x740   : > { %v10087_v14 = vpop.xlane.xlu1 %10086  ;;  %v10154_v26 = vpop.xlane.xlu0 %10153 }
 0x741   : > { %v10023_v41 = vadd.f32 %v10022_v50, %v10021_v53 }
 0x744   : > { %v10083_v13 = vpop.xlane.xlu1 %10082  ;;  %v10152_v20 = vpop.xlane.xlu0 %10151 }
 0x745   : > { %v10092_v5 = vadd.f32 %v10091_v63, %v10083_v13 }
 0x747   : > { %v10093_v8 = vadd.f32 %v10092_v5, %v10085_v56 }
 0x748   : > { %v10150_v6 = vpop.xlane.xlu1 %10149  ;;  %v10162_v60 = vpop.xlane.xlu0 %10161 }
 0x749   : > { %v10094_v24 = vadd.f32 %v10093_v8, %v10087_v14  ;;  %v10165_v4 = vadd.f32 %v10152_v20, %v10150_v6 }
 0x74b   : > { %v10095_v32 = vrot.slane %v10094_v24, 4  ;;  %v10166_v36 = vadd.f32 %v10165_v4, %v10154_v26 }
 0x74c   : > { %v10156_v21 = vpop.xlane.xlu1 %10155  ;;  %v10158_v33 = vpop.xlane.xlu0 %10157 }
 0x74d   : > { %v10096_v44 = vadd.f32 %v10095_v32, %v10094_v24  ;;  %v10167_v58 = vadd.f32 %v10166_v36, %v10156_v21 }
 0x74f   : > { %v10097_v28 = vrot.slane %v10096_v44, 2  ;;  %v10168_v25 = vadd.f32 %v10167_v58, %v10158_v33 }
 0x750   : > { %v10164_v61 = vpop.xlane.xlu1 %10163  ;;  %v10231_v9 = vpop.xlane.xlu0 %10230 }
 0x751   : > { %v10098_v3 = vadd.f32 %v10097_v28, %v10096_v44 }
 0x753   : > { %v10099_v37 = vrot.slane %v10098_v3, 1 }
 0x754   : > { %v10160_v45 = vpop.xlane.xlu1 %10159  ;;  %v10227_v10 = vpop.xlane.xlu0 %10226 }
 0x755   : > { %v10100_v22 = vadd.f32 %v10099_v37, %v10098_v3  ;;  %v10169_v16 = vadd.f32 %v10168_v25, %v10160_v45 }
 0x757   : > { %v10564_v18 = vsel %vm10563_vm0, %v10023_v41, %v10100_v22  ;;  %v10170_v23 = vadd.f32 %v10169_v16, %v10162_v60 }
 0x758   : > { %v10229_v17 = vpop.xlane.xlu1 %10228  ;;  %v10233_v59 = vpop.xlane.xlu0 %10232 }
 0x759   : > { %v10171_v49 = vadd.f32 %v10170_v23, %v10164_v61  ;;  %v10242_v57 = vadd.f32 %v10229_v17, %v10227_v10 }
 0x75b   : > { %v10172_v48 = vrot.slane %v10171_v49, 4  ;;  %v10243_v52 = vadd.f32 %v10242_v57, %v10231_v9 }
 0x75c   : > { %v10237_v29 = vpop.xlane.xlu1 %10236  ;;  %v10239_v34 = vpop.xlane.xlu0 %10238 }
 0x75d   : > { %v10173_v46 = vadd.f32 %v10172_v48, %v10171_v49  ;;  %v10244_v51 = vadd.f32 %v10243_v52, %v10233_v59 }
 0x75f   : > { %v10174_v2 = vrot.slane %v10173_v46, 2 }
 0x760   : > { %v10235_v42 = vpop.xlane.xlu0 %10234 }
 0x761   : > { %v10175_v0 = vadd.f32 %v10174_v2, %v10173_v46  ;;  %v10245_v27 = vadd.f32 %v10244_v51, %v10235_v42  ;;  %v10304_v39 = vpop.xlane.xlu1 %10303 }
 0x763   : > { %v10176_v38 = vrot.slane %v10175_v0, 1  ;;  %v10246_v30 = vadd.f32 %v10245_v27, %v10237_v29 }
 0x764   : > { %v10241_v15 = vpop.xlane.xlu0 %10240 }
 0x765   : > { %v10177_v12 = vadd.f32 %v10176_v38, %v10175_v0  ;;  %v10247_v35 = vadd.f32 %v10246_v30, %v10239_v34  ;;  %v10310_v62 = vpop.xlane.xlu1 %10309 }
 0x767   : > { %v10566_v43 = vsel %vm10565_vm7, %v10564_v18, %v10177_v12  ;;  %v10248_v40 = vadd.f32 %v10247_v35, %v10241_v15 }
 0x768   : > { %v10308_v7 = vpop.xlane.xlu0 %10307 }
 0x769   : > { %v10249_v11 = vrot.slane %v10248_v40, 4 }
 0x76a   : > { %v10318_v1 = vpop.xlane.xlu1 %10317 }
 0x76b   : > { %v10250_v55 = vadd.f32 %v10249_v11, %v10248_v40 }
 0x76c   : > { %v10306_v56 = vpop.xlane.xlu0 %10305 }
 0x76d   : > { %v10251_v31 = vrot.slane %v10250_v55, 2  ;;  %v10319_v36 = vadd.f32 %v10306_v56, %v10304_v39 }
 0x76e   : > { %v10314_v63 = vpop.xlane.xlu1 %10313 }
 0x76f   : > { %v10252_v14 = vadd.f32 %v10251_v31, %v10250_v55  ;;  %v10320_v44 = vadd.f32 %v10319_v36, %v10308_v7 }
 0x770   : > { %v10316_v26 = vpop.xlane.xlu0 %10315 }
 0x771   : > { %v10253_v19 = vrot.slane %v10252_v14, 1  ;;  %v10321_v9 = vadd.f32 %v10320_v44, %v10310_v62 }
 0x772   : > { %v10385_v13 = vpop.xlane.xlu1 %10384 }
 0x773   : > { %v10254_v20 = vadd.f32 %v10253_v19, %v10252_v14 }
 0x774   : > { %v10312_v47 = vpop.xlane.xlu0 %10311 }
 0x775   : > { %v15997_v5 = vsel %vm10567_vm8, %v10566_v43, %v10254_v20  ;;  %v10322_v45 = vadd.f32 %v10321_v9, %v10312_v47 }
 0x776   : > { %v10381_v8 = vpop.xlane.xlu1 %10380 }
 0x777   : > { %v10323_v18 = vadd.f32 %v10322_v45, %v10314_v63 }
 0x778   : > { %v10383_v6 = vpop.xlane.xlu0 %10382 }
 0x779   : > { %v10396_v33 = vadd.f32 %v10383_v6, %v10381_v8  ;;  %v10324_v57 = vadd.f32 %v10323_v18, %v10316_v26 }
 0x77a   : > { %v10387_v60 = vpop.xlane.xlu1 %10386 }
 0x77b   : > { %v10397_v28 = vadd.f32 %v10396_v33, %v10385_v13  ;;  %v10325_v51 = vadd.f32 %v10324_v57, %v10318_v1 }
 0x77c   : > { %v10389_v54 = vpop.xlane.xlu0 %10388 }
 0x77d   : > { %v10398_v3 = vadd.f32 %v10397_v28, %v10387_v60  ;;  %v10326_v27 = vrot.slane %v10325_v51, 4  ;;  %v16227_v28 = vld [vmem:[#allocation5_spill] sm:$0xff] }
 0x77e   : > { %v10393_v24 = vpop.xlane.xlu1 %10392 }
 0x77f   : > { %v10399_v22 = vadd.f32 %v10398_v3, %v10389_v54  ;;  %v10327_v62 = vadd.f32 %v10326_v27, %v10325_v51 }
 0x780   : > { %v10462_v4 = vpop.xlane.xlu0 %10461 }
 0x781   : > { %v10328_v56 = vrot.slane %v10327_v62, 2 }
 0x782   : > { %v10395_v32 = vpop.xlane.xlu1 %10394 }
 0x783   : > { %v10329_v26 = vadd.f32 %v10328_v56, %v10327_v62 }
 0x784   : > { %v10460_v21 = vpop.xlane.xlu0 %10459 }
 0x785   : > { %v10330_v6 = vrot.slane %v10329_v26, 1 }
 0x786   : > { %v10391_v53 = vpop.xlane.xlu1 %10390 }
 0x787   : > { %v10400_v17 = vadd.f32 %v10399_v22, %v10391_v53 }
 0x788   : > { %v10470_v58 = vpop.xlane.xlu0 %10469 }
 0x789   : > { %v10401_v52 = vadd.f32 %v10400_v17, %v10393_v24 }
 0x78a   : > { %v10458_v25 = vpop.xlane.xlu1 %10457 }
 0x78b   : > { %v10473_v61 = vadd.f32 %v10460_v21, %v10458_v25  ;;  %v10402_v42 = vadd.f32 %v10401_v52, %v10395_v32  ;;  %v10331_v32 = vadd.f32 %v10330_v6, %v10329_v26  ;;  %v16228_v25 = vsub.s32 0, %v16227_v28 }
 0x78c   : > { %v10466_v50 = vpop.xlane.xlu0 %10465 }
 0x78d   : > { %v10474_v37 = vadd.f32 %v10473_v61, %v10462_v4  ;;  %v10403_v30 = vrot.slane %v10402_v42, 4 }
 0x78e   : > { %v10464_v10 = vpop.xlane.xlu1 %10463 }
 0x78f   : > { %v10475_v16 = vadd.f32 %v10474_v37, %v10464_v10  ;;  %v10404_v43 = vadd.f32 %v10403_v30, %v10402_v42 }
 0x790   : > { %v10539_v41 = vpop.xlane.xlu0 %10538 }
 0x791   : > { %v10476_v49 = vadd.f32 %v10475_v16, %v10466_v50  ;;  %v10405_v31 = vrot.slane %v10404_v43, 2 }
 0x792   : > { %v10472_v23 = vpop.xlane.xlu1 %10471 }
 0x793   : > { %v10406_v13 = vadd.f32 %v10405_v31, %v10404_v43 }
 0x794   : > { %v10535_v59 = vpop.xlane.xlu0 %10534 }
 0x795   : > { %v10407_v60 = vrot.slane %v10406_v13, 1 }
 0x796   : > { %v10468_v48 = vpop.xlane.xlu1 %10467 }
 0x797   : > { %v10477_v29 = vadd.f32 %v10476_v49, %v10468_v48  ;;  %v10408_v36 = vadd.f32 %v10407_v60, %v10406_v13 }
 0x798   : > { %v10547_v34 = vpop.xlane.xlu0 %10546 }
 0x799   : > { %v10478_v46 = vadd.f32 %v10477_v29, %v10470_v58  ;;  %v10570_v58 = vsel %vm10569_vm2, %v15997_v5, %v10331_v32 }
 0x79a   : > { %v10541_v2 = vpop.xlane.xlu1 %10540  ;;  %v10572_v50 = vsel %vm10571_vm3, %v10570_v58, %v10408_v36 }
 0x79b   : > { %v10479_v0 = vadd.f32 %v10478_v46, %v10472_v23 }
 0x79c   : > { %v10543_v39 = vpop.xlane.xlu0 %10542 }
 0x79d   : > { %v10480_v12 = vrot.slane %v10479_v0, 4 }
 0x79e   : > { %v10537_v38 = vpop.xlane.xlu1 %10536 }
 0x79f   : > { %v10550_v15 = vadd.f32 %v10537_v38, %v10535_v59  ;;  %v10481_v7 = vadd.f32 %v10480_v12, %v10479_v0 }
 0x7a0   : > { %v10545_v11 = vpop.xlane.xlu0 %10544 }
 0x7a1   : > { %v10551_v35 = vadd.f32 %v10550_v15, %v10539_v41  ;;  %v10482_v1 = vrot.slane %v10481_v7, 2 }
 0x7a2   : > { %v10581_v33 = vpop.permute.xlu1 %10580 }
 0x7a3   : > { %v10552_v40 = vadd.f32 %v10551_v35, %v10541_v2  ;;  %v10483_v47 = vadd.f32 %v10482_v1, %v10481_v7  ;;  %v10586_v61 = vrot.slane %v10581_v33, %v16228_v25 }
 0x7a4   : > { %v10549_v19 = vpop.xlane.xlu0 %10548 }
 0x7a5   : > { %v10553_v55 = vadd.f32 %v10552_v40, %v10543_v39  ;;  %v10484_v24 = vrot.slane %v10483_v47, 1 }
 0x7a7   : > { %v10554_v63 = vadd.f32 %v10553_v55, %v10545_v11  ;;  %v10485_v53 = vadd.f32 %v10484_v24, %v10483_v47 }
 0x7a9   : > { %v10555_v14 = vadd.f32 %v10554_v63, %v10547_v34  ;;  %v10574_v3 = vsel %vm10573_vm4, %v10572_v50, %v10485_v53 }
 0x7ab   : > { %v10556_v20 = vadd.f32 %v10555_v14, %v10549_v19 }
 0x7ad   : > { %v10557_v8 = vrot.slane %v10556_v20, 4 }
 0x7af   : > { %v10558_v54 = vadd.f32 %v10557_v8, %v10556_v20 }
 0x7b1   : > { %v10559_v4 = vrot.slane %v10558_v54, 2 }
 0x7b3   : > { %v10560_v21 = vadd.f32 %v10559_v4, %v10558_v54 }
 0x7b5   : > { %v10561_v44 = vrot.slane %v10560_v21, 1 }
 0x7b7   : > { %v10562_v9 = vadd.f32 %v10561_v44, %v10560_v21 }
 0x7b9   : > { %v10576_v37 = vsel %vm10575_vm5, %v10574_v3, %v10562_v9 }
 0x7ba   : > { %v10587_v45 = vadd.f32 %v10586_v61, %v10576_v37 }
 0x7bc   : > { %v10588_v10 = vsub.f32 0.0, %v10587_v45 }
 0x7be   : > { %v10589_v41 = vmul.f32 1.442695, %v10588_v10 }
 0x7c0   : > { %13255 = vpow2.f32 %v10589_v41 }
 0x7ca   : > { %v13256_v22 = vpop.eup %13255 }
 0x7cb   : > { %v10591_v16 = vadd.f32 1.0, %v13256_v22 }
 0x7cd   : > { %13257 = vrcp.f32 %v10591_v16 }
 0x7d7   : > { %v13258_v5 = vpop.eup %13257 }
 0x7d8   : > { %10595 = vst.msk [vmem:[%s308_s10] sm:$0x1] %vm10594_vm6, %v13258_v5 }
 0x7d9 PF: > { %s20_s29 = sadd.s32 1, %s13308_s29  }
 0x7da   : > { %p17_p5 = scmp.ge.s32.totalorder %s20_s29, 4  }
 0x7dc   :  { %19 = sbr.rel (!%p17_p5) target bundleno = 3 (0x3), region = 82 }

</bundles_post_ra>
